<compile_context>
chip_gen: v7x
topology: tpu7x:2x2x1
jax: 0.10.0
libtpu: 0.0.40
codegen_flags: <defaults>
</compile_context>

<pallas_src>
import functools
import math

import jax
import jax.numpy as jnp
from jax import lax
from jax.experimental import pallas as pl
from jax.experimental.pallas import tpu as pltpu

# Set to jnp.bfloat16 on v6e/v7x for ~2x MXU throughput (accumulation stays f32,
# bias/BN epilogue stays f32). Kept f32 here so the built-in check is tight.
MATMUL_DTYPE = jnp.float32

_TM = 256            # rows (B*OH*OW) per grid step
_LANE = 128          # TPU lane width: K and N padded to multiples of this
_LEAKY_SLOPE = 0.2
_BN_EPS = 1e-5


def _round_up(x, m):
    return (x + m - 1) // m * m


# ---------------------------------------------------------------------------
# Fused GEMM kernel:  out[g] = act((x[g] @ w[g]) * scale + shift)
# ---------------------------------------------------------------------------
def _gemm_affine_act_kernel(x_ref, w_ref, s_ref, t_ref, o_ref, *, act):
    acc = jnp.dot(x_ref[0], w_ref[0], preferred_element_type=jnp.float32)
    acc = acc * s_ref[...] + t_ref[...]
    if act == "leaky_relu":
        acc = jnp.where(acc > 0, acc, _LEAKY_SLOPE * acc)
    elif act == "tanh":
        acc = jnp.tanh(acc)
    o_ref[0] = acc.astype(o_ref.dtype)


def fused_gemm(xs, ws, scale, shift, act):
    """xs: (G, M, K), ws: (G, K, N), scale/shift: (N,)  ->  (G, M, N) float32.

    G batches independent GEMMs (e.g. the 4 parity sub-grids of a stride-2
    transposed conv) into one pallas_call. M is tiled over the grid; K/N are
    zero-padded to lane multiples (padded output columns are sliced off).
    """
    G, M, K = xs.shape
    _, _, N = ws.shape

    Kp = _round_up(K, _LANE)
    Np = _round_up(N, _LANE)
    bm = M if M <= _TM else _TM
    Mp = M if M <= _TM else _round_up(M, _TM)

    if (Mp, Kp) != (M, K):
        xs = jnp.pad(xs, ((0, 0), (0, Mp - M), (0, Kp - K)))
    if (Kp, Np) != (K, N):
        ws = jnp.pad(ws, ((0, 0), (0, Kp - K), (0, Np - N)))
    if Np != N:
        scale = jnp.pad(scale, (0, Np - N), constant_values=1.0)
        shift = jnp.pad(shift, (0, Np - N))

    xs = xs.astype(MATMUL_DTYPE)
    ws = ws.astype(MATMUL_DTYPE)
    scale2 = scale.reshape(1, Np).astype(jnp.float32)
    shift2 = shift.reshape(1, Np).astype(jnp.float32)

    out = pl.pallas_call(
        functools.partial(_gemm_affine_act_kernel, act=act),
        out_shape=jax.ShapeDtypeStruct((G, Mp, Np), jnp.float32),
        grid=(G, Mp // bm),
        in_specs=[
            pl.BlockSpec((1, bm, Kp), lambda g, i: (g, i, 0)),
            pl.BlockSpec((1, Kp, Np), lambda g, i: (g, 0, 0)),   # resident per g
            pl.BlockSpec((1, Np), lambda g, i: (0, 0)),
            pl.BlockSpec((1, Np), lambda g, i: (0, 0)),
        ],
        out_specs=pl.BlockSpec((1, bm, Np), lambda g, i: (g, i, 0)),
        compiler_params=pltpu.CompilerParams(
            dimension_semantics=("parallel", "parallel")),
    )(xs, ws, scale2, shift2)
    return out[:, :M, :N]


# ---------------------------------------------------------------------------
# Layer wrappers (layout plumbing in JAX, compute in the fused Pallas GEMM)
# ---------------------------------------------------------------------------
def _im2col(x, k, stride, pad):
    """x: (B, H, W, C) NHWC -> (B*OH*OW, k*k*C); column order (kh, kw, c)."""
    B, H, W, C = x.shape
    if pad:
        x = jnp.pad(x, ((0, 0), (pad, pad), (pad, pad), (0, 0)))
    Hp, Wp = H + 2 * pad, W + 2 * pad
    OH = (Hp - k) // stride + 1
    OW = (Wp - k) // stride + 1
    cols = [x[:, kh:kh + stride * (OH - 1) + 1:stride,
              kw:kw + stride * (OW - 1) + 1:stride, :]
            for kh in range(k) for kw in range(k)]
    patches = jnp.concatenate(cols, axis=-1)
    return patches.reshape(B * OH * OW, k * k * C), (B, OH, OW)


def conv_block(x, blk):
    """Fused Conv2d(k=4) + bias + BN + activation. x: NHWC."""
    w = blk["w"]                                   # (Cout, Cin, k, k) torch layout
    cout, cin, k, _ = w.shape
    patches, (B, OH, OW) = _im2col(x, k, blk["stride"], blk["pad"])
    w_flat = jnp.transpose(w, (2, 3, 1, 0)).reshape(k * k * cin, cout)
    out = fused_gemm(patches[None], w_flat[None],
                     blk["scale"], blk["shift"], blk["act"])[0]
    return out.reshape(B, OH, OW, cout)


def deconv_first_block(z, blk):
    """ConvTranspose2d(dim->C, k=4, s=1, p=0) on a 1x1 input + BN + LeakyReLU."""
    w = blk["w"]                                   # (Cin, Cout, 4, 4) torch layout
    cin, cout, k, _ = w.shape
    w_flat = jnp.transpose(w, (0, 2, 3, 1)).reshape(cin, k * k * cout)
    scale = jnp.tile(blk["scale"], k * k)
    shift = jnp.tile(blk["shift"], k * k)
    out = fused_gemm(z[None], w_flat[None], scale, shift, blk["act"])[0]
    return out.reshape(z.shape[0], k, k, cout)     # (B, 4, 4, Cout)


def deconv_up_block(x, blk):
    """ConvTranspose2d(k=4, s=2, p=1) + bias + (BN) + act via the 4-parity
    decomposition — one batched fused GEMM (G=4), no wasted FLOPs."""
    w = blk["w"]                                   # (Cin, Cout, 4, 4)
    cin, cout, k, _ = w.shape
    B, IH, IW, _ = x.shape
    xp = jnp.pad(x, ((0, 0), (1, 1), (1, 1), (0, 0)))
    wk = jnp.transpose(w, (2, 3, 0, 1))            # (kh, kw, Cin, Cout)

    xs, ws = [], []
    for ph in (0, 1):
        for pw in (0, 1):
            cols = [xp[:, ph + dh:ph + dh + IH, pw + dw:pw + dw + IW, :]
                    for dh in (0, 1) for dw in (0, 1)]
            xs.append(jnp.concatenate(cols, axis=-1).reshape(B * IH * IW, 4 * cin))
            taps = [wk[3 - ph - 2 * dh, 3 - pw - 2 * dw]
                    for dh in (0, 1) for dw in (0, 1)]
            ws.append(jnp.concatenate(taps, axis=0))       # (4*Cin, Cout)
    xs = jnp.stack(xs, axis=0)                     # (4, B*IH*IW, 4*Cin)
    ws = jnp.stack(ws, axis=0)                     # (4, 4*Cin, Cout)

    out = fused_gemm(xs, ws, blk["scale"], blk["shift"], blk["act"])
    out = out.reshape(2, 2, B, IH, IW, cout)
    out = jnp.transpose(out, (2, 3, 0, 4, 1, 5)).reshape(B, 2 * IH, 2 * IW, cout)
    return out


def image_decoder_forward(params, x_nchw):
    """Full image_decoder_128 forward (NCHW in, NCHW out)."""
    x = jnp.transpose(x_nchw, (0, 2, 3, 1))        # NHWC: channels on lanes
    for blk in params["enc"]:
        x = conv_block(x, blk)
    B = x.shape[0]
    z = x.reshape(B, -1)                           # == out.view(B, -1, 1, 1)
    x = deconv_first_block(z, params["dec_first"])
    for blk in params["dec_mid"]:
        x = deconv_up_block(x, blk)
    x = deconv_up_block(x, params["dec_last"])     # final ConvT + Tanh
    return jnp.transpose(x, (0, 3, 1, 2))


# ---------------------------------------------------------------------------
# Parameters (mirrors conv()/dconv() architecture generation)
# ---------------------------------------------------------------------------
# TODO(synk): training-mode BatchNorm (batch statistics) is not implemented;
#             BN runs in inference mode, folded into the per-channel affine.
def _fold_bn(bias, bn):
    if bn is None:
        return jnp.ones_like(bias), bias
    gamma, beta, mean, var = bn
    scale = gamma / jnp.sqrt(var + _BN_EPS)
    shift = beta + (bias - mean) * scale
    return scale, shift


def init_image_decoder_params(key, nc, size, dim, image_nc=3, image_size=128):
    nf = 64
    n_e = int(round(math.log2(size))) - 1
    n_d = int(round(math.log2(image_size))) - 1
    state = {"key": key}

    def nxt():
        state["key"], sub = jax.random.split(state["key"])
        return sub

    def conv_w(cout, cin, k):
        bound = 1.0 / math.sqrt(cin * k * k)
        w = jax.random.uniform(nxt(), (cout, cin, k, k), jnp.float32, -bound, bound)
        b = jax.random.uniform(nxt(), (cout,), jnp.float32, -bound, bound)
        return w, b

    def convT_w(cin, cout, k):
        bound = 1.0 / math.sqrt(cin * k * k)
        w = jax.random.uniform(nxt(), (cin, cout, k, k), jnp.float32, -bound, bound)
        b = jax.random.uniform(nxt(), (cout,), jnp.float32, -bound, bound)
        return w, b

    def bn(c):
        gamma = jax.random.uniform(nxt(), (c,), jnp.float32, 0.8, 1.2)
        beta = 0.1 * jax.random.normal(nxt(), (c,), jnp.float32)
        mean = 0.1 * jax.random.normal(nxt(), (c,), jnp.float32)
        var = jax.random.uniform(nxt(), (c,), jnp.float32, 0.5, 1.5)
        return (gamma, beta, mean, var)

    # encoder: conv(nc, size, dim)
    enc_ch = [(nc, nf)]
    for i in range(max(0, n_e - 2)):
        enc_ch.append((min(2 ** i, 8) * nf, min(2 ** (i + 1), 8) * nf))
    enc = []
    for cin, cout in enc_ch:
        w, b = conv_w(cout, cin, 4)
        bnp = bn(cout)
        s, t = _fold_bn(b, bnp)
        enc.append(dict(w=w, b=b, bn=bnp, scale=s, shift=t,
                        stride=2, pad=1, act="leaky_relu"))
    cin_last = min(2 ** (n_e - 2), 8) * nf
    w, b = conv_w(dim, cin_last, 4)
    bnp = bn(dim)
    s, t = _fold_bn(b, bnp)
    enc.append(dict(w=w, b=b, bn=bnp, scale=s, shift=t,
                    stride=1, pad=0, act="none"))

    # decoder: dconv(image_nc, image_size, dim) + Tanh
    cout_first = nf * min(2 ** (n_d - 2), 8)
    w, b = convT_w(dim, cout_first, 4)
    bnp = bn(cout_first)
    s, t = _fold_bn(b, bnp)
    dec_first = dict(w=w, b=b, bn=bnp, scale=s, shift=t, act="leaky_relu")

    dec_mid = []
    for i in range(n_d - 2 - 1, -1, -1):
        cin_i, cout_i = nf * min(2 ** (i + 1), 8), nf * min(2 ** i, 8)
        w, b = convT_w(cin_i, cout_i, 4)
        bnp = bn(cout_i)
        s, t = _fold_bn(b, bnp)
        dec_mid.append(dict(w=w, b=b, bn=bnp, scale=s, shift=t, act="leaky_relu"))

    w, b = convT_w(nf, image_nc, 4)
    s, t = _fold_bn(b, None)
    dec_last = dict(w=w, b=b, bn=None, scale=s, shift=t, act="tanh")

    return dict(enc=enc, dec_first=dec_first, dec_mid=dec_mid, dec_last=dec_last)


# ---------------------------------------------------------------------------
# Pure-JAX reference (lax convs, eval-mode BN) for the correctness check
# ---------------------------------------------------------------------------
def image_decoder_reference(params, x):
    HP = lax.Precision.HIGHEST

    def leaky(v):
        return jnp.where(v > 0, v, _LEAKY_SLOPE * v)

    def bn_eval(v, bnp):
        gamma, beta, mean, var = bnp
        r = lambda a: a.reshape(1, -1, 1, 1)
        return (v - r(mean)) / jnp.sqrt(r(var) + _BN_EPS) * r(gamma) + r(beta)

    def conv(v, w, b, stride, pad):
        out = lax.conv_general_dilated(
            v, w, (stride, stride), [(pad, pad), (pad, pad)],
            dimension_numbers=("NCHW", "OIHW", "NCHW"), precision=HP)
        return out + b.reshape(1, -1, 1, 1)

    def convT(v, w, b, stride, pad):
        k = w.shape[2]
        wf = jnp.transpose(jnp.flip(w, axis=(2, 3)), (1, 0, 2, 3))
        out = lax.conv_general_dilated(
            v, wf, (1, 1), [(k - 1 - pad, k - 1 - pad)] * 2,
            lhs_dilation=(stride, stride),
            dimension_numbers=("NCHW", "OIHW", "NCHW"), precision=HP)
        return out + b.reshape(1, -1, 1, 1)

    out = x
    for blk in params["enc"]:
        out = bn_eval(conv(out, blk["w"], blk["b"], blk["stride"], blk["pad"]),
                      blk["bn"])
        if blk["act"] == "leaky_relu":
            out = leaky(out)
    out = out.reshape(out.shape[0], -1, 1, 1)

    blk = params["dec_first"]
    out = leaky(bn_eval(convT(out, blk["w"], blk["b"], 1, 0), blk["bn"]))
    for blk in params["dec_mid"]:
        out = leaky(bn_eval(convT(out, blk["w"], blk["b"], 2, 1), blk["bn"]))
    blk = params["dec_last"]
    return jnp.tanh(convT(out, blk["w"], blk["b"], 2, 1))


if __name__ == "__main__":
    # Small config consistent with the module: x is (B, nc, size, size);
    # output image is (B, image_nc, image_size, image_size).
    nc, size, dim = 4, 16, 32
    image_nc, image_size = 3, 32      # use image_size=128 for the full model
    batch = 2

    key = jax.random.PRNGKey(0)
    key, kx, kp = jax.random.split(key, 3)
    x = jax.random.normal(kx, (batch, nc, size, size), jnp.float32)
    params = init_image_decoder_params(kp, nc, size, dim, image_nc, image_size)

    fwd = jax.jit(lambda v: image_decoder_forward(params, v))
    out = jax.block_until_ready(fwd(x))

    ref = jax.block_until_ready(image_decoder_reference(params, x))
    assert out.shape == (batch, image_nc, image_size, image_size), out.shape
    assert bool(jnp.isfinite(out).all())
    assert bool(jnp.allclose(out, ref, rtol=3e-2, atol=3e-2)), \
        float(jnp.max(jnp.abs(out - ref)))

    print("KERNEL_OK")
</pallas_src>

<mosaic_0001>
module attributes {stable_mosaic.version = 11 : i64} {
  func.func @_gemm_affine_act_kernel(%arg0: i32, %arg1: i32, %arg2: memref<1x128x128xf32, #tpu.memory_space<vmem>>, %arg3: memref<1x128x128xf32, #tpu.memory_space<vmem>>, %arg4: memref<1x128xf32, #tpu.memory_space<vmem>>, %arg5: memref<1x128xf32, #tpu.memory_space<vmem>>, %arg6: memref<1x128x128xf32, #tpu.memory_space<vmem>>) attributes {dimension_semantics = [#tpu.dimension_semantics<parallel>, #tpu.dimension_semantics<parallel>], iteration_bounds = array<i64: 1, 1>, scalar_prefetch = 0 : i64, scratch_operands = 0 : i64, tpu.core_type = #tpu.core_type<tc>, window_params = [{transform_indices = @transform_0, window_bounds = array<i64: 1, 128, 128>}, {transform_indices = @transform_1, window_bounds = array<i64: 1, 128, 128>}, {pipeline_mode = #tpu.pipeline_mode<synchronous>, transform_indices = @transform_2, window_bounds = array<i64: 1, 128>}, {pipeline_mode = #tpu.pipeline_mode<synchronous>, transform_indices = @transform_3, window_bounds = array<i64: 1, 128>}, {transform_indices = @transform_4, window_bounds = array<i64: 1, 128, 128>}]} {
    %c0 = arith.constant 0 : index
    %c0_0 = arith.constant 0 : index
    %c0_1 = arith.constant 0 : index
    %0 = vector.load %arg2[%c0, %c0_0, %c0_1] : memref<1x128x128xf32, #tpu.memory_space<vmem>>, vector<1x128x128xf32>
    %1 = vector.shape_cast %0 : vector<1x128x128xf32> to vector<128x128xf32>
    %c0_2 = arith.constant 0 : index
    %c0_3 = arith.constant 0 : index
    %c0_4 = arith.constant 0 : index
    %2 = vector.load %arg3[%c0_2, %c0_3, %c0_4] : memref<1x128x128xf32, #tpu.memory_space<vmem>>, vector<1x128x128xf32>
    %3 = vector.shape_cast %2 : vector<1x128x128xf32> to vector<128x128xf32>
    %cst = arith.constant dense<0.000000e+00> : vector<128x128xf32>
    %4 = tpu.matmul %1, %3, %cst {dimension_numbers = #tpu.dot_dimension_numbers<[1], [0], [0], [1], [0, 0, 1, 1], [], []>} : vector<128x128xf32>, vector<128x128xf32>, vector<128x128xf32> -> vector<128x128xf32>
    %c0_5 = arith.constant 0 : index
    %c0_6 = arith.constant 0 : index
    %5 = vector.load %arg4[%c0_5, %c0_6] : memref<1x128xf32, #tpu.memory_space<vmem>>, vector<1x128xf32>
    %6 = vector.broadcast %5 : vector<1x128xf32> to vector<128x128xf32>
    %7 = arith.mulf %4, %6 : vector<128x128xf32>
    %c0_7 = arith.constant 0 : index
    %c0_8 = arith.constant 0 : index
    %8 = vector.load %arg5[%c0_7, %c0_8] : memref<1x128xf32, #tpu.memory_space<vmem>>, vector<1x128xf32>
    %9 = vector.broadcast %8 : vector<1x128xf32> to vector<128x128xf32>
    %10 = arith.addf %7, %9 : vector<128x128xf32>
    %cst_9 = arith.constant 0.000000e+00 : f32
    %11 = vector.broadcast %cst_9 : f32 to vector<128x128xf32>
    %12 = arith.cmpf ogt, %10, %11 : vector<128x128xf32>
    %cst_10 = arith.constant 2.000000e-01 : f32
    %13 = vector.broadcast %cst_10 : f32 to vector<128x128xf32>
    %14 = arith.mulf %13, %10 : vector<128x128xf32>
    %15 = arith.select %12, %10, %14 : vector<128x128xi1>, vector<128x128xf32>
    %c0_11 = arith.constant 0 : index
    %c0_12 = arith.constant 0 : index
    %c0_13 = arith.constant 0 : index
    %16 = vector.load %arg6[%c0_11, %c0_12, %c0_13] : memref<1x128x128xf32, #tpu.memory_space<vmem>>, vector<1x128x128xf32>
    %17 = vector.shape_cast %16 : vector<1x128x128xf32> to vector<128x128xf32>
    %18 = vector.shape_cast %15 : vector<128x128xf32> to vector<1x128x128xf32>
    tpu.vector_store %arg6[%c0_11, %c0_12, %c0_13], %18 {strides = array<i32>} : memref<1x128x128xf32, #tpu.memory_space<vmem>>, vector<1x128x128xf32>,
    return
  }
  func.func @transform_0(%arg0: i32, %arg1: i32) -> (i32, i32, i32) {
    %c0_i32 = arith.constant 0 : i32
    %c0_i32_0 = arith.constant 0 : i32
    return %arg0, %arg1, %c0_i32 : i32, i32, i32
  }
  func.func @transform_1(%arg0: i32, %arg1: i32) -> (i32, i32, i32) {
    %c0_i32 = arith.constant 0 : i32
    %c0_i32_0 = arith.constant 0 : i32
    %c0_i32_1 = arith.constant 0 : i32
    return %arg0, %c0_i32, %c0_i32_0 : i32, i32, i32
  }
  func.func @transform_2(%arg0: i32, %arg1: i32) -> (i32, i32) {
    %c0_i32 = arith.constant 0 : i32
    %c0_i32_0 = arith.constant 0 : i32
    %c0_i32_1 = arith.constant 0 : i32
    return %c0_i32, %c0_i32_0 : i32, i32
  }
  func.func @transform_3(%arg0: i32, %arg1: i32) -> (i32, i32) {
    %c0_i32 = arith.constant 0 : i32
    %c0_i32_0 = arith.constant 0 : i32
    %c0_i32_1 = arith.constant 0 : i32
    return %c0_i32, %c0_i32_0 : i32, i32
  }
  func.func @transform_4(%arg0: i32, %arg1: i32) -> (i32, i32, i32) {
    %c0_i32 = arith.constant 0 : i32
    %c0_i32_0 = arith.constant 0 : i32
    return %arg0, %arg1, %c0_i32 : i32, i32, i32
  }
}

module attributes {stable_mosaic.version = 11 : i64} {
  func.func @_gemm_affine_act_kernel(%arg0: i32, %arg1: i32, %arg2: memref<1x32x1024xf32, #tpu.memory_space<vmem>>, %arg3: memref<1x1024x128xf32, #tpu.memory_space<vmem>>, %arg4: memref<1x128xf32, #tpu.memory_space<vmem>>, %arg5: memref<1x128xf32, #tpu.memory_space<vmem>>, %arg6: memref<1x32x128xf32, #tpu.memory_space<vmem>>) attributes {dimension_semantics = [#tpu.dimension_semantics<parallel>, #tpu.dimension_semantics<parallel>], iteration_bounds = array<i64: 1, 1>, scalar_prefetch = 0 : i64, scratch_operands = 0 : i64, tpu.core_type = #tpu.core_type<tc>, window_params = [{transform_indices = @transform_0, window_bounds = array<i64: 1, 32, 1024>}, {transform_indices = @transform_1, window_bounds = array<i64: 1, 1024, 128>}, {pipeline_mode = #tpu.pipeline_mode<synchronous>, transform_indices = @transform_2, window_bounds = array<i64: 1, 128>}, {pipeline_mode = #tpu.pipeline_mode<synchronous>, transform_indices = @transform_3, window_bounds = array<i64: 1, 128>}, {transform_indices = @transform_4, window_bounds = array<i64: 1, 32, 128>}]} {
    %c0 = arith.constant 0 : index
    %c0_0 = arith.constant 0 : index
    %c0_1 = arith.constant 0 : index
    %0 = vector.load %arg2[%c0, %c0_0, %c0_1] : memref<1x32x1024xf32, #tpu.memory_space<vmem>>, vector<1x32x1024xf32>
    %1 = vector.shape_cast %0 : vector<1x32x1024xf32> to vector<32x1024xf32>
    %c0_2 = arith.constant 0 : index
    %c0_3 = arith.constant 0 : index
    %c0_4 = arith.constant 0 : index
    %2 = vector.load %arg3[%c0_2, %c0_3, %c0_4] : memref<1x1024x128xf32, #tpu.memory_space<vmem>>, vector<1x1024x128xf32>
    %3 = vector.shape_cast %2 : vector<1x1024x128xf32> to vector<1024x128xf32>
    %cst = arith.constant dense<0.000000e+00> : vector<32x128xf32>
    %4 = tpu.matmul %1, %3, %cst {dimension_numbers = #tpu.dot_dimension_numbers<[1], [0], [0], [1], [0, 0, 1, 1], [], []>} : vector<32x1024xf32>, vector<1024x128xf32>, vector<32x128xf32> -> vector<32x128xf32>
    %c0_5 = arith.constant 0 : index
    %c0_6 = arith.constant 0 : index
    %5 = vector.load %arg4[%c0_5, %c0_6] : memref<1x128xf32, #tpu.memory_space<vmem>>, vector<1x128xf32>
    %6 = vector.broadcast %5 : vector<1x128xf32> to vector<32x128xf32>
    %7 = arith.mulf %4, %6 : vector<32x128xf32>
    %c0_7 = arith.constant 0 : index
    %c0_8 = arith.constant 0 : index
    %8 = vector.load %arg5[%c0_7, %c0_8] : memref<1x128xf32, #tpu.memory_space<vmem>>, vector<1x128xf32>
    %9 = vector.broadcast %8 : vector<1x128xf32> to vector<32x128xf32>
    %10 = arith.addf %7, %9 : vector<32x128xf32>
    %cst_9 = arith.constant 0.000000e+00 : f32
    %11 = vector.broadcast %cst_9 : f32 to vector<32x128xf32>
    %12 = arith.cmpf ogt, %10, %11 : vector<32x128xf32>
    %cst_10 = arith.constant 2.000000e-01 : f32
    %13 = vector.broadcast %cst_10 : f32 to vector<32x128xf32>
    %14 = arith.mulf %13, %10 : vector<32x128xf32>
    %15 = arith.select %12, %10, %14 : vector<32x128xi1>, vector<32x128xf32>
    %c0_11 = arith.constant 0 : index
    %c0_12 = arith.constant 0 : index
    %c0_13 = arith.constant 0 : index
    %16 = vector.load %arg6[%c0_11, %c0_12, %c0_13] : memref<1x32x128xf32, #tpu.memory_space<vmem>>, vector<1x32x128xf32>
    %17 = vector.shape_cast %16 : vector<1x32x128xf32> to vector<32x128xf32>
    %18 = vector.shape_cast %15 : vector<32x128xf32> to vector<1x32x128xf32>
    tpu.vector_store %arg6[%c0_11, %c0_12, %c0_13], %18 {strides = array<i32>} : memref<1x32x128xf32, #tpu.memory_space<vmem>>, vector<1x32x128xf32>,
    return
  }
  func.func @transform_0(%arg0: i32, %arg1: i32) -> (i32, i32, i32) {
    %c0_i32 = arith.constant 0 : i32
    %c0_i32_0 = arith.constant 0 : i32
    return %arg0, %arg1, %c0_i32 : i32, i32, i32
  }
  func.func @transform_1(%arg0: i32, %arg1: i32) -> (i32, i32, i32) {
    %c0_i32 = arith.constant 0 : i32
    %c0_i32_0 = arith.constant 0 : i32
    %c0_i32_1 = arith.constant 0 : i32
    return %arg0, %c0_i32, %c0_i32_0 : i32, i32, i32
  }
  func.func @transform_2(%arg0: i32, %arg1: i32) -> (i32, i32) {
    %c0_i32 = arith.constant 0 : i32
    %c0_i32_0 = arith.constant 0 : i32
    %c0_i32_1 = arith.constant 0 : i32
    return %c0_i32, %c0_i32_0 : i32, i32
  }
  func.func @transform_3(%arg0: i32, %arg1: i32) -> (i32, i32) {
    %c0_i32 = arith.constant 0 : i32
    %c0_i32_0 = arith.constant 0 : i32
    %c0_i32_1 = arith.constant 0 : i32
    return %c0_i32, %c0_i32_0 : i32, i32
  }
  func.func @transform_4(%arg0: i32, %arg1: i32) -> (i32, i32, i32) {
    %c0_i32 = arith.constant 0 : i32
    %c0_i32_0 = arith.constant 0 : i32
    return %arg0, %arg1, %c0_i32 : i32, i32, i32
  }
}

module attributes {stable_mosaic.version = 11 : i64} {
  func.func @_gemm_affine_act_kernel(%arg0: i32, %arg1: i32, %arg2: memref<1x2x128xf32, #tpu.memory_space<vmem>>, %arg3: memref<1x128x4096xf32, #tpu.memory_space<vmem>>, %arg4: memref<1x4096xf32, #tpu.memory_space<vmem>>, %arg5: memref<1x4096xf32, #tpu.memory_space<vmem>>, %arg6: memref<1x2x4096xf32, #tpu.memory_space<vmem>>) attributes {dimension_semantics = [#tpu.dimension_semantics<parallel>, #tpu.dimension_semantics<parallel>], iteration_bounds = array<i64: 1, 1>, scalar_prefetch = 0 : i64, scratch_operands = 0 : i64, tpu.core_type = #tpu.core_type<tc>, window_params = [{transform_indices = @transform_0, window_bounds = array<i64: 1, 2, 128>}, {transform_indices = @transform_1, window_bounds = array<i64: 1, 128, 4096>}, {pipeline_mode = #tpu.pipeline_mode<synchronous>, transform_indices = @transform_2, window_bounds = array<i64: 1, 4096>}, {pipeline_mode = #tpu.pipeline_mode<synchronous>, transform_indices = @transform_3, window_bounds = array<i64: 1, 4096>}, {transform_indices = @transform_4, window_bounds = array<i64: 1, 2, 4096>}]} {
    %c0 = arith.constant 0 : index
    %c0_0 = arith.constant 0 : index
    %c0_1 = arith.constant 0 : index
    %0 = vector.load %arg2[%c0, %c0_0, %c0_1] : memref<1x2x128xf32, #tpu.memory_space<vmem>>, vector<1x2x128xf32>
    %1 = vector.shape_cast %0 : vector<1x2x128xf32> to vector<2x128xf32>
    %c0_2 = arith.constant 0 : index
    %c0_3 = arith.constant 0 : index
    %c0_4 = arith.constant 0 : index
    %2 = vector.load %arg3[%c0_2, %c0_3, %c0_4] : memref<1x128x4096xf32, #tpu.memory_space<vmem>>, vector<1x128x4096xf32>
    %3 = vector.shape_cast %2 : vector<1x128x4096xf32> to vector<128x4096xf32>
    %cst = arith.constant dense<0.000000e+00> : vector<2x4096xf32>
    %4 = tpu.matmul %1, %3, %cst {dimension_numbers = #tpu.dot_dimension_numbers<[1], [0], [0], [1], [0, 0, 1, 1], [], []>} : vector<2x128xf32>, vector<128x4096xf32>, vector<2x4096xf32> -> vector<2x4096xf32>
    %c0_5 = arith.constant 0 : index
    %c0_6 = arith.constant 0 : index
    %5 = vector.load %arg4[%c0_5, %c0_6] : memref<1x4096xf32, #tpu.memory_space<vmem>>, vector<1x4096xf32>
    %6 = vector.broadcast %5 : vector<1x4096xf32> to vector<2x4096xf32>
    %7 = arith.mulf %4, %6 : vector<2x4096xf32>
    %c0_7 = arith.constant 0 : index
    %c0_8 = arith.constant 0 : index
    %8 = vector.load %arg5[%c0_7, %c0_8] : memref<1x4096xf32, #tpu.memory_space<vmem>>, vector<1x4096xf32>
    %9 = vector.broadcast %8 : vector<1x4096xf32> to vector<2x4096xf32>
    %10 = arith.addf %7, %9 : vector<2x4096xf32>
    %cst_9 = arith.constant 0.000000e+00 : f32
    %11 = vector.broadcast %cst_9 : f32 to vector<2x4096xf32>
    %12 = arith.cmpf ogt, %10, %11 : vector<2x4096xf32>
    %cst_10 = arith.constant 2.000000e-01 : f32
    %13 = vector.broadcast %cst_10 : f32 to vector<2x4096xf32>
    %14 = arith.mulf %13, %10 : vector<2x4096xf32>
    %15 = arith.select %12, %10, %14 : vector<2x4096xi1>, vector<2x4096xf32>
    %c0_11 = arith.constant 0 : index
    %c0_12 = arith.constant 0 : index
    %c0_13 = arith.constant 0 : index
    %16 = vector.load %arg6[%c0_11, %c0_12, %c0_13] : memref<1x2x4096xf32, #tpu.memory_space<vmem>>, vector<1x2x4096xf32>
    %17 = vector.shape_cast %16 : vector<1x2x4096xf32> to vector<2x4096xf32>
    %18 = vector.shape_cast %15 : vector<2x4096xf32> to vector<1x2x4096xf32>
    tpu.vector_store %arg6[%c0_11, %c0_12, %c0_13], %18 {strides = array<i32>} : memref<1x2x4096xf32, #tpu.memory_space<vmem>>, vector<1x2x4096xf32>,
    return
  }
  func.func @transform_0(%arg0: i32, %arg1: i32) -> (i32, i32, i32) {
    %c0_i32 = arith.constant 0 : i32
    %c0_i32_0 = arith.constant 0 : i32
    return %arg0, %arg1, %c0_i32 : i32, i32, i32
  }
  func.func @transform_1(%arg0: i32, %arg1: i32) -> (i32, i32, i32) {
    %c0_i32 = arith.constant 0 : i32
    %c0_i32_0 = arith.constant 0 : i32
    %c0_i32_1 = arith.constant 0 : i32
    return %arg0, %c0_i32, %c0_i32_0 : i32, i32, i32
  }
  func.func @transform_2(%arg0: i32, %arg1: i32) -> (i32, i32) {
    %c0_i32 = arith.constant 0 : i32
    %c0_i32_0 = arith.constant 0 : i32
    %c0_i32_1 = arith.constant 0 : i32
    return %c0_i32, %c0_i32_0 : i32, i32
  }
  func.func @transform_3(%arg0: i32, %arg1: i32) -> (i32, i32) {
    %c0_i32 = arith.constant 0 : i32
    %c0_i32_0 = arith.constant 0 : i32
    %c0_i32_1 = arith.constant 0 : i32
    return %c0_i32, %c0_i32_0 : i32, i32
  }
  func.func @transform_4(%arg0: i32, %arg1: i32) -> (i32, i32, i32) {
    %c0_i32 = arith.constant 0 : i32
    %c0_i32_0 = arith.constant 0 : i32
    return %arg0, %arg1, %c0_i32 : i32, i32, i32
  }
}

module attributes {stable_mosaic.version = 11 : i64} {
  func.func @_gemm_affine_act_kernel(%arg0: i32, %arg1: i32, %arg2: memref<1x2x2048xf32, #tpu.memory_space<vmem>>, %arg3: memref<1x2048x128xf32, #tpu.memory_space<vmem>>, %arg4: memref<1x128xf32, #tpu.memory_space<vmem>>, %arg5: memref<1x128xf32, #tpu.memory_space<vmem>>, %arg6: memref<1x2x128xf32, #tpu.memory_space<vmem>>) attributes {dimension_semantics = [#tpu.dimension_semantics<parallel>, #tpu.dimension_semantics<parallel>], iteration_bounds = array<i64: 1, 1>, scalar_prefetch = 0 : i64, scratch_operands = 0 : i64, tpu.core_type = #tpu.core_type<tc>, window_params = [{transform_indices = @transform_0, window_bounds = array<i64: 1, 2, 2048>}, {transform_indices = @transform_1, window_bounds = array<i64: 1, 2048, 128>}, {pipeline_mode = #tpu.pipeline_mode<synchronous>, transform_indices = @transform_2, window_bounds = array<i64: 1, 128>}, {pipeline_mode = #tpu.pipeline_mode<synchronous>, transform_indices = @transform_3, window_bounds = array<i64: 1, 128>}, {transform_indices = @transform_4, window_bounds = array<i64: 1, 2, 128>}]} {
    %c0 = arith.constant 0 : index
    %c0_0 = arith.constant 0 : index
    %c0_1 = arith.constant 0 : index
    %0 = vector.load %arg2[%c0, %c0_0, %c0_1] : memref<1x2x2048xf32, #tpu.memory_space<vmem>>, vector<1x2x2048xf32>
    %1 = vector.shape_cast %0 : vector<1x2x2048xf32> to vector<2x2048xf32>
    %c0_2 = arith.constant 0 : index
    %c0_3 = arith.constant 0 : index
    %c0_4 = arith.constant 0 : index
    %2 = vector.load %arg3[%c0_2, %c0_3, %c0_4] : memref<1x2048x128xf32, #tpu.memory_space<vmem>>, vector<1x2048x128xf32>
    %3 = vector.shape_cast %2 : vector<1x2048x128xf32> to vector<2048x128xf32>
    %cst = arith.constant dense<0.000000e+00> : vector<2x128xf32>
    %4 = tpu.matmul %1, %3, %cst {dimension_numbers = #tpu.dot_dimension_numbers<[1], [0], [0], [1], [0, 0, 1, 1], [], []>} : vector<2x2048xf32>, vector<2048x128xf32>, vector<2x128xf32> -> vector<2x128xf32>
    %c0_5 = arith.constant 0 : index
    %c0_6 = arith.constant 0 : index
    %5 = vector.load %arg4[%c0_5, %c0_6] : memref<1x128xf32, #tpu.memory_space<vmem>>, vector<1x128xf32>
    %6 = vector.broadcast %5 : vector<1x128xf32> to vector<2x128xf32>
    %7 = arith.mulf %4, %6 : vector<2x128xf32>
    %c0_7 = arith.constant 0 : index
    %c0_8 = arith.constant 0 : index
    %8 = vector.load %arg5[%c0_7, %c0_8] : memref<1x128xf32, #tpu.memory_space<vmem>>, vector<1x128xf32>
    %9 = vector.broadcast %8 : vector<1x128xf32> to vector<2x128xf32>
    %10 = arith.addf %7, %9 : vector<2x128xf32>
    %c0_9 = arith.constant 0 : index
    %c0_10 = arith.constant 0 : index
    %c0_11 = arith.constant 0 : index
    %11 = vector.load %arg6[%c0_9, %c0_10, %c0_11] : memref<1x2x128xf32, #tpu.memory_space<vmem>>, vector<1x2x128xf32>
    %12 = vector.shape_cast %11 : vector<1x2x128xf32> to vector<2x128xf32>
    %13 = vector.shape_cast %10 : vector<2x128xf32> to vector<1x2x128xf32>
    tpu.vector_store %arg6[%c0_9, %c0_10, %c0_11], %13 {strides = array<i32>} : memref<1x2x128xf32, #tpu.memory_space<vmem>>, vector<1x2x128xf32>,
    return
  }
  func.func @transform_0(%arg0: i32, %arg1: i32) -> (i32, i32, i32) {
    %c0_i32 = arith.constant 0 : i32
    %c0_i32_0 = arith.constant 0 : i32
    return %arg0, %arg1, %c0_i32 : i32, i32, i32
  }
  func.func @transform_1(%arg0: i32, %arg1: i32) -> (i32, i32, i32) {
    %c0_i32 = arith.constant 0 : i32
    %c0_i32_0 = arith.constant 0 : i32
    %c0_i32_1 = arith.constant 0 : i32
    return %arg0, %c0_i32, %c0_i32_0 : i32, i32, i32
  }
  func.func @transform_2(%arg0: i32, %arg1: i32) -> (i32, i32) {
    %c0_i32 = arith.constant 0 : i32
    %c0_i32_0 = arith.constant 0 : i32
    %c0_i32_1 = arith.constant 0 : i32
    return %c0_i32, %c0_i32_0 : i32, i32
  }
  func.func @transform_3(%arg0: i32, %arg1: i32) -> (i32, i32) {
    %c0_i32 = arith.constant 0 : i32
    %c0_i32_0 = arith.constant 0 : i32
    %c0_i32_1 = arith.constant 0 : i32
    return %c0_i32, %c0_i32_0 : i32, i32
  }
  func.func @transform_4(%arg0: i32, %arg1: i32) -> (i32, i32, i32) {
    %c0_i32 = arith.constant 0 : i32
    %c0_i32_0 = arith.constant 0 : i32
    return %arg0, %arg1, %c0_i32 : i32, i32, i32
  }
}

module attributes {stable_mosaic.version = 11 : i64} {
  func.func @_gemm_affine_act_kernel(%arg0: i32, %arg1: i32, %arg2: memref<1x32x1024xf32, #tpu.memory_space<vmem>>, %arg3: memref<1x1024x128xf32, #tpu.memory_space<vmem>>, %arg4: memref<1x128xf32, #tpu.memory_space<vmem>>, %arg5: memref<1x128xf32, #tpu.memory_space<vmem>>, %arg6: memref<1x32x128xf32, #tpu.memory_space<vmem>>) attributes {dimension_semantics = [#tpu.dimension_semantics<parallel>, #tpu.dimension_semantics<parallel>], iteration_bounds = array<i64: 4, 1>, scalar_prefetch = 0 : i64, scratch_operands = 0 : i64, tpu.core_type = #tpu.core_type<tc>, window_params = [{transform_indices = @transform_0, window_bounds = array<i64: 1, 32, 1024>}, {transform_indices = @transform_1, window_bounds = array<i64: 1, 1024, 128>}, {pipeline_mode = #tpu.pipeline_mode<synchronous>, transform_indices = @transform_2, window_bounds = array<i64: 1, 128>}, {pipeline_mode = #tpu.pipeline_mode<synchronous>, transform_indices = @transform_3, window_bounds = array<i64: 1, 128>}, {transform_indices = @transform_4, window_bounds = array<i64: 1, 32, 128>}]} {
    %c0 = arith.constant 0 : index
    %c0_0 = arith.constant 0 : index
    %c0_1 = arith.constant 0 : index
    %0 = vector.load %arg2[%c0, %c0_0, %c0_1] : memref<1x32x1024xf32, #tpu.memory_space<vmem>>, vector<1x32x1024xf32>
    %1 = vector.shape_cast %0 : vector<1x32x1024xf32> to vector<32x1024xf32>
    %c0_2 = arith.constant 0 : index
    %c0_3 = arith.constant 0 : index
    %c0_4 = arith.constant 0 : index
    %2 = vector.load %arg3[%c0_2, %c0_3, %c0_4] : memref<1x1024x128xf32, #tpu.memory_space<vmem>>, vector<1x1024x128xf32>
    %3 = vector.shape_cast %2 : vector<1x1024x128xf32> to vector<1024x128xf32>
    %cst = arith.constant dense<0.000000e+00> : vector<32x128xf32>
    %4 = tpu.matmul %1, %3, %cst {dimension_numbers = #tpu.dot_dimension_numbers<[1], [0], [0], [1], [0, 0, 1, 1], [], []>} : vector<32x1024xf32>, vector<1024x128xf32>, vector<32x128xf32> -> vector<32x128xf32>
    %c0_5 = arith.constant 0 : index
    %c0_6 = arith.constant 0 : index
    %5 = vector.load %arg4[%c0_5, %c0_6] : memref<1x128xf32, #tpu.memory_space<vmem>>, vector<1x128xf32>
    %6 = vector.broadcast %5 : vector<1x128xf32> to vector<32x128xf32>
    %7 = arith.mulf %4, %6 : vector<32x128xf32>
    %c0_7 = arith.constant 0 : index
    %c0_8 = arith.constant 0 : index
    %8 = vector.load %arg5[%c0_7, %c0_8] : memref<1x128xf32, #tpu.memory_space<vmem>>, vector<1x128xf32>
    %9 = vector.broadcast %8 : vector<1x128xf32> to vector<32x128xf32>
    %10 = arith.addf %7, %9 : vector<32x128xf32>
    %cst_9 = arith.constant 0.000000e+00 : f32
    %11 = vector.broadcast %cst_9 : f32 to vector<32x128xf32>
    %12 = arith.cmpf ogt, %10, %11 : vector<32x128xf32>
    %cst_10 = arith.constant 2.000000e-01 : f32
    %13 = vector.broadcast %cst_10 : f32 to vector<32x128xf32>
    %14 = arith.mulf %13, %10 : vector<32x128xf32>
    %15 = arith.select %12, %10, %14 : vector<32x128xi1>, vector<32x128xf32>
    %c0_11 = arith.constant 0 : index
    %c0_12 = arith.constant 0 : index
    %c0_13 = arith.constant 0 : index
    %16 = vector.load %arg6[%c0_11, %c0_12, %c0_13] : memref<1x32x128xf32, #tpu.memory_space<vmem>>, vector<1x32x128xf32>
    %17 = vector.shape_cast %16 : vector<1x32x128xf32> to vector<32x128xf32>
    %18 = vector.shape_cast %15 : vector<32x128xf32> to vector<1x32x128xf32>
    tpu.vector_store %arg6[%c0_11, %c0_12, %c0_13], %18 {strides = array<i32>} : memref<1x32x128xf32, #tpu.memory_space<vmem>>, vector<1x32x128xf32>,
    return
  }
  func.func @transform_0(%arg0: i32, %arg1: i32) -> (i32, i32, i32) {
    %c0_i32 = arith.constant 0 : i32
    %c0_i32_0 = arith.constant 0 : i32
    return %arg0, %arg1, %c0_i32 : i32, i32, i32
  }
  func.func @transform_1(%arg0: i32, %arg1: i32) -> (i32, i32, i32) {
    %c0_i32 = arith.constant 0 : i32
    %c0_i32_0 = arith.constant 0 : i32
    %c0_i32_1 = arith.constant 0 : i32
    return %arg0, %c0_i32, %c0_i32_0 : i32, i32, i32
  }
  func.func @transform_2(%arg0: i32, %arg1: i32) -> (i32, i32) {
    %c0_i32 = arith.constant 0 : i32
    %c0_i32_0 = arith.constant 0 : i32
    %c0_i32_1 = arith.constant 0 : i32
    return %c0_i32, %c0_i32_0 : i32, i32
  }
  func.func @transform_3(%arg0: i32, %arg1: i32) -> (i32, i32) {
    %c0_i32 = arith.constant 0 : i32
    %c0_i32_0 = arith.constant 0 : i32
    %c0_i32_1 = arith.constant 0 : i32
    return %c0_i32, %c0_i32_0 : i32, i32
  }
  func.func @transform_4(%arg0: i32, %arg1: i32) -> (i32, i32, i32) {
    %c0_i32 = arith.constant 0 : i32
    %c0_i32_0 = arith.constant 0 : i32
    return %arg0, %arg1, %c0_i32 : i32, i32, i32
  }
}

module attributes {stable_mosaic.version = 11 : i64} {
  func.func @_gemm_affine_act_kernel(%arg0: i32, %arg1: i32, %arg2: memref<1x128x512xf32, #tpu.memory_space<vmem>>, %arg3: memref<1x512x128xf32, #tpu.memory_space<vmem>>, %arg4: memref<1x128xf32, #tpu.memory_space<vmem>>, %arg5: memref<1x128xf32, #tpu.memory_space<vmem>>, %arg6: memref<1x128x128xf32, #tpu.memory_space<vmem>>) attributes {dimension_semantics = [#tpu.dimension_semantics<parallel>, #tpu.dimension_semantics<parallel>], iteration_bounds = array<i64: 4, 1>, scalar_prefetch = 0 : i64, scratch_operands = 0 : i64, tpu.core_type = #tpu.core_type<tc>, window_params = [{transform_indices = @transform_0, window_bounds = array<i64: 1, 128, 512>}, {transform_indices = @transform_1, window_bounds = array<i64: 1, 512, 128>}, {pipeline_mode = #tpu.pipeline_mode<synchronous>, transform_indices = @transform_2, window_bounds = array<i64: 1, 128>}, {pipeline_mode = #tpu.pipeline_mode<synchronous>, transform_indices = @transform_3, window_bounds = array<i64: 1, 128>}, {transform_indices = @transform_4, window_bounds = array<i64: 1, 128, 128>}]} {
    %c0 = arith.constant 0 : index
    %c0_0 = arith.constant 0 : index
    %c0_1 = arith.constant 0 : index
    %0 = vector.load %arg2[%c0, %c0_0, %c0_1] : memref<1x128x512xf32, #tpu.memory_space<vmem>>, vector<1x128x512xf32>
    %1 = vector.shape_cast %0 : vector<1x128x512xf32> to vector<128x512xf32>
    %c0_2 = arith.constant 0 : index
    %c0_3 = arith.constant 0 : index
    %c0_4 = arith.constant 0 : index
    %2 = vector.load %arg3[%c0_2, %c0_3, %c0_4] : memref<1x512x128xf32, #tpu.memory_space<vmem>>, vector<1x512x128xf32>
    %3 = vector.shape_cast %2 : vector<1x512x128xf32> to vector<512x128xf32>
    %cst = arith.constant dense<0.000000e+00> : vector<128x128xf32>
    %4 = tpu.matmul %1, %3, %cst {dimension_numbers = #tpu.dot_dimension_numbers<[1], [0], [0], [1], [0, 0, 1, 1], [], []>} : vector<128x512xf32>, vector<512x128xf32>, vector<128x128xf32> -> vector<128x128xf32>
    %c0_5 = arith.constant 0 : index
    %c0_6 = arith.constant 0 : index
    %5 = vector.load %arg4[%c0_5, %c0_6] : memref<1x128xf32, #tpu.memory_space<vmem>>, vector<1x128xf32>
    %6 = vector.broadcast %5 : vector<1x128xf32> to vector<128x128xf32>
    %7 = arith.mulf %4, %6 : vector<128x128xf32>
    %c0_7 = arith.constant 0 : index
    %c0_8 = arith.constant 0 : index
    %8 = vector.load %arg5[%c0_7, %c0_8] : memref<1x128xf32, #tpu.memory_space<vmem>>, vector<1x128xf32>
    %9 = vector.broadcast %8 : vector<1x128xf32> to vector<128x128xf32>
    %10 = arith.addf %7, %9 : vector<128x128xf32>
    %cst_9 = arith.constant 0.000000e+00 : f32
    %11 = vector.broadcast %cst_9 : f32 to vector<128x128xf32>
    %12 = arith.cmpf ogt, %10, %11 : vector<128x128xf32>
    %cst_10 = arith.constant 2.000000e-01 : f32
    %13 = vector.broadcast %cst_10 : f32 to vector<128x128xf32>
    %14 = arith.mulf %13, %10 : vector<128x128xf32>
    %15 = arith.select %12, %10, %14 : vector<128x128xi1>, vector<128x128xf32>
    %c0_11 = arith.constant 0 : index
    %c0_12 = arith.constant 0 : index
    %c0_13 = arith.constant 0 : index
    %16 = vector.load %arg6[%c0_11, %c0_12, %c0_13] : memref<1x128x128xf32, #tpu.memory_space<vmem>>, vector<1x128x128xf32>
    %17 = vector.shape_cast %16 : vector<1x128x128xf32> to vector<128x128xf32>
    %18 = vector.shape_cast %15 : vector<128x128xf32> to vector<1x128x128xf32>
    tpu.vector_store %arg6[%c0_11, %c0_12, %c0_13], %18 {strides = array<i32>} : memref<1x128x128xf32, #tpu.memory_space<vmem>>, vector<1x128x128xf32>,
    return
  }
  func.func @transform_0(%arg0: i32, %arg1: i32) -> (i32, i32, i32) {
    %c0_i32 = arith.constant 0 : i32
    %c0_i32_0 = arith.constant 0 : i32
    return %arg0, %arg1, %c0_i32 : i32, i32, i32
  }
  func.func @transform_1(%arg0: i32, %arg1: i32) -> (i32, i32, i32) {
    %c0_i32 = arith.constant 0 : i32
    %c0_i32_0 = arith.constant 0 : i32
    %c0_i32_1 = arith.constant 0 : i32
    return %arg0, %c0_i32, %c0_i32_0 : i32, i32, i32
  }
  func.func @transform_2(%arg0: i32, %arg1: i32) -> (i32, i32) {
    %c0_i32 = arith.constant 0 : i32
    %c0_i32_0 = arith.constant 0 : i32
    %c0_i32_1 = arith.constant 0 : i32
    return %c0_i32, %c0_i32_0 : i32, i32
  }
  func.func @transform_3(%arg0: i32, %arg1: i32) -> (i32, i32) {
    %c0_i32 = arith.constant 0 : i32
    %c0_i32_0 = arith.constant 0 : i32
    %c0_i32_1 = arith.constant 0 : i32
    return %c0_i32, %c0_i32_0 : i32, i32
  }
  func.func @transform_4(%arg0: i32, %arg1: i32) -> (i32, i32, i32) {
    %c0_i32 = arith.constant 0 : i32
    %c0_i32_0 = arith.constant 0 : i32
    return %arg0, %arg1, %c0_i32 : i32, i32, i32
  }
}

module attributes {stable_mosaic.version = 11 : i64} {
  func.func @_gemm_affine_act_kernel(%arg0: i32, %arg1: i32, %arg2: memref<1x256x256xf32, #tpu.memory_space<vmem>>, %arg3: memref<1x256x128xf32, #tpu.memory_space<vmem>>, %arg4: memref<1x128xf32, #tpu.memory_space<vmem>>, %arg5: memref<1x128xf32, #tpu.memory_space<vmem>>, %arg6: memref<1x256x128xf32, #tpu.memory_space<vmem>>) attributes {dimension_semantics = [#tpu.dimension_semantics<parallel>, #tpu.dimension_semantics<parallel>], iteration_bounds = array<i64: 4, 2>, scalar_prefetch = 0 : i64, scratch_operands = 0 : i64, tpu.core_type = #tpu.core_type<tc>, window_params = [{transform_indices = @transform_0, window_bounds = array<i64: 1, 256, 256>}, {transform_indices = @transform_1, window_bounds = array<i64: 1, 256, 128>}, {pipeline_mode = #tpu.pipeline_mode<synchronous>, transform_indices = @transform_2, window_bounds = array<i64: 1, 128>}, {pipeline_mode = #tpu.pipeline_mode<synchronous>, transform_indices = @transform_3, window_bounds = array<i64: 1, 128>}, {transform_indices = @transform_4, window_bounds = array<i64: 1, 256, 128>}]} {
    %c0 = arith.constant 0 : index
    %c0_0 = arith.constant 0 : index
    %c0_1 = arith.constant 0 : index
    %0 = vector.load %arg2[%c0, %c0_0, %c0_1] : memref<1x256x256xf32, #tpu.memory_space<vmem>>, vector<1x256x256xf32>
    %1 = vector.shape_cast %0 : vector<1x256x256xf32> to vector<256x256xf32>
    %c0_2 = arith.constant 0 : index
    %c0_3 = arith.constant 0 : index
    %c0_4 = arith.constant 0 : index
    %2 = vector.load %arg3[%c0_2, %c0_3, %c0_4] : memref<1x256x128xf32, #tpu.memory_space<vmem>>, vector<1x256x128xf32>
    %3 = vector.shape_cast %2 : vector<1x256x128xf32> to vector<256x128xf32>
    %cst = arith.constant dense<0.000000e+00> : vector<256x128xf32>
    %4 = tpu.matmul %1, %3, %cst {dimension_numbers = #tpu.dot_dimension_numbers<[1], [0], [0], [1], [0, 0, 1, 1], [], []>} : vector<256x256xf32>, vector<256x128xf32>, vector<256x128xf32> -> vector<256x128xf32>
    %c0_5 = arith.constant 0 : index
    %c0_6 = arith.constant 0 : index
    %5 = vector.load %arg4[%c0_5, %c0_6] : memref<1x128xf32, #tpu.memory_space<vmem>>, vector<1x128xf32>
    %6 = vector.broadcast %5 : vector<1x128xf32> to vector<256x128xf32>
    %7 = arith.mulf %4, %6 : vector<256x128xf32>
    %c0_7 = arith.constant 0 : index
    %c0_8 = arith.constant 0 : index
    %8 = vector.load %arg5[%c0_7, %c0_8] : memref<1x128xf32, #tpu.memory_space<vmem>>, vector<1x128xf32>
    %9 = vector.broadcast %8 : vector<1x128xf32> to vector<256x128xf32>
    %10 = arith.addf %7, %9 : vector<256x128xf32>
    %11 = math.tanh %10 : vector<256x128xf32>
    %c0_9 = arith.constant 0 : index
    %c0_10 = arith.constant 0 : index
    %c0_11 = arith.constant 0 : index
    %12 = vector.load %arg6[%c0_9, %c0_10, %c0_11] : memref<1x256x128xf32, #tpu.memory_space<vmem>>, vector<1x256x128xf32>
    %13 = vector.shape_cast %12 : vector<1x256x128xf32> to vector<256x128xf32>
    %14 = vector.shape_cast %11 : vector<256x128xf32> to vector<1x256x128xf32>
    tpu.vector_store %arg6[%c0_9, %c0_10, %c0_11], %14 {strides = array<i32>} : memref<1x256x128xf32, #tpu.memory_space<vmem>>, vector<1x256x128xf32>,
    return
  }
  func.func @transform_0(%arg0: i32, %arg1: i32) -> (i32, i32, i32) {
    %c0_i32 = arith.constant 0 : i32
    %c0_i32_0 = arith.constant 0 : i32
    return %arg0, %arg1, %c0_i32 : i32, i32, i32
  }
  func.func @transform_1(%arg0: i32, %arg1: i32) -> (i32, i32, i32) {
    %c0_i32 = arith.constant 0 : i32
    %c0_i32_0 = arith.constant 0 : i32
    %c0_i32_1 = arith.constant 0 : i32
    return %arg0, %c0_i32, %c0_i32_0 : i32, i32, i32
  }
  func.func @transform_2(%arg0: i32, %arg1: i32) -> (i32, i32) {
    %c0_i32 = arith.constant 0 : i32
    %c0_i32_0 = arith.constant 0 : i32
    %c0_i32_1 = arith.constant 0 : i32
    return %c0_i32, %c0_i32_0 : i32, i32
  }
  func.func @transform_3(%arg0: i32, %arg1: i32) -> (i32, i32) {
    %c0_i32 = arith.constant 0 : i32
    %c0_i32_0 = arith.constant 0 : i32
    %c0_i32_1 = arith.constant 0 : i32
    return %c0_i32, %c0_i32_0 : i32, i32
  }
  func.func @transform_4(%arg0: i32, %arg1: i32) -> (i32, i32, i32) {
    %c0_i32 = arith.constant 0 : i32
    %c0_i32_0 = arith.constant 0 : i32
    return %arg0, %arg1, %c0_i32 : i32, i32, i32
  }
}

</mosaic_0001>

<bundles_post_ra>
// kernel: _lambda_.7
= control target key start
LH: loop header
LB: loop body
LE: loop exit
PB: predicated region body
PF: predicated region fallthrough
CT: control target
= control target key end

     0   :  { %s657_s1 = inlined_call_operand.vmem [shape: f32[1,128,128], index: 1, kind: input, shape index: {}]   ;;  %s658_s0 = inlined_call_operand.vmem [shape: f32[1,128,128], index: 0, kind: input, shape index: {}]   ;;  %s659_s2 = inlined_call_operand.vmem [shape: f32[1,128], index: 2, kind: input, shape index: {}]   ;;  %s660_s3 = inlined_call_operand.vmem [shape: f32[1,128], index: 3, kind: input, shape index: {}]   ;;  %s661_s4 = inlined_call_operand.vmem [shape: f32[1,128,128], index: 4, kind: output, shape index: {}]  }
   0x1   :  { %v33_v0 = vld [vmem:[%s657_s1] sm:$0xff]  ;;  %v34_v1 = vld [vmem:[%s657_s1 + $0x8] sm:$0xff]  ;;  %v35_v2 = vld [vmem:[%s657_s1 + $0x10] sm:$0xff] }
   0x2   :  { %v398_v3 = vpack.c.bf16 %v34_v1, %v33_v0  ;;  %v36_v4 = vld [vmem:[%s657_s1 + $0x18] sm:$0xff]  ;;  %v37_v6 = vld [vmem:[%s657_s1 + $0x20] sm:$0xff]  ;;  %v38_v7 = vld [vmem:[%s657_s1 + $0x28] sm:$0xff] }
   0x3   :  { %v402_v5 = vpack.c.bf16 %v36_v4, %v35_v2  ;;  %v406_v8 = vpack.c.bf16 %v38_v7, %v37_v6  ;;  %v17_v9 = vld [vmem:[%s658_s0] sm:$0xff]  ;;  %v39_v11 = vld [vmem:[%s657_s1 + $0x30] sm:$0xff]  ;;  %v40_v12 = vld [vmem:[%s657_s1 + $0x38] sm:$0xff] }
   0x4   :  { %399 = vmatprep.subr.bf16.mxu0 %v398_v3  ;;  %430 = vmatprep.subr.bf16.mxu1 %v398_v3  ;;  %v25_v10 = vld [vmem:[%s658_s0 + $0x40] sm:$0xff]  ;;  %v410_v13 = vpack.c.bf16 %v40_v12, %v39_v11  ;;  %v42_v15 = vld [vmem:[%s657_s1 + $0x48] sm:$0xff]  ;;  %v43_v17 = vld [vmem:[%s657_s1 + $0x50] sm:$0xff] }
   0x5   :  { %401 = vmatpush3.bf16.msra.mxu0 %v398_v3  ;;  %438 = vmatpush3.bf16.msra.mxu1 %v398_v3  ;;  %v41_v14 = vld [vmem:[%s657_s1 + $0x40] sm:$0xff]  ;;  %v44_v18 = vld [vmem:[%s657_s1 + $0x58] sm:$0xff]  ;;  %v46_v21 = vld [vmem:[%s657_s1 + $0x68] sm:$0xff] }
   0x6   :  { %403 = vmatprep.subr.bf16.mxu0 %v402_v5  ;;  %431 = vmatprep.subr.bf16.mxu1 %v402_v5  ;;  %v414_v16 = vpack.c.bf16 %v42_v15, %v41_v14  ;;  %v418_v19 = vpack.c.bf16 %v44_v18, %v43_v17  ;;  %v45_v20 = vld [vmem:[%s657_s1 + $0x60] sm:$0xff]  ;;  %v47_v23 = vld [vmem:[%s657_s1 + $0x70] sm:$0xff]  ;;  %v48_v24 = vld [vmem:[%s657_s1 + $0x78] sm:$0xff] }
   0x7   :  { %374 = vmatprep.mubr.f32.mxu0 %v17_v9  ;;  %386 = vmatprep.mubr.f32.mxu1 %v25_v10  ;;  %v422_v22 = vpack.c.bf16 %v46_v21, %v45_v20  ;;  %v426_v25 = vpack.c.bf16 %v48_v24, %v47_v23  ;;  %v18_v26 = vld [vmem:[%s658_s0 + $0x8] sm:$0xff]  ;;  %v19_v28 = vld [vmem:[%s658_s0 + $0x10] sm:$0xff]  ;;  %v20_v30 = vld [vmem:[%s658_s0 + $0x18] sm:$0xff] }
   0x8   :  { %v26_v27 = vld [vmem:[%s658_s0 + $0x48] sm:$0xff]  ;;  %v27_v29 = vld [vmem:[%s658_s0 + $0x50] sm:$0xff]  ;;  %v28_v31 = vld [vmem:[%s658_s0 + $0x58] sm:$0xff] }
   0x9   :  { %405 = vmatpush3.bf16.msra.mxu0 %v402_v5  ;;  %439 = vmatpush3.bf16.msra.mxu1 %v402_v5  ;;  %v21_v32 = vld [vmem:[%s658_s0 + $0x20] sm:$0xff]  ;;  %v22_v34 = vld [vmem:[%s658_s0 + $0x28] sm:$0xff]  ;;  %v23_v36 = vld [vmem:[%s658_s0 + $0x30] sm:$0xff] }
   0xa   :  { %407 = vmatprep.subr.bf16.mxu0 %v406_v8  ;;  %432 = vmatprep.subr.bf16.mxu1 %v406_v8  ;;  %v29_v33 = vld [vmem:[%s658_s0 + $0x60] sm:$0xff]  ;;  %v30_v35 = vld [vmem:[%s658_s0 + $0x68] sm:$0xff]  ;;  %v31_v37 = vld [vmem:[%s658_s0 + $0x70] sm:$0xff] }
   0xb   :  { %v24_v38 = vld [vmem:[%s658_s0 + $0x38] sm:$0xff]  ;;  %v570_v40 = vld [vmem:[%s659_s2] ss:$0 sm:$0xff] }
   0xc   :  { %v32_v39 = vld [vmem:[%s658_s0 + $0x78] sm:$0xff]  ;;  %v575_v42 = vld [vmem:[%s660_s3] ss:$0 sm:$0xff] }
   0xd   :  { %409 = vmatpush3.bf16.msra.mxu0 %v406_v8  ;;  %440 = vmatpush3.bf16.msra.mxu1 %v406_v8 }
   0xe   :  { %411 = vmatprep.subr.bf16.mxu0 %v410_v13  ;;  %433 = vmatprep.subr.bf16.mxu1 %v410_v13 }
  0x11   :  { %413 = vmatpush3.bf16.msra.mxu0 %v410_v13  ;;  %441 = vmatpush3.bf16.msra.mxu1 %v410_v13 }
  0x12   :  { %415 = vmatprep.subr.bf16.mxu0 %v414_v16  ;;  %434 = vmatprep.subr.bf16.mxu1 %v414_v16 }
  0x15   :  { %417 = vmatpush3.bf16.msra.mxu0 %v414_v16  ;;  %442 = vmatpush3.bf16.msra.mxu1 %v414_v16 }
  0x16   :  { %419 = vmatprep.subr.bf16.mxu0 %v418_v19  ;;  %435 = vmatprep.subr.bf16.mxu1 %v418_v19 }
  0x19   :  { %421 = vmatpush3.bf16.msra.mxu0 %v418_v19  ;;  %443 = vmatpush3.bf16.msra.mxu1 %v418_v19 }
  0x1a   :  { %423 = vmatprep.subr.bf16.mxu0 %v422_v22  ;;  %436 = vmatprep.subr.bf16.mxu1 %v422_v22 }
  0x1d   :  { %425 = vmatpush3.bf16.msra.mxu0 %v422_v22  ;;  %444 = vmatpush3.bf16.msra.mxu1 %v422_v22 }
  0x1e   :  { %427 = vmatprep.subr.bf16.mxu0 %v426_v25  ;;  %437 = vmatprep.subr.bf16.mxu1 %v426_v25 }
  0x21   :  { %429 = vmatpush3.bf16.msra.mxu0 %v426_v25  ;;  %445 = vmatpush3.bf16.msra.mxu1 %v426_v25 }
  0x24   :  { %375 = vmatmul.mubr.f32.vlgmr.msra.gmra.mrb[0].mxu0 %v18_v26  ;;  %387 = vmatmul.mubr.f32.vlgmr.msra.gmra.mrb[0].mxu1 %v26_v27 }
  0x25   :  { %377 = vmatprep.mubr.f32.mxu0 %v19_v28  ;;  %389 = vmatprep.mubr.f32.mxu1 %v27_v29 }
  0x28   :  { %378 = vmatmul.mubr.f32.gmra.mrb[2].mxu0 %v20_v30  ;;  %390 = vmatmul.mubr.f32.gmra.mrb[2].mxu1 %v28_v31 }
  0x29   :  { %380 = vmatprep.mubr.f32.mxu0 %v21_v32  ;;  %392 = vmatprep.mubr.f32.mxu1 %v29_v33 }
  0x2c   :  { %381 = vmatmul.mubr.f32.gmra.mrb[4].mxu0 %v22_v34  ;;  %393 = vmatmul.mubr.f32.gmra.mrb[4].mxu1 %v30_v35 }
  0x2d   :  { %383 = vmatprep.mubr.f32.mxu0 %v23_v36  ;;  %395 = vmatprep.mubr.f32.mxu1 %v31_v37 }
  0x30   :  { %384 = vmatmul.mubr.f32.gmra.mrb[6].mxu0 %v24_v38  ;;  %396 = vmatmul.mubr.f32.gmra.mrb[6].mxu1 %v32_v39 }
  0xf7   :  { %v376_v41 = vpop.f32.mrb[0].mxu0  ;;  %v388_v43 = vpop.f32.mrb[0].mxu1 }
  0xf8   :  { %v202_v44 = vmul.f32 %v376_v41, %v570_v40  ;;  %v210_v45 = vmul.f32 %v388_v43, %v570_v40  ;;  %v115_v46 = vpop.f32.mrb[1].mxu0  ;;  %v155_v47 = vpop.f32.mrb[1].mxu1 }
  0xf9   :  { %v201_v48 = vmul.f32 %v570_v40, %v115_v46  ;;  %v209_v49 = vmul.f32 %v570_v40, %v155_v47 }
  0xfa   :  { %v225_v50 = vadd.f32 %v575_v42, %v202_v44  ;;  %v233_v51 = vadd.f32 %v575_v42, %v210_v45 }
  0xfb   :  { %v224_v52 = vadd.f32 %v575_v42, %v201_v48  ;;  %v232_v53 = vadd.f32 %v575_v42, %v209_v49  ;;  %v379_v54 = vpop.f32.mrb[2].mxu0  ;;  %v391_v55 = vpop.f32.mrb[2].mxu1 }
  0xfc   :  { %vm241_vm0 = vcmp.gt.f32.partialorder %v225_v50, 0.0  ;;  %v257_v56 = vmul.f32 0.2, %v225_v50  ;;  %vm249_vm1 = vcmp.gt.f32.partialorder %v233_v51, 0.0  ;;  %v265_v57 = vmul.f32 0.2, %v233_v51 }
  0xfd   :  { %vm240_vm2 = vcmp.gt.f32.partialorder %v224_v52, 0.0  ;;  %v256_v58 = vmul.f32 0.2, %v224_v52  ;;  %vm248_vm3 = vcmp.gt.f32.partialorder %v232_v53, 0.0  ;;  %v264_v59 = vmul.f32 0.2, %v232_v53 }
  0xfe   :  { %v273_v60 = vsel %vm241_vm0, %v225_v50, %v257_v56  ;;  %v281_v61 = vsel %vm249_vm1, %v233_v51, %v265_v57  ;;  %v204_v62 = vmul.f32 %v379_v54, %v570_v40  ;;  %v212_v63 = vmul.f32 %v391_v55, %v570_v40  ;;  %v125_v0 = vpop.f32.mrb[3].mxu0  ;;  %v165_v1 = vpop.f32.mrb[3].mxu1 }
  0xff   :  { %289 = vst [vmem:[%s661_s4 + $0x8] sm:$0xff] %v273_v60  ;;  %297 = vst [vmem:[%s661_s4 + $0x48] sm:$0xff] %v281_v61  ;;  %v272_v2 = vsel %vm240_vm2, %v224_v52, %v256_v58  ;;  %v280_v3 = vsel %vm248_vm3, %v232_v53, %v264_v59  ;;  %v203_v4 = vmul.f32 %v570_v40, %v125_v0  ;;  %v382_v6 = vpop.f32.mrb[4].mxu0  ;;  %v394_v7 = vpop.f32.mrb[4].mxu1 }
 0x100   :  { %v211_v5 = vmul.f32 %v570_v40, %v165_v1  ;;  %288 = vst [vmem:[%s661_s4] sm:$0xff] %v272_v2  ;;  %296 = vst [vmem:[%s661_s4 + $0x40] sm:$0xff] %v280_v3  ;;  %v227_v8 = vadd.f32 %v575_v42, %v204_v62  ;;  %v235_v9 = vadd.f32 %v575_v42, %v212_v63  ;;  %v135_v12 = vpop.f32.mrb[5].mxu0  ;;  %v175_v13 = vpop.f32.mrb[5].mxu1 }
 0x101   :  { %v206_v10 = vmul.f32 %v382_v6, %v570_v40  ;;  %v214_v11 = vmul.f32 %v394_v7, %v570_v40  ;;  %v226_v14 = vadd.f32 %v575_v42, %v203_v4  ;;  %v205_v16 = vmul.f32 %v570_v40, %v135_v12 }
 0x102   :  { %v234_v15 = vadd.f32 %v575_v42, %v211_v5  ;;  %v213_v17 = vmul.f32 %v570_v40, %v175_v13  ;;  %vm243_vm4 = vcmp.gt.f32.partialorder %v227_v8, 0.0  ;;  %v259_v18 = vmul.f32 0.2, %v227_v8 }
 0x103   :  { %vm251_vm5 = vcmp.gt.f32.partialorder %v235_v9, 0.0  ;;  %v267_v19 = vmul.f32 0.2, %v235_v9  ;;  %vm242_vm6 = vcmp.gt.f32.partialorder %v226_v14, 0.0  ;;  %v258_v20 = vmul.f32 0.2, %v226_v14 }
 0x104   :  { %vm250_vm7 = vcmp.gt.f32.partialorder %v234_v15, 0.0  ;;  %v266_v21 = vmul.f32 0.2, %v234_v15  ;;  %v275_v22 = vsel %vm243_vm4, %v227_v8, %v259_v18  ;;  %v229_v24 = vadd.f32 %v575_v42, %v206_v10  ;;  %v385_v26 = vpop.f32.mrb[6].mxu0  ;;  %v397_v27 = vpop.f32.mrb[6].mxu1 }
 0x105   :  { %v283_v23 = vsel %vm251_vm5, %v235_v9, %v267_v19  ;;  %v237_v25 = vadd.f32 %v575_v42, %v214_v11  ;;  %291 = vst [vmem:[%s661_s4 + $0x18] sm:$0xff] %v275_v22  ;;  %v274_v28 = vsel %vm242_vm6, %v226_v14, %v258_v20  ;;  %v228_v30 = vadd.f32 %v575_v42, %v205_v16  ;;  %v145_v32 = vpop.f32.mrb[7].mxu0  ;;  %v185_v33 = vpop.f32.mrb[7].mxu1 }
 0x106   :  { %299 = vst [vmem:[%s661_s4 + $0x58] sm:$0xff] %v283_v23  ;;  %v282_v29 = vsel %vm250_vm7, %v234_v15, %v266_v21  ;;  %v236_v31 = vadd.f32 %v575_v42, %v213_v17  ;;  %290 = vst [vmem:[%s661_s4 + $0x10] sm:$0xff] %v274_v28  ;;  %vm245_vm8 = vcmp.gt.f32.partialorder %v229_v24, 0.0  ;;  %v261_v34 = vmul.f32 0.2, %v229_v24 }
 0x107   :  { %298 = vst [vmem:[%s661_s4 + $0x50] sm:$0xff] %v282_v29  ;;  %vm253_vm9 = vcmp.gt.f32.partialorder %v237_v25, 0.0  ;;  %v269_v35 = vmul.f32 0.2, %v237_v25  ;;  %vm244_vm10 = vcmp.gt.f32.partialorder %v228_v30, 0.0  ;;  %v208_v41 = vmul.f32 %v385_v26, %v570_v40 }
 0x108   :  { %v260_v36 = vmul.f32 0.2, %v228_v30  ;;  %vm252_vm11 = vcmp.gt.f32.partialorder %v236_v31, 0.0  ;;  %v268_v37 = vmul.f32 0.2, %v236_v31  ;;  %v277_v38 = vsel %vm245_vm8, %v229_v24, %v261_v34 }
 0x109   :  { %v285_v39 = vsel %vm253_vm9, %v237_v25, %v269_v35  ;;  %v216_v43 = vmul.f32 %v397_v27, %v570_v40  ;;  %293 = vst [vmem:[%s661_s4 + $0x28] sm:$0xff] %v277_v38  ;;  %v207_v46 = vmul.f32 %v570_v40, %v145_v32  ;;  %v215_v47 = vmul.f32 %v570_v40, %v185_v33 }
 0x10a   :  { %301 = vst [vmem:[%s661_s4 + $0x68] sm:$0xff] %v285_v39  ;;  %v276_v44 = vsel %vm244_vm10, %v228_v30, %v260_v36  ;;  %v284_v45 = vsel %vm252_vm11, %v236_v31, %v268_v37  ;;  %v231_v48 = vadd.f32 %v575_v42, %v208_v41 }
 0x10b   :  { %292 = vst [vmem:[%s661_s4 + $0x20] sm:$0xff] %v276_v44  ;;  %300 = vst [vmem:[%s661_s4 + $0x60] sm:$0xff] %v284_v45  ;;  %v239_v49 = vadd.f32 %v575_v42, %v216_v43  ;;  %v230_v50 = vadd.f32 %v575_v42, %v207_v46  ;;  %v238_v51 = vadd.f32 %v575_v42, %v215_v47 }
 0x10c   :  { %vm247_vm12 = vcmp.gt.f32.partialorder %v231_v48, 0.0  ;;  %v263_v52 = vmul.f32 0.2, %v231_v48 }
 0x10d   :  { %vm255_vm13 = vcmp.gt.f32.partialorder %v239_v49, 0.0  ;;  %v271_v40 = vmul.f32 0.2, %v239_v49  ;;  %vm246_vm14 = vcmp.gt.f32.partialorder %v230_v50, 0.0  ;;  %v262_v53 = vmul.f32 0.2, %v230_v50 }
 0x10e   :  { %vm254_vm15 = vcmp.gt.f32.partialorder %v238_v51, 0.0  ;;  %v270_v54 = vmul.f32 0.2, %v238_v51  ;;  %v279_v55 = vsel %vm247_vm12, %v231_v48, %v263_v52 }
 0x10f   :  { %v287_v56 = vsel %vm255_vm13, %v239_v49, %v271_v40  ;;  %295 = vst [vmem:[%s661_s4 + $0x38] sm:$0xff] %v279_v55  ;;  %v278_v57 = vsel %vm246_vm14, %v230_v50, %v262_v53 }
 0x110   :  { %303 = vst [vmem:[%s661_s4 + $0x78] sm:$0xff] %v287_v56  ;;  %v286_v42 = vsel %vm254_vm15, %v238_v51, %v270_v54  ;;  %294 = vst [vmem:[%s661_s4 + $0x30] sm:$0xff] %v278_v57 }
 0x111   :  { %302 = vst [vmem:[%s661_s4 + $0x70] sm:$0xff] %v286_v42 }

// kernel: squeeze.5
= control target key start
LH: loop header
LB: loop body
LE: loop exit
PB: predicated region body
PF: predicated region fallthrough
CT: control target
= control target key end

     0   :  { %s689_s0 = inlined_call_operand.vmem [shape: f32[1,2,4096], index: 0, kind: input, shape index: {}]   ;;  %s690_s1 = inlined_call_operand.vmem [shape: f32[2,4,4,256], index: 1, kind: output, shape index: {}]  }
   0x1   :  { %v489_v0 = vld [vmem:[%s689_s0 + $0x3e] sm:$0x3]  ;;  %v490_v1 = vld [vmem:[%s689_s0 + $0x3c] sm:$0x3]  ;;  %v491_v2 = vld [vmem:[%s689_s0 + $0x3a] sm:$0x3] }
   0x2   :  { %8 = vst [vmem:[#allocation1 + $0xf8] sm:$0x3] %v489_v0  ;;  %13 = vst [vmem:[#allocation1 + $0xf0] sm:$0x3] %v490_v1  ;;  %v492_v3 = vld [vmem:[%s689_s0 + $0x38] sm:$0x3] }
   0x3   :  { %18 = vst [vmem:[#allocation1 + $0xe8] sm:$0x3] %v491_v2  ;;  %v493_v4 = vld [vmem:[%s689_s0 + $0x36] sm:$0x3]  ;;  %v494_v5 = vld [vmem:[%s689_s0 + $0x34] sm:$0x3] }
   0x4   :  { %23 = vst [vmem:[#allocation1 + $0xe0] sm:$0x3] %v492_v3  ;;  %28 = vst [vmem:[#allocation1 + $0xd8] sm:$0x3] %v493_v4  ;;  %v495_v6 = vld [vmem:[%s689_s0 + $0x32] sm:$0x3] }
   0x5   :  { %33 = vst [vmem:[#allocation1 + $0xd0] sm:$0x3] %v494_v5  ;;  %v496_v7 = vld [vmem:[%s689_s0 + $0x30] sm:$0x3]  ;;  %v497_v8 = vld [vmem:[%s689_s0 + $0x2e] sm:$0x3] }
   0x6   :  { %38 = vst [vmem:[#allocation1 + $0xc8] sm:$0x3] %v495_v6  ;;  %43 = vst [vmem:[#allocation1 + $0xc0] sm:$0x3] %v496_v7  ;;  %v498_v9 = vld [vmem:[%s689_s0 + $0x2c] sm:$0x3] }
   0x7   :  { %48 = vst [vmem:[#allocation1 + $0xb8] sm:$0x3] %v497_v8  ;;  %v499_v10 = vld [vmem:[%s689_s0 + $0x2a] sm:$0x3]  ;;  %v500_v11 = vld [vmem:[%s689_s0 + $0x28] sm:$0x3] }
   0x8   :  { %53 = vst [vmem:[#allocation1 + $0xb0] sm:$0x3] %v498_v9  ;;  %58 = vst [vmem:[#allocation1 + $0xa8] sm:$0x3] %v499_v10  ;;  %v501_v12 = vld [vmem:[%s689_s0 + $0x26] sm:$0x3] }
   0x9   :  { %63 = vst [vmem:[#allocation1 + $0xa0] sm:$0x3] %v500_v11  ;;  %v502_v13 = vld [vmem:[%s689_s0 + $0x24] sm:$0x3]  ;;  %v503_v14 = vld [vmem:[%s689_s0 + $0x22] sm:$0x3] }
   0xa   :  { %68 = vst [vmem:[#allocation1 + $0x98] sm:$0x3] %v501_v12  ;;  %73 = vst [vmem:[#allocation1 + $0x90] sm:$0x3] %v502_v13  ;;  %v504_v15 = vld [vmem:[%s689_s0 + $0x20] sm:$0x3] }
   0xb   :  { %78 = vst [vmem:[#allocation1 + $0x88] sm:$0x3] %v503_v14  ;;  %v505_v16 = vld [vmem:[%s689_s0 + $0x1e] sm:$0x3]  ;;  %v506_v17 = vld [vmem:[%s689_s0 + $0x1c] sm:$0x3] }
   0xc   :  { %83 = vst [vmem:[#allocation1 + $0x80] sm:$0x3] %v504_v15  ;;  %88 = vst [vmem:[#allocation1 + $0x78] sm:$0x3] %v505_v16  ;;  %v507_v18 = vld [vmem:[%s689_s0 + $0x1a] sm:$0x3] }
   0xd   :  { %93 = vst [vmem:[#allocation1 + $0x70] sm:$0x3] %v506_v17  ;;  %v508_v19 = vld [vmem:[%s689_s0 + $0x18] sm:$0x3]  ;;  %v509_v20 = vld [vmem:[%s689_s0 + $0x16] sm:$0x3] }
   0xe   :  { %98 = vst [vmem:[#allocation1 + $0x68] sm:$0x3] %v507_v18  ;;  %103 = vst [vmem:[#allocation1 + $0x60] sm:$0x3] %v508_v19  ;;  %v510_v21 = vld [vmem:[%s689_s0 + $0x14] sm:$0x3] }
   0xf   :  { %108 = vst [vmem:[#allocation1 + $0x58] sm:$0x3] %v509_v20  ;;  %v511_v22 = vld [vmem:[%s689_s0 + $0x12] sm:$0x3]  ;;  %v512_v23 = vld [vmem:[%s689_s0 + $0x10] sm:$0x3] }
  0x10   :  { %113 = vst [vmem:[#allocation1 + $0x50] sm:$0x3] %v510_v21  ;;  %118 = vst [vmem:[#allocation1 + $0x48] sm:$0x3] %v511_v22  ;;  %v513_v24 = vld [vmem:[%s689_s0 + $0xe] sm:$0x3] }
  0x11   :  { %123 = vst [vmem:[#allocation1 + $0x40] sm:$0x3] %v512_v23  ;;  %v514_v25 = vld [vmem:[%s689_s0 + $0xc] sm:$0x3]  ;;  %v515_v26 = vld [vmem:[%s689_s0 + $0xa] sm:$0x3] }
  0x12   :  { %128 = vst [vmem:[#allocation1 + $0x38] sm:$0x3] %v513_v24  ;;  %133 = vst [vmem:[#allocation1 + $0x30] sm:$0x3] %v514_v25  ;;  %v516_v27 = vld [vmem:[%s689_s0 + $0x8] sm:$0x3] }
  0x13   :  { %138 = vst [vmem:[#allocation1 + $0x28] sm:$0x3] %v515_v26  ;;  %v517_v28 = vld [vmem:[%s689_s0 + $0x6] sm:$0x3]  ;;  %v518_v29 = vld [vmem:[%s689_s0 + $0x4] sm:$0x3] }
  0x14   :  { %143 = vst [vmem:[#allocation1 + $0x20] sm:$0x3] %v516_v27  ;;  %148 = vst [vmem:[#allocation1 + $0x18] sm:$0x3] %v517_v28  ;;  %v519_v30 = vld [vmem:[%s689_s0 + $0x2] sm:$0x3] }
  0x15   :  { %153 = vst [vmem:[#allocation1 + $0x10] sm:$0x3] %v518_v29  ;;  %v158_v31 = vld [vmem:[%s689_s0] sm:$0x3]  ;;  %v297_v32 = vld [vmem:[#allocation1 + $0xb8] sm:$0x3]  }
  0x16   :  { %157 = vst [vmem:[#allocation1 + $0x8] sm:$0x3] %v519_v30  ;;  %159 = vst [vmem:[#allocation1] sm:$0x3] %v158_v31  ;;  %v279_v33 = vld [vmem:[#allocation1 + $0xa0] sm:$0x3]  }
  0x17   :  { %v285_v34 = vld [vmem:[#allocation1 + $0xa8] sm:$0x3]   ;;  %v291_v35 = vld [vmem:[#allocation1 + $0xb0] sm:$0x3]   ;;  %299 = vst [vmem:[#allocation0 + $0x2b] sm:$0x1] %v297_v32  }
  0x18   :  { %301 = vst [vmem:[#allocation0 + $0x6a] sm:$0x2] %v297_v32   ;;  %v261_v36 = vld [vmem:[#allocation1 + $0x88] sm:$0x3]   ;;  %v267_v37 = vld [vmem:[#allocation1 + $0x90] sm:$0x3]  }
  0x19   :  { %v273_v38 = vld [vmem:[#allocation1 + $0x98] sm:$0x3]   ;;  %281 = vst [vmem:[#allocation0 + $0x22] sm:$0x1] %v279_v33   ;;  %283 = vst [vmem:[#allocation0 + $0x61] sm:$0x2] %v279_v33  }
  0x1a   :  { %287 = vst [vmem:[#allocation0 + $0x2a] sm:$0x1] %v285_v34   ;;  %289 = vst [vmem:[#allocation0 + $0x69] sm:$0x2] %v285_v34   ;;  %v243_v39 = vld [vmem:[#allocation1 + $0x70] sm:$0x3]  }
  0x1b   :  { %293 = vst [vmem:[#allocation0 + $0x23] sm:$0x1] %v291_v35   ;;  %295 = vst [vmem:[#allocation0 + $0x62] sm:$0x2] %v291_v35   ;;  %v249_v40 = vld [vmem:[#allocation1 + $0x78] sm:$0x3]  }
  0x1c   :  { %v255_v41 = vld [vmem:[#allocation1 + $0x80] sm:$0x3]   ;;  %263 = vst [vmem:[#allocation0 + $0x28] sm:$0x1] %v261_v36   ;;  %265 = vst [vmem:[#allocation0 + $0x67] sm:$0x2] %v261_v36  }
  0x1d   :  { %269 = vst [vmem:[#allocation0 + $0x21] sm:$0x1] %v267_v37   ;;  %271 = vst [vmem:[#allocation0 + $0x60] sm:$0x2] %v267_v37   ;;  %v225_v42 = vld [vmem:[#allocation1 + $0x58] sm:$0x3]  }
  0x1e   :  { %275 = vst [vmem:[#allocation0 + $0x29] sm:$0x1] %v273_v38   ;;  %277 = vst [vmem:[#allocation0 + $0x68] sm:$0x2] %v273_v38   ;;  %v231_v43 = vld [vmem:[#allocation1 + $0x60] sm:$0x3]  }
  0x1f   :  { %v237_v44 = vld [vmem:[#allocation1 + $0x68] sm:$0x3]   ;;  %245 = vst [vmem:[#allocation0 + $0x13] sm:$0x1] %v243_v39   ;;  %247 = vst [vmem:[#allocation0 + $0x52] sm:$0x2] %v243_v39  }
  0x20   :  { %251 = vst [vmem:[#allocation0 + $0x1b] sm:$0x1] %v249_v40   ;;  %253 = vst [vmem:[#allocation0 + $0x5a] sm:$0x2] %v249_v40   ;;  %v207_v45 = vld [vmem:[#allocation1 + $0x40] sm:$0x3]  }
  0x21   :  { %257 = vst [vmem:[#allocation0 + $0x20] sm:$0x1] %v255_v41   ;;  %259 = vst [vmem:[#allocation0 + $0x5f] sm:$0x2] %v255_v41   ;;  %v213_v46 = vld [vmem:[#allocation1 + $0x48] sm:$0x3]  }
  0x22   :  { %v219_v47 = vld [vmem:[#allocation1 + $0x50] sm:$0x3]   ;;  %227 = vst [vmem:[#allocation0 + $0x19] sm:$0x1] %v225_v42   ;;  %229 = vst [vmem:[#allocation0 + $0x58] sm:$0x2] %v225_v42  }
  0x23   :  { %233 = vst [vmem:[#allocation0 + $0x12] sm:$0x1] %v231_v43   ;;  %235 = vst [vmem:[#allocation0 + $0x51] sm:$0x2] %v231_v43   ;;  %v189_v48 = vld [vmem:[#allocation1 + $0x28] sm:$0x3]  }
  0x24   :  { %239 = vst [vmem:[#allocation0 + $0x1a] sm:$0x1] %v237_v44   ;;  %241 = vst [vmem:[#allocation0 + $0x59] sm:$0x2] %v237_v44   ;;  %v195_v49 = vld [vmem:[#allocation1 + $0x30] sm:$0x3]  }
  0x25   :  { %v201_v50 = vld [vmem:[#allocation1 + $0x38] sm:$0x3]   ;;  %209 = vst [vmem:[#allocation0 + $0x10] sm:$0x1] %v207_v45   ;;  %211 = vst [vmem:[#allocation0 + $0x4f] sm:$0x2] %v207_v45  }
  0x26   :  { %215 = vst [vmem:[#allocation0 + $0x18] sm:$0x1] %v213_v46   ;;  %217 = vst [vmem:[#allocation0 + $0x57] sm:$0x2] %v213_v46   ;;  %v171_v51 = vld [vmem:[#allocation1 + $0x10] sm:$0x3]  }
  0x27   :  { %221 = vst [vmem:[#allocation0 + $0x11] sm:$0x1] %v219_v47   ;;  %223 = vst [vmem:[#allocation0 + $0x50] sm:$0x2] %v219_v47   ;;  %v177_v52 = vld [vmem:[#allocation1 + $0x18] sm:$0x3]  }
  0x28   :  { %v183_v53 = vld [vmem:[#allocation1 + $0x20] sm:$0x3]   ;;  %191 = vst [vmem:[#allocation0 + $0xa] sm:$0x1] %v189_v48   ;;  %193 = vst [vmem:[#allocation0 + $0x49] sm:$0x2] %v189_v48  }
  0x29   :  { %197 = vst [vmem:[#allocation0 + $0x3] sm:$0x1] %v195_v49   ;;  %199 = vst [vmem:[#allocation0 + $0x42] sm:$0x2] %v195_v49   ;;  %v160_v54 = vld [vmem:[#allocation1] sm:$0x3]  }
  0x2a   :  { %203 = vst [vmem:[#allocation0 + $0xb] sm:$0x1] %v201_v50   ;;  %205 = vst [vmem:[#allocation0 + $0x4a] sm:$0x2] %v201_v50   ;;  %v165_v55 = vld [vmem:[#allocation1 + $0x8] sm:$0x3]  }
  0x2b   :  { %173 = vst [vmem:[#allocation0 + $0x1] sm:$0x1] %v171_v51   ;;  %175 = vst [vmem:[#allocation0 + $0x40] sm:$0x2] %v171_v51   ;;  %v303_v56 = vld [vmem:[#allocation1 + $0xc0] sm:$0x3]  }
  0x2c   :  { %179 = vst [vmem:[#allocation0 + $0x9] sm:$0x1] %v177_v52   ;;  %181 = vst [vmem:[#allocation0 + $0x48] sm:$0x2] %v177_v52   ;;  %v309_v57 = vld [vmem:[#allocation1 + $0xc8] sm:$0x3]  }
  0x2d   :  { %185 = vst [vmem:[#allocation0 + $0x2] sm:$0x1] %v183_v53   ;;  %187 = vst [vmem:[#allocation0 + $0x41] sm:$0x2] %v183_v53   ;;  %v315_v58 = vld [vmem:[#allocation1 + $0xd0] sm:$0x3]  }
  0x2e   :  { %161 = vst [vmem:[#allocation0] sm:$0x1] %v160_v54   ;;  %163 = vst [vmem:[#allocation0 + $0x3f] sm:$0x2] %v160_v54   ;;  %v321_v59 = vld [vmem:[#allocation1 + $0xd8] sm:$0x3]  }
  0x2f   :  { %167 = vst [vmem:[#allocation0 + $0x8] sm:$0x1] %v165_v55   ;;  %169 = vst [vmem:[#allocation0 + $0x47] sm:$0x2] %v165_v55   ;;  %v327_v60 = vld [vmem:[#allocation1 + $0xe0] sm:$0x3]  }
  0x30   :  { %305 = vst [vmem:[#allocation0 + $0x30] sm:$0x1] %v303_v56   ;;  %307 = vst [vmem:[#allocation0 + $0x6f] sm:$0x2] %v303_v56   ;;  %v333_v61 = vld [vmem:[#allocation1 + $0xe8] sm:$0x3]  }
  0x31   :  { %311 = vst [vmem:[#allocation0 + $0x38] sm:$0x1] %v309_v57   ;;  %313 = vst [vmem:[#allocation0 + $0x77] sm:$0x2] %v309_v57   ;;  %v339_v62 = vld [vmem:[#allocation1 + $0xf0] sm:$0x3]  }
  0x32   :  { %317 = vst [vmem:[#allocation0 + $0x31] sm:$0x1] %v315_v58   ;;  %319 = vst [vmem:[#allocation0 + $0x70] sm:$0x2] %v315_v58   ;;  %v345_v63 = vld [vmem:[#allocation1 + $0xf8] sm:$0x3]  }
  0x33   :  { %323 = vst [vmem:[#allocation0 + $0x39] sm:$0x1] %v321_v59   ;;  %325 = vst [vmem:[#allocation0 + $0x78] sm:$0x2] %v321_v59   ;;  %v374_v0 = vld [vmem:[#allocation0 + $0x20] sm:$0xf] }
  0x34   :  { %329 = vst [vmem:[#allocation0 + $0x32] sm:$0x1] %v327_v60   ;;  %331 = vst [vmem:[#allocation0 + $0x71] sm:$0x2] %v327_v60   ;;  %v380_v1 = vld [vmem:[#allocation0 + $0x28] sm:$0xf] }
  0x35   :  { %335 = vst [vmem:[#allocation0 + $0x3a] sm:$0x1] %v333_v61   ;;  %337 = vst [vmem:[#allocation0 + $0x79] sm:$0x2] %v333_v61   ;;  %v422_v2 = vld [vmem:[#allocation0 + $0x60] sm:$0xf] }
  0x36   :  { %341 = vst [vmem:[#allocation0 + $0x33] sm:$0x1] %v339_v62   ;;  %343 = vst [vmem:[#allocation0 + $0x72] sm:$0x2] %v339_v62   ;;  %v428_v3 = vld [vmem:[#allocation0 + $0x68] sm:$0xf] }
  0x37   :  { %347 = vst [vmem:[#allocation0 + $0x3b] sm:$0x1] %v345_v63   ;;  %349 = vst [vmem:[#allocation0 + $0x7a] sm:$0x2] %v345_v63   ;;  %v362_v4 = vld [vmem:[#allocation0 + $0x10] sm:$0xf] }
  0x38   :  { %523 = vst [vmem:[%s690_s1 + $0x10] sm:$0xf] %v374_v0  ;;  %524 = vst [vmem:[%s690_s1 + $0x14] sm:$0xf] %v380_v1  ;;  %v368_v5 = vld [vmem:[#allocation0 + $0x18] sm:$0xf] }
  0x39   :  { %v410_v6 = vld [vmem:[#allocation0 + $0x50] sm:$0xf]  ;;  %531 = vst [vmem:[%s690_s1 + $0x30] sm:$0xf] %v422_v2  ;;  %532 = vst [vmem:[%s690_s1 + $0x34] sm:$0xf] %v428_v3 }
  0x3a   :  { %521 = vst [vmem:[%s690_s1 + $0x8] sm:$0xf] %v362_v4  ;;  %522 = vst [vmem:[%s690_s1 + $0xc] sm:$0xf] %v368_v5  ;;  %v416_v7 = vld [vmem:[#allocation0 + $0x58] sm:$0xf] }
  0x3b   :  { %529 = vst [vmem:[%s690_s1 + $0x28] sm:$0xf] %v410_v6  ;;  %530 = vst [vmem:[%s690_s1 + $0x2c] sm:$0xf] %v416_v7  ;;  %v353_v8 = vld [vmem:[#allocation0] sm:$0xf] }
  0x3c   :  { %v357_v9 = vld [vmem:[#allocation0 + $0x8] sm:$0xf]  ;;  %v398_v10 = vld [vmem:[#allocation0 + $0x40] sm:$0xf]  ;;  %355 = vst [vmem:[%s690_s1] sm:$0xf] %v353_v8 }
  0x3d   :  { %520 = vst [vmem:[%s690_s1 + $0x4] sm:$0xf] %v357_v9  ;;  %527 = vst [vmem:[%s690_s1 + $0x20] sm:$0xf] %v398_v10  ;;  %v404_v11 = vld [vmem:[#allocation0 + $0x48] sm:$0xf] }
  0x3e   :  { %v386_v12 = vld [vmem:[#allocation0 + $0x30] sm:$0xf]  ;;  %528 = vst [vmem:[%s690_s1 + $0x24] sm:$0xf] %v404_v11  ;;  %v392_v14 = vld [vmem:[#allocation0 + $0x38] sm:$0xf] }
  0x3f   :  { %v434_v13 = vld [vmem:[#allocation0 + $0x70] sm:$0xf]  ;;  %525 = vst [vmem:[%s690_s1 + $0x18] sm:$0xf] %v386_v12  ;;  %v440_v15 = vld [vmem:[#allocation0 + $0x78] sm:$0xf] }
  0x40   :  { %533 = vst [vmem:[%s690_s1 + $0x38] sm:$0xf] %v434_v13  ;;  %526 = vst [vmem:[%s690_s1 + $0x1c] sm:$0xf] %v392_v14 }
  0x41   :  { %534 = vst [vmem:[%s690_s1 + $0x3c] sm:$0xf] %v440_v15 }

// kernel: _lambda_.8
= control target key start
LH: loop header
LB: loop body
LE: loop exit
PB: predicated region body
PF: predicated region fallthrough
CT: control target
= control target key end

     0   :  { %s1388_s1 = inlined_call_operand.vmem [shape: f32[1,1024,128], index: 1, kind: input, shape index: {}]   ;;  %s1389_s0 = inlined_call_operand.vmem [shape: f32[1,32,1024], index: 0, kind: input, shape index: {}]   ;;  %s1390_s2 = inlined_call_operand.vmem [shape: f32[1,128], index: 2, kind: input, shape index: {}]   ;;  %s1391_s3 = inlined_call_operand.vmem [shape: f32[1,128], index: 3, kind: input, shape index: {}]   ;;  %s1392_s4 = inlined_call_operand.vmem [shape: f32[1,32,128], index: 4, kind: output, shape index: {}]  }
   0x1   :  { %v65_v0 = vld [vmem:[%s1388_s1 + $0x80] sm:$0xff]  ;;  %v66_v1 = vld [vmem:[%s1388_s1 + $0x88] sm:$0xff]  ;;  %v67_v11 = vld [vmem:[%s1388_s1 + $0x90] sm:$0xff] }
   0x2   :  { %v97_v2 = vld [vmem:[%s1388_s1 + $0x180] sm:$0xff]  ;;  %v737_v3 = vpack.c.bf16 %v66_v1, %v65_v0  ;;  %v98_v4 = vld [vmem:[%s1388_s1 + $0x188] sm:$0xff]  ;;  %v68_v13 = vld [vmem:[%s1388_s1 + $0x98] sm:$0xff] }
   0x3   :  { %v49_v5 = vld [vmem:[%s1388_s1] sm:$0xff]  ;;  %v50_v6 = vld [vmem:[%s1388_s1 + $0x8] sm:$0xff]  ;;  %v769_v7 = vpack.c.bf16 %v98_v4, %v97_v2  ;;  %v99_v14 = vld [vmem:[%s1388_s1 + $0x190] sm:$0xff]  ;;  %v741_v16 = vpack.c.bf16 %v68_v13, %v67_v11 }
   0x4   :  { %v739_v8 = vpack.c.bf16 %v50_v6, %v49_v5  ;;  %v81_v9 = vld [vmem:[%s1388_s1 + $0x100] sm:$0xff]  ;;  %v82_v10 = vld [vmem:[%s1388_s1 + $0x108] sm:$0xff]  ;;  %738 = vmatprep.subr.bf16.mxu0 %v737_v3  ;;  %v100_v15 = vld [vmem:[%s1388_s1 + $0x198] sm:$0xff] }
   0x5   :  { %v771_v12 = vpack.c.bf16 %v82_v10, %v81_v9  ;;  %770 = vmatprep.subr.bf16.mxu1 %v769_v7  ;;  %v773_v17 = vpack.c.bf16 %v100_v15, %v99_v14  ;;  %v51_v18 = vld [vmem:[%s1388_s1 + $0x10] sm:$0xff]  ;;  %v52_v19 = vld [vmem:[%s1388_s1 + $0x18] sm:$0xff]  ;;  %v69_v23 = vld [vmem:[%s1388_s1 + $0xa0] sm:$0xff] }
   0x6   :  { %740 = vmatpush3.bf16.msra.mxu0 %v739_v8  ;;  %v83_v20 = vld [vmem:[%s1388_s1 + $0x110] sm:$0xff]  ;;  %v743_v21 = vpack.c.bf16 %v52_v19, %v51_v18  ;;  %v84_v22 = vld [vmem:[%s1388_s1 + $0x118] sm:$0xff]  ;;  %v70_v24 = vld [vmem:[%s1388_s1 + $0xa8] sm:$0xff] }
   0x7   :  { %772 = vmatpush3.bf16.msra.mxu1 %v771_v12  ;;  %742 = vmatprep.subr.bf16.mxu0 %v741_v16  ;;  %v775_v25 = vpack.c.bf16 %v84_v22, %v83_v20  ;;  %v745_v26 = vpack.c.bf16 %v70_v24, %v69_v23  ;;  %v101_v27 = vld [vmem:[%s1388_s1 + $0x1a0] sm:$0xff]  ;;  %v102_v28 = vld [vmem:[%s1388_s1 + $0x1a8] sm:$0xff]  ;;  %v71_v35 = vld [vmem:[%s1388_s1 + $0xb0] sm:$0xff] }
   0x8   :  { %774 = vmatprep.subr.bf16.mxu1 %v773_v17  ;;  %v53_v29 = vld [vmem:[%s1388_s1 + $0x20] sm:$0xff]  ;;  %v777_v30 = vpack.c.bf16 %v102_v28, %v101_v27  ;;  %v54_v31 = vld [vmem:[%s1388_s1 + $0x28] sm:$0xff]  ;;  %v72_v36 = vld [vmem:[%s1388_s1 + $0xb8] sm:$0xff] }
   0x9   :  { %v85_v32 = vld [vmem:[%s1388_s1 + $0x120] sm:$0xff]  ;;  %v86_v33 = vld [vmem:[%s1388_s1 + $0x128] sm:$0xff]  ;;  %v747_v34 = vpack.c.bf16 %v54_v31, %v53_v29  ;;  %v103_v37 = vld [vmem:[%s1388_s1 + $0x1b0] sm:$0xff]  ;;  %v749_v39 = vpack.c.bf16 %v72_v36, %v71_v35 }
   0xa   :  { %744 = vmatpush3.bf16.msra.mxu0 %v743_v21  ;;  %v779_v38 = vpack.c.bf16 %v86_v33, %v85_v32  ;;  %v104_v40 = vld [vmem:[%s1388_s1 + $0x1b8] sm:$0xff]  ;;  %v55_v41 = vld [vmem:[%s1388_s1 + $0x30] sm:$0xff]  ;;  %v73_v46 = vld [vmem:[%s1388_s1 + $0xc0] sm:$0xff] }
   0xb   :  { %776 = vmatpush3.bf16.msra.mxu1 %v775_v25  ;;  %746 = vmatprep.subr.bf16.mxu0 %v745_v26  ;;  %v56_v42 = vld [vmem:[%s1388_s1 + $0x38] sm:$0xff]  ;;  %v781_v43 = vpack.c.bf16 %v104_v40, %v103_v37  ;;  %v87_v44 = vld [vmem:[%s1388_s1 + $0x130] sm:$0xff]  ;;  %v74_v47 = vld [vmem:[%s1388_s1 + $0xc8] sm:$0xff] }
   0xc   :  { %778 = vmatprep.subr.bf16.mxu1 %v777_v30  ;;  %v88_v45 = vld [vmem:[%s1388_s1 + $0x138] sm:$0xff]  ;;  %v105_v48 = vld [vmem:[%s1388_s1 + $0x1c0] sm:$0xff]  ;;  %v106_v49 = vld [vmem:[%s1388_s1 + $0x1c8] sm:$0xff]  ;;  %v751_v50 = vpack.c.bf16 %v56_v42, %v55_v41  ;;  %v753_v52 = vpack.c.bf16 %v74_v47, %v73_v46 }
   0xd   :  { %v783_v51 = vpack.c.bf16 %v88_v45, %v87_v44  ;;  %v57_v53 = vld [vmem:[%s1388_s1 + $0x40] sm:$0xff]  ;;  %v58_v54 = vld [vmem:[%s1388_s1 + $0x48] sm:$0xff]  ;;  %v785_v56 = vpack.c.bf16 %v106_v49, %v105_v48  ;;  %v75_v58 = vld [vmem:[%s1388_s1 + $0xd0] sm:$0xff] }
   0xe   :  { %748 = vmatpush3.bf16.msra.mxu0 %v747_v34  ;;  %v89_v55 = vld [vmem:[%s1388_s1 + $0x140] sm:$0xff]  ;;  %v90_v57 = vld [vmem:[%s1388_s1 + $0x148] sm:$0xff]  ;;  %v76_v59 = vld [vmem:[%s1388_s1 + $0xd8] sm:$0xff]  ;;  %v755_v62 = vpack.c.bf16 %v58_v54, %v57_v53 }
   0xf   :  { %780 = vmatpush3.bf16.msra.mxu1 %v779_v38  ;;  %750 = vmatprep.subr.bf16.mxu0 %v749_v39  ;;  %v107_v60 = vld [vmem:[%s1388_s1 + $0x1d0] sm:$0xff]  ;;  %v108_v61 = vld [vmem:[%s1388_s1 + $0x1d8] sm:$0xff]  ;;  %v787_v63 = vpack.c.bf16 %v90_v57, %v89_v55  ;;  %v757_v0 = vpack.c.bf16 %v76_v59, %v75_v58  ;;  %v77_v6 = vld [vmem:[%s1388_s1 + $0xe0] sm:$0xff] }
  0x10   :  { %782 = vmatprep.subr.bf16.mxu1 %v781_v43  ;;  %v59_v1 = vld [vmem:[%s1388_s1 + $0x50] sm:$0xff]  ;;  %v60_v2 = vld [vmem:[%s1388_s1 + $0x58] sm:$0xff]  ;;  %v789_v4 = vpack.c.bf16 %v108_v61, %v107_v60  ;;  %v78_v7 = vld [vmem:[%s1388_s1 + $0xe8] sm:$0xff] }
  0x11   :  { %v91_v3 = vld [vmem:[%s1388_s1 + $0x150] sm:$0xff]  ;;  %v92_v5 = vld [vmem:[%s1388_s1 + $0x158] sm:$0xff]  ;;  %v109_v8 = vld [vmem:[%s1388_s1 + $0x1e0] sm:$0xff]  ;;  %v759_v10 = vpack.c.bf16 %v60_v2, %v59_v1  ;;  %v761_v14 = vpack.c.bf16 %v78_v7, %v77_v6 }
  0x12   :  { %752 = vmatpush3.bf16.msra.mxu0 %v751_v50  ;;  %v110_v9 = vld [vmem:[%s1388_s1 + $0x1e8] sm:$0xff]  ;;  %v61_v11 = vld [vmem:[%s1388_s1 + $0x60] sm:$0xff]  ;;  %v791_v13 = vpack.c.bf16 %v92_v5, %v91_v3  ;;  %v20_v17 = vld [vmem:[%s1389_s0 + $0x18] sm:$0xff] }
  0x13   :  { %784 = vmatpush3.bf16.msra.mxu1 %v783_v51  ;;  %754 = vmatprep.subr.bf16.mxu0 %v753_v52  ;;  %v62_v12 = vld [vmem:[%s1388_s1 + $0x68] sm:$0xff]  ;;  %v93_v15 = vld [vmem:[%s1388_s1 + $0x160] sm:$0xff]  ;;  %v793_v18 = vpack.c.bf16 %v110_v9, %v109_v8  ;;  %v79_v20 = vld [vmem:[%s1388_s1 + $0xf0] sm:$0xff] }
  0x14   :  { %786 = vmatprep.subr.bf16.mxu1 %v785_v56  ;;  %v18_v16 = vld [vmem:[%s1389_s0 + $0x8] sm:$0xff]  ;;  %v80_v21 = vld [vmem:[%s1388_s1 + $0xf8] sm:$0xff]  ;;  %v111_v22 = vld [vmem:[%s1388_s1 + $0x1f0] sm:$0xff]  ;;  %326 = vmatprep.mubr.f32.mxu1 %v20_v17  ;;  %v763_v24 = vpack.c.bf16 %v62_v12, %v61_v11 }
  0x15   :  { %v94_v19 = vld [vmem:[%s1388_s1 + $0x168] sm:$0xff]  ;;  %241 = vmatprep.mubr.f32.mxu0 %v18_v16  ;;  %v112_v23 = vld [vmem:[%s1388_s1 + $0x1f8] sm:$0xff]  ;;  %v765_v26 = vpack.c.bf16 %v80_v21, %v79_v20  ;;  %v63_v27 = vld [vmem:[%s1388_s1 + $0x70] sm:$0xff] }
  0x16   :  { %756 = vmatpush3.bf16.msra.mxu0 %v755_v62  ;;  %v795_v25 = vpack.c.bf16 %v94_v19, %v93_v15  ;;  %v64_v28 = vld [vmem:[%s1388_s1 + $0x78] sm:$0xff]  ;;  %v95_v29 = vld [vmem:[%s1388_s1 + $0x170] sm:$0xff]  ;;  %v797_v30 = vpack.c.bf16 %v112_v23, %v111_v22  ;;  %v129_v32 = vld [vmem:[%s1388_s1 + $0x280] sm:$0xff] }
  0x17   :  { %788 = vmatpush3.bf16.msra.mxu1 %v787_v63  ;;  %758 = vmatprep.subr.bf16.mxu0 %v757_v0  ;;  %v96_v31 = vld [vmem:[%s1388_s1 + $0x178] sm:$0xff]  ;;  %v130_v33 = vld [vmem:[%s1388_s1 + $0x288] sm:$0xff]  ;;  %v161_v34 = vld [vmem:[%s1388_s1 + $0x380] sm:$0xff]  ;;  %v767_v36 = vpack.c.bf16 %v64_v28, %v63_v27 }
  0x18   :  { %790 = vmatprep.subr.bf16.mxu1 %v789_v4  ;;  %v162_v35 = vld [vmem:[%s1388_s1 + $0x388] sm:$0xff]  ;;  %v799_v37 = vpack.c.bf16 %v96_v31, %v95_v29  ;;  %v801_v38 = vpack.c.bf16 %v130_v33, %v129_v32  ;;  %v113_v39 = vld [vmem:[%s1388_s1 + $0x200] sm:$0xff]  ;;  %v131_v44 = vld [vmem:[%s1388_s1 + $0x290] sm:$0xff] }
  0x19   :  { %v114_v40 = vld [vmem:[%s1388_s1 + $0x208] sm:$0xff]  ;;  %v145_v41 = vld [vmem:[%s1388_s1 + $0x300] sm:$0xff]  ;;  %v833_v42 = vpack.c.bf16 %v162_v35, %v161_v34  ;;  %v132_v45 = vld [vmem:[%s1388_s1 + $0x298] sm:$0xff] }
  0x1a   :  { %760 = vmatpush3.bf16.msra.mxu0 %v759_v10  ;;  %v146_v43 = vld [vmem:[%s1388_s1 + $0x308] sm:$0xff]  ;;  %v163_v46 = vld [vmem:[%s1388_s1 + $0x390] sm:$0xff]  ;;  %v164_v47 = vld [vmem:[%s1388_s1 + $0x398] sm:$0xff]  ;;  %v803_v50 = vpack.c.bf16 %v114_v40, %v113_v39  ;;  %v805_v52 = vpack.c.bf16 %v132_v45, %v131_v44 }
  0x1b   :  { %792 = vmatpush3.bf16.msra.mxu1 %v791_v13  ;;  %762 = vmatprep.subr.bf16.mxu0 %v761_v14  ;;  %v17_v48 = vld [vmem:[%s1389_s0] sm:$0xff]  ;;  %v19_v49 = vld [vmem:[%s1389_s0 + $0x10] sm:$0xff]  ;;  %v835_v51 = vpack.c.bf16 %v146_v43, %v145_v41  ;;  %v116_v54 = vld [vmem:[%s1388_s1 + $0x218] sm:$0xff]  ;;  %v837_v56 = vpack.c.bf16 %v164_v47, %v163_v46 }
  0x1c   :  { %794 = vmatprep.subr.bf16.mxu1 %v793_v18  ;;  %v115_v53 = vld [vmem:[%s1388_s1 + $0x210] sm:$0xff]  ;;  %v148_v57 = vld [vmem:[%s1388_s1 + $0x318] sm:$0xff]  ;;  %v133_v58 = vld [vmem:[%s1388_s1 + $0x2a0] sm:$0xff] }
  0x1d   :  { %v147_v55 = vld [vmem:[%s1388_s1 + $0x310] sm:$0xff]  ;;  %v134_v59 = vld [vmem:[%s1388_s1 + $0x2a8] sm:$0xff]  ;;  %v165_v60 = vld [vmem:[%s1388_s1 + $0x3a0] sm:$0xff]  ;;  %v807_v63 = vpack.c.bf16 %v116_v54, %v115_v53 }
  0x1e   :  { %764 = vmatpush3.bf16.msra.mxu0 %v763_v24  ;;  %v166_v61 = vld [vmem:[%s1388_s1 + $0x3a8] sm:$0xff]  ;;  %v117_v0 = vld [vmem:[%s1388_s1 + $0x220] sm:$0xff]  ;;  %v28_v1 = vld [vmem:[%s1389_s0 + $0x58] sm:$0xff]  ;;  %v839_v3 = vpack.c.bf16 %v148_v57, %v147_v55  ;;  %v809_v4 = vpack.c.bf16 %v134_v59, %v133_v58 }
  0x1f   :  { %796 = vmatpush3.bf16.msra.mxu1 %v795_v25  ;;  %766 = vmatprep.subr.bf16.mxu0 %v765_v26  ;;  %v26_v62 = vld [vmem:[%s1389_s0 + $0x48] sm:$0xff]  ;;  %v25_v2 = vld [vmem:[%s1389_s0 + $0x40] sm:$0xff]  ;;  %v27_v7 = vld [vmem:[%s1389_s0 + $0x50] sm:$0xff]  ;;  %v841_v8 = vpack.c.bf16 %v166_v61, %v165_v60 }
  0x20   :  { %798 = vmatprep.subr.bf16.mxu1 %v797_v30  ;;  %v118_v5 = vld [vmem:[%s1388_s1 + $0x228] sm:$0xff]  ;;  %v149_v6 = vld [vmem:[%s1388_s1 + $0x320] sm:$0xff]  ;;  %v135_v10 = vld [vmem:[%s1388_s1 + $0x2b0] sm:$0xff] }
  0x21   :  { %v150_v9 = vld [vmem:[%s1388_s1 + $0x328] sm:$0xff]  ;;  %v136_v11 = vld [vmem:[%s1388_s1 + $0x2b8] sm:$0xff]  ;;  %v167_v12 = vld [vmem:[%s1388_s1 + $0x3b0] sm:$0xff]  ;;  %v811_v15 = vpack.c.bf16 %v118_v5, %v117_v0 }
  0x22   :  { %768 = vmatpush3.bf16.msra.mxu0 %v767_v36  ;;  %v168_v13 = vld [vmem:[%s1388_s1 + $0x3b8] sm:$0xff]  ;;  %v34_v14 = vld [vmem:[%s1389_s0 + $0x88] sm:$0xff]  ;;  %v119_v16 = vld [vmem:[%s1388_s1 + $0x230] sm:$0xff]  ;;  %v843_v19 = vpack.c.bf16 %v150_v9, %v149_v6  ;;  %v813_v20 = vpack.c.bf16 %v136_v11, %v135_v10 }
  0x23   :  { %800 = vmatpush3.bf16.msra.mxu1 %v799_v37  ;;  %802 = vmatprep.subr.bf16.mxu0 %v801_v38  ;;  %v36_v17 = vld [vmem:[%s1389_s0 + $0x98] sm:$0xff]  ;;  %v33_v18 = vld [vmem:[%s1389_s0 + $0x80] sm:$0xff]  ;;  %v151_v22 = vld [vmem:[%s1388_s1 + $0x330] sm:$0xff]  ;;  %v845_v24 = vpack.c.bf16 %v168_v13, %v167_v12 }
  0x24   :  { %834 = vmatprep.subr.bf16.mxu1 %v833_v42  ;;  %v120_v21 = vld [vmem:[%s1388_s1 + $0x238] sm:$0xff]  ;;  %v35_v23 = vld [vmem:[%s1389_s0 + $0x90] sm:$0xff]  ;;  %v137_v26 = vld [vmem:[%s1388_s1 + $0x2c0] sm:$0xff] }
  0x25   :  { %242 = vmatmul.mubr.f32.vlgmr.msra.gmra.mrb[0].mxu0 %v17_v48  ;;  %v152_v25 = vld [vmem:[%s1388_s1 + $0x338] sm:$0xff]  ;;  %v138_v27 = vld [vmem:[%s1388_s1 + $0x2c8] sm:$0xff]  ;;  %v169_v28 = vld [vmem:[%s1388_s1 + $0x3c0] sm:$0xff]  ;;  %v815_v31 = vpack.c.bf16 %v120_v21, %v119_v16 }
  0x26   :  { %327 = vmatmul.mubr.f32.vlgmr.msra.gmra.mrb[0].mxu1 %v19_v49  ;;  %804 = vmatpush3.bf16.msra.mxu0 %v803_v50  ;;  %v170_v29 = vld [vmem:[%s1388_s1 + $0x3c8] sm:$0xff]  ;;  %v121_v32 = vld [vmem:[%s1388_s1 + $0x240] sm:$0xff]  ;;  %v44_v33 = vld [vmem:[%s1389_s0 + $0xd8] sm:$0xff]  ;;  %v847_v35 = vpack.c.bf16 %v152_v25, %v151_v22  ;;  %v817_v36 = vpack.c.bf16 %v138_v27, %v137_v26 }
  0x27   :  { %836 = vmatpush3.bf16.msra.mxu1 %v835_v51  ;;  %806 = vmatprep.subr.bf16.mxu0 %v805_v52  ;;  %v42_v30 = vld [vmem:[%s1389_s0 + $0xc8] sm:$0xff]  ;;  %v41_v34 = vld [vmem:[%s1389_s0 + $0xc0] sm:$0xff]  ;;  %v43_v39 = vld [vmem:[%s1389_s0 + $0xd0] sm:$0xff]  ;;  %v849_v40 = vpack.c.bf16 %v170_v29, %v169_v28 }
  0x28   :  { %838 = vmatprep.subr.bf16.mxu1 %v837_v56  ;;  %246 = vmatprep.mubr.f32.mxu0 %v26_v62  ;;  %v122_v37 = vld [vmem:[%s1388_s1 + $0x248] sm:$0xff]  ;;  %v153_v38 = vld [vmem:[%s1388_s1 + $0x340] sm:$0xff]  ;;  %v139_v42 = vld [vmem:[%s1388_s1 + $0x2d0] sm:$0xff] }
  0x29   :  { %331 = vmatprep.mubr.f32.mxu1 %v28_v1  ;;  %247 = vmatmul.mubr.f32.gmra.mrb[2].mxu0 %v25_v2  ;;  %v154_v41 = vld [vmem:[%s1388_s1 + $0x348] sm:$0xff]  ;;  %v140_v43 = vld [vmem:[%s1388_s1 + $0x2d8] sm:$0xff]  ;;  %v171_v44 = vld [vmem:[%s1388_s1 + $0x3d0] sm:$0xff]  ;;  %v819_v46 = vpack.c.bf16 %v122_v37, %v121_v32 }
  0x2a   :  { %808 = vmatpush3.bf16.msra.mxu0 %v807_v63  ;;  %332 = vmatmul.mubr.f32.gmra.mrb[2].mxu1 %v27_v7  ;;  %v172_v45 = vld [vmem:[%s1388_s1 + $0x3d8] sm:$0xff]  ;;  %v22_v47 = vld [vmem:[%s1389_s0 + $0x28] sm:$0xff]  ;;  %v851_v49 = vpack.c.bf16 %v154_v41, %v153_v38  ;;  %v821_v50 = vpack.c.bf16 %v140_v43, %v139_v42  ;;  %v123_v51 = vld [vmem:[%s1388_s1 + $0x250] sm:$0xff] }
  0x2b   :  { %840 = vmatpush3.bf16.msra.mxu1 %v839_v3  ;;  %810 = vmatprep.subr.bf16.mxu0 %v809_v4  ;;  %v24_v48 = vld [vmem:[%s1389_s0 + $0x38] sm:$0xff]  ;;  %v155_v53 = vld [vmem:[%s1388_s1 + $0x350] sm:$0xff]  ;;  %v853_v54 = vpack.c.bf16 %v172_v45, %v171_v44  ;;  %v141_v56 = vld [vmem:[%s1388_s1 + $0x2e0] sm:$0xff] }
  0x2c   :  { %842 = vmatprep.subr.bf16.mxu1 %v841_v8  ;;  %251 = vmatprep.mubr.f32.mxu0 %v34_v14  ;;  %v124_v52 = vld [vmem:[%s1388_s1 + $0x258] sm:$0xff]  ;;  %v142_v57 = vld [vmem:[%s1388_s1 + $0x2e8] sm:$0xff]  ;;  %v173_v58 = vld [vmem:[%s1388_s1 + $0x3e0] sm:$0xff] }
  0x2d   :  { %336 = vmatprep.mubr.f32.mxu1 %v36_v17  ;;  %252 = vmatmul.mubr.f32.gmra.mrb[4].mxu0 %v33_v18  ;;  %v156_v55 = vld [vmem:[%s1388_s1 + $0x358] sm:$0xff]  ;;  %v174_v59 = vld [vmem:[%s1388_s1 + $0x3e8] sm:$0xff]  ;;  %v823_v60 = vpack.c.bf16 %v124_v52, %v123_v51  ;;  %v825_v62 = vpack.c.bf16 %v142_v57, %v141_v56  ;;  %v125_v63 = vld [vmem:[%s1388_s1 + $0x260] sm:$0xff] }
  0x2e   :  { %812 = vmatpush3.bf16.msra.mxu0 %v811_v15  ;;  %337 = vmatmul.mubr.f32.gmra.mrb[4].mxu1 %v35_v23  ;;  %v855_v61 = vpack.c.bf16 %v156_v55, %v155_v53  ;;  %v126_v0 = vld [vmem:[%s1388_s1 + $0x268] sm:$0xff]  ;;  %v157_v1 = vld [vmem:[%s1388_s1 + $0x360] sm:$0xff]  ;;  %v857_v2 = vpack.c.bf16 %v174_v59, %v173_v58  ;;  %v143_v4 = vld [vmem:[%s1388_s1 + $0x2f0] sm:$0xff] }
  0x2f   :  { %844 = vmatpush3.bf16.msra.mxu1 %v843_v19  ;;  %814 = vmatprep.subr.bf16.mxu0 %v813_v20  ;;  %v158_v3 = vld [vmem:[%s1388_s1 + $0x368] sm:$0xff]  ;;  %v144_v5 = vld [vmem:[%s1388_s1 + $0x2f8] sm:$0xff]  ;;  %v175_v6 = vld [vmem:[%s1388_s1 + $0x3f0] sm:$0xff]  ;;  %v827_v8 = vpack.c.bf16 %v126_v0, %v125_v63 }
  0x30   :  { %846 = vmatprep.subr.bf16.mxu1 %v845_v24  ;;  %256 = vmatprep.mubr.f32.mxu0 %v42_v30  ;;  %v176_v7 = vld [vmem:[%s1388_s1 + $0x3f8] sm:$0xff]  ;;  %v859_v9 = vpack.c.bf16 %v158_v3, %v157_v1  ;;  %v829_v10 = vpack.c.bf16 %v144_v5, %v143_v4  ;;  %v127_v11 = vld [vmem:[%s1388_s1 + $0x270] sm:$0xff]  ;;  %v21_v18 = vld [vmem:[%s1389_s0 + $0x20] sm:$0xff] }
  0x31   :  { %341 = vmatprep.mubr.f32.mxu1 %v44_v33  ;;  %257 = vmatmul.mubr.f32.gmra.mrb[6].mxu0 %v41_v34  ;;  %v128_v12 = vld [vmem:[%s1388_s1 + $0x278] sm:$0xff]  ;;  %v861_v13 = vpack.c.bf16 %v176_v7, %v175_v6  ;;  %v159_v14 = vld [vmem:[%s1388_s1 + $0x370] sm:$0xff]  ;;  %v30_v20 = vld [vmem:[%s1389_s0 + $0x68] sm:$0xff] }
  0x32   :  { %816 = vmatpush3.bf16.msra.mxu0 %v815_v31  ;;  %342 = vmatmul.mubr.f32.gmra.mrb[6].mxu1 %v43_v39  ;;  %v160_v15 = vld [vmem:[%s1388_s1 + $0x378] sm:$0xff]  ;;  %v831_v16 = vpack.c.bf16 %v128_v12, %v127_v11  ;;  %v23_v19 = vld [vmem:[%s1389_s0 + $0x30] sm:$0xff]  ;;  %v29_v22 = vld [vmem:[%s1389_s0 + $0x60] sm:$0xff] }
  0x33   :  { %848 = vmatpush3.bf16.msra.mxu1 %v847_v35  ;;  %818 = vmatprep.subr.bf16.mxu0 %v817_v36  ;;  %v863_v17 = vpack.c.bf16 %v160_v15, %v159_v14  ;;  %v32_v21 = vld [vmem:[%s1389_s0 + $0x78] sm:$0xff]  ;;  %v31_v23 = vld [vmem:[%s1389_s0 + $0x70] sm:$0xff]  ;;  %v38_v24 = vld [vmem:[%s1389_s0 + $0xa8] sm:$0xff] }
  0x34   :  { %850 = vmatprep.subr.bf16.mxu1 %v849_v40  ;;  %411 = vmatprep.mubr.f32.mxu0 %v22_v47  ;;  %v40_v25 = vld [vmem:[%s1389_s0 + $0xb8] sm:$0xff]  ;;  %v37_v26 = vld [vmem:[%s1389_s0 + $0xa0] sm:$0xff]  ;;  %v39_v27 = vld [vmem:[%s1389_s0 + $0xb0] sm:$0xff] }
  0x35   :  { %496 = vmatprep.mubr.f32.mxu1 %v24_v48  ;;  %v46_v28 = vld [vmem:[%s1389_s0 + $0xe8] sm:$0xff]  ;;  %v48_v29 = vld [vmem:[%s1389_s0 + $0xf8] sm:$0xff]  ;;  %v45_v30 = vld [vmem:[%s1389_s0 + $0xe0] sm:$0xff] }
  0x36   :  { %820 = vmatpush3.bf16.msra.mxu0 %v819_v46  ;;  %v47_v31 = vld [vmem:[%s1389_s0 + $0xf0] sm:$0xff]  ;;  %v559_v4 = vld [vmem:[%s1390_s2] ss:$0 sm:$0xff] }
  0x37   :  { %852 = vmatpush3.bf16.msra.mxu1 %v851_v49  ;;  %822 = vmatprep.subr.bf16.mxu0 %v821_v50 }
  0x38   :  { %854 = vmatprep.subr.bf16.mxu1 %v853_v54 }
  0x3a   :  { %824 = vmatpush3.bf16.msra.mxu0 %v823_v60 }
  0x3b   :  { %856 = vmatpush3.bf16.msra.mxu1 %v855_v61  ;;  %826 = vmatprep.subr.bf16.mxu0 %v825_v62 }
  0x3c   :  { %858 = vmatprep.subr.bf16.mxu1 %v857_v2 }
  0x3e   :  { %828 = vmatpush3.bf16.msra.mxu0 %v827_v8 }
  0x3f   :  { %860 = vmatpush3.bf16.msra.mxu1 %v859_v9  ;;  %830 = vmatprep.subr.bf16.mxu0 %v829_v10  ;;  %v560_v10 = vld [vmem:[%s1391_s3] ss:$0 sm:$0xff] }
  0x40   :  { %862 = vmatprep.subr.bf16.mxu1 %v861_v13 }
  0x42   :  { %832 = vmatpush3.bf16.msra.mxu0 %v831_v16 }
  0x43   :  { %864 = vmatpush3.bf16.msra.mxu1 %v863_v17 }
  0x45   :  { %412 = vmatmul.mubr.f32.vlgmr.msra.gmra.mrb[8].mxu0 %v21_v18 }
  0x46   :  { %497 = vmatmul.mubr.f32.vlgmr.msra.gmra.mrb[8].mxu1 %v23_v19  ;;  %416 = vmatprep.mubr.f32.mxu0 %v30_v20 }
  0x47   :  { %501 = vmatprep.mubr.f32.mxu1 %v32_v21 }
  0x49   :  { %417 = vmatmul.mubr.f32.gmra.mrb[10].mxu0 %v29_v22 }
  0x4a   :  { %502 = vmatmul.mubr.f32.gmra.mrb[10].mxu1 %v31_v23  ;;  %421 = vmatprep.mubr.f32.mxu0 %v38_v24 }
  0x4b   :  { %506 = vmatprep.mubr.f32.mxu1 %v40_v25 }
  0x4d   :  { %422 = vmatmul.mubr.f32.gmra.mrb[12].mxu0 %v37_v26 }
  0x4e   :  { %507 = vmatmul.mubr.f32.gmra.mrb[12].mxu1 %v39_v27  ;;  %426 = vmatprep.mubr.f32.mxu0 %v46_v28 }
  0x4f   :  { %511 = vmatprep.mubr.f32.mxu1 %v48_v29 }
  0x51   :  { %427 = vmatmul.mubr.f32.gmra.mrb[14].mxu0 %v45_v30 }
  0x52   :  { %512 = vmatmul.mubr.f32.gmra.mrb[14].mxu1 %v47_v31 }
  0xf8   :  { %v593_v32 = vpop.f32.mrb[0].mxu0 }
  0xf9   :  { %v637_v33 = vpop.f32.mrb[0].mxu1  ;;  %v594_v34 = vpop.f32.mrb[1].mxu0 }
  0xfa   :  { %v595_v35 = vadd.f32 %v594_v34, %v593_v32  ;;  %v638_v36 = vpop.f32.mrb[1].mxu1 }
  0xfb   :  { %v639_v37 = vadd.f32 %v638_v36, %v637_v33 }
  0xfc   :  { %v596_v38 = vpop.f32.mrb[2].mxu0 }
  0xfd   :  { %v329_v39 = vadd.f32 %v639_v37, %v595_v35  ;;  %v640_v40 = vpop.f32.mrb[2].mxu1  ;;  %v597_v41 = vpop.f32.mrb[3].mxu0 }
  0xfe   :  { %v598_v42 = vadd.f32 %v597_v41, %v596_v38  ;;  %v641_v43 = vpop.f32.mrb[3].mxu1 }
  0xff   :  { %v642_v44 = vadd.f32 %v641_v43, %v640_v40 }
 0x100   :  { %v599_v45 = vpop.f32.mrb[4].mxu0 }
 0x101   :  { %v334_v46 = vadd.f32 %v642_v44, %v598_v42  ;;  %v643_v47 = vpop.f32.mrb[4].mxu1  ;;  %v600_v48 = vpop.f32.mrb[5].mxu0 }
 0x102   :  { %v601_v49 = vadd.f32 %v600_v48, %v599_v45  ;;  %v644_v50 = vpop.f32.mrb[5].mxu1 }
 0x103   :  { %v645_v51 = vadd.f32 %v644_v50, %v643_v47 }
 0x104   :  { %v602_v52 = vpop.f32.mrb[6].mxu0 }
 0x105   :  { %v339_v53 = vadd.f32 %v645_v51, %v601_v49  ;;  %v646_v54 = vpop.f32.mrb[6].mxu1  ;;  %v603_v55 = vpop.f32.mrb[7].mxu0 }
 0x106   :  { %v604_v56 = vadd.f32 %v603_v55, %v602_v52  ;;  %v647_v57 = vpop.f32.mrb[7].mxu1 }
 0x107   :  { %v648_v58 = vadd.f32 %v647_v57, %v646_v54 }
 0x109   :  { %v344_v59 = vadd.f32 %v648_v58, %v604_v56 }
 0x118   :  { %v681_v60 = vpop.f32.mrb[8].mxu0 }
 0x119   :  { %v682_v61 = vpop.f32.mrb[9].mxu0  ;;  %v725_v62 = vpop.f32.mrb[8].mxu1 }
 0x11a   :  { %v683_v63 = vadd.f32 %v682_v61, %v681_v60  ;;  %v726_v0 = vpop.f32.mrb[9].mxu1 }
 0x11b   :  { %v727_v1 = vadd.f32 %v726_v0, %v725_v62 }
 0x11c   :  { %v414_v2 = vadd.f32 %v683_v63, %v329_v39  ;;  %v684_v3 = vpop.f32.mrb[10].mxu0 }
 0x11d   :  { %v685_v5 = vpop.f32.mrb[11].mxu0  ;;  %v728_v6 = vpop.f32.mrb[10].mxu1 }
 0x11e   :  { %v499_v7 = vadd.f32 %v727_v1, %v414_v2  ;;  %v686_v8 = vadd.f32 %v685_v5, %v684_v3  ;;  %v729_v9 = vpop.f32.mrb[11].mxu1 }
 0x11f   :  { %v730_v11 = vadd.f32 %v729_v9, %v728_v6 }
 0x120   :  { %v524_v12 = vmul.f32 %v559_v4, %v499_v7  ;;  %v419_v13 = vadd.f32 %v686_v8, %v334_v46  ;;  %v687_v14 = vpop.f32.mrb[12].mxu0 }
 0x121   :  { %v688_v15 = vpop.f32.mrb[13].mxu0  ;;  %v731_v16 = vpop.f32.mrb[12].mxu1 }
 0x122   :  { %v535_v17 = vadd.f32 %v560_v10, %v524_v12  ;;  %v504_v18 = vadd.f32 %v730_v11, %v419_v13  ;;  %v689_v19 = vadd.f32 %v688_v15, %v687_v14  ;;  %v732_v20 = vpop.f32.mrb[13].mxu1 }
 0x123   :  { %v733_v21 = vadd.f32 %v732_v20, %v731_v16 }
 0x124   :  { %vm539_vm0 = vcmp.gt.f32.partialorder %v535_v17, 0.0  ;;  %v543_v22 = vmul.f32 0.2, %v535_v17  ;;  %v525_v23 = vmul.f32 %v559_v4, %v504_v18  ;;  %v424_v24 = vadd.f32 %v689_v19, %v339_v53  ;;  %v690_v25 = vpop.f32.mrb[14].mxu0 }
 0x125   :  { %v691_v26 = vpop.f32.mrb[15].mxu0  ;;  %v734_v27 = vpop.f32.mrb[14].mxu1 }
 0x126   :  { %v547_v28 = vsel %vm539_vm0, %v535_v17, %v543_v22  ;;  %v536_v29 = vadd.f32 %v560_v10, %v525_v23  ;;  %v509_v30 = vadd.f32 %v733_v21, %v424_v24  ;;  %v692_v31 = vadd.f32 %v691_v26, %v690_v25  ;;  %v735_v32 = vpop.f32.mrb[15].mxu1 }
 0x127   :  { %551 = vst [vmem:[%s1392_s4] sm:$0xff] %v547_v28  ;;  %v736_v33 = vadd.f32 %v735_v32, %v734_v27 }
 0x128   :  { %vm540_vm1 = vcmp.gt.f32.partialorder %v536_v29, 0.0  ;;  %v544_v34 = vmul.f32 0.2, %v536_v29  ;;  %v526_v35 = vmul.f32 %v559_v4, %v509_v30  ;;  %v429_v36 = vadd.f32 %v692_v31, %v344_v59 }
 0x12a   :  { %v548_v37 = vsel %vm540_vm1, %v536_v29, %v544_v34  ;;  %v537_v38 = vadd.f32 %v560_v10, %v526_v35  ;;  %v514_v39 = vadd.f32 %v736_v33, %v429_v36 }
 0x12b   :  { %552 = vst [vmem:[%s1392_s4 + $0x8] sm:$0xff] %v548_v37 }
 0x12c   :  { %vm541_vm2 = vcmp.gt.f32.partialorder %v537_v38, 0.0  ;;  %v545_v40 = vmul.f32 0.2, %v537_v38  ;;  %v527_v41 = vmul.f32 %v559_v4, %v514_v39 }
 0x12e   :  { %v549_v42 = vsel %vm541_vm2, %v537_v38, %v545_v40  ;;  %v538_v43 = vadd.f32 %v560_v10, %v527_v41 }
 0x12f   :  { %553 = vst [vmem:[%s1392_s4 + $0x10] sm:$0xff] %v549_v42 }
 0x130   :  { %vm542_vm3 = vcmp.gt.f32.partialorder %v538_v43, 0.0  ;;  %v546_v44 = vmul.f32 0.2, %v538_v43 }
 0x132   :  { %v550_v45 = vsel %vm542_vm3, %v538_v43, %v546_v44 }
 0x133   :  { %554 = vst [vmem:[%s1392_s4 + $0x18] sm:$0xff] %v550_v45 }

// kernel: _lambda_.9
= control target key start
LH: loop header
LB: loop body
LE: loop exit
PB: predicated region body
PF: predicated region fallthrough
CT: control target
= control target key end

     0   :  { %v1489_v47 = vmov 1983009808   ;;  %v285_v49 = vlaneseq  ;;  %s2344_s1 = inlined_call_operand.vmem [shape: f32[1,2048,128], index: 1, kind: input, shape index: {}]   ;;  %s2345_s0 = inlined_call_operand.vmem [shape: f32[1,2,2048], index: 0, kind: input, shape index: {}]   ;;  %s2346_s2 = inlined_call_operand.vmem [shape: f32[1,128], index: 2, kind: input, shape index: {}]   ;;  %s2347_s3 = inlined_call_operand.vmem [shape: f32[1,128], index: 3, kind: input, shape index: {}]   ;;  %s2348_s4 = inlined_call_operand.vmem [shape: f32[1,2,128], index: 4, kind: output, shape index: {}]  }
   0x1   :  { %v37_v0 = vld [vmem:[%s2344_s1 + $0x80] sm:$0xff]  ;;  %v38_v1 = vld [vmem:[%s2344_s1 + $0x88] sm:$0xff]  ;;  %v39_v11 = vld [vmem:[%s2344_s1 + $0x90] sm:$0xff]  ;;  %v283_v48 = vunpack.c.l.s4 %v1489_v47 }
   0x2   :  { %v69_v2 = vld [vmem:[%s2344_s1 + $0x180] sm:$0xff]  ;;  %v1228_v3 = vpack.c.bf16 %v38_v1, %v37_v0  ;;  %v70_v4 = vld [vmem:[%s2344_s1 + $0x188] sm:$0xff]  ;;  %v40_v13 = vld [vmem:[%s2344_s1 + $0x98] sm:$0xff]  ;;  %v286_v0 = vshrl.u32 %v285_v49, 7 }
   0x3   :  { %v21_v5 = vld [vmem:[%s2344_s1] sm:$0xff]  ;;  %v22_v6 = vld [vmem:[%s2344_s1 + $0x8] sm:$0xff]  ;;  %v1260_v7 = vpack.c.bf16 %v70_v4, %v69_v2  ;;  %v71_v14 = vld [vmem:[%s2344_s1 + $0x190] sm:$0xff]  ;;  %v1232_v16 = vpack.c.bf16 %v40_v13, %v39_v11  ;;  %v284_v63 = vunpack.c.0.s8 %v283_v48 }
   0x4   :  { %v1230_v8 = vpack.c.bf16 %v22_v6, %v21_v5  ;;  %v53_v9 = vld [vmem:[%s2344_s1 + $0x100] sm:$0xff]  ;;  %v54_v10 = vld [vmem:[%s2344_s1 + $0x108] sm:$0xff]  ;;  %1229 = vmatprep.subr.bf16.mxu0 %v1228_v3  ;;  %v72_v15 = vld [vmem:[%s2344_s1 + $0x198] sm:$0xff] }
   0x5   :  { %v1262_v12 = vpack.c.bf16 %v54_v10, %v53_v9  ;;  %1261 = vmatprep.subr.bf16.mxu1 %v1260_v7  ;;  %v1264_v17 = vpack.c.bf16 %v72_v15, %v71_v14  ;;  %v23_v18 = vld [vmem:[%s2344_s1 + $0x10] sm:$0xff]  ;;  %v24_v19 = vld [vmem:[%s2344_s1 + $0x18] sm:$0xff]  ;;  %v41_v23 = vld [vmem:[%s2344_s1 + $0xa0] sm:$0xff]  ;;  %v1665_v13 = vsub.s32 %v284_v63, %v286_v0 }
   0x6   :  { %1231 = vmatpush3.bf16.msra.mxu0 %v1230_v8  ;;  %v55_v20 = vld [vmem:[%s2344_s1 + $0x110] sm:$0xff]  ;;  %v1234_v21 = vpack.c.bf16 %v24_v19, %v23_v18  ;;  %v56_v22 = vld [vmem:[%s2344_s1 + $0x118] sm:$0xff]  ;;  %v42_v24 = vld [vmem:[%s2344_s1 + $0xa8] sm:$0xff] }
   0x7   :  { %1263 = vmatpush3.bf16.msra.mxu1 %v1262_v12  ;;  %1233 = vmatprep.subr.bf16.mxu0 %v1232_v16  ;;  %v1266_v25 = vpack.c.bf16 %v56_v22, %v55_v20  ;;  %v1236_v26 = vpack.c.bf16 %v42_v24, %v41_v23  ;;  %v73_v27 = vld [vmem:[%s2344_s1 + $0x1a0] sm:$0xff]  ;;  %v74_v28 = vld [vmem:[%s2344_s1 + $0x1a8] sm:$0xff]  ;;  %v43_v35 = vld [vmem:[%s2344_s1 + $0xb0] sm:$0xff] }
   0x8   :  { %1265 = vmatprep.subr.bf16.mxu1 %v1264_v17  ;;  %v25_v29 = vld [vmem:[%s2344_s1 + $0x20] sm:$0xff]  ;;  %v1268_v30 = vpack.c.bf16 %v74_v28, %v73_v27  ;;  %v26_v31 = vld [vmem:[%s2344_s1 + $0x28] sm:$0xff]  ;;  %v44_v36 = vld [vmem:[%s2344_s1 + $0xb8] sm:$0xff] }
   0x9   :  { %v57_v32 = vld [vmem:[%s2344_s1 + $0x120] sm:$0xff]  ;;  %v58_v33 = vld [vmem:[%s2344_s1 + $0x128] sm:$0xff]  ;;  %v1238_v34 = vpack.c.bf16 %v26_v31, %v25_v29  ;;  %v75_v37 = vld [vmem:[%s2344_s1 + $0x1b0] sm:$0xff]  ;;  %v1240_v39 = vpack.c.bf16 %v44_v36, %v43_v35 }
   0xa   :  { %1235 = vmatpush3.bf16.msra.mxu0 %v1234_v21  ;;  %v1270_v38 = vpack.c.bf16 %v58_v33, %v57_v32  ;;  %v76_v40 = vld [vmem:[%s2344_s1 + $0x1b8] sm:$0xff]  ;;  %v27_v41 = vld [vmem:[%s2344_s1 + $0x30] sm:$0xff]  ;;  %v45_v46 = vld [vmem:[%s2344_s1 + $0xc0] sm:$0xff] }
   0xb   :  { %1267 = vmatpush3.bf16.msra.mxu1 %v1266_v25  ;;  %1237 = vmatprep.subr.bf16.mxu0 %v1236_v26  ;;  %v28_v42 = vld [vmem:[%s2344_s1 + $0x38] sm:$0xff]  ;;  %v1272_v43 = vpack.c.bf16 %v76_v40, %v75_v37  ;;  %v59_v44 = vld [vmem:[%s2344_s1 + $0x130] sm:$0xff]  ;;  %v46_v50 = vld [vmem:[%s2344_s1 + $0xc8] sm:$0xff] }
   0xc   :  { %1269 = vmatprep.subr.bf16.mxu1 %v1268_v30  ;;  %v60_v45 = vld [vmem:[%s2344_s1 + $0x138] sm:$0xff]  ;;  %v77_v51 = vld [vmem:[%s2344_s1 + $0x1c0] sm:$0xff]  ;;  %v78_v52 = vld [vmem:[%s2344_s1 + $0x1c8] sm:$0xff]  ;;  %v1242_v53 = vpack.c.bf16 %v28_v42, %v27_v41  ;;  %v1244_v55 = vpack.c.bf16 %v46_v50, %v45_v46 }
   0xd   :  { %v1274_v54 = vpack.c.bf16 %v60_v45, %v59_v44  ;;  %v29_v56 = vld [vmem:[%s2344_s1 + $0x40] sm:$0xff]  ;;  %v30_v57 = vld [vmem:[%s2344_s1 + $0x48] sm:$0xff]  ;;  %v1276_v59 = vpack.c.bf16 %v78_v52, %v77_v51  ;;  %v47_v61 = vld [vmem:[%s2344_s1 + $0xd0] sm:$0xff] }
   0xe   :  { %1239 = vmatpush3.bf16.msra.mxu0 %v1238_v34  ;;  %v61_v58 = vld [vmem:[%s2344_s1 + $0x140] sm:$0xff]  ;;  %v62_v60 = vld [vmem:[%s2344_s1 + $0x148] sm:$0xff]  ;;  %v48_v62 = vld [vmem:[%s2344_s1 + $0xd8] sm:$0xff]  ;;  %v1246_v3 = vpack.c.bf16 %v30_v57, %v29_v56 }
   0xf   :  { %1271 = vmatpush3.bf16.msra.mxu1 %v1270_v38  ;;  %1241 = vmatprep.subr.bf16.mxu0 %v1240_v39  ;;  %v79_v1 = vld [vmem:[%s2344_s1 + $0x1d0] sm:$0xff]  ;;  %v80_v2 = vld [vmem:[%s2344_s1 + $0x1d8] sm:$0xff]  ;;  %v1278_v4 = vpack.c.bf16 %v62_v60, %v61_v58  ;;  %v1248_v5 = vpack.c.bf16 %v48_v62, %v47_v61  ;;  %v49_v11 = vld [vmem:[%s2344_s1 + $0xe0] sm:$0xff] }
  0x10   :  { %1273 = vmatprep.subr.bf16.mxu1 %v1272_v43  ;;  %v31_v6 = vld [vmem:[%s2344_s1 + $0x50] sm:$0xff]  ;;  %v32_v7 = vld [vmem:[%s2344_s1 + $0x58] sm:$0xff]  ;;  %v1280_v9 = vpack.c.bf16 %v80_v2, %v79_v1  ;;  %v50_v12 = vld [vmem:[%s2344_s1 + $0xe8] sm:$0xff] }
  0x11   :  { %v63_v8 = vld [vmem:[%s2344_s1 + $0x150] sm:$0xff]  ;;  %v64_v10 = vld [vmem:[%s2344_s1 + $0x158] sm:$0xff]  ;;  %v81_v14 = vld [vmem:[%s2344_s1 + $0x1e0] sm:$0xff]  ;;  %v1250_v16 = vpack.c.bf16 %v32_v7, %v31_v6  ;;  %v1252_v19 = vpack.c.bf16 %v50_v12, %v49_v11 }
  0x12   :  { %1243 = vmatpush3.bf16.msra.mxu0 %v1242_v53  ;;  %v82_v15 = vld [vmem:[%s2344_s1 + $0x1e8] sm:$0xff]  ;;  %v33_v17 = vld [vmem:[%s2344_s1 + $0x60] sm:$0xff]  ;;  %v1282_v18 = vpack.c.bf16 %v64_v10, %v63_v8  ;;  %v51_v25 = vld [vmem:[%s2344_s1 + $0xf0] sm:$0xff] }
  0x13   :  { %1275 = vmatpush3.bf16.msra.mxu1 %v1274_v54  ;;  %1245 = vmatprep.subr.bf16.mxu0 %v1244_v55  ;;  %v34_v20 = vld [vmem:[%s2344_s1 + $0x68] sm:$0xff]  ;;  %v65_v21 = vld [vmem:[%s2344_s1 + $0x160] sm:$0xff]  ;;  %v1284_v23 = vpack.c.bf16 %v82_v15, %v81_v14  ;;  %v52_v26 = vld [vmem:[%s2344_s1 + $0xf8] sm:$0xff] }
  0x14   :  { %1277 = vmatprep.subr.bf16.mxu1 %v1276_v59  ;;  %v17_v22 = vld [vmem:[%s2345_s0] sm:$0xff]  ;;  %v66_v24 = vld [vmem:[%s2344_s1 + $0x168] sm:$0xff]  ;;  %v83_v29 = vld [vmem:[%s2344_s1 + $0x1f0] sm:$0xff]  ;;  %v1254_v31 = vpack.c.bf16 %v34_v20, %v33_v17  ;;  %v1256_v35 = vpack.c.bf16 %v52_v26, %v51_v25 }
  0x15   :  { %v288_v27 = vrot.slane %v17_v22, %v1665_v13  ;;  %v281_v28 = vcombine.high %v17_v22, %v17_v22  ;;  %v84_v30 = vld [vmem:[%s2344_s1 + $0x1f8] sm:$0xff]  ;;  %v1286_v34 = vpack.c.bf16 %v66_v24, %v65_v21  ;;  %v35_v36 = vld [vmem:[%s2344_s1 + $0x70] sm:$0xff]  ;;  %v101_v42 = vld [vmem:[%s2344_s1 + $0x280] sm:$0xff] }
  0x16   :  { %1247 = vmatpush3.bf16.msra.mxu0 %v1246_v3  ;;  %v36_v37 = vld [vmem:[%s2344_s1 + $0x78] sm:$0xff]  ;;  %v67_v38 = vld [vmem:[%s2344_s1 + $0x170] sm:$0xff]  ;;  %v1288_v39 = vpack.c.bf16 %v84_v30, %v83_v29  ;;  %v102_v43 = vld [vmem:[%s2344_s1 + $0x288] sm:$0xff] }
  0x17   :  { %1279 = vmatpush3.bf16.msra.mxu1 %v1278_v4  ;;  %1249 = vmatprep.subr.bf16.mxu0 %v1248_v5  ;;  %v296_v32 = vcombine.high %v288_v27, %v288_v27  ;;  %v295_v33 = vrot.slane %v281_v28, %v1665_v13  ;;  %v68_v40 = vld [vmem:[%s2344_s1 + $0x178] sm:$0xff]  ;;  %v133_v44 = vld [vmem:[%s2344_s1 + $0x380] sm:$0xff]  ;;  %v134_v45 = vld [vmem:[%s2344_s1 + $0x388] sm:$0xff]  ;;  %v1258_v46 = vpack.c.bf16 %v36_v37, %v35_v36 }
  0x18   :  { %1281 = vmatprep.subr.bf16.mxu1 %v1280_v9  ;;  %v1290_v47 = vpack.c.bf16 %v68_v40, %v67_v38  ;;  %v1292_v48 = vpack.c.bf16 %v102_v43, %v101_v42  ;;  %v85_v49 = vld [vmem:[%s2344_s1 + $0x200] sm:$0xff]  ;;  %v86_v50 = vld [vmem:[%s2344_s1 + $0x208] sm:$0xff]  ;;  %v1324_v52 = vpack.c.bf16 %v134_v45, %v133_v44  ;;  %v103_v54 = vld [vmem:[%s2344_s1 + $0x290] sm:$0xff] }
  0x19   :  { %429 = vmatprep.mubr.f32.mxu0 %v296_v32  ;;  %v297_v41 = vcombine.high %v295_v33, %v295_v33  ;;  %v117_v51 = vld [vmem:[%s2344_s1 + $0x300] sm:$0xff]  ;;  %v118_v53 = vld [vmem:[%s2344_s1 + $0x308] sm:$0xff]  ;;  %v104_v55 = vld [vmem:[%s2344_s1 + $0x298] sm:$0xff]  ;;  %v1294_v58 = vpack.c.bf16 %v86_v50, %v85_v49 }
  0x1a   :  { %1251 = vmatpush3.bf16.msra.mxu0 %v1250_v16  ;;  %v135_v56 = vld [vmem:[%s2344_s1 + $0x390] sm:$0xff]  ;;  %v136_v57 = vld [vmem:[%s2344_s1 + $0x398] sm:$0xff]  ;;  %v1326_v59 = vpack.c.bf16 %v118_v53, %v117_v51  ;;  %v1296_v60 = vpack.c.bf16 %v104_v55, %v103_v54  ;;  %v105_v2 = vld [vmem:[%s2344_s1 + $0x2a0] sm:$0xff] }
  0x1b   :  { %1283 = vmatpush3.bf16.msra.mxu1 %v1282_v18  ;;  %1253 = vmatprep.subr.bf16.mxu0 %v1252_v19  ;;  %v87_v61 = vld [vmem:[%s2344_s1 + $0x210] sm:$0xff]  ;;  %v88_v62 = vld [vmem:[%s2344_s1 + $0x218] sm:$0xff]  ;;  %v1328_v0 = vpack.c.bf16 %v136_v57, %v135_v56  ;;  %v106_v3 = vld [vmem:[%s2344_s1 + $0x2a8] sm:$0xff] }
  0x1c   :  { %1285 = vmatprep.subr.bf16.mxu1 %v1284_v23  ;;  %499 = vmatprep.mubr.f32.mxu1 %v297_v41  ;;  %v119_v63 = vld [vmem:[%s2344_s1 + $0x310] sm:$0xff]  ;;  %v120_v1 = vld [vmem:[%s2344_s1 + $0x318] sm:$0xff]  ;;  %v137_v4 = vld [vmem:[%s2344_s1 + $0x3a0] sm:$0xff]  ;;  %v1298_v6 = vpack.c.bf16 %v88_v62, %v87_v61  ;;  %v1300_v8 = vpack.c.bf16 %v106_v3, %v105_v2 }
  0x1d   :  { %v138_v5 = vld [vmem:[%s2344_s1 + $0x3a8] sm:$0xff]  ;;  %v1330_v7 = vpack.c.bf16 %v120_v1, %v119_v63  ;;  %v89_v9 = vld [vmem:[%s2344_s1 + $0x220] sm:$0xff]  ;;  %v107_v15 = vld [vmem:[%s2344_s1 + $0x2b0] sm:$0xff] }
  0x1e   :  { %1255 = vmatpush3.bf16.msra.mxu0 %v1254_v31  ;;  %v90_v10 = vld [vmem:[%s2344_s1 + $0x228] sm:$0xff]  ;;  %v121_v11 = vld [vmem:[%s2344_s1 + $0x320] sm:$0xff]  ;;  %v1332_v12 = vpack.c.bf16 %v138_v5, %v137_v4  ;;  %v108_v16 = vld [vmem:[%s2344_s1 + $0x2b8] sm:$0xff] }
  0x1f   :  { %1287 = vmatpush3.bf16.msra.mxu1 %v1286_v34  ;;  %1257 = vmatprep.subr.bf16.mxu0 %v1256_v35  ;;  %v122_v14 = vld [vmem:[%s2344_s1 + $0x328] sm:$0xff]  ;;  %v139_v17 = vld [vmem:[%s2344_s1 + $0x3b0] sm:$0xff]  ;;  %v140_v18 = vld [vmem:[%s2344_s1 + $0x3b8] sm:$0xff]  ;;  %v1302_v19 = vpack.c.bf16 %v90_v10, %v89_v9  ;;  %v1304_v21 = vpack.c.bf16 %v108_v16, %v107_v15 }
  0x20   :  { %1289 = vmatprep.subr.bf16.mxu1 %v1288_v39  ;;  %v1334_v20 = vpack.c.bf16 %v122_v14, %v121_v11  ;;  %v91_v22 = vld [vmem:[%s2344_s1 + $0x230] sm:$0xff]  ;;  %v92_v23 = vld [vmem:[%s2344_s1 + $0x238] sm:$0xff]  ;;  %v1336_v25 = vpack.c.bf16 %v140_v18, %v139_v17  ;;  %v110_v28 = vld [vmem:[%s2344_s1 + $0x2c8] sm:$0xff] }
  0x21   :  { %v123_v24 = vld [vmem:[%s2344_s1 + $0x330] sm:$0xff]  ;;  %v124_v26 = vld [vmem:[%s2344_s1 + $0x338] sm:$0xff]  ;;  %v141_v29 = vld [vmem:[%s2344_s1 + $0x3c0] sm:$0xff]  ;;  %v1306_v32 = vpack.c.bf16 %v92_v23, %v91_v22 }
  0x22   :  { %1259 = vmatpush3.bf16.msra.mxu0 %v1258_v46  ;;  %v142_v30 = vld [vmem:[%s2344_s1 + $0x3c8] sm:$0xff]  ;;  %v1338_v35 = vpack.c.bf16 %v124_v26, %v123_v24  ;;  %v93_v37 = vld [vmem:[%s2344_s1 + $0x240] sm:$0xff]  ;;  %v111_v42 = vld [vmem:[%s2344_s1 + $0x2d0] sm:$0xff] }
  0x23   :  { %1291 = vmatpush3.bf16.msra.mxu1 %v1290_v47  ;;  %1293 = vmatprep.subr.bf16.mxu0 %v1292_v48  ;;  %v18_v31 = vld [vmem:[%s2345_s0 + $0x8] sm:$0xff]  ;;  %v125_v39 = vld [vmem:[%s2344_s1 + $0x340] sm:$0xff]  ;;  %v1340_v40 = vpack.c.bf16 %v142_v30, %v141_v29  ;;  %v112_v43 = vld [vmem:[%s2344_s1 + $0x2d8] sm:$0xff] }
  0x24   :  { %1325 = vmatprep.subr.bf16.mxu1 %v1324_v52  ;;  %v298_v34 = vcombine.high %v18_v31, %v18_v31  ;;  %v94_v38 = vld [vmem:[%s2344_s1 + $0x248] sm:$0xff]  ;;  %v143_v46 = vld [vmem:[%s2344_s1 + $0x3d0] sm:$0xff]  ;;  %v144_v47 = vld [vmem:[%s2344_s1 + $0x3d8] sm:$0xff]  ;;  %v1312_v51 = vpack.c.bf16 %v112_v43, %v111_v42 }
  0x25   :  { %430 = vmatmul.mubr.f32.vlgmr.msra.gmra.mrb[0].mxu0 %v288_v27  ;;  %v109_v27 = vld [vmem:[%s2344_s1 + $0x2c0] sm:$0xff]  ;;  %v126_v41 = vld [vmem:[%s2344_s1 + $0x348] sm:$0xff]  ;;  %v1310_v48 = vpack.c.bf16 %v94_v38, %v93_v37  ;;  %v95_v52 = vld [vmem:[%s2344_s1 + $0x250] sm:$0xff]  ;;  %v1344_v55 = vpack.c.bf16 %v144_v47, %v143_v46 }
  0x26   :  { %500 = vmatmul.mubr.f32.vlgmr.msra.gmra.mrb[0].mxu1 %v295_v33  ;;  %1295 = vmatpush3.bf16.msra.mxu0 %v1294_v58  ;;  %v1826_v33 = vrot.slane %v18_v31, %v1665_v13  ;;  %v1308_v36 = vpack.c.bf16 %v110_v28, %v109_v27  ;;  %v1849_v45 = vrot.slane %v298_v34, %v1665_v13  ;;  %v96_v53 = vld [vmem:[%s2344_s1 + $0x258] sm:$0xff]  ;;  %v127_v54 = vld [vmem:[%s2344_s1 + $0x350] sm:$0xff]  ;;  %v113_v57 = vld [vmem:[%s2344_s1 + $0x2e0] sm:$0xff] }
  0x27   :  { %1327 = vmatpush3.bf16.msra.mxu1 %v1326_v59  ;;  %1297 = vmatprep.subr.bf16.mxu0 %v1296_v60  ;;  %v1342_v50 = vpack.c.bf16 %v126_v41, %v125_v39  ;;  %v128_v56 = vld [vmem:[%s2344_s1 + $0x358] sm:$0xff]  ;;  %v114_v58 = vld [vmem:[%s2344_s1 + $0x2e8] sm:$0xff]  ;;  %v145_v59 = vld [vmem:[%s2344_s1 + $0x3e0] sm:$0xff]  ;;  %v1314_v61 = vpack.c.bf16 %v96_v53, %v95_v52 }
  0x28   :  { %1329 = vmatprep.subr.bf16.mxu1 %v1328_v0  ;;  %v313_v44 = vcombine.high %v1826_v33, %v1826_v33  ;;  %v314_v49 = vcombine.high %v1849_v45, %v1849_v45  ;;  %v146_v60 = vld [vmem:[%s2344_s1 + $0x3e8] sm:$0xff]  ;;  %v1346_v62 = vpack.c.bf16 %v128_v56, %v127_v54  ;;  %v1316_v63 = vpack.c.bf16 %v114_v58, %v113_v57  ;;  %v97_v0 = vld [vmem:[%s2344_s1 + $0x260] sm:$0xff]  ;;  %v115_v5 = vld [vmem:[%s2344_s1 + $0x2f0] sm:$0xff] }
  0x29   :  { %v98_v1 = vld [vmem:[%s2344_s1 + $0x268] sm:$0xff]  ;;  %v129_v2 = vld [vmem:[%s2344_s1 + $0x360] sm:$0xff]  ;;  %v1348_v3 = vpack.c.bf16 %v146_v60, %v145_v59  ;;  %v100_v14 = vld [vmem:[%s2344_s1 + $0x278] sm:$0xff] }
  0x2a   :  { %1299 = vmatpush3.bf16.msra.mxu0 %v1298_v6  ;;  %569 = vmatprep.mubr.f32.mxu0 %v313_v44  ;;  %v130_v4 = vld [vmem:[%s2344_s1 + $0x368] sm:$0xff]  ;;  %v116_v6 = vld [vmem:[%s2344_s1 + $0x2f8] sm:$0xff]  ;;  %v1318_v9 = vpack.c.bf16 %v98_v1, %v97_v0  ;;  %v131_v15 = vld [vmem:[%s2344_s1 + $0x370] sm:$0xff] }
  0x2b   :  { %1331 = vmatpush3.bf16.msra.mxu1 %v1330_v7  ;;  %1301 = vmatprep.subr.bf16.mxu0 %v1300_v8  ;;  %v147_v7 = vld [vmem:[%s2344_s1 + $0x3f0] sm:$0xff]  ;;  %v148_v8 = vld [vmem:[%s2344_s1 + $0x3f8] sm:$0xff]  ;;  %v1350_v10 = vpack.c.bf16 %v130_v4, %v129_v2  ;;  %v1320_v11 = vpack.c.bf16 %v116_v6, %v115_v5  ;;  %v165_v18 = vld [vmem:[%s2344_s1 + $0x480] sm:$0xff] }
  0x2c   :  { %1333 = vmatprep.subr.bf16.mxu1 %v1332_v12  ;;  %639 = vmatprep.mubr.f32.mxu1 %v314_v49  ;;  %v99_v12 = vld [vmem:[%s2344_s1 + $0x270] sm:$0xff]  ;;  %v1352_v16 = vpack.c.bf16 %v148_v8, %v147_v7  ;;  %v132_v17 = vld [vmem:[%s2344_s1 + $0x378] sm:$0xff]  ;;  %v149_v23 = vld [vmem:[%s2344_s1 + $0x400] sm:$0xff] }
  0x2d   :  { %v1322_v22 = vpack.c.bf16 %v100_v14, %v99_v12  ;;  %v1354_v24 = vpack.c.bf16 %v132_v17, %v131_v15  ;;  %v150_v26 = vld [vmem:[%s2344_s1 + $0x408] sm:$0xff]  ;;  %v181_v27 = vld [vmem:[%s2344_s1 + $0x500] sm:$0xff]  ;;  %v167_v30 = vld [vmem:[%s2344_s1 + $0x490] sm:$0xff] }
  0x2e   :  { %1303 = vmatpush3.bf16.msra.mxu0 %v1302_v19  ;;  %v166_v19 = vld [vmem:[%s2344_s1 + $0x488] sm:$0xff]  ;;  %v168_v31 = vld [vmem:[%s2344_s1 + $0x498] sm:$0xff]  ;;  %v19_v37 = vld [vmem:[%s2345_s0 + $0x10] sm:$0xff] }
  0x2f   :  { %1335 = vmatpush3.bf16.msra.mxu1 %v1334_v20  ;;  %1305 = vmatprep.subr.bf16.mxu0 %v1304_v21  ;;  %v197_v20 = vld [vmem:[%s2344_s1 + $0x580] sm:$0xff]  ;;  %v198_v21 = vld [vmem:[%s2344_s1 + $0x588] sm:$0xff]  ;;  %v200_v34 = vld [vmem:[%s2344_s1 + $0x598] sm:$0xff]  ;;  %v1360_v38 = vpack.c.bf16 %v168_v31, %v167_v30  ;;  %v1968_v42 = vrot.slane %v19_v37, %v1665_v13  ;;  %v315_v43 = vcombine.high %v19_v37, %v19_v37 }
  0x30   :  { %1337 = vmatprep.subr.bf16.mxu1 %v1336_v25  ;;  %v1356_v25 = vpack.c.bf16 %v166_v19, %v165_v18  ;;  %v182_v28 = vld [vmem:[%s2344_s1 + $0x508] sm:$0xff]  ;;  %v1388_v29 = vpack.c.bf16 %v198_v21, %v197_v20  ;;  %v151_v39 = vld [vmem:[%s2344_s1 + $0x410] sm:$0xff]  ;;  %v184_v46 = vld [vmem:[%s2344_s1 + $0x518] sm:$0xff] }
  0x31   :  { %v183_v41 = vld [vmem:[%s2344_s1 + $0x510] sm:$0xff]  ;;  %v169_v47 = vld [vmem:[%s2344_s1 + $0x4a0] sm:$0xff]  ;;  %v1989_v52 = vrot.slane %v315_v43, %v1665_v13  ;;  %v154_v56 = vld [vmem:[%s2344_s1 + $0x428] sm:$0xff] }
  0x32   :  { %1307 = vmatpush3.bf16.msra.mxu0 %v1306_v32  ;;  %v199_v32 = vld [vmem:[%s2344_s1 + $0x590] sm:$0xff]  ;;  %v201_v49 = vld [vmem:[%s2344_s1 + $0x5a0] sm:$0xff]  ;;  %v186_v59 = vld [vmem:[%s2344_s1 + $0x528] sm:$0xff] }
  0x33   :  { %1339 = vmatpush3.bf16.msra.mxu1 %v1338_v35  ;;  %1309 = vmatprep.subr.bf16.mxu0 %v1308_v36  ;;  %v1358_v35 = vpack.c.bf16 %v150_v26, %v149_v23  ;;  %v1390_v36 = vpack.c.bf16 %v182_v28, %v181_v27  ;;  %v1392_v44 = vpack.c.bf16 %v200_v34, %v199_v32  ;;  %v185_v57 = vld [vmem:[%s2344_s1 + $0x520] sm:$0xff]  ;;  %v171_v60 = vld [vmem:[%s2344_s1 + $0x4b0] sm:$0xff]  ;;  %v156_v4 = vld [vmem:[%s2344_s1 + $0x438] sm:$0xff] }
  0x34   :  { %1341 = vmatprep.subr.bf16.mxu1 %v1340_v40  ;;  %v152_v40 = vld [vmem:[%s2344_s1 + $0x418] sm:$0xff]  ;;  %v1398_v1 = vpack.c.bf16 %v186_v59, %v185_v57  ;;  %v187_v5 = vld [vmem:[%s2344_s1 + $0x530] sm:$0xff]  ;;  %v173_v8 = vld [vmem:[%s2344_s1 + $0x4c0] sm:$0xff] }
  0x35   :  { %v1362_v53 = vpack.c.bf16 %v152_v40, %v151_v39  ;;  %v188_v7 = vld [vmem:[%s2344_s1 + $0x538] sm:$0xff]  ;;  %v158_v17 = vld [vmem:[%s2344_s1 + $0x448] sm:$0xff]  ;;  %v189_v18 = vld [vmem:[%s2344_s1 + $0x540] sm:$0xff] }
  0x36   :  { %1311 = vmatpush3.bf16.msra.mxu0 %v1310_v48  ;;  %v170_v48 = vld [vmem:[%s2344_s1 + $0x4a8] sm:$0xff]  ;;  %v1402_v14 = vpack.c.bf16 %v188_v7, %v187_v5  ;;  %v175_v21 = vld [vmem:[%s2344_s1 + $0x4d0] sm:$0xff]  ;;  %v192_v32 = vld [vmem:[%s2344_s1 + $0x558] sm:$0xff] }
  0x37   :  { %1343 = vmatpush3.bf16.msra.mxu1 %v1342_v50  ;;  %1313 = vmatprep.subr.bf16.mxu0 %v1312_v51  ;;  %v202_v50 = vld [vmem:[%s2344_s1 + $0x5a8] sm:$0xff]  ;;  %v330_v51 = vcombine.high %v1968_v42, %v1968_v42  ;;  %v1364_v54 = vpack.c.bf16 %v170_v48, %v169_v47  ;;  %v207_v23 = vld [vmem:[%s2344_s1 + $0x5d0] sm:$0xff]  ;;  %v177_v34 = vld [vmem:[%s2344_s1 + $0x4e0] sm:$0xff] }
  0x38   :  { %1345 = vmatprep.subr.bf16.mxu1 %v1344_v55  ;;  %v153_v55 = vld [vmem:[%s2344_s1 + $0x420] sm:$0xff]  ;;  %v1396_v58 = vpack.c.bf16 %v202_v50, %v201_v49  ;;  %v190_v20 = vld [vmem:[%s2344_s1 + $0x548] sm:$0xff]  ;;  %v159_v28 = vld [vmem:[%s2344_s1 + $0x450] sm:$0xff] }
  0x39   :  { %v1366_v0 = vpack.c.bf16 %v154_v56, %v153_v55  ;;  %v1406_v26 = vpack.c.bf16 %v190_v20, %v189_v18  ;;  %v191_v30 = vld [vmem:[%s2344_s1 + $0x550] sm:$0xff]  ;;  %v210_v37 = vld [vmem:[%s2344_s1 + $0x5e8] sm:$0xff]  ;;  %v180_v49 = vld [vmem:[%s2344_s1 + $0x4f8] sm:$0xff] }
  0x3a   :  { %1315 = vmatpush3.bf16.msra.mxu0 %v1314_v61  ;;  %v172_v61 = vld [vmem:[%s2344_s1 + $0x4b8] sm:$0xff]  ;;  %v1410_v39 = vpack.c.bf16 %v192_v32, %v191_v30  ;;  %v162_v43 = vld [vmem:[%s2344_s1 + $0x468] sm:$0xff]  ;;  %v179_v48 = vld [vmem:[%s2344_s1 + $0x4f0] sm:$0xff] }
  0x3b   :  { %1347 = vmatpush3.bf16.msra.mxu1 %v1346_v62  ;;  %1317 = vmatprep.subr.bf16.mxu0 %v1316_v63  ;;  %v203_v62 = vld [vmem:[%s2344_s1 + $0x5b0] sm:$0xff]  ;;  %v204_v63 = vld [vmem:[%s2344_s1 + $0x5b8] sm:$0xff]  ;;  %v1368_v2 = vpack.c.bf16 %v172_v61, %v171_v60  ;;  %v194_v47 = vld [vmem:[%s2344_s1 + $0x568] sm:$0xff]  ;;  %v1384_v55 = vpack.c.bf16 %v180_v49, %v179_v48 }
  0x3c   :  { %1349 = vmatprep.subr.bf16.mxu1 %v1348_v3  ;;  %v155_v3 = vld [vmem:[%s2344_s1 + $0x430] sm:$0xff]  ;;  %v1400_v6 = vpack.c.bf16 %v204_v63, %v203_v62  ;;  %v164_v57 = vld [vmem:[%s2344_s1 + $0x478] sm:$0xff]  ;;  %v229_v60 = vld [vmem:[%s2344_s1 + $0x680] sm:$0xff] }
  0x3d   :  { %v1370_v12 = vpack.c.bf16 %v156_v4, %v155_v3  ;;  %v211_v50 = vld [vmem:[%s2344_s1 + $0x5f0] sm:$0xff]  ;;  %v196_v59 = vld [vmem:[%s2344_s1 + $0x578] sm:$0xff]  ;;  %v230_v61 = vld [vmem:[%s2344_s1 + $0x688] sm:$0xff] }
  0x3e   :  { %1319 = vmatpush3.bf16.msra.mxu0 %v1318_v9  ;;  %v174_v9 = vld [vmem:[%s2344_s1 + $0x4c8] sm:$0xff]  ;;  %v163_v56 = vld [vmem:[%s2344_s1 + $0x470] sm:$0xff]  ;;  %v261_v62 = vld [vmem:[%s2344_s1 + $0x780] sm:$0xff]  ;;  %v1420_v3 = vpack.c.bf16 %v230_v61, %v229_v60 }
  0x3f   :  { %1351 = vmatpush3.bf16.msra.mxu1 %v1350_v10  ;;  %1321 = vmatprep.subr.bf16.mxu0 %v1320_v11  ;;  %v205_v10 = vld [vmem:[%s2344_s1 + $0x5c0] sm:$0xff]  ;;  %v206_v11 = vld [vmem:[%s2344_s1 + $0x5c8] sm:$0xff]  ;;  %v1372_v15 = vpack.c.bf16 %v174_v9, %v173_v8  ;;  %v231_v9 = vld [vmem:[%s2344_s1 + $0x690] sm:$0xff] }
  0x40   :  { %1353 = vmatprep.subr.bf16.mxu1 %v1352_v16  ;;  %v157_v16 = vld [vmem:[%s2344_s1 + $0x440] sm:$0xff]  ;;  %v1404_v19 = vpack.c.bf16 %v206_v11, %v205_v10  ;;  %v262_v63 = vld [vmem:[%s2344_s1 + $0x788] sm:$0xff]  ;;  %v232_v10 = vld [vmem:[%s2344_s1 + $0x698] sm:$0xff] }
  0x41   :  { %v213_v4 = vld [vmem:[%s2344_s1 + $0x600] sm:$0xff]  ;;  %v214_v5 = vld [vmem:[%s2344_s1 + $0x608] sm:$0xff]  ;;  %v1452_v7 = vpack.c.bf16 %v262_v63, %v261_v62  ;;  %v1424_v18 = vpack.c.bf16 %v232_v10, %v231_v9  ;;  %v216_v20 = vld [vmem:[%s2344_s1 + $0x618] sm:$0xff] }
  0x42   :  { %1323 = vmatpush3.bf16.msra.mxu0 %v1322_v22  ;;  %v176_v22 = vld [vmem:[%s2344_s1 + $0x4d8] sm:$0xff]  ;;  %v246_v8 = vld [vmem:[%s2344_s1 + $0x708] sm:$0xff]  ;;  %v239_v61 = vld [vmem:[%s2344_s1 + $0x6d0] sm:$0xff] }
  0x43   :  { %1355 = vmatpush3.bf16.msra.mxu1 %v1354_v24  ;;  %1357 = vmatprep.subr.bf16.mxu0 %v1356_v25  ;;  %v208_v24 = vld [vmem:[%s2344_s1 + $0x5d8] sm:$0xff]  ;;  %v1374_v25 = vpack.c.bf16 %v158_v17, %v157_v16  ;;  %v1376_v27 = vpack.c.bf16 %v176_v22, %v175_v21  ;;  %v1422_v16 = vpack.c.bf16 %v214_v5, %v213_v4  ;;  %v247_v21 = vld [vmem:[%s2344_s1 + $0x710] sm:$0xff]  ;;  %v218_v32 = vld [vmem:[%s2344_s1 + $0x628] sm:$0xff] }
  0x44   :  { %1389 = vmatprep.subr.bf16.mxu1 %v1388_v29  ;;  %v160_v29 = vld [vmem:[%s2344_s1 + $0x458] sm:$0xff]  ;;  %v1408_v31 = vpack.c.bf16 %v208_v24, %v207_v23  ;;  %v233_v23 = vld [vmem:[%s2344_s1 + $0x6a0] sm:$0xff]  ;;  %v234_v24 = vld [vmem:[%s2344_s1 + $0x6a8] sm:$0xff] }
  0x45   :  { %570 = vmatmul.mubr.f32.vlgmr.msra.gmra.mrb[2].mxu0 %v1826_v33  ;;  %v1394_v33 = vpack.c.bf16 %v184_v46, %v183_v41  ;;  %v161_v41 = vld [vmem:[%s2344_s1 + $0x460] sm:$0xff]  ;;  %v248_v22 = vld [vmem:[%s2344_s1 + $0x718] sm:$0xff]  ;;  %v254_v60 = vld [vmem:[%s2344_s1 + $0x748] sm:$0xff] }
  0x46   :  { %1359 = vmatpush3.bf16.msra.mxu0 %v1358_v35  ;;  %640 = vmatmul.mubr.f32.vlgmr.msra.gmra.mrb[2].mxu1 %v1849_v45  ;;  %v331_v45 = vcombine.high %v1989_v52, %v1989_v52  ;;  %v178_v35 = vld [vmem:[%s2344_s1 + $0x4e8] sm:$0xff]  ;;  %v1458_v30 = vpack.c.bf16 %v248_v22, %v247_v21  ;;  %v252_v49 = vld [vmem:[%s2344_s1 + $0x738] sm:$0xff]  ;;  %v271_v63 = vld [vmem:[%s2344_s1 + $0x7d0] sm:$0xff] }
  0x47   :  { %1391 = vmatpush3.bf16.msra.mxu1 %v1390_v36  ;;  %1361 = vmatprep.subr.bf16.mxu0 %v1360_v38  ;;  %v209_v36 = vld [vmem:[%s2344_s1 + $0x5e0] sm:$0xff]  ;;  %v1378_v38 = vpack.c.bf16 %v160_v29, %v159_v28  ;;  %v1380_v40 = vpack.c.bf16 %v178_v35, %v177_v34  ;;  %v240_v62 = vld [vmem:[%s2344_s1 + $0x6d8] sm:$0xff]  ;;  %v223_v4 = vld [vmem:[%s2344_s1 + $0x650] sm:$0xff] }
  0x48   :  { %1393 = vmatprep.subr.bf16.mxu1 %v1392_v44  ;;  %709 = vmatprep.mubr.f32.mxu0 %v330_v51  ;;  %v193_v44 = vld [vmem:[%s2344_s1 + $0x560] sm:$0xff]  ;;  %v1412_v46 = vpack.c.bf16 %v210_v37, %v209_v36  ;;  %v212_v51 = vld [vmem:[%s2344_s1 + $0x5f8] sm:$0xff]  ;;  %v235_v36 = vld [vmem:[%s2344_s1 + $0x6b0] sm:$0xff] }
  0x49   :  { %779 = vmatprep.mubr.f32.mxu1 %v331_v45  ;;  %v195_v45 = vld [vmem:[%s2344_s1 + $0x570] sm:$0xff]  ;;  %v249_v34 = vld [vmem:[%s2344_s1 + $0x720] sm:$0xff]  ;;  %v236_v37 = vld [vmem:[%s2344_s1 + $0x6b8] sm:$0xff] }
  0x4a   :  { %1363 = vmatpush3.bf16.msra.mxu0 %v1362_v53  ;;  %v1382_v53 = vpack.c.bf16 %v162_v43, %v161_v41  ;;  %v1432_v43 = vpack.c.bf16 %v236_v37, %v235_v36  ;;  %v224_v5 = vld [vmem:[%s2344_s1 + $0x658] sm:$0xff]  ;;  %v241_v9 = vld [vmem:[%s2344_s1 + $0x6e0] sm:$0xff]  ;;  %v242_v10 = vld [vmem:[%s2344_s1 + $0x6e8] sm:$0xff] }
  0x4b   :  { %1395 = vmatpush3.bf16.msra.mxu1 %v1394_v33  ;;  %1365 = vmatprep.subr.bf16.mxu0 %v1364_v54  ;;  %v20_v33 = vld [vmem:[%s2345_s0 + $0x18] sm:$0xff]  ;;  %v1414_v54 = vpack.c.bf16 %v194_v47, %v193_v44  ;;  %v219_v44 = vld [vmem:[%s2344_s1 + $0x630] sm:$0xff]  ;;  %v257_v21 = vld [vmem:[%s2344_s1 + $0x760] sm:$0xff] }
  0x4c   :  { %1397 = vmatprep.subr.bf16.mxu1 %v1396_v58  ;;  %v1416_v58 = vpack.c.bf16 %v212_v51, %v211_v50  ;;  %v2160_v11 = vrot.slane %v20_v33, %v1665_v13  ;;  %v251_v47 = vld [vmem:[%s2344_s1 + $0x730] sm:$0xff]  ;;  %v237_v50 = vld [vmem:[%s2344_s1 + $0x6c0] sm:$0xff]  ;;  %v238_v51 = vld [vmem:[%s2344_s1 + $0x6c8] sm:$0xff] }
  0x4d   :  { %v258_v22 = vld [vmem:[%s2344_s1 + $0x768] sm:$0xff] }
  0x4e   :  { %1367 = vmatpush3.bf16.msra.mxu0 %v1366_v0  ;;  %v332_v0 = vcombine.high %v20_v33, %v20_v33  ;;  %v270_v33 = vld [vmem:[%s2344_s1 + $0x7c8] sm:$0xff] }
  0x4f   :  { %1399 = vmatpush3.bf16.msra.mxu1 %v1398_v1  ;;  %1369 = vmatprep.subr.bf16.mxu0 %v1368_v2  ;;  %v1386_v1 = vpack.c.bf16 %v164_v57, %v163_v56  ;;  %v1418_v2 = vpack.c.bf16 %v196_v59, %v195_v45  ;;  %v1436_v56 = vpack.c.bf16 %v238_v51, %v237_v50  ;;  %v221_v57 = vld [vmem:[%s2344_s1 + $0x640] sm:$0xff]  ;;  %v222_v45 = vld [vmem:[%s2344_s1 + $0x648] sm:$0xff] }
  0x50   :  { %1401 = vmatprep.subr.bf16.mxu1 %v1400_v6  ;;  %v245_v6 = vld [vmem:[%s2344_s1 + $0x700] sm:$0xff] }
  0x51   :  { %v1454_v17 = vpack.c.bf16 %v246_v8, %v245_v6  ;;  %v255_v6 = vld [vmem:[%s2344_s1 + $0x750] sm:$0xff]  ;;  %v256_v8 = vld [vmem:[%s2344_s1 + $0x758] sm:$0xff] }
  0x52   :  { %1371 = vmatpush3.bf16.msra.mxu0 %v1370_v12  ;;  %v263_v12 = vld [vmem:[%s2344_s1 + $0x790] sm:$0xff] }
  0x53   :  { %1403 = vmatpush3.bf16.msra.mxu1 %v1402_v14  ;;  %1373 = vmatprep.subr.bf16.mxu0 %v1372_v15  ;;  %v264_v14 = vld [vmem:[%s2344_s1 + $0x798] sm:$0xff]  ;;  %v2169_v15 = vrot.slane %v332_v0, %v1665_v13 }
  0x54   :  { %1405 = vmatprep.subr.bf16.mxu1 %v1404_v19  ;;  %v215_v19 = vld [vmem:[%s2344_s1 + $0x610] sm:$0xff]  ;;  %v1456_v13 = vpack.c.bf16 %v264_v14, %v263_v12  ;;  %v272_v0 = vld [vmem:[%s2344_s1 + $0x7d8] sm:$0xff]  ;;  %v273_v12 = vld [vmem:[%s2344_s1 + $0x7e0] sm:$0xff] }
  0x55   :  { %v348_v28 = vcombine.high %v2169_v15, %v2169_v15  ;;  %v1426_v29 = vpack.c.bf16 %v216_v20, %v215_v19  ;;  %v274_v14 = vld [vmem:[%s2344_s1 + $0x7e8] sm:$0xff]  ;;  %v225_v19 = vld [vmem:[%s2344_s1 + $0x660] sm:$0xff] }
  0x56   :  { %1375 = vmatpush3.bf16.msra.mxu0 %v1374_v25  ;;  %v347_v25 = vcombine.high %v2160_v11, %v2160_v11  ;;  %v226_v20 = vld [vmem:[%s2344_s1 + $0x668] sm:$0xff] }
  0x57   :  { %1407 = vmatpush3.bf16.msra.mxu1 %v1406_v26  ;;  %1377 = vmatprep.subr.bf16.mxu0 %v1376_v27  ;;  %v265_v26 = vld [vmem:[%s2344_s1 + $0x7a0] sm:$0xff]  ;;  %v266_v27 = vld [vmem:[%s2344_s1 + $0x7a8] sm:$0xff] }
  0x58   :  { %1409 = vmatprep.subr.bf16.mxu1 %v1408_v31  ;;  %v1428_v31 = vpack.c.bf16 %v234_v24, %v233_v23  ;;  %v1460_v35 = vpack.c.bf16 %v266_v27, %v265_v26  ;;  %v243_v23 = vld [vmem:[%s2344_s1 + $0x6f0] sm:$0xff]  ;;  %v244_v24 = vld [vmem:[%s2344_s1 + $0x6f8] sm:$0xff]  ;;  %v1446_v27 = vpack.c.bf16 %v226_v20, %v225_v19 }
  0x59   :  { %v276_v26 = vld [vmem:[%s2344_s1 + $0x7f8] sm:$0xff] }
  0x5a   :  { %1379 = vmatpush3.bf16.msra.mxu0 %v1378_v38  ;;  %v267_v38 = vld [vmem:[%s2344_s1 + $0x7b0] sm:$0xff] }
  0x5b   :  { %1411 = vmatpush3.bf16.msra.mxu1 %v1410_v39  ;;  %1381 = vmatprep.subr.bf16.mxu0 %v1380_v40  ;;  %v268_v39 = vld [vmem:[%s2344_s1 + $0x7b8] sm:$0xff] }
  0x5c   :  { %1413 = vmatprep.subr.bf16.mxu1 %v1412_v46  ;;  %v220_v46 = vld [vmem:[%s2344_s1 + $0x638] sm:$0xff]  ;;  %v1464_v48 = vpack.c.bf16 %v268_v39, %v267_v38 }
  0x5e   :  { %1383 = vmatpush3.bf16.msra.mxu0 %v1382_v53  ;;  %v269_v53 = vld [vmem:[%s2344_s1 + $0x7c0] sm:$0xff] }
  0x5f   :  { %1415 = vmatpush3.bf16.msra.mxu1 %v1414_v54  ;;  %1385 = vmatprep.subr.bf16.mxu0 %v1384_v55  ;;  %v1434_v54 = vpack.c.bf16 %v220_v46, %v219_v44  ;;  %v1466_v55 = vpack.c.bf16 %v252_v49, %v251_v47  ;;  %v1468_v59 = vpack.c.bf16 %v270_v33, %v269_v53 }
  0x60   :  { %1417 = vmatprep.subr.bf16.mxu1 %v1416_v58  ;;  %v253_v58 = vld [vmem:[%s2344_s1 + $0x740] sm:$0xff] }
  0x62   :  { %1387 = vmatpush3.bf16.msra.mxu0 %v1386_v1  ;;  %v1438_v1 = vpack.c.bf16 %v222_v45, %v221_v57 }
  0x63   :  { %1419 = vmatpush3.bf16.msra.mxu1 %v1418_v2  ;;  %1421 = vmatprep.subr.bf16.mxu0 %v1420_v3  ;;  %v1470_v2 = vpack.c.bf16 %v254_v60, %v253_v58  ;;  %v1440_v3 = vpack.c.bf16 %v240_v62, %v239_v61 }
  0x64   :  { %1453 = vmatprep.subr.bf16.mxu1 %v1452_v7  ;;  %v1472_v7 = vpack.c.bf16 %v272_v0, %v271_v63 }
  0x65   :  { %710 = vmatmul.mubr.f32.vlgmr.msra.gmra.mrb[4].mxu0 %v1968_v42  ;;  %v217_v42 = vld [vmem:[%s2344_s1 + $0x620] sm:$0xff] }
  0x66   :  { %1423 = vmatpush3.bf16.msra.mxu0 %v1422_v16  ;;  %780 = vmatmul.mubr.f32.vlgmr.msra.gmra.mrb[4].mxu1 %v1989_v52  ;;  %v250_v52 = vld [vmem:[%s2344_s1 + $0x728] sm:$0xff]  ;;  %v1430_v40 = vpack.c.bf16 %v218_v32, %v217_v42  ;;  %v1442_v16 = vpack.c.bf16 %v224_v5, %v223_v4  ;;  %v259_v32 = vld [vmem:[%s2344_s1 + $0x770] sm:$0xff] }
  0x67   :  { %1455 = vmatpush3.bf16.msra.mxu1 %v1454_v17  ;;  %1425 = vmatprep.subr.bf16.mxu0 %v1424_v18  ;;  %v1462_v41 = vpack.c.bf16 %v250_v52, %v249_v34  ;;  %v1474_v17 = vpack.c.bf16 %v256_v8, %v255_v6  ;;  %v1444_v18 = vpack.c.bf16 %v242_v10, %v241_v9  ;;  %v260_v34 = vld [vmem:[%s2344_s1 + $0x778] sm:$0xff] }
  0x68   :  { %1457 = vmatprep.subr.bf16.mxu1 %v1456_v13  ;;  %849 = vmatprep.mubr.f32.mxu0 %v347_v25  ;;  %v1476_v13 = vpack.c.bf16 %v274_v14, %v273_v12  ;;  %v275_v25 = vld [vmem:[%s2344_s1 + $0x7f0] sm:$0xff]  ;;  %v1482_v52 = vpack.c.bf16 %v260_v34, %v259_v32 }
  0x69   :  { %919 = vmatprep.mubr.f32.mxu1 %v348_v28  ;;  %v1478_v28 = vpack.c.bf16 %v258_v22, %v257_v21  ;;  %v1480_v42 = vpack.c.bf16 %v276_v26, %v275_v25 }
  0x6a   :  { %1427 = vmatpush3.bf16.msra.mxu0 %v1426_v29  ;;  %v1448_v29 = vpack.c.bf16 %v244_v24, %v243_v23 }
  0x6b   :  { %1459 = vmatpush3.bf16.msra.mxu1 %v1458_v30  ;;  %1429 = vmatprep.subr.bf16.mxu0 %v1428_v31  ;;  %v227_v30 = vld [vmem:[%s2344_s1 + $0x670] sm:$0xff]  ;;  %v228_v31 = vld [vmem:[%s2344_s1 + $0x678] sm:$0xff] }
  0x6c   :  { %1461 = vmatprep.subr.bf16.mxu1 %v1460_v35  ;;  %v1450_v35 = vpack.c.bf16 %v228_v31, %v227_v30 }
  0x6e   :  { %1431 = vmatpush3.bf16.msra.mxu0 %v1430_v40 }
  0x6f   :  { %1463 = vmatpush3.bf16.msra.mxu1 %v1462_v41  ;;  %1433 = vmatprep.subr.bf16.mxu0 %v1432_v43 }
  0x70   :  { %1465 = vmatprep.subr.bf16.mxu1 %v1464_v48 }
  0x72   :  { %1435 = vmatpush3.bf16.msra.mxu0 %v1434_v54 }
  0x73   :  { %1467 = vmatpush3.bf16.msra.mxu1 %v1466_v55  ;;  %1437 = vmatprep.subr.bf16.mxu0 %v1436_v56 }
  0x74   :  { %1469 = vmatprep.subr.bf16.mxu1 %v1468_v59 }
  0x76   :  { %1439 = vmatpush3.bf16.msra.mxu0 %v1438_v1  ;;  %v946_v1 = vld [vmem:[%s2346_s2] ss:$0 sm:$0xff] }
  0x77   :  { %1471 = vmatpush3.bf16.msra.mxu1 %v1470_v2  ;;  %1441 = vmatprep.subr.bf16.mxu0 %v1440_v3  ;;  %v947_v3 = vld [vmem:[%s2347_s3] ss:$0 sm:$0xff] }
  0x78   :  { %1473 = vmatprep.subr.bf16.mxu1 %v1472_v7 }
  0x7a   :  { %1443 = vmatpush3.bf16.msra.mxu0 %v1442_v16 }
  0x7b   :  { %1475 = vmatpush3.bf16.msra.mxu1 %v1474_v17  ;;  %1445 = vmatprep.subr.bf16.mxu0 %v1444_v18 }
  0x7c   :  { %1477 = vmatprep.subr.bf16.mxu1 %v1476_v13 }
  0x7e   :  { %1447 = vmatpush3.bf16.msra.mxu0 %v1446_v27 }
  0x7f   :  { %1479 = vmatpush3.bf16.msra.mxu1 %v1478_v28  ;;  %1449 = vmatprep.subr.bf16.mxu0 %v1448_v29 }
  0x80   :  { %1481 = vmatprep.subr.bf16.mxu1 %v1480_v42 }
  0x82   :  { %1451 = vmatpush3.bf16.msra.mxu0 %v1450_v35 }
  0x83   :  { %1483 = vmatpush3.bf16.msra.mxu1 %v1482_v52 }
  0x85   :  { %850 = vmatmul.mubr.f32.vlgmr.msra.gmra.mrb[6].mxu0 %v2160_v11 }
  0x86   :  { %920 = vmatmul.mubr.f32.vlgmr.msra.gmra.mrb[6].mxu1 %v2169_v15 }
  0xf8   :  { %v980_v36 = vpop.f32.mrb[0].mxu0 }
  0xf9   :  { %v1015_v37 = vpop.f32.mrb[0].mxu1  ;;  %v981_v38 = vpop.f32.mrb[1].mxu0 }
  0xfa   :  { %v982_v39 = vadd.f32 %v981_v38, %v980_v36  ;;  %v1016_v40 = vpop.f32.mrb[1].mxu1 }
  0xfb   :  { %v1017_v41 = vadd.f32 %v1016_v40, %v1015_v37 }
  0xfd   :  { %v502_v43 = vadd.f32 %v1017_v41, %v982_v39 }
 0x118   :  { %v1050_v44 = vpop.f32.mrb[2].mxu0 }
 0x119   :  { %v1051_v46 = vpop.f32.mrb[3].mxu0  ;;  %v1085_v47 = vpop.f32.mrb[2].mxu1 }
 0x11a   :  { %v1052_v48 = vadd.f32 %v1051_v46, %v1050_v44  ;;  %v1086_v49 = vpop.f32.mrb[3].mxu1 }
 0x11b   :  { %v1087_v50 = vadd.f32 %v1086_v49, %v1085_v47 }
 0x11c   :  { %v572_v51 = vadd.f32 %v1052_v48, %v502_v43 }
 0x11e   :  { %v642_v53 = vadd.f32 %v1087_v50, %v572_v51 }
 0x138   :  { %v1120_v33 = vpop.f32.mrb[4].mxu0 }
 0x139   :  { %v1121_v54 = vpop.f32.mrb[5].mxu0  ;;  %v1155_v11 = vpop.f32.mrb[4].mxu1 }
 0x13a   :  { %v1122_v55 = vadd.f32 %v1121_v54, %v1120_v33  ;;  %v1156_v15 = vpop.f32.mrb[5].mxu1 }
 0x13b   :  { %v1157_v56 = vadd.f32 %v1156_v15, %v1155_v11 }
 0x13c   :  { %v712_v57 = vadd.f32 %v1122_v55, %v642_v53 }
 0x13e   :  { %v782_v45 = vadd.f32 %v1157_v56, %v712_v57 }
 0x158   :  { %v1190_v58 = vpop.f32.mrb[6].mxu0 }
 0x159   :  { %v1191_v59 = vpop.f32.mrb[7].mxu0  ;;  %v1225_v60 = vpop.f32.mrb[6].mxu1 }
 0x15a   :  { %v1192_v61 = vadd.f32 %v1191_v59, %v1190_v58  ;;  %v1226_v62 = vpop.f32.mrb[7].mxu1 }
 0x15b   :  { %v1227_v63 = vadd.f32 %v1226_v62, %v1225_v60 }
 0x15c   :  { %v852_v0 = vadd.f32 %v1192_v61, %v782_v45 }
 0x15e   :  { %v922_v2 = vadd.f32 %v1227_v63, %v852_v0 }
 0x160   :  { %v932_v4 = vmul.f32 %v946_v1, %v922_v2 }
 0x162   :  { %v940_v5 = vadd.f32 %v947_v3, %v932_v4 }
 0x164   :  { %941 = vst [vmem:[%s2348_s4] sm:$0x3] %v940_v5 }

// kernel: _lambda_.10
= control target key start
LH: loop header
LB: loop body
LE: loop exit
PB: predicated region body
PF: predicated region fallthrough
CT: control target
= control target key end

     0   :  { %v2865_v3 = vmov 0.0   ;;  %s4647_s1 = inlined_call_operand.vmem [shape: f32[1,128,4096], index: 1, kind: input, shape index: {}]   ;;  %s4648_s0 = inlined_call_operand.vmem [shape: f32[1,2,128], index: 0, kind: input, shape index: {}]   ;;  %s4649_s2 = inlined_call_operand.vmem [shape: f32[1,4096], index: 2, kind: input, shape index: {}]   ;;  %s4650_s3 = inlined_call_operand.vmem [shape: f32[1,4096], index: 3, kind: input, shape index: {}]   ;;  %s4651_s4 = inlined_call_operand.vmem [shape: f32[1,2,4096], index: 4, kind: output, shape index: {}]  }
   0x1   :  { %v19_v0 = vld [vmem:[%s4647_s1 + $0x8] sm:$0xff]  ;;  %v21_v2 = vld [vmem:[%s4647_s1 + $0x18] sm:$0xff]  ;;  %594 = vmatprep.mubr.f32.mxu0 %v2865_v3  ;;  %665 = vmatprep.mubr.f32.mxu1 %v2865_v3  ;;  %v18_v6 = vld [vmem:[%s4647_s1] sm:$0xff] }
   0x2   :  { %v51_v1 = vld [vmem:[%s4647_s1 + $0x108] sm:$0xff]  ;;  %v53_v5 = vld [vmem:[%s4647_s1 + $0x118] sm:$0xff]  ;;  %v50_v7 = vld [vmem:[%s4647_s1 + $0x100] sm:$0xff] }
   0x3   :  { %v2350_v4 = vpack.c.bf16 %v51_v1, %v19_v0  ;;  %v2382_v8 = vpack.c.bf16 %v53_v5, %v21_v2  ;;  %v2352_v9 = vpack.c.bf16 %v50_v7, %v18_v6  ;;  %v20_v10 = vld [vmem:[%s4647_s1 + $0x10] sm:$0xff]  ;;  %v83_v12 = vld [vmem:[%s4647_s1 + $0x208] sm:$0xff]  ;;  %v85_v15 = vld [vmem:[%s4647_s1 + $0x218] sm:$0xff] }
   0x4   :  { %v52_v11 = vld [vmem:[%s4647_s1 + $0x110] sm:$0xff]  ;;  %v115_v14 = vld [vmem:[%s4647_s1 + $0x308] sm:$0xff]  ;;  %v117_v16 = vld [vmem:[%s4647_s1 + $0x318] sm:$0xff] }
   0x5   :  { %2351 = vmatprep.subr.bf16.mxu0 %v2350_v4  ;;  %v2384_v13 = vpack.c.bf16 %v52_v11, %v20_v10  ;;  %2383 = vmatprep.subr.bf16.mxu1 %v2382_v8  ;;  %v2354_v17 = vpack.c.bf16 %v115_v14, %v83_v12  ;;  %v2386_v18 = vpack.c.bf16 %v117_v16, %v85_v15  ;;  %v82_v19 = vld [vmem:[%s4647_s1 + $0x200] sm:$0xff]  ;;  %v84_v21 = vld [vmem:[%s4647_s1 + $0x210] sm:$0xff]  ;;  %v147_v24 = vld [vmem:[%s4647_s1 + $0x408] sm:$0xff] }
   0x6   :  { %2353 = vmatpush1.bf16.msra.mxu0 %v2352_v9  ;;  %v114_v20 = vld [vmem:[%s4647_s1 + $0x300] sm:$0xff]  ;;  %v116_v23 = vld [vmem:[%s4647_s1 + $0x310] sm:$0xff]  ;;  %v179_v25 = vld [vmem:[%s4647_s1 + $0x508] sm:$0xff] }
   0x7   :  { %2385 = vmatpush1.bf16.msra.mxu1 %v2384_v13  ;;  %v2356_v22 = vpack.c.bf16 %v114_v20, %v82_v19  ;;  %2355 = vmatprep.subr.bf16.mxu0 %v2354_v17  ;;  %v2388_v26 = vpack.c.bf16 %v116_v23, %v84_v21  ;;  %v2358_v27 = vpack.c.bf16 %v179_v25, %v147_v24  ;;  %v149_v28 = vld [vmem:[%s4647_s1 + $0x418] sm:$0xff]  ;;  %v146_v30 = vld [vmem:[%s4647_s1 + $0x400] sm:$0xff]  ;;  %v148_v33 = vld [vmem:[%s4647_s1 + $0x410] sm:$0xff] }
   0x8   :  { %2387 = vmatprep.subr.bf16.mxu1 %v2386_v18  ;;  %v181_v29 = vld [vmem:[%s4647_s1 + $0x518] sm:$0xff]  ;;  %v178_v32 = vld [vmem:[%s4647_s1 + $0x500] sm:$0xff]  ;;  %v180_v34 = vld [vmem:[%s4647_s1 + $0x510] sm:$0xff] }
   0x9   :  { %v2390_v31 = vpack.c.bf16 %v181_v29, %v149_v28  ;;  %v2360_v35 = vpack.c.bf16 %v178_v32, %v146_v30  ;;  %v211_v36 = vld [vmem:[%s4647_s1 + $0x608] sm:$0xff]  ;;  %v213_v38 = vld [vmem:[%s4647_s1 + $0x618] sm:$0xff]  ;;  %v2392_v39 = vpack.c.bf16 %v180_v34, %v148_v33  ;;  %v210_v42 = vld [vmem:[%s4647_s1 + $0x600] sm:$0xff] }
   0xa   :  { %2357 = vmatpush1.bf16.msra.mxu0 %v2356_v22  ;;  %v243_v37 = vld [vmem:[%s4647_s1 + $0x708] sm:$0xff]  ;;  %v245_v41 = vld [vmem:[%s4647_s1 + $0x718] sm:$0xff]  ;;  %v242_v43 = vld [vmem:[%s4647_s1 + $0x700] sm:$0xff] }
   0xb   :  { %2389 = vmatpush1.bf16.msra.mxu1 %v2388_v26  ;;  %2359 = vmatprep.subr.bf16.mxu0 %v2358_v27  ;;  %v2362_v40 = vpack.c.bf16 %v243_v37, %v211_v36  ;;  %v2394_v44 = vpack.c.bf16 %v245_v41, %v213_v38  ;;  %v212_v45 = vld [vmem:[%s4647_s1 + $0x610] sm:$0xff]  ;;  %v275_v47 = vld [vmem:[%s4647_s1 + $0x808] sm:$0xff]  ;;  %v277_v49 = vld [vmem:[%s4647_s1 + $0x818] sm:$0xff]  ;;  %v2364_v51 = vpack.c.bf16 %v242_v43, %v210_v42 }
   0xc   :  { %2391 = vmatprep.subr.bf16.mxu1 %v2390_v31  ;;  %v244_v46 = vld [vmem:[%s4647_s1 + $0x710] sm:$0xff]  ;;  %v307_v48 = vld [vmem:[%s4647_s1 + $0x908] sm:$0xff]  ;;  %v309_v50 = vld [vmem:[%s4647_s1 + $0x918] sm:$0xff] }
   0xd   :  { %v2396_v52 = vpack.c.bf16 %v244_v46, %v212_v45  ;;  %v2366_v53 = vpack.c.bf16 %v307_v48, %v275_v47  ;;  %v274_v54 = vld [vmem:[%s4647_s1 + $0x800] sm:$0xff]  ;;  %v276_v56 = vld [vmem:[%s4647_s1 + $0x810] sm:$0xff]  ;;  %v2398_v57 = vpack.c.bf16 %v309_v50, %v277_v49  ;;  %v339_v59 = vld [vmem:[%s4647_s1 + $0xa08] sm:$0xff] }
   0xe   :  { %2361 = vmatpush1.bf16.msra.mxu0 %v2360_v35  ;;  %v306_v55 = vld [vmem:[%s4647_s1 + $0x900] sm:$0xff]  ;;  %v308_v58 = vld [vmem:[%s4647_s1 + $0x910] sm:$0xff]  ;;  %v371_v60 = vld [vmem:[%s4647_s1 + $0xb08] sm:$0xff] }
   0xf   :  { %2393 = vmatpush1.bf16.msra.mxu1 %v2392_v39  ;;  %2363 = vmatprep.subr.bf16.mxu0 %v2362_v40  ;;  %v341_v61 = vld [vmem:[%s4647_s1 + $0xa18] sm:$0xff]  ;;  %v2368_v63 = vpack.c.bf16 %v306_v55, %v274_v54  ;;  %v2400_v0 = vpack.c.bf16 %v308_v58, %v276_v56  ;;  %v2370_v1 = vpack.c.bf16 %v371_v60, %v339_v59  ;;  %v338_v2 = vld [vmem:[%s4647_s1 + $0xa00] sm:$0xff]  ;;  %v340_v5 = vld [vmem:[%s4647_s1 + $0xa10] sm:$0xff] }
  0x10   :  { %2395 = vmatprep.subr.bf16.mxu1 %v2394_v44  ;;  %v373_v62 = vld [vmem:[%s4647_s1 + $0xb18] sm:$0xff]  ;;  %v370_v4 = vld [vmem:[%s4647_s1 + $0xb00] sm:$0xff]  ;;  %v372_v7 = vld [vmem:[%s4647_s1 + $0xb10] sm:$0xff] }
  0x11   :  { %v2402_v6 = vpack.c.bf16 %v373_v62, %v341_v61  ;;  %v403_v8 = vld [vmem:[%s4647_s1 + $0xc08] sm:$0xff]  ;;  %v405_v10 = vld [vmem:[%s4647_s1 + $0xc18] sm:$0xff]  ;;  %v2372_v12 = vpack.c.bf16 %v370_v4, %v338_v2  ;;  %v2404_v13 = vpack.c.bf16 %v372_v7, %v340_v5  ;;  %v402_v15 = vld [vmem:[%s4647_s1 + $0xc00] sm:$0xff] }
  0x12   :  { %2365 = vmatpush1.bf16.msra.mxu0 %v2364_v51  ;;  %v435_v9 = vld [vmem:[%s4647_s1 + $0xd08] sm:$0xff]  ;;  %v437_v11 = vld [vmem:[%s4647_s1 + $0xd18] sm:$0xff]  ;;  %v434_v16 = vld [vmem:[%s4647_s1 + $0xd00] sm:$0xff] }
  0x13   :  { %2397 = vmatpush1.bf16.msra.mxu1 %v2396_v52  ;;  %2367 = vmatprep.subr.bf16.mxu0 %v2366_v53  ;;  %v2374_v14 = vpack.c.bf16 %v435_v9, %v403_v8  ;;  %v404_v17 = vld [vmem:[%s4647_s1 + $0xc10] sm:$0xff]  ;;  %v2406_v18 = vpack.c.bf16 %v437_v11, %v405_v10  ;;  %v467_v20 = vld [vmem:[%s4647_s1 + $0xe08] sm:$0xff]  ;;  %v469_v22 = vld [vmem:[%s4647_s1 + $0xe18] sm:$0xff]  ;;  %v2376_v24 = vpack.c.bf16 %v434_v16, %v402_v15 }
  0x14   :  { %2399 = vmatprep.subr.bf16.mxu1 %v2398_v57  ;;  %v436_v19 = vld [vmem:[%s4647_s1 + $0xd10] sm:$0xff]  ;;  %v499_v21 = vld [vmem:[%s4647_s1 + $0xf08] sm:$0xff]  ;;  %v501_v23 = vld [vmem:[%s4647_s1 + $0xf18] sm:$0xff] }
  0x15   :  { %v2408_v25 = vpack.c.bf16 %v436_v19, %v404_v17  ;;  %v2378_v26 = vpack.c.bf16 %v499_v21, %v467_v20  ;;  %v466_v27 = vld [vmem:[%s4647_s1 + $0xe00] sm:$0xff]  ;;  %v468_v29 = vld [vmem:[%s4647_s1 + $0xe10] sm:$0xff]  ;;  %v2410_v30 = vpack.c.bf16 %v501_v23, %v469_v22  ;;  %v23_v32 = vld [vmem:[%s4647_s1 + $0x28] sm:$0xff] }
  0x16   :  { %2369 = vmatpush1.bf16.msra.mxu0 %v2368_v63  ;;  %v498_v28 = vld [vmem:[%s4647_s1 + $0xf00] sm:$0xff]  ;;  %v500_v31 = vld [vmem:[%s4647_s1 + $0xf10] sm:$0xff]  ;;  %v55_v33 = vld [vmem:[%s4647_s1 + $0x128] sm:$0xff] }
  0x17   :  { %2401 = vmatpush1.bf16.msra.mxu1 %v2400_v0  ;;  %2371 = vmatprep.subr.bf16.mxu0 %v2370_v1  ;;  %v25_v34 = vld [vmem:[%s4647_s1 + $0x38] sm:$0xff]  ;;  %v2380_v36 = vpack.c.bf16 %v498_v28, %v466_v27  ;;  %v2412_v37 = vpack.c.bf16 %v500_v31, %v468_v29  ;;  %v2414_v38 = vpack.c.bf16 %v55_v33, %v23_v32  ;;  %v22_v39 = vld [vmem:[%s4647_s1 + $0x20] sm:$0xff]  ;;  %v24_v41 = vld [vmem:[%s4647_s1 + $0x30] sm:$0xff] }
  0x18   :  { %2403 = vmatprep.subr.bf16.mxu1 %v2402_v6  ;;  %v57_v35 = vld [vmem:[%s4647_s1 + $0x138] sm:$0xff]  ;;  %v54_v40 = vld [vmem:[%s4647_s1 + $0x120] sm:$0xff]  ;;  %v56_v43 = vld [vmem:[%s4647_s1 + $0x130] sm:$0xff] }
  0x19   :  { %v2446_v42 = vpack.c.bf16 %v57_v35, %v25_v34  ;;  %v87_v44 = vld [vmem:[%s4647_s1 + $0x228] sm:$0xff]  ;;  %v89_v46 = vld [vmem:[%s4647_s1 + $0x238] sm:$0xff]  ;;  %v3125_v48 = vld [vmem:[%s4648_s0] sm:$0x3]  ;;  %v2416_v49 = vpack.c.bf16 %v54_v40, %v22_v39  ;;  %v2448_v50 = vpack.c.bf16 %v56_v43, %v24_v41 }
  0x1a   :  { %2373 = vmatpush1.bf16.msra.mxu0 %v2372_v12  ;;  %v119_v45 = vld [vmem:[%s4647_s1 + $0x328] sm:$0xff]  ;;  %v121_v47 = vld [vmem:[%s4647_s1 + $0x338] sm:$0xff]  ;;  %v86_v52 = vld [vmem:[%s4647_s1 + $0x220] sm:$0xff] }
  0x1b   :  { %2405 = vmatpush1.bf16.msra.mxu1 %v2404_v13  ;;  %2375 = vmatprep.subr.bf16.mxu0 %v2374_v14  ;;  %v2418_v51 = vpack.c.bf16 %v119_v45, %v87_v44  ;;  %v118_v53 = vld [vmem:[%s4647_s1 + $0x320] sm:$0xff]  ;;  %v88_v54 = vld [vmem:[%s4647_s1 + $0x230] sm:$0xff]  ;;  %v2450_v55 = vpack.c.bf16 %v121_v47, %v89_v46  ;;  %v151_v57 = vld [vmem:[%s4647_s1 + $0x428] sm:$0xff] }
  0x1c   :  { %2407 = vmatprep.subr.bf16.mxu1 %v2406_v18  ;;  %v120_v56 = vld [vmem:[%s4647_s1 + $0x330] sm:$0xff]  ;;  %v183_v58 = vld [vmem:[%s4647_s1 + $0x528] sm:$0xff]  ;;  %v153_v59 = vld [vmem:[%s4647_s1 + $0x438] sm:$0xff]  ;;  %v2420_v61 = vpack.c.bf16 %v118_v53, %v86_v52 }
  0x1d   :  { %v185_v60 = vld [vmem:[%s4647_s1 + $0x538] sm:$0xff]  ;;  %v2452_v62 = vpack.c.bf16 %v120_v56, %v88_v54  ;;  %v2422_v63 = vpack.c.bf16 %v183_v58, %v151_v57  ;;  %v150_v0 = vld [vmem:[%s4647_s1 + $0x420] sm:$0xff]  ;;  %v152_v2 = vld [vmem:[%s4647_s1 + $0x430] sm:$0xff] }
  0x1e   :  { %2377 = vmatpush1.bf16.msra.mxu0 %v2376_v24  ;;  %v182_v1 = vld [vmem:[%s4647_s1 + $0x520] sm:$0xff]  ;;  %v2454_v4 = vpack.c.bf16 %v185_v60, %v153_v59  ;;  %v184_v5 = vld [vmem:[%s4647_s1 + $0x530] sm:$0xff]  ;;  %v215_v6 = vld [vmem:[%s4647_s1 + $0x628] sm:$0xff] }
  0x1f   :  { %2409 = vmatpush1.bf16.msra.mxu1 %v2408_v25  ;;  %2379 = vmatprep.subr.bf16.mxu0 %v2378_v26  ;;  %v247_v7 = vld [vmem:[%s4647_s1 + $0x728] sm:$0xff]  ;;  %v217_v8 = vld [vmem:[%s4647_s1 + $0x638] sm:$0xff]  ;;  %v2424_v10 = vpack.c.bf16 %v182_v1, %v150_v0  ;;  %v2456_v11 = vpack.c.bf16 %v184_v5, %v152_v2  ;;  %v214_v13 = vld [vmem:[%s4647_s1 + $0x620] sm:$0xff] }
  0x20   :  { %2411 = vmatprep.subr.bf16.mxu1 %v2410_v30  ;;  %v249_v9 = vld [vmem:[%s4647_s1 + $0x738] sm:$0xff]  ;;  %v2426_v12 = vpack.c.bf16 %v247_v7, %v215_v6  ;;  %v246_v14 = vld [vmem:[%s4647_s1 + $0x720] sm:$0xff]  ;;  %v216_v15 = vld [vmem:[%s4647_s1 + $0x630] sm:$0xff] }
  0x21   :  { %v2458_v16 = vpack.c.bf16 %v249_v9, %v217_v8  ;;  %v248_v17 = vld [vmem:[%s4647_s1 + $0x730] sm:$0xff]  ;;  %v279_v18 = vld [vmem:[%s4647_s1 + $0x828] sm:$0xff]  ;;  %v281_v20 = vld [vmem:[%s4647_s1 + $0x838] sm:$0xff]  ;;  %v2428_v22 = vpack.c.bf16 %v246_v14, %v214_v13 }
  0x22   :  { %2381 = vmatpush1.bf16.msra.mxu0 %v2380_v36  ;;  %v311_v19 = vld [vmem:[%s4647_s1 + $0x928] sm:$0xff]  ;;  %v313_v21 = vld [vmem:[%s4647_s1 + $0x938] sm:$0xff]  ;;  %v2460_v23 = vpack.c.bf16 %v248_v17, %v216_v15  ;;  %v278_v25 = vld [vmem:[%s4647_s1 + $0x820] sm:$0xff] }
  0x23   :  { %2413 = vmatpush1.bf16.msra.mxu1 %v2412_v37  ;;  %2415 = vmatprep.subr.bf16.mxu0 %v2414_v38  ;;  %v2430_v24 = vpack.c.bf16 %v311_v19, %v279_v18  ;;  %v310_v26 = vld [vmem:[%s4647_s1 + $0x920] sm:$0xff]  ;;  %v280_v27 = vld [vmem:[%s4647_s1 + $0x830] sm:$0xff]  ;;  %v2462_v28 = vpack.c.bf16 %v313_v21, %v281_v20  ;;  %v343_v30 = vld [vmem:[%s4647_s1 + $0xa28] sm:$0xff] }
  0x24   :  { %2447 = vmatprep.subr.bf16.mxu1 %v2446_v42  ;;  %v312_v29 = vld [vmem:[%s4647_s1 + $0x930] sm:$0xff]  ;;  %v375_v31 = vld [vmem:[%s4647_s1 + $0xb28] sm:$0xff]  ;;  %v345_v32 = vld [vmem:[%s4647_s1 + $0xa38] sm:$0xff]  ;;  %v2432_v34 = vpack.c.bf16 %v310_v26, %v278_v25 }
  0x25   :  { %595 = vmatmul.mubr.f32.vlgmr.msra.gmra.mrb[0].mxu0 %v3125_v48  ;;  %v377_v33 = vld [vmem:[%s4647_s1 + $0xb38] sm:$0xff]  ;;  %v2464_v35 = vpack.c.bf16 %v312_v29, %v280_v27  ;;  %v2434_v36 = vpack.c.bf16 %v375_v31, %v343_v30  ;;  %v342_v37 = vld [vmem:[%s4647_s1 + $0xa20] sm:$0xff]  ;;  %v344_v39 = vld [vmem:[%s4647_s1 + $0xa30] sm:$0xff] }
  0x26   :  { %666 = vmatmul.mubr.f32.vlgmr.msra.gmra.mrb[0].mxu1 %v3125_v48  ;;  %2417 = vmatpush1.bf16.msra.mxu0 %v2416_v49  ;;  %v374_v38 = vld [vmem:[%s4647_s1 + $0xb20] sm:$0xff]  ;;  %v2466_v40 = vpack.c.bf16 %v377_v33, %v345_v32  ;;  %v376_v41 = vld [vmem:[%s4647_s1 + $0xb30] sm:$0xff]  ;;  %v407_v42 = vld [vmem:[%s4647_s1 + $0xc28] sm:$0xff] }
  0x27   :  { %2449 = vmatpush1.bf16.msra.mxu1 %v2448_v50  ;;  %2419 = vmatprep.subr.bf16.mxu0 %v2418_v51  ;;  %v439_v43 = vld [vmem:[%s4647_s1 + $0xd28] sm:$0xff]  ;;  %v409_v44 = vld [vmem:[%s4647_s1 + $0xc38] sm:$0xff]  ;;  %v2436_v46 = vpack.c.bf16 %v374_v38, %v342_v37  ;;  %v2468_v47 = vpack.c.bf16 %v376_v41, %v344_v39  ;;  %v406_v50 = vld [vmem:[%s4647_s1 + $0xc20] sm:$0xff] }
  0x28   :  { %2451 = vmatprep.subr.bf16.mxu1 %v2450_v55  ;;  %736 = vmatprep.mubr.f32.mxu0 %v2865_v3  ;;  %v441_v45 = vld [vmem:[%s4647_s1 + $0xd38] sm:$0xff]  ;;  %v2438_v49 = vpack.c.bf16 %v439_v43, %v407_v42  ;;  %v438_v51 = vld [vmem:[%s4647_s1 + $0xd20] sm:$0xff]  ;;  %v408_v52 = vld [vmem:[%s4647_s1 + $0xc30] sm:$0xff] }
  0x29   :  { %807 = vmatprep.mubr.f32.mxu1 %v2865_v3  ;;  %v2470_v53 = vpack.c.bf16 %v441_v45, %v409_v44  ;;  %v440_v54 = vld [vmem:[%s4647_s1 + $0xd30] sm:$0xff]  ;;  %v471_v55 = vld [vmem:[%s4647_s1 + $0xe28] sm:$0xff]  ;;  %v473_v57 = vld [vmem:[%s4647_s1 + $0xe38] sm:$0xff]  ;;  %v2440_v59 = vpack.c.bf16 %v438_v51, %v406_v50 }
  0x2a   :  { %2421 = vmatpush1.bf16.msra.mxu0 %v2420_v61  ;;  %v503_v56 = vld [vmem:[%s4647_s1 + $0xf28] sm:$0xff]  ;;  %v505_v58 = vld [vmem:[%s4647_s1 + $0xf38] sm:$0xff]  ;;  %v2472_v60 = vpack.c.bf16 %v440_v54, %v408_v52  ;;  %v472_v0 = vld [vmem:[%s4647_s1 + $0xe30] sm:$0xff] }
  0x2b   :  { %2453 = vmatpush1.bf16.msra.mxu1 %v2452_v62  ;;  %2423 = vmatprep.subr.bf16.mxu0 %v2422_v63  ;;  %v2442_v61 = vpack.c.bf16 %v503_v56, %v471_v55  ;;  %v470_v62 = vld [vmem:[%s4647_s1 + $0xe20] sm:$0xff]  ;;  %v2474_v1 = vpack.c.bf16 %v505_v58, %v473_v57  ;;  %v504_v2 = vld [vmem:[%s4647_s1 + $0xf30] sm:$0xff]  ;;  %v59_v5 = vld [vmem:[%s4647_s1 + $0x148] sm:$0xff] }
  0x2c   :  { %2455 = vmatprep.subr.bf16.mxu1 %v2454_v4  ;;  %v502_v63 = vld [vmem:[%s4647_s1 + $0xf20] sm:$0xff]  ;;  %v27_v4 = vld [vmem:[%s4647_s1 + $0x48] sm:$0xff]  ;;  %v29_v6 = vld [vmem:[%s4647_s1 + $0x58] sm:$0xff]  ;;  %v2476_v9 = vpack.c.bf16 %v504_v2, %v472_v0 }
  0x2d   :  { %v61_v7 = vld [vmem:[%s4647_s1 + $0x158] sm:$0xff]  ;;  %v2444_v8 = vpack.c.bf16 %v502_v63, %v470_v62  ;;  %v28_v13 = vld [vmem:[%s4647_s1 + $0x50] sm:$0xff]  ;;  %v123_v17 = vld [vmem:[%s4647_s1 + $0x348] sm:$0xff] }
  0x2e   :  { %2425 = vmatpush1.bf16.msra.mxu0 %v2424_v10  ;;  %v2478_v10 = vpack.c.bf16 %v59_v5, %v27_v4  ;;  %v2510_v14 = vpack.c.bf16 %v61_v7, %v29_v6  ;;  %v60_v15 = vld [vmem:[%s4647_s1 + $0x150] sm:$0xff]  ;;  %v93_v18 = vld [vmem:[%s4647_s1 + $0x258] sm:$0xff]  ;;  %v187_v29 = vld [vmem:[%s4647_s1 + $0x548] sm:$0xff] }
  0x2f   :  { %2457 = vmatpush1.bf16.msra.mxu1 %v2456_v11  ;;  %2427 = vmatprep.subr.bf16.mxu0 %v2426_v12  ;;  %v26_v11 = vld [vmem:[%s4647_s1 + $0x40] sm:$0xff]  ;;  %v125_v19 = vld [vmem:[%s4647_s1 + $0x358] sm:$0xff]  ;;  %v2512_v21 = vpack.c.bf16 %v60_v15, %v28_v13  ;;  %v92_v25 = vld [vmem:[%s4647_s1 + $0x250] sm:$0xff] }
  0x30   :  { %2459 = vmatprep.subr.bf16.mxu1 %v2458_v16  ;;  %v58_v12 = vld [vmem:[%s4647_s1 + $0x140] sm:$0xff]  ;;  %v91_v16 = vld [vmem:[%s4647_s1 + $0x248] sm:$0xff]  ;;  %v2514_v26 = vpack.c.bf16 %v125_v19, %v93_v18  ;;  %v124_v27 = vld [vmem:[%s4647_s1 + $0x350] sm:$0xff] }
  0x31   :  { %v2480_v20 = vpack.c.bf16 %v58_v12, %v26_v11  ;;  %v157_v30 = vld [vmem:[%s4647_s1 + $0x458] sm:$0xff]  ;;  %v2516_v33 = vpack.c.bf16 %v124_v27, %v92_v25  ;;  %v156_v37 = vld [vmem:[%s4647_s1 + $0x450] sm:$0xff]  ;;  %v251_v41 = vld [vmem:[%s4647_s1 + $0x748] sm:$0xff] }
  0x32   :  { %2429 = vmatpush1.bf16.msra.mxu0 %v2428_v22  ;;  %v2482_v22 = vpack.c.bf16 %v123_v17, %v91_v16  ;;  %v189_v31 = vld [vmem:[%s4647_s1 + $0x558] sm:$0xff]  ;;  %v188_v39 = vld [vmem:[%s4647_s1 + $0x550] sm:$0xff]  ;;  %v315_v54 = vld [vmem:[%s4647_s1 + $0x948] sm:$0xff] }
  0x33   :  { %2461 = vmatpush1.bf16.msra.mxu1 %v2460_v23  ;;  %2431 = vmatprep.subr.bf16.mxu0 %v2430_v24  ;;  %v90_v23 = vld [vmem:[%s4647_s1 + $0x240] sm:$0xff]  ;;  %v2518_v38 = vpack.c.bf16 %v189_v31, %v157_v30  ;;  %v221_v42 = vld [vmem:[%s4647_s1 + $0x658] sm:$0xff]  ;;  %v2520_v45 = vpack.c.bf16 %v188_v39, %v156_v37  ;;  %v220_v50 = vld [vmem:[%s4647_s1 + $0x650] sm:$0xff] }
  0x34   :  { %2463 = vmatprep.subr.bf16.mxu1 %v2462_v28  ;;  %v122_v24 = vld [vmem:[%s4647_s1 + $0x340] sm:$0xff]  ;;  %v155_v28 = vld [vmem:[%s4647_s1 + $0x448] sm:$0xff]  ;;  %v253_v43 = vld [vmem:[%s4647_s1 + $0x758] sm:$0xff] }
  0x35   :  { %v2484_v32 = vpack.c.bf16 %v122_v24, %v90_v23  ;;  %v2522_v51 = vpack.c.bf16 %v253_v43, %v221_v42  ;;  %v252_v52 = vld [vmem:[%s4647_s1 + $0x750] sm:$0xff]  ;;  %v285_v55 = vld [vmem:[%s4647_s1 + $0x858] sm:$0xff]  ;;  %v379_v2 = vld [vmem:[%s4647_s1 + $0xb48] sm:$0xff] }
  0x36   :  { %2433 = vmatpush1.bf16.msra.mxu0 %v2432_v34  ;;  %v2486_v34 = vpack.c.bf16 %v187_v29, %v155_v28  ;;  %v317_v56 = vld [vmem:[%s4647_s1 + $0x958] sm:$0xff]  ;;  %v2524_v58 = vpack.c.bf16 %v252_v52, %v220_v50  ;;  %v284_v62 = vld [vmem:[%s4647_s1 + $0x850] sm:$0xff]  ;;  %v443_v15 = vld [vmem:[%s4647_s1 + $0xd48] sm:$0xff] }
  0x37   :  { %2465 = vmatpush1.bf16.msra.mxu1 %v2464_v35  ;;  %2435 = vmatprep.subr.bf16.mxu0 %v2434_v36  ;;  %v154_v35 = vld [vmem:[%s4647_s1 + $0x440] sm:$0xff]  ;;  %v2526_v63 = vpack.c.bf16 %v317_v56, %v285_v55  ;;  %v316_v0 = vld [vmem:[%s4647_s1 + $0x950] sm:$0xff]  ;;  %v349_v4 = vld [vmem:[%s4647_s1 + $0xa58] sm:$0xff] }
  0x38   :  { %2467 = vmatprep.subr.bf16.mxu1 %v2466_v40  ;;  %v186_v36 = vld [vmem:[%s4647_s1 + $0x540] sm:$0xff]  ;;  %v219_v40 = vld [vmem:[%s4647_s1 + $0x648] sm:$0xff]  ;;  %v381_v5 = vld [vmem:[%s4647_s1 + $0xb58] sm:$0xff]  ;;  %v2528_v7 = vpack.c.bf16 %v316_v0, %v284_v62 }
  0x39   :  { %v2488_v44 = vpack.c.bf16 %v186_v36, %v154_v35  ;;  %v348_v11 = vld [vmem:[%s4647_s1 + $0xa50] sm:$0xff]  ;;  %v2530_v12 = vpack.c.bf16 %v381_v5, %v349_v4  ;;  %v413_v16 = vld [vmem:[%s4647_s1 + $0xc58] sm:$0xff]  ;;  %v507_v27 = vld [vmem:[%s4647_s1 + $0xf48] sm:$0xff] }
  0x3a   :  { %2437 = vmatpush1.bf16.msra.mxu0 %v2436_v46  ;;  %v2490_v46 = vpack.c.bf16 %v251_v41, %v219_v40  ;;  %v380_v13 = vld [vmem:[%s4647_s1 + $0xb50] sm:$0xff]  ;;  %v445_v17 = vld [vmem:[%s4647_s1 + $0xd58] sm:$0xff]  ;;  %v63_v39 = vld [vmem:[%s4647_s1 + $0x168] sm:$0xff] }
  0x3b   :  { %2469 = vmatpush1.bf16.msra.mxu1 %v2468_v47  ;;  %2439 = vmatprep.subr.bf16.mxu0 %v2438_v49  ;;  %v218_v47 = vld [vmem:[%s4647_s1 + $0x640] sm:$0xff]  ;;  %v2532_v19 = vpack.c.bf16 %v380_v13, %v348_v11  ;;  %v412_v23 = vld [vmem:[%s4647_s1 + $0xc50] sm:$0xff]  ;;  %v2534_v24 = vpack.c.bf16 %v445_v17, %v413_v16  ;;  %v477_v28 = vld [vmem:[%s4647_s1 + $0xe58] sm:$0xff] }
  0x3c   :  { %2471 = vmatprep.subr.bf16.mxu1 %v2470_v53  ;;  %v250_v49 = vld [vmem:[%s4647_s1 + $0x740] sm:$0xff]  ;;  %v283_v53 = vld [vmem:[%s4647_s1 + $0x848] sm:$0xff]  ;;  %v444_v25 = vld [vmem:[%s4647_s1 + $0xd50] sm:$0xff] }
  0x3d   :  { %v2492_v57 = vpack.c.bf16 %v250_v49, %v218_v47  ;;  %v509_v29 = vld [vmem:[%s4647_s1 + $0xf58] sm:$0xff]  ;;  %v2536_v31 = vpack.c.bf16 %v444_v25, %v412_v23  ;;  %v476_v35 = vld [vmem:[%s4647_s1 + $0xe50] sm:$0xff]  ;;  %v127_v52 = vld [vmem:[%s4647_s1 + $0x368] sm:$0xff] }
  0x3e   :  { %2441 = vmatpush1.bf16.msra.mxu0 %v2440_v59  ;;  %v2494_v59 = vpack.c.bf16 %v315_v54, %v283_v53  ;;  %v2538_v36 = vpack.c.bf16 %v509_v29, %v477_v28  ;;  %v508_v37 = vld [vmem:[%s4647_s1 + $0xf50] sm:$0xff]  ;;  %v33_v40 = vld [vmem:[%s4647_s1 + $0x78] sm:$0xff]  ;;  %v191_v0 = vld [vmem:[%s4647_s1 + $0x568] sm:$0xff] }
  0x3f   :  { %2473 = vmatpush1.bf16.msra.mxu1 %v2472_v60  ;;  %2443 = vmatprep.subr.bf16.mxu0 %v2442_v61  ;;  %v282_v60 = vld [vmem:[%s4647_s1 + $0x840] sm:$0xff]  ;;  %v65_v41 = vld [vmem:[%s4647_s1 + $0x178] sm:$0xff]  ;;  %v2540_v43 = vpack.c.bf16 %v508_v37, %v476_v35  ;;  %v32_v47 = vld [vmem:[%s4647_s1 + $0x70] sm:$0xff] }
  0x40   :  { %2475 = vmatprep.subr.bf16.mxu1 %v2474_v1  ;;  %v314_v61 = vld [vmem:[%s4647_s1 + $0x940] sm:$0xff]  ;;  %v347_v1 = vld [vmem:[%s4647_s1 + $0xa48] sm:$0xff]  ;;  %v2574_v49 = vpack.c.bf16 %v65_v41, %v33_v40  ;;  %v64_v50 = vld [vmem:[%s4647_s1 + $0x170] sm:$0xff] }
  0x41   :  { %v2496_v6 = vpack.c.bf16 %v314_v61, %v282_v60  ;;  %v97_v53 = vld [vmem:[%s4647_s1 + $0x278] sm:$0xff]  ;;  %v2576_v56 = vpack.c.bf16 %v64_v50, %v32_v47  ;;  %v96_v60 = vld [vmem:[%s4647_s1 + $0x270] sm:$0xff]  ;;  %v255_v13 = vld [vmem:[%s4647_s1 + $0x768] sm:$0xff] }
  0x42   :  { %2445 = vmatpush1.bf16.msra.mxu0 %v2444_v8  ;;  %v2498_v8 = vpack.c.bf16 %v379_v2, %v347_v1  ;;  %v129_v54 = vld [vmem:[%s4647_s1 + $0x378] sm:$0xff]  ;;  %v128_v62 = vld [vmem:[%s4647_s1 + $0x370] sm:$0xff]  ;;  %v319_v25 = vld [vmem:[%s4647_s1 + $0x968] sm:$0xff] }
  0x43   :  { %2477 = vmatpush1.bf16.msra.mxu1 %v2476_v9  ;;  %2479 = vmatprep.subr.bf16.mxu0 %v2478_v10  ;;  %v346_v9 = vld [vmem:[%s4647_s1 + $0xa40] sm:$0xff]  ;;  %v2578_v61 = vpack.c.bf16 %v129_v54, %v97_v53  ;;  %v161_v1 = vld [vmem:[%s4647_s1 + $0x478] sm:$0xff]  ;;  %v2580_v5 = vpack.c.bf16 %v128_v62, %v96_v60  ;;  %v192_v11 = vld [vmem:[%s4647_s1 + $0x570] sm:$0xff] }
  0x44   :  { %2511 = vmatprep.subr.bf16.mxu1 %v2510_v14  ;;  %v378_v10 = vld [vmem:[%s4647_s1 + $0xb40] sm:$0xff]  ;;  %v411_v14 = vld [vmem:[%s4647_s1 + $0xc48] sm:$0xff]  ;;  %v193_v2 = vld [vmem:[%s4647_s1 + $0x578] sm:$0xff] }
  0x45   :  { %737 = vmatmul.mubr.f32.vlgmr.msra.gmra.mrb[2].mxu0 %v3125_v48  ;;  %v2500_v18 = vpack.c.bf16 %v378_v10, %v346_v9  ;;  %v160_v9 = vld [vmem:[%s4647_s1 + $0x470] sm:$0xff]  ;;  %v2582_v10 = vpack.c.bf16 %v193_v2, %v161_v1  ;;  %v383_v37 = vld [vmem:[%s4647_s1 + $0xb68] sm:$0xff] }
  0x46   :  { %808 = vmatmul.mubr.f32.vlgmr.msra.gmra.mrb[2].mxu1 %v3125_v48  ;;  %2481 = vmatpush1.bf16.msra.mxu0 %v2480_v20  ;;  %v2502_v20 = vpack.c.bf16 %v443_v15, %v411_v14  ;;  %v225_v14 = vld [vmem:[%s4647_s1 + $0x678] sm:$0xff]  ;;  %v2584_v17 = vpack.c.bf16 %v192_v11, %v160_v9  ;;  %v256_v23 = vld [vmem:[%s4647_s1 + $0x770] sm:$0xff]  ;;  %v447_v50 = vld [vmem:[%s4647_s1 + $0xd68] sm:$0xff] }
  0x47   :  { %2513 = vmatpush1.bf16.msra.mxu1 %v2512_v21  ;;  %2483 = vmatprep.subr.bf16.mxu0 %v2482_v22  ;;  %v410_v21 = vld [vmem:[%s4647_s1 + $0xc40] sm:$0xff]  ;;  %v257_v15 = vld [vmem:[%s4647_s1 + $0x778] sm:$0xff]  ;;  %v320_v35 = vld [vmem:[%s4647_s1 + $0x970] sm:$0xff] }
  0x48   :  { %2515 = vmatprep.subr.bf16.mxu1 %v2514_v26  ;;  %878 = vmatprep.mubr.f32.mxu0 %v2865_v3  ;;  %v442_v22 = vld [vmem:[%s4647_s1 + $0xd40] sm:$0xff]  ;;  %v475_v26 = vld [vmem:[%s4647_s1 + $0xe48] sm:$0xff]  ;;  %v384_v47 = vld [vmem:[%s4647_s1 + $0xb70] sm:$0xff] }
  0x49   :  { %949 = vmatprep.mubr.f32.mxu1 %v2865_v3  ;;  %v2504_v30 = vpack.c.bf16 %v442_v22, %v410_v21  ;;  %v224_v21 = vld [vmem:[%s4647_s1 + $0x670] sm:$0xff]  ;;  %v2586_v22 = vpack.c.bf16 %v257_v15, %v225_v14  ;;  %v511_v62 = vld [vmem:[%s4647_s1 + $0xf68] sm:$0xff] }
  0x4a   :  { %2485 = vmatpush1.bf16.msra.mxu0 %v2484_v32  ;;  %v2506_v32 = vpack.c.bf16 %v507_v27, %v475_v26  ;;  %v289_v26 = vld [vmem:[%s4647_s1 + $0x878] sm:$0xff]  ;;  %v2588_v29 = vpack.c.bf16 %v256_v23, %v224_v21  ;;  %v448_v60 = vld [vmem:[%s4647_s1 + $0xd70] sm:$0xff]  ;;  %v67_v11 = vld [vmem:[%s4647_s1 + $0x188] sm:$0xff] }
  0x4b   :  { %2517 = vmatpush1.bf16.msra.mxu1 %v2516_v33  ;;  %2487 = vmatprep.subr.bf16.mxu0 %v2486_v34  ;;  %v474_v33 = vld [vmem:[%s4647_s1 + $0xe40] sm:$0xff]  ;;  %v321_v27 = vld [vmem:[%s4647_s1 + $0x978] sm:$0xff]  ;;  %v512_v9 = vld [vmem:[%s4647_s1 + $0xf70] sm:$0xff] }
  0x4c   :  { %2519 = vmatprep.subr.bf16.mxu1 %v2518_v38  ;;  %v506_v34 = vld [vmem:[%s4647_s1 + $0xf40] sm:$0xff]  ;;  %v31_v38 = vld [vmem:[%s4647_s1 + $0x68] sm:$0xff]  ;;  %v68_v21 = vld [vmem:[%s4647_s1 + $0x190] sm:$0xff] }
  0x4d   :  { %v2508_v42 = vpack.c.bf16 %v506_v34, %v474_v33  ;;  %v288_v33 = vld [vmem:[%s4647_s1 + $0x870] sm:$0xff]  ;;  %v2590_v34 = vpack.c.bf16 %v321_v27, %v289_v26  ;;  %v131_v23 = vld [vmem:[%s4647_s1 + $0x388] sm:$0xff] }
  0x4e   :  { %2489 = vmatpush1.bf16.msra.mxu0 %v2488_v44  ;;  %v2542_v44 = vpack.c.bf16 %v63_v39, %v31_v38  ;;  %v353_v38 = vld [vmem:[%s4647_s1 + $0xa78] sm:$0xff]  ;;  %v2592_v41 = vpack.c.bf16 %v320_v35, %v288_v33  ;;  %v132_v33 = vld [vmem:[%s4647_s1 + $0x390] sm:$0xff]  ;;  %v195_v35 = vld [vmem:[%s4647_s1 + $0x588] sm:$0xff] }
  0x4f   :  { %2521 = vmatpush1.bf16.msra.mxu1 %v2520_v45  ;;  %2491 = vmatprep.subr.bf16.mxu0 %v2490_v46  ;;  %v30_v45 = vld [vmem:[%s4647_s1 + $0x60] sm:$0xff]  ;;  %v385_v39 = vld [vmem:[%s4647_s1 + $0xb78] sm:$0xff] }
  0x50   :  { %2523 = vmatprep.subr.bf16.mxu1 %v2522_v51  ;;  %v62_v46 = vld [vmem:[%s4647_s1 + $0x160] sm:$0xff]  ;;  %v95_v51 = vld [vmem:[%s4647_s1 + $0x268] sm:$0xff] }
  0x51   :  { %v2544_v55 = vpack.c.bf16 %v62_v46, %v30_v45  ;;  %v352_v45 = vld [vmem:[%s4647_s1 + $0xa70] sm:$0xff]  ;;  %v2594_v46 = vpack.c.bf16 %v385_v39, %v353_v38 }
  0x52   :  { %2493 = vmatpush1.bf16.msra.mxu0 %v2492_v57  ;;  %v2546_v57 = vpack.c.bf16 %v127_v52, %v95_v51  ;;  %v417_v51 = vld [vmem:[%s4647_s1 + $0xc78] sm:$0xff]  ;;  %v2596_v54 = vpack.c.bf16 %v384_v47, %v352_v45  ;;  %v227_v45 = vld [vmem:[%s4647_s1 + $0x688] sm:$0xff] }
  0x53   :  { %2525 = vmatpush1.bf16.msra.mxu1 %v2524_v58  ;;  %2495 = vmatprep.subr.bf16.mxu0 %v2494_v59  ;;  %v94_v58 = vld [vmem:[%s4647_s1 + $0x260] sm:$0xff]  ;;  %v449_v52 = vld [vmem:[%s4647_s1 + $0xd78] sm:$0xff] }
  0x54   :  { %2527 = vmatprep.subr.bf16.mxu1 %v2526_v63  ;;  %v126_v59 = vld [vmem:[%s4647_s1 + $0x360] sm:$0xff]  ;;  %v159_v63 = vld [vmem:[%s4647_s1 + $0x468] sm:$0xff]  ;;  %v229_v47 = vld [vmem:[%s4647_s1 + $0x698] sm:$0xff] }
  0x55   :  { %v2548_v4 = vpack.c.bf16 %v126_v59, %v94_v58  ;;  %v416_v58 = vld [vmem:[%s4647_s1 + $0xc70] sm:$0xff]  ;;  %v2598_v59 = vpack.c.bf16 %v449_v52, %v417_v51 }
  0x56   :  { %2497 = vmatpush1.bf16.msra.mxu0 %v2496_v6  ;;  %v2550_v6 = vpack.c.bf16 %v191_v0, %v159_v63  ;;  %v481_v63 = vld [vmem:[%s4647_s1 + $0xe78] sm:$0xff]  ;;  %v2600_v2 = vpack.c.bf16 %v448_v60, %v416_v58  ;;  %v291_v58 = vld [vmem:[%s4647_s1 + $0x888] sm:$0xff] }
  0x57   :  { %2529 = vmatpush1.bf16.msra.mxu1 %v2528_v7  ;;  %2499 = vmatprep.subr.bf16.mxu0 %v2498_v8  ;;  %v158_v7 = vld [vmem:[%s4647_s1 + $0x460] sm:$0xff]  ;;  %v513_v0 = vld [vmem:[%s4647_s1 + $0xf78] sm:$0xff] }
  0x58   :  { %2531 = vmatprep.subr.bf16.mxu1 %v2530_v12  ;;  %v190_v8 = vld [vmem:[%s4647_s1 + $0x560] sm:$0xff]  ;;  %v223_v12 = vld [vmem:[%s4647_s1 + $0x668] sm:$0xff]  ;;  %v293_v60 = vld [vmem:[%s4647_s1 + $0x898] sm:$0xff] }
  0x59   :  { %v2552_v16 = vpack.c.bf16 %v190_v8, %v158_v7  ;;  %v480_v7 = vld [vmem:[%s4647_s1 + $0xe70] sm:$0xff]  ;;  %v2602_v8 = vpack.c.bf16 %v513_v0, %v481_v63 }
  0x5a   :  { %2501 = vmatpush1.bf16.msra.mxu0 %v2500_v18  ;;  %v2554_v18 = vpack.c.bf16 %v255_v13, %v223_v12  ;;  %v37_v12 = vld [vmem:[%s4647_s1 + $0x98] sm:$0xff]  ;;  %v2604_v15 = vpack.c.bf16 %v512_v9, %v480_v7  ;;  %v355_v7 = vld [vmem:[%s4647_s1 + $0xa88] sm:$0xff] }
  0x5b   :  { %2533 = vmatpush1.bf16.msra.mxu1 %v2532_v19  ;;  %2503 = vmatprep.subr.bf16.mxu0 %v2502_v20  ;;  %v222_v19 = vld [vmem:[%s4647_s1 + $0x660] sm:$0xff]  ;;  %v69_v13 = vld [vmem:[%s4647_s1 + $0x198] sm:$0xff] }
  0x5c   :  { %2535 = vmatprep.subr.bf16.mxu1 %v2534_v24  ;;  %v254_v20 = vld [vmem:[%s4647_s1 + $0x760] sm:$0xff]  ;;  %v287_v24 = vld [vmem:[%s4647_s1 + $0x868] sm:$0xff]  ;;  %v357_v9 = vld [vmem:[%s4647_s1 + $0xa98] sm:$0xff] }
  0x5d   :  { %v2556_v28 = vpack.c.bf16 %v254_v20, %v222_v19  ;;  %v36_v19 = vld [vmem:[%s4647_s1 + $0x90] sm:$0xff]  ;;  %v2638_v20 = vpack.c.bf16 %v69_v13, %v37_v12 }
  0x5e   :  { %2505 = vmatpush1.bf16.msra.mxu0 %v2504_v30  ;;  %v2558_v30 = vpack.c.bf16 %v319_v25, %v287_v24  ;;  %v101_v24 = vld [vmem:[%s4647_s1 + $0x298] sm:$0xff]  ;;  %v2640_v27 = vpack.c.bf16 %v68_v21, %v36_v19  ;;  %v419_v19 = vld [vmem:[%s4647_s1 + $0xc88] sm:$0xff] }
  0x5f   :  { %2537 = vmatpush1.bf16.msra.mxu1 %v2536_v31  ;;  %2507 = vmatprep.subr.bf16.mxu0 %v2506_v32  ;;  %v286_v31 = vld [vmem:[%s4647_s1 + $0x860] sm:$0xff]  ;;  %v133_v25 = vld [vmem:[%s4647_s1 + $0x398] sm:$0xff] }
  0x60   :  { %2539 = vmatprep.subr.bf16.mxu1 %v2538_v36  ;;  %v318_v32 = vld [vmem:[%s4647_s1 + $0x960] sm:$0xff]  ;;  %v351_v36 = vld [vmem:[%s4647_s1 + $0xa68] sm:$0xff]  ;;  %v421_v21 = vld [vmem:[%s4647_s1 + $0xc98] sm:$0xff] }
  0x61   :  { %v2560_v40 = vpack.c.bf16 %v318_v32, %v286_v31  ;;  %v100_v31 = vld [vmem:[%s4647_s1 + $0x290] sm:$0xff]  ;;  %v2642_v32 = vpack.c.bf16 %v133_v25, %v101_v24 }
  0x62   :  { %2509 = vmatpush1.bf16.msra.mxu0 %v2508_v42  ;;  %v2562_v42 = vpack.c.bf16 %v383_v37, %v351_v36  ;;  %v165_v36 = vld [vmem:[%s4647_s1 + $0x498] sm:$0xff]  ;;  %v2644_v39 = vpack.c.bf16 %v132_v33, %v100_v31  ;;  %v483_v31 = vld [vmem:[%s4647_s1 + $0xe88] sm:$0xff] }
  0x63   :  { %2541 = vmatpush1.bf16.msra.mxu1 %v2540_v43  ;;  %2543 = vmatprep.subr.bf16.mxu0 %v2542_v44  ;;  %v350_v43 = vld [vmem:[%s4647_s1 + $0xa60] sm:$0xff]  ;;  %v197_v37 = vld [vmem:[%s4647_s1 + $0x598] sm:$0xff] }
  0x64   :  { %2575 = vmatprep.subr.bf16.mxu1 %v2574_v49  ;;  %v382_v44 = vld [vmem:[%s4647_s1 + $0xb60] sm:$0xff]  ;;  %v415_v49 = vld [vmem:[%s4647_s1 + $0xc68] sm:$0xff]  ;;  %v485_v33 = vld [vmem:[%s4647_s1 + $0xe98] sm:$0xff] }
  0x65   :  { %879 = vmatmul.mubr.f32.vlgmr.msra.gmra.mrb[4].mxu0 %v3125_v48  ;;  %v2564_v53 = vpack.c.bf16 %v382_v44, %v350_v43  ;;  %v164_v43 = vld [vmem:[%s4647_s1 + $0x490] sm:$0xff] }
  0x66   :  { %950 = vmatmul.mubr.f32.vlgmr.msra.gmra.mrb[4].mxu1 %v3125_v48  ;;  %2545 = vmatpush1.bf16.msra.mxu0 %v2544_v55  ;;  %v2566_v55 = vpack.c.bf16 %v447_v50, %v415_v49  ;;  %v196_v44 = vld [vmem:[%s4647_s1 + $0x590] sm:$0xff]  ;;  %v261_v49 = vld [vmem:[%s4647_s1 + $0x798] sm:$0xff] }
  0x67   :  { %2577 = vmatpush1.bf16.msra.mxu1 %v2576_v56  ;;  %2547 = vmatprep.subr.bf16.mxu0 %v2546_v57  ;;  %v414_v56 = vld [vmem:[%s4647_s1 + $0xc60] sm:$0xff]  ;;  %v2648_v51 = vpack.c.bf16 %v196_v44, %v164_v43  ;;  %v39_v43 = vld [vmem:[%s4647_s1 + $0xa8] sm:$0xff]  ;;  %v41_v44 = vld [vmem:[%s4647_s1 + $0xb8] sm:$0xff] }
  0x68   :  { %2579 = vmatprep.subr.bf16.mxu1 %v2578_v61  ;;  %1020 = vmatprep.mubr.f32.mxu0 %v2865_v3  ;;  %v446_v57 = vld [vmem:[%s4647_s1 + $0xd60] sm:$0xff]  ;;  %v479_v61 = vld [vmem:[%s4647_s1 + $0xe68] sm:$0xff] }
  0x69   :  { %1091 = vmatprep.mubr.f32.mxu1 %v2865_v3  ;;  %v2568_v1 = vpack.c.bf16 %v446_v57, %v414_v56  ;;  %v2650_v56 = vpack.c.bf16 %v261_v49, %v229_v47  ;;  %v260_v57 = vld [vmem:[%s4647_s1 + $0x790] sm:$0xff] }
  0x6a   :  { %2549 = vmatpush1.bf16.msra.mxu0 %v2548_v4  ;;  %v2570_v4 = vpack.c.bf16 %v511_v62, %v479_v61  ;;  %v325_v61 = vld [vmem:[%s4647_s1 + $0x998] sm:$0xff] }
  0x6b   :  { %2581 = vmatpush1.bf16.msra.mxu1 %v2580_v5  ;;  %2551 = vmatprep.subr.bf16.mxu0 %v2550_v6  ;;  %v478_v5 = vld [vmem:[%s4647_s1 + $0xe60] sm:$0xff] }
  0x6c   :  { %2583 = vmatprep.subr.bf16.mxu1 %v2582_v10  ;;  %v510_v6 = vld [vmem:[%s4647_s1 + $0xf60] sm:$0xff]  ;;  %v35_v10 = vld [vmem:[%s4647_s1 + $0x88] sm:$0xff] }
  0x6d   :  { %v2572_v14 = vpack.c.bf16 %v510_v6, %v478_v5  ;;  %v2654_v5 = vpack.c.bf16 %v325_v61, %v293_v60  ;;  %v324_v6 = vld [vmem:[%s4647_s1 + $0x990] sm:$0xff] }
  0x6e   :  { %2553 = vmatpush1.bf16.msra.mxu0 %v2552_v16  ;;  %v2606_v16 = vpack.c.bf16 %v67_v11, %v35_v10  ;;  %v389_v10 = vld [vmem:[%s4647_s1 + $0xb98] sm:$0xff] }
  0x6f   :  { %2585 = vmatpush1.bf16.msra.mxu1 %v2584_v17  ;;  %2555 = vmatprep.subr.bf16.mxu0 %v2554_v18  ;;  %v34_v17 = vld [vmem:[%s4647_s1 + $0x80] sm:$0xff] }
  0x70   :  { %2587 = vmatprep.subr.bf16.mxu1 %v2586_v22  ;;  %v66_v18 = vld [vmem:[%s4647_s1 + $0x180] sm:$0xff]  ;;  %v99_v22 = vld [vmem:[%s4647_s1 + $0x288] sm:$0xff] }
  0x71   :  { %v2608_v26 = vpack.c.bf16 %v66_v18, %v34_v17  ;;  %v2658_v17 = vpack.c.bf16 %v389_v10, %v357_v9  ;;  %v388_v18 = vld [vmem:[%s4647_s1 + $0xb90] sm:$0xff] }
  0x72   :  { %2557 = vmatpush1.bf16.msra.mxu0 %v2556_v28  ;;  %v2610_v28 = vpack.c.bf16 %v131_v23, %v99_v22  ;;  %v453_v22 = vld [vmem:[%s4647_s1 + $0xd98] sm:$0xff] }
  0x73   :  { %2589 = vmatpush1.bf16.msra.mxu1 %v2588_v29  ;;  %2559 = vmatprep.subr.bf16.mxu0 %v2558_v30  ;;  %v98_v29 = vld [vmem:[%s4647_s1 + $0x280] sm:$0xff] }
  0x74   :  { %2591 = vmatprep.subr.bf16.mxu1 %v2590_v34  ;;  %v130_v30 = vld [vmem:[%s4647_s1 + $0x380] sm:$0xff]  ;;  %v163_v34 = vld [vmem:[%s4647_s1 + $0x488] sm:$0xff] }
  0x75   :  { %v2612_v38 = vpack.c.bf16 %v130_v30, %v98_v29  ;;  %v2662_v29 = vpack.c.bf16 %v453_v22, %v421_v21  ;;  %v452_v30 = vld [vmem:[%s4647_s1 + $0xd90] sm:$0xff] }
  0x76   :  { %2561 = vmatpush1.bf16.msra.mxu0 %v2560_v40  ;;  %v2614_v40 = vpack.c.bf16 %v195_v35, %v163_v34  ;;  %v517_v34 = vld [vmem:[%s4647_s1 + $0xf98] sm:$0xff] }
  0x77   :  { %2593 = vmatpush1.bf16.msra.mxu1 %v2592_v41  ;;  %2563 = vmatprep.subr.bf16.mxu0 %v2562_v42  ;;  %v162_v41 = vld [vmem:[%s4647_s1 + $0x480] sm:$0xff] }
  0x78   :  { %2595 = vmatprep.subr.bf16.mxu1 %v2594_v46  ;;  %v194_v42 = vld [vmem:[%s4647_s1 + $0x580] sm:$0xff]  ;;  %v259_v46 = vld [vmem:[%s4647_s1 + $0x788] sm:$0xff] }
  0x79   :  { %v2616_v50 = vpack.c.bf16 %v194_v42, %v162_v41  ;;  %v2618_v52 = vpack.c.bf16 %v259_v46, %v227_v45  ;;  %v2666_v41 = vpack.c.bf16 %v517_v34, %v485_v33  ;;  %v516_v42 = vld [vmem:[%s4647_s1 + $0xf90] sm:$0xff]  ;;  %v73_v45 = vld [vmem:[%s4647_s1 + $0x1b8] sm:$0xff] }
  0x7a   :  { %2565 = vmatpush1.bf16.msra.mxu0 %v2564_v53  ;;  %v226_v53 = vld [vmem:[%s4647_s1 + $0x680] sm:$0xff] }
  0x7b   :  { %2597 = vmatpush1.bf16.msra.mxu1 %v2596_v54  ;;  %2567 = vmatprep.subr.bf16.mxu0 %v2566_v55  ;;  %v258_v54 = vld [vmem:[%s4647_s1 + $0x780] sm:$0xff]  ;;  %v228_v55 = vld [vmem:[%s4647_s1 + $0x690] sm:$0xff] }
  0x7c   :  { %2599 = vmatprep.subr.bf16.mxu1 %v2598_v59  ;;  %v323_v59 = vld [vmem:[%s4647_s1 + $0x988] sm:$0xff]  ;;  %v2620_v62 = vpack.c.bf16 %v258_v54, %v226_v53  ;;  %v2652_v63 = vpack.c.bf16 %v260_v57, %v228_v55  ;;  %v2702_v53 = vpack.c.bf16 %v73_v45, %v41_v44  ;;  %v72_v54 = vld [vmem:[%s4647_s1 + $0x1b0] sm:$0xff]  ;;  %v105_v57 = vld [vmem:[%s4647_s1 + $0x2b8] sm:$0xff] }
  0x7d   :  { %v2622_v0 = vpack.c.bf16 %v323_v59, %v291_v58  ;;  %v103_v55 = vld [vmem:[%s4647_s1 + $0x2a8] sm:$0xff]  ;;  %v137_v58 = vld [vmem:[%s4647_s1 + $0x3b8] sm:$0xff] }
  0x7e   :  { %2569 = vmatpush1.bf16.msra.mxu0 %v2568_v1  ;;  %v290_v1 = vld [vmem:[%s4647_s1 + $0x880] sm:$0xff] }
  0x7f   :  { %2601 = vmatpush1.bf16.msra.mxu1 %v2600_v2  ;;  %2571 = vmatprep.subr.bf16.mxu0 %v2570_v4  ;;  %v322_v2 = vld [vmem:[%s4647_s1 + $0x980] sm:$0xff]  ;;  %v292_v4 = vld [vmem:[%s4647_s1 + $0x890] sm:$0xff] }
  0x80   :  { %2603 = vmatprep.subr.bf16.mxu1 %v2602_v8  ;;  %v387_v8 = vld [vmem:[%s4647_s1 + $0xb88] sm:$0xff]  ;;  %v2624_v11 = vpack.c.bf16 %v322_v2, %v290_v1  ;;  %v2656_v12 = vpack.c.bf16 %v324_v6, %v292_v4  ;;  %v2706_v1 = vpack.c.bf16 %v137_v58, %v105_v57  ;;  %v136_v2 = vld [vmem:[%s4647_s1 + $0x3b0] sm:$0xff]  ;;  %v3932_v6 = vld [vmem:[%s4648_s0] sm:$0x3] }
  0x81   :  { %v2626_v13 = vpack.c.bf16 %v387_v8, %v355_v7  ;;  %v167_v4 = vld [vmem:[%s4647_s1 + $0x4a8] sm:$0xff]  ;;  %v169_v7 = vld [vmem:[%s4647_s1 + $0x4b8] sm:$0xff] }
  0x82   :  { %2573 = vmatpush1.bf16.msra.mxu0 %v2572_v14  ;;  %v354_v14 = vld [vmem:[%s4647_s1 + $0xa80] sm:$0xff]  ;;  %v201_v8 = vld [vmem:[%s4647_s1 + $0x5b8] sm:$0xff] }
  0x83   :  { %2605 = vmatpush1.bf16.msra.mxu1 %v2604_v15  ;;  %2607 = vmatprep.subr.bf16.mxu0 %v2606_v16  ;;  %v386_v15 = vld [vmem:[%s4647_s1 + $0xb80] sm:$0xff]  ;;  %v356_v16 = vld [vmem:[%s4647_s1 + $0xa90] sm:$0xff] }
  0x84   :  { %2639 = vmatprep.subr.bf16.mxu1 %v2638_v20  ;;  %v451_v20 = vld [vmem:[%s4647_s1 + $0xd88] sm:$0xff]  ;;  %v2628_v23 = vpack.c.bf16 %v386_v15, %v354_v14  ;;  %v2660_v24 = vpack.c.bf16 %v388_v18, %v356_v16  ;;  %v168_v14 = vld [vmem:[%s4647_s1 + $0x4b0] sm:$0xff]  ;;  %v2710_v15 = vpack.c.bf16 %v201_v8, %v169_v7 }
  0x85   :  { %1021 = vmatmul.mubr.f32.vlgmr.msra.gmra.mrb[6].mxu0 %v3125_v48  ;;  %v2630_v25 = vpack.c.bf16 %v451_v20, %v419_v19  ;;  %v200_v16 = vld [vmem:[%s4647_s1 + $0x5b0] sm:$0xff]  ;;  %v263_v18 = vld [vmem:[%s4647_s1 + $0x7a8] sm:$0xff]  ;;  %v233_v19 = vld [vmem:[%s4647_s1 + $0x6b8] sm:$0xff] }
  0x86   :  { %1092 = vmatmul.mubr.f32.vlgmr.msra.gmra.mrb[6].mxu1 %v3125_v48  ;;  %2609 = vmatpush1.bf16.msra.mxu0 %v2608_v26  ;;  %v2646_v48 = vpack.c.bf16 %v197_v37, %v165_v36  ;;  %v418_v26 = vld [vmem:[%s4647_s1 + $0xc80] sm:$0xff]  ;;  %v265_v20 = vld [vmem:[%s4647_s1 + $0x7b8] sm:$0xff]  ;;  %v2712_v22 = vpack.c.bf16 %v200_v16, %v168_v14  ;;  %v520_v14 = vld [vmem:[%s4647_s1 + $0xfb0] sm:$0xff] }
  0x87   :  { %2641 = vmatpush1.bf16.msra.mxu1 %v2640_v27  ;;  %2611 = vmatprep.subr.bf16.mxu0 %v2610_v28  ;;  %v450_v27 = vld [vmem:[%s4647_s1 + $0xd80] sm:$0xff]  ;;  %v420_v28 = vld [vmem:[%s4647_s1 + $0xc90] sm:$0xff]  ;;  %v75_v16 = vld [vmem:[%s4647_s1 + $0x1c8] sm:$0xff] }
  0x88   :  { %2643 = vmatprep.subr.bf16.mxu1 %v2642_v32  ;;  %1162 = vmatprep.mubr.f32.mxu0 %v2865_v3  ;;  %v515_v32 = vld [vmem:[%s4647_s1 + $0xf88] sm:$0xff]  ;;  %v2632_v35 = vpack.c.bf16 %v450_v27, %v418_v26  ;;  %v2664_v36 = vpack.c.bf16 %v452_v30, %v420_v28  ;;  %v232_v26 = vld [vmem:[%s4647_s1 + $0x6b0] sm:$0xff]  ;;  %v2714_v27 = vpack.c.bf16 %v265_v20, %v233_v19 }
  0x89   :  { %1233 = vmatprep.mubr.f32.mxu1 %v2865_v3  ;;  %v2634_v37 = vpack.c.bf16 %v515_v32, %v483_v31  ;;  %v264_v28 = vld [vmem:[%s4647_s1 + $0x7b0] sm:$0xff]  ;;  %v327_v30 = vld [vmem:[%s4647_s1 + $0x9a8] sm:$0xff]  ;;  %v297_v31 = vld [vmem:[%s4647_s1 + $0x8b8] sm:$0xff] }
  0x8a   :  { %2613 = vmatpush1.bf16.msra.mxu0 %v2612_v38  ;;  %v482_v38 = vld [vmem:[%s4647_s1 + $0xe80] sm:$0xff]  ;;  %v329_v32 = vld [vmem:[%s4647_s1 + $0x9b8] sm:$0xff]  ;;  %v2716_v34 = vpack.c.bf16 %v264_v28, %v232_v26  ;;  %v76_v26 = vld [vmem:[%s4647_s1 + $0x1d0] sm:$0xff] }
  0x8b   :  { %2645 = vmatpush1.bf16.msra.mxu1 %v2644_v39  ;;  %2615 = vmatprep.subr.bf16.mxu0 %v2614_v40  ;;  %v514_v39 = vld [vmem:[%s4647_s1 + $0xf80] sm:$0xff]  ;;  %v484_v40 = vld [vmem:[%s4647_s1 + $0xe90] sm:$0xff]  ;;  %v139_v28 = vld [vmem:[%s4647_s1 + $0x3c8] sm:$0xff] }
  0x8c   :  { %2647 = vmatprep.subr.bf16.mxu1 %v2646_v48  ;;  %v71_v48 = vld [vmem:[%s4647_s1 + $0x1a8] sm:$0xff]  ;;  %v2636_v46 = vpack.c.bf16 %v514_v39, %v482_v38  ;;  %v2668_v47 = vpack.c.bf16 %v516_v42, %v484_v40  ;;  %v296_v38 = vld [vmem:[%s4647_s1 + $0x8b0] sm:$0xff]  ;;  %v2718_v39 = vpack.c.bf16 %v329_v32, %v297_v31 }
  0x8d   :  { %v2670_v49 = vpack.c.bf16 %v71_v48, %v39_v43  ;;  %v328_v40 = vld [vmem:[%s4647_s1 + $0x9b0] sm:$0xff]  ;;  %v391_v42 = vld [vmem:[%s4647_s1 + $0xba8] sm:$0xff]  ;;  %v361_v43 = vld [vmem:[%s4647_s1 + $0xab8] sm:$0xff] }
  0x8e   :  { %2617 = vmatpush1.bf16.msra.mxu0 %v2616_v50  ;;  %v38_v50 = vld [vmem:[%s4647_s1 + $0xa0] sm:$0xff]  ;;  %v393_v48 = vld [vmem:[%s4647_s1 + $0xbb8] sm:$0xff]  ;;  %v2720_v45 = vpack.c.bf16 %v328_v40, %v296_v38  ;;  %v140_v38 = vld [vmem:[%s4647_s1 + $0x3d0] sm:$0xff] }
  0x8f   :  { %2649 = vmatpush1.bf16.msra.mxu1 %v2648_v51  ;;  %2619 = vmatprep.subr.bf16.mxu0 %v2618_v52  ;;  %v70_v51 = vld [vmem:[%s4647_s1 + $0x1a0] sm:$0xff]  ;;  %v40_v52 = vld [vmem:[%s4647_s1 + $0xb0] sm:$0xff]  ;;  %v203_v40 = vld [vmem:[%s4647_s1 + $0x5c8] sm:$0xff] }
  0x90   :  { %2651 = vmatprep.subr.bf16.mxu1 %v2650_v56  ;;  %v135_v56 = vld [vmem:[%s4647_s1 + $0x3a8] sm:$0xff]  ;;  %v2672_v59 = vpack.c.bf16 %v70_v51, %v38_v50  ;;  %v2704_v60 = vpack.c.bf16 %v72_v54, %v40_v52  ;;  %v360_v50 = vld [vmem:[%s4647_s1 + $0xab0] sm:$0xff]  ;;  %v2722_v51 = vpack.c.bf16 %v393_v48, %v361_v43 }
  0x91   :  { %v2674_v61 = vpack.c.bf16 %v135_v56, %v103_v55  ;;  %v392_v52 = vld [vmem:[%s4647_s1 + $0xbb0] sm:$0xff]  ;;  %v455_v54 = vld [vmem:[%s4647_s1 + $0xda8] sm:$0xff]  ;;  %v425_v55 = vld [vmem:[%s4647_s1 + $0xcb8] sm:$0xff] }
  0x92   :  { %2621 = vmatpush1.bf16.msra.mxu0 %v2620_v62  ;;  %v102_v62 = vld [vmem:[%s4647_s1 + $0x2a0] sm:$0xff]  ;;  %v457_v56 = vld [vmem:[%s4647_s1 + $0xdb8] sm:$0xff]  ;;  %v2724_v58 = vpack.c.bf16 %v392_v52, %v360_v50  ;;  %v204_v50 = vld [vmem:[%s4647_s1 + $0x5d0] sm:$0xff] }
  0x93   :  { %2653 = vmatpush1.bf16.msra.mxu1 %v2652_v63  ;;  %2623 = vmatprep.subr.bf16.mxu0 %v2622_v0  ;;  %v134_v63 = vld [vmem:[%s4647_s1 + $0x3a0] sm:$0xff]  ;;  %v104_v0 = vld [vmem:[%s4647_s1 + $0x2b0] sm:$0xff]  ;;  %v267_v52 = vld [vmem:[%s4647_s1 + $0x7c8] sm:$0xff] }
  0x94   :  { %2655 = vmatprep.subr.bf16.mxu1 %v2654_v5  ;;  %v199_v5 = vld [vmem:[%s4647_s1 + $0x5a8] sm:$0xff]  ;;  %v2676_v9 = vpack.c.bf16 %v134_v63, %v102_v62  ;;  %v2708_v10 = vpack.c.bf16 %v136_v2, %v104_v0  ;;  %v424_v62 = vld [vmem:[%s4647_s1 + $0xcb0] sm:$0xff]  ;;  %v2726_v63 = vpack.c.bf16 %v457_v56, %v425_v55 }
  0x95   :  { %v456_v0 = vld [vmem:[%s4647_s1 + $0xdb0] sm:$0xff]  ;;  %v519_v2 = vld [vmem:[%s4647_s1 + $0xfa8] sm:$0xff] }
  0x96   :  { %2625 = vmatpush1.bf16.msra.mxu0 %v2624_v11  ;;  %v2678_v11 = vpack.c.bf16 %v199_v5, %v167_v4  ;;  %v489_v4 = vld [vmem:[%s4647_s1 + $0xeb8] sm:$0xff]  ;;  %v2728_v8 = vpack.c.bf16 %v456_v0, %v424_v62  ;;  %v268_v62 = vld [vmem:[%s4647_s1 + $0x7d0] sm:$0xff]  ;;  %v331_v0 = vld [vmem:[%s4647_s1 + $0x9c8] sm:$0xff] }
  0x97   :  { %2657 = vmatpush1.bf16.msra.mxu1 %v2656_v12  ;;  %2627 = vmatprep.subr.bf16.mxu0 %v2626_v13  ;;  %v166_v12 = vld [vmem:[%s4647_s1 + $0x4a0] sm:$0xff]  ;;  %v521_v5 = vld [vmem:[%s4647_s1 + $0xfb8] sm:$0xff] }
  0x98   :  { %2659 = vmatprep.subr.bf16.mxu1 %v2658_v17  ;;  %v198_v13 = vld [vmem:[%s4647_s1 + $0x5a0] sm:$0xff]  ;;  %v231_v17 = vld [vmem:[%s4647_s1 + $0x6a8] sm:$0xff] }
  0x99   :  { %v2680_v21 = vpack.c.bf16 %v198_v13, %v166_v12  ;;  %v488_v12 = vld [vmem:[%s4647_s1 + $0xeb0] sm:$0xff]  ;;  %v2730_v13 = vpack.c.bf16 %v521_v5, %v489_v4 }
  0x9a   :  { %2629 = vmatpush1.bf16.msra.mxu0 %v2628_v23  ;;  %v2682_v23 = vpack.c.bf16 %v263_v18, %v231_v17  ;;  %v45_v17 = vld [vmem:[%s4647_s1 + $0xd8] sm:$0xff]  ;;  %v2732_v20 = vpack.c.bf16 %v520_v14, %v488_v12  ;;  %v332_v12 = vld [vmem:[%s4647_s1 + $0x9d0] sm:$0xff]  ;;  %v395_v14 = vld [vmem:[%s4647_s1 + $0xbc8] sm:$0xff] }
  0x9b   :  { %2661 = vmatpush1.bf16.msra.mxu1 %v2660_v24  ;;  %2631 = vmatprep.subr.bf16.mxu0 %v2630_v25  ;;  %v230_v24 = vld [vmem:[%s4647_s1 + $0x6a0] sm:$0xff]  ;;  %v77_v18 = vld [vmem:[%s4647_s1 + $0x1d8] sm:$0xff] }
  0x9c   :  { %2663 = vmatprep.subr.bf16.mxu1 %v2662_v29  ;;  %v262_v25 = vld [vmem:[%s4647_s1 + $0x7a0] sm:$0xff]  ;;  %v295_v29 = vld [vmem:[%s4647_s1 + $0x8a8] sm:$0xff] }
  0x9d   :  { %v2684_v33 = vpack.c.bf16 %v262_v25, %v230_v24  ;;  %v44_v24 = vld [vmem:[%s4647_s1 + $0xd0] sm:$0xff]  ;;  %v2766_v25 = vpack.c.bf16 %v77_v18, %v45_v17 }
  0x9e   :  { %2633 = vmatpush1.bf16.msra.mxu0 %v2632_v35  ;;  %v2686_v35 = vpack.c.bf16 %v327_v30, %v295_v29  ;;  %v109_v29 = vld [vmem:[%s4647_s1 + $0x2d8] sm:$0xff]  ;;  %v2768_v32 = vpack.c.bf16 %v76_v26, %v44_v24  ;;  %v396_v24 = vld [vmem:[%s4647_s1 + $0xbd0] sm:$0xff]  ;;  %v459_v26 = vld [vmem:[%s4647_s1 + $0xdc8] sm:$0xff] }
  0x9f   :  { %2665 = vmatpush1.bf16.msra.mxu1 %v2664_v36  ;;  %2635 = vmatprep.subr.bf16.mxu0 %v2634_v37  ;;  %v294_v36 = vld [vmem:[%s4647_s1 + $0x8a0] sm:$0xff]  ;;  %v141_v30 = vld [vmem:[%s4647_s1 + $0x3d8] sm:$0xff] }
  0xa0   :  { %2667 = vmatprep.subr.bf16.mxu1 %v2666_v41  ;;  %v326_v37 = vld [vmem:[%s4647_s1 + $0x9a0] sm:$0xff]  ;;  %v359_v41 = vld [vmem:[%s4647_s1 + $0xaa8] sm:$0xff] }
  0xa1   :  { %v2688_v44 = vpack.c.bf16 %v326_v37, %v294_v36  ;;  %v108_v36 = vld [vmem:[%s4647_s1 + $0x2d0] sm:$0xff]  ;;  %v2770_v37 = vpack.c.bf16 %v141_v30, %v109_v29 }
  0xa2   :  { %2637 = vmatpush1.bf16.msra.mxu0 %v2636_v46  ;;  %v2690_v46 = vpack.c.bf16 %v391_v42, %v359_v41  ;;  %v173_v41 = vld [vmem:[%s4647_s1 + $0x4d8] sm:$0xff]  ;;  %v2772_v48 = vpack.c.bf16 %v140_v38, %v108_v36  ;;  %v460_v36 = vld [vmem:[%s4647_s1 + $0xdd0] sm:$0xff]  ;;  %v523_v38 = vld [vmem:[%s4647_s1 + $0xfc8] sm:$0xff] }
  0xa3   :  { %2669 = vmatpush1.bf16.msra.mxu1 %v2668_v47  ;;  %2671 = vmatprep.subr.bf16.mxu0 %v2670_v49  ;;  %v358_v47 = vld [vmem:[%s4647_s1 + $0xaa0] sm:$0xff]  ;;  %v205_v42 = vld [vmem:[%s4647_s1 + $0x5d8] sm:$0xff] }
  0xa4   :  { %2703 = vmatprep.subr.bf16.mxu1 %v2702_v53  ;;  %v390_v49 = vld [vmem:[%s4647_s1 + $0xba0] sm:$0xff]  ;;  %v423_v53 = vld [vmem:[%s4647_s1 + $0xca8] sm:$0xff] }
  0xa5   :  { %1163 = vmatmul.mubr.f32.vlgmr.msra.gmra.mrb[8].mxu0 %v3932_v6  ;;  %v2692_v57 = vpack.c.bf16 %v390_v49, %v358_v47  ;;  %v172_v47 = vld [vmem:[%s4647_s1 + $0x4d0] sm:$0xff]  ;;  %v2774_v49 = vpack.c.bf16 %v205_v42, %v173_v41 }
  0xa6   :  { %1234 = vmatmul.mubr.f32.vlgmr.msra.gmra.mrb[8].mxu1 %v3932_v6  ;;  %2673 = vmatpush1.bf16.msra.mxu0 %v2672_v59  ;;  %v2694_v59 = vpack.c.bf16 %v455_v54, %v423_v53  ;;  %v237_v53 = vld [vmem:[%s4647_s1 + $0x6d8] sm:$0xff]  ;;  %v2776_v56 = vpack.c.bf16 %v204_v50, %v172_v47  ;;  %v524_v47 = vld [vmem:[%s4647_s1 + $0xfd0] sm:$0xff]  ;;  %v79_v50 = vld [vmem:[%s4647_s1 + $0x1e8] sm:$0xff] }
  0xa7   :  { %2705 = vmatpush1.bf16.msra.mxu1 %v2704_v60  ;;  %2675 = vmatprep.subr.bf16.mxu0 %v2674_v61  ;;  %v422_v60 = vld [vmem:[%s4647_s1 + $0xca0] sm:$0xff]  ;;  %v269_v54 = vld [vmem:[%s4647_s1 + $0x7d8] sm:$0xff] }
  0xa8   :  { %2707 = vmatprep.subr.bf16.mxu1 %v2706_v1  ;;  %1304 = vmatprep.mubr.f32.mxu0 %v2865_v3  ;;  %v454_v61 = vld [vmem:[%s4647_s1 + $0xda0] sm:$0xff]  ;;  %v487_v1 = vld [vmem:[%s4647_s1 + $0xea8] sm:$0xff] }
  0xa9   :  { %1375 = vmatprep.mubr.f32.mxu1 %v2865_v3  ;;  %v2696_v7 = vpack.c.bf16 %v454_v61, %v422_v60  ;;  %v236_v60 = vld [vmem:[%s4647_s1 + $0x6d0] sm:$0xff]  ;;  %v2778_v61 = vpack.c.bf16 %v269_v54, %v237_v53 }
  0xaa   :  { %2677 = vmatpush1.bf16.msra.mxu0 %v2676_v9  ;;  %v2698_v9 = vpack.c.bf16 %v519_v2, %v487_v1  ;;  %v301_v1 = vld [vmem:[%s4647_s1 + $0x8d8] sm:$0xff]  ;;  %v2780_v5 = vpack.c.bf16 %v268_v62, %v236_v60  ;;  %v80_v60 = vld [vmem:[%s4647_s1 + $0x1f0] sm:$0xff]  ;;  %v143_v62 = vld [vmem:[%s4647_s1 + $0x3e8] sm:$0xff] }
  0xab   :  { %2709 = vmatpush1.bf16.msra.mxu1 %v2708_v10  ;;  %2679 = vmatprep.subr.bf16.mxu0 %v2678_v11  ;;  %v486_v10 = vld [vmem:[%s4647_s1 + $0xea0] sm:$0xff]  ;;  %v333_v2 = vld [vmem:[%s4647_s1 + $0x9d8] sm:$0xff] }
  0xac   :  { %2711 = vmatprep.subr.bf16.mxu1 %v2710_v15  ;;  %v518_v11 = vld [vmem:[%s4647_s1 + $0xfa0] sm:$0xff]  ;;  %v43_v15 = vld [vmem:[%s4647_s1 + $0xc8] sm:$0xff] }
  0xad   :  { %v2700_v19 = vpack.c.bf16 %v518_v11, %v486_v10  ;;  %v300_v10 = vld [vmem:[%s4647_s1 + $0x8d0] sm:$0xff]  ;;  %v2782_v11 = vpack.c.bf16 %v333_v2, %v301_v1 }
  0xae   :  { %2681 = vmatpush1.bf16.msra.mxu0 %v2680_v21  ;;  %v2734_v21 = vpack.c.bf16 %v75_v16, %v43_v15  ;;  %v365_v15 = vld [vmem:[%s4647_s1 + $0xad8] sm:$0xff]  ;;  %v2784_v18 = vpack.c.bf16 %v332_v12, %v300_v10  ;;  %v144_v10 = vld [vmem:[%s4647_s1 + $0x3f0] sm:$0xff]  ;;  %v207_v12 = vld [vmem:[%s4647_s1 + $0x5e8] sm:$0xff] }
  0xaf   :  { %2713 = vmatpush1.bf16.msra.mxu1 %v2712_v22  ;;  %2683 = vmatprep.subr.bf16.mxu0 %v2682_v23  ;;  %v42_v22 = vld [vmem:[%s4647_s1 + $0xc0] sm:$0xff]  ;;  %v397_v16 = vld [vmem:[%s4647_s1 + $0xbd8] sm:$0xff] }
  0xb0   :  { %2715 = vmatprep.subr.bf16.mxu1 %v2714_v27  ;;  %v74_v23 = vld [vmem:[%s4647_s1 + $0x1c0] sm:$0xff]  ;;  %v107_v27 = vld [vmem:[%s4647_s1 + $0x2c8] sm:$0xff] }
  0xb1   :  { %v2736_v31 = vpack.c.bf16 %v74_v23, %v42_v22  ;;  %v364_v22 = vld [vmem:[%s4647_s1 + $0xad0] sm:$0xff]  ;;  %v2786_v23 = vpack.c.bf16 %v397_v16, %v365_v15 }
  0xb2   :  { %2685 = vmatpush1.bf16.msra.mxu0 %v2684_v33  ;;  %v2738_v33 = vpack.c.bf16 %v139_v28, %v107_v27  ;;  %v429_v27 = vld [vmem:[%s4647_s1 + $0xcd8] sm:$0xff]  ;;  %v2788_v30 = vpack.c.bf16 %v396_v24, %v364_v22  ;;  %v208_v22 = vld [vmem:[%s4647_s1 + $0x5f0] sm:$0xff]  ;;  %v271_v24 = vld [vmem:[%s4647_s1 + $0x7e8] sm:$0xff] }
  0xb3   :  { %2717 = vmatpush1.bf16.msra.mxu1 %v2716_v34  ;;  %2687 = vmatprep.subr.bf16.mxu0 %v2686_v35  ;;  %v106_v34 = vld [vmem:[%s4647_s1 + $0x2c0] sm:$0xff]  ;;  %v461_v28 = vld [vmem:[%s4647_s1 + $0xdd8] sm:$0xff] }
  0xb4   :  { %2719 = vmatprep.subr.bf16.mxu1 %v2718_v39  ;;  %v138_v35 = vld [vmem:[%s4647_s1 + $0x3c0] sm:$0xff]  ;;  %v171_v39 = vld [vmem:[%s4647_s1 + $0x4c8] sm:$0xff] }
  0xb5   :  { %v2740_v43 = vpack.c.bf16 %v138_v35, %v106_v34  ;;  %v428_v34 = vld [vmem:[%s4647_s1 + $0xcd0] sm:$0xff]  ;;  %v2790_v35 = vpack.c.bf16 %v461_v28, %v429_v27  ;;  %v1674_v27 = vlaneseq }
  0xb6   :  { %2689 = vmatpush1.bf16.msra.mxu0 %v2688_v44  ;;  %v2742_v44 = vpack.c.bf16 %v203_v40, %v171_v39  ;;  %v493_v39 = vld [vmem:[%s4647_s1 + $0xed8] sm:$0xff]  ;;  %v2792_v42 = vpack.c.bf16 %v460_v36, %v428_v34  ;;  %v272_v34 = vld [vmem:[%s4647_s1 + $0x7f0] sm:$0xff]  ;;  %v335_v36 = vld [vmem:[%s4647_s1 + $0x9e8] sm:$0xff] }
  0xb7   :  { %2721 = vmatpush1.bf16.msra.mxu1 %v2720_v45  ;;  %2691 = vmatprep.subr.bf16.mxu0 %v2690_v46  ;;  %v170_v45 = vld [vmem:[%s4647_s1 + $0x4c0] sm:$0xff]  ;;  %v525_v40 = vld [vmem:[%s4647_s1 + $0xfd8] sm:$0xff] }
  0xb8   :  { %2723 = vmatprep.subr.bf16.mxu1 %v2722_v51  ;;  %v202_v46 = vld [vmem:[%s4647_s1 + $0x5c0] sm:$0xff]  ;;  %v235_v51 = vld [vmem:[%s4647_s1 + $0x6c8] sm:$0xff] }
  0xb9   :  { %v2744_v55 = vpack.c.bf16 %v202_v46, %v170_v45  ;;  %v492_v45 = vld [vmem:[%s4647_s1 + $0xed0] sm:$0xff]  ;;  %v2794_v46 = vpack.c.bf16 %v525_v40, %v493_v39  ;;  %v4384_v39 = vshrl.u32 %v1674_v27, 7  ;;  %v495_v27 = vld [vmem:[%s4647_s1 + $0xee8] sm:$0xff] }
  0xba   :  { %2693 = vmatpush1.bf16.msra.mxu0 %v2692_v57  ;;  %v2746_v57 = vpack.c.bf16 %v267_v52, %v235_v51  ;;  %v49_v51 = vld [vmem:[%s4647_s1 + $0xf8] sm:$0xff]  ;;  %v2796_v54 = vpack.c.bf16 %v524_v47, %v492_v45  ;;  %v367_v47 = vld [vmem:[%s4647_s1 + $0xae8] sm:$0xff] }
  0xbb   :  { %2725 = vmatpush1.bf16.msra.mxu1 %v2724_v58  ;;  %2695 = vmatprep.subr.bf16.mxu0 %v2694_v59  ;;  %v234_v58 = vld [vmem:[%s4647_s1 + $0x6c0] sm:$0xff]  ;;  %v81_v52 = vld [vmem:[%s4647_s1 + $0x1f8] sm:$0xff] }
  0xbc   :  { %2727 = vmatprep.subr.bf16.mxu1 %v2726_v63  ;;  %v266_v59 = vld [vmem:[%s4647_s1 + $0x7c0] sm:$0xff]  ;;  %v299_v63 = vld [vmem:[%s4647_s1 + $0x8c8] sm:$0xff] }
  0xbd   :  { %v2748_v4 = vpack.c.bf16 %v266_v59, %v234_v58  ;;  %v48_v58 = vld [vmem:[%s4647_s1 + $0xf0] sm:$0xff]  ;;  %v2830_v59 = vpack.c.bf16 %v81_v52, %v49_v51  ;;  %v369_v51 = vld [vmem:[%s4647_s1 + $0xaf8] sm:$0xff] }
  0xbe   :  { %2697 = vmatpush1.bf16.msra.mxu0 %v2696_v7  ;;  %v2750_v7 = vpack.c.bf16 %v331_v0, %v299_v63  ;;  %v113_v63 = vld [vmem:[%s4647_s1 + $0x2f8] sm:$0xff]  ;;  %v2832_v2 = vpack.c.bf16 %v80_v60, %v48_v58 }
  0xbf   :  { %2729 = vmatpush1.bf16.msra.mxu1 %v2728_v8  ;;  %2699 = vmatprep.subr.bf16.mxu0 %v2698_v9  ;;  %v298_v8 = vld [vmem:[%s4647_s1 + $0x8c0] sm:$0xff]  ;;  %v145_v0 = vld [vmem:[%s4647_s1 + $0x3f8] sm:$0xff] }
  0xc0   :  { %2731 = vmatprep.subr.bf16.mxu1 %v2730_v13  ;;  %v330_v9 = vld [vmem:[%s4647_s1 + $0x9c0] sm:$0xff]  ;;  %v363_v13 = vld [vmem:[%s4647_s1 + $0xac8] sm:$0xff]  ;;  %v401_v52 = vld [vmem:[%s4647_s1 + $0xbf8] sm:$0xff] }
  0xc1   :  { %v2752_v17 = vpack.c.bf16 %v330_v9, %v298_v8  ;;  %v112_v8 = vld [vmem:[%s4647_s1 + $0x2f0] sm:$0xff]  ;;  %v2834_v9 = vpack.c.bf16 %v145_v0, %v113_v63  ;;  %v2866_v0 = vmov 1983009808  }
  0xc2   :  { %2701 = vmatpush1.bf16.msra.mxu0 %v2700_v19  ;;  %v2754_v19 = vpack.c.bf16 %v395_v14, %v363_v13  ;;  %v177_v13 = vld [vmem:[%s4647_s1 + $0x4f8] sm:$0xff]  ;;  %v2836_v16 = vpack.c.bf16 %v144_v10, %v112_v8  ;;  %v368_v63 = vld [vmem:[%s4647_s1 + $0xaf0] sm:$0xff] }
  0xc3   :  { %2733 = vmatpush1.bf16.msra.mxu1 %v2732_v20  ;;  %2735 = vmatprep.subr.bf16.mxu0 %v2734_v21  ;;  %v362_v20 = vld [vmem:[%s4647_s1 + $0xac0] sm:$0xff]  ;;  %v209_v14 = vld [vmem:[%s4647_s1 + $0x5f8] sm:$0xff] }
  0xc4   :  { %2767 = vmatprep.subr.bf16.mxu1 %v2766_v25  ;;  %v394_v21 = vld [vmem:[%s4647_s1 + $0xbc0] sm:$0xff]  ;;  %v427_v25 = vld [vmem:[%s4647_s1 + $0xcc8] sm:$0xff]  ;;  %v465_v10 = vld [vmem:[%s4647_s1 + $0xdf8] sm:$0xff] }
  0xc5   :  { %1305 = vmatmul.mubr.f32.vlgmr.msra.gmra.mrb[10].mxu0 %v3932_v6  ;;  %v2756_v29 = vpack.c.bf16 %v394_v21, %v362_v20  ;;  %v176_v20 = vld [vmem:[%s4647_s1 + $0x4f0] sm:$0xff]  ;;  %v2838_v21 = vpack.c.bf16 %v209_v14, %v177_v13 }
  0xc6   :  { %1376 = vmatmul.mubr.f32.vlgmr.msra.gmra.mrb[10].mxu1 %v3932_v6  ;;  %2737 = vmatpush1.bf16.msra.mxu0 %v2736_v31  ;;  %v2758_v31 = vpack.c.bf16 %v459_v26, %v427_v25  ;;  %v241_v25 = vld [vmem:[%s4647_s1 + $0x6f8] sm:$0xff] }
  0xc7   :  { %2769 = vmatpush1.bf16.msra.mxu1 %v2768_v32  ;;  %2739 = vmatprep.subr.bf16.mxu0 %v2738_v33  ;;  %v426_v32 = vld [vmem:[%s4647_s1 + $0xcc0] sm:$0xff]  ;;  %v273_v26 = vld [vmem:[%s4647_s1 + $0x7f8] sm:$0xff] }
  0xc8   :  { %2771 = vmatprep.subr.bf16.mxu1 %v2770_v37  ;;  %1446 = vmatprep.mubr.f32.mxu0 %v2865_v3  ;;  %v458_v33 = vld [vmem:[%s4647_s1 + $0xdc0] sm:$0xff]  ;;  %v491_v37 = vld [vmem:[%s4647_s1 + $0xec8] sm:$0xff] }
  0xc9   :  { %1517 = vmatprep.mubr.f32.mxu1 %v2865_v3  ;;  %v2760_v41 = vpack.c.bf16 %v458_v33, %v426_v32  ;;  %v270_v32 = vld [vmem:[%s4647_s1 + $0x7e0] sm:$0xff]  ;;  %v240_v33 = vld [vmem:[%s4647_s1 + $0x6f0] sm:$0xff] }
  0xca   :  { %2741 = vmatpush1.bf16.msra.mxu0 %v2740_v43  ;;  %v2762_v43 = vpack.c.bf16 %v523_v38, %v491_v37  ;;  %v305_v37 = vld [vmem:[%s4647_s1 + $0x8f8] sm:$0xff] }
  0xcb   :  { %2773 = vmatpush1.bf16.msra.mxu1 %v2772_v48  ;;  %2743 = vmatprep.subr.bf16.mxu0 %v2742_v44  ;;  %v490_v48 = vld [vmem:[%s4647_s1 + $0xec0] sm:$0xff]  ;;  %v337_v38 = vld [vmem:[%s4647_s1 + $0x9f8] sm:$0xff] }
  0xcc   :  { %2775 = vmatprep.subr.bf16.mxu1 %v2774_v49  ;;  %v522_v44 = vld [vmem:[%s4647_s1 + $0xfc0] sm:$0xff]  ;;  %v47_v49 = vld [vmem:[%s4647_s1 + $0xe8] sm:$0xff]  ;;  %v2846_v45 = vpack.c.bf16 %v337_v38, %v305_v37 }
  0xcd   :  { %v2764_v53 = vpack.c.bf16 %v522_v44, %v490_v48  ;;  %v334_v48 = vld [vmem:[%s4647_s1 + $0x9e0] sm:$0xff]  ;;  %v304_v44 = vld [vmem:[%s4647_s1 + $0x8f0] sm:$0xff] }
  0xce   :  { %2745 = vmatpush1.bf16.msra.mxu0 %v2744_v55  ;;  %v2798_v55 = vpack.c.bf16 %v79_v50, %v47_v49  ;;  %v399_v49 = vld [vmem:[%s4647_s1 + $0xbe8] sm:$0xff]  ;;  %v4405_v50 = vsub.s32 0, %v4384_v39 }
  0xcf   :  { %2777 = vmatpush1.bf16.msra.mxu1 %v2776_v56  ;;  %2747 = vmatprep.subr.bf16.mxu0 %v2746_v57  ;;  %v46_v56 = vld [vmem:[%s4647_s1 + $0xe0] sm:$0xff]  ;;  %v2818_v60 = vpack.c.bf16 %v399_v49, %v367_v47  ;;  %v496_v49 = vld [vmem:[%s4647_s1 + $0xef0] sm:$0xff] }
  0xd0   :  { %2779 = vmatprep.subr.bf16.mxu1 %v2778_v61  ;;  %v78_v57 = vld [vmem:[%s4647_s1 + $0x1e0] sm:$0xff]  ;;  %v111_v61 = vld [vmem:[%s4647_s1 + $0x2e8] sm:$0xff] }
  0xd1   :  { %v2800_v1 = vpack.c.bf16 %v78_v57, %v46_v56  ;;  %v4424_v56 = vsub.s32 2, %v4384_v39  ;;  %v4427_v57 = vsub.s32 1, %v4384_v39 }
  0xd2   :  { %2749 = vmatpush1.bf16.msra.mxu0 %v2748_v4  ;;  %v2802_v4 = vpack.c.bf16 %v143_v62, %v111_v61  ;;  %v366_v61 = vld [vmem:[%s4647_s1 + $0xae0] sm:$0xff] }
  0xd3   :  { %2781 = vmatpush1.bf16.msra.mxu1 %v2780_v5  ;;  %2751 = vmatprep.subr.bf16.mxu0 %v2750_v7  ;;  %v110_v5 = vld [vmem:[%s4647_s1 + $0x2e0] sm:$0xff] }
  0xd4   :  { %2783 = vmatprep.subr.bf16.mxu1 %v2782_v11  ;;  %v142_v7 = vld [vmem:[%s4647_s1 + $0x3e0] sm:$0xff]  ;;  %v175_v11 = vld [vmem:[%s4647_s1 + $0x4e8] sm:$0xff] }
  0xd5   :  { %v2804_v15 = vpack.c.bf16 %v142_v7, %v110_v5  ;;  %v398_v62 = vld [vmem:[%s4647_s1 + $0xbe0] sm:$0xff]  ;;  %v431_v5 = vld [vmem:[%s4647_s1 + $0xce8] sm:$0xff] }
  0xd6   :  { %2753 = vmatpush1.bf16.msra.mxu0 %v2752_v17  ;;  %v2806_v17 = vpack.c.bf16 %v207_v12, %v175_v11  ;;  %v463_v7 = vld [vmem:[%s4647_s1 + $0xde8] sm:$0xff]  ;;  %v2820_v14 = vpack.c.bf16 %v398_v62, %v366_v61 }
  0xd7   :  { %2785 = vmatpush1.bf16.msra.mxu1 %v2784_v18  ;;  %2755 = vmatprep.subr.bf16.mxu0 %v2754_v19  ;;  %v174_v18 = vld [vmem:[%s4647_s1 + $0x4e0] sm:$0xff] }
  0xd8   :  { %2787 = vmatprep.subr.bf16.mxu1 %v2786_v23  ;;  %v206_v19 = vld [vmem:[%s4647_s1 + $0x5e0] sm:$0xff]  ;;  %v239_v23 = vld [vmem:[%s4647_s1 + $0x6e8] sm:$0xff] }
  0xd9   :  { %v2808_v28 = vpack.c.bf16 %v206_v19, %v174_v18  ;;  %v2822_v18 = vpack.c.bf16 %v463_v7, %v431_v5  ;;  %v462_v19 = vld [vmem:[%s4647_s1 + $0xde0] sm:$0xff] }
  0xda   :  { %2757 = vmatpush1.bf16.msra.mxu0 %v2756_v29  ;;  %v2840_v29 = vpack.c.bf16 %v208_v22, %v176_v20  ;;  %v432_v20 = vld [vmem:[%s4647_s1 + $0xcf0] sm:$0xff] }
  0xdb   :  { %2789 = vmatpush1.bf16.msra.mxu1 %v2788_v30  ;;  %2759 = vmatprep.subr.bf16.mxu0 %v2758_v31  ;;  %v2810_v30 = vpack.c.bf16 %v271_v24, %v239_v23  ;;  %v238_v31 = vld [vmem:[%s4647_s1 + $0x6e0] sm:$0xff] }
  0xdc   :  { %2791 = vmatprep.subr.bf16.mxu1 %v2790_v35  ;;  %v303_v35 = vld [vmem:[%s4647_s1 + $0x8e8] sm:$0xff]  ;;  %v2812_v40 = vpack.c.bf16 %v270_v32, %v238_v31 }
  0xde   :  { %2761 = vmatpush1.bf16.msra.mxu0 %v2760_v41  ;;  %v2844_v41 = vpack.c.bf16 %v272_v34, %v240_v33  ;;  %v497_v33 = vld [vmem:[%s4647_s1 + $0xef8] sm:$0xff] }
  0xdf   :  { %2793 = vmatpush1.bf16.msra.mxu1 %v2792_v42  ;;  %2763 = vmatprep.subr.bf16.mxu0 %v2762_v43  ;;  %v2814_v42 = vpack.c.bf16 %v335_v36, %v303_v35  ;;  %v302_v43 = vld [vmem:[%s4647_s1 + $0x8e0] sm:$0xff] }
  0xe0   :  { %2795 = vmatprep.subr.bf16.mxu1 %v2794_v46  ;;  %v336_v46 = vld [vmem:[%s4647_s1 + $0x9f0] sm:$0xff] }
  0xe1   :  { %v2848_v58 = vpack.c.bf16 %v336_v46, %v304_v44 }
  0xe2   :  { %2765 = vmatpush1.bf16.msra.mxu0 %v2764_v53  ;;  %v2816_v53 = vpack.c.bf16 %v334_v48, %v302_v43 }
  0xe3   :  { %2797 = vmatpush1.bf16.msra.mxu1 %v2796_v54  ;;  %2799 = vmatprep.subr.bf16.mxu0 %v2798_v55  ;;  %v4416_v54 = vld [vmem:[%s4649_s2] sm:$0xff] }
  0xe4   :  { %2831 = vmatprep.subr.bf16.mxu1 %v2830_v59  ;;  %v4421_v55 = vld [vmem:[%s4650_s3] sm:$0xff]  ;;  %v4430_v59 = vsub.s32 3, %v4384_v39  ;;  %v1677_v8 = vrot.slane %v4416_v54, %v4405_v50  ;;  %v1685_v12 = vrot.slane %v4416_v54, %v4424_v56  ;;  %v1681_v13 = vrot.slane %v4416_v54, %v4427_v57 }
  0xe5   :  { %1447 = vmatmul.mubr.f32.vlgmr.msra.gmra.mrb[12].mxu0 %v3932_v6  ;;  %v1877_v11 = vrot.slane %v4421_v55, %v4405_v50  ;;  %v1885_v23 = vrot.slane %v4421_v55, %v4424_v56  ;;  %v1881_v24 = vrot.slane %v4421_v55, %v4427_v57 }
  0xe6   :  { %1518 = vmatmul.mubr.f32.vlgmr.msra.gmra.mrb[12].mxu1 %v3932_v6  ;;  %2801 = vmatpush1.bf16.msra.mxu0 %v2800_v1  ;;  %v2197_v1 = vunpack.c.l.s4 %v2866_v0  ;;  %v1889_v32 = vrot.slane %v4421_v55, %v4430_v59 }
  0xe7   :  { %2833 = vmatpush1.bf16.msra.mxu1 %v2832_v2  ;;  %2803 = vmatprep.subr.bf16.mxu0 %v2802_v4  ;;  %v2850_v2 = vpack.c.bf16 %v401_v52, %v369_v51  ;;  %v400_v4 = vld [vmem:[%s4647_s1 + $0xbf0] sm:$0xff] }
  0xe8   :  { %2835 = vmatprep.subr.bf16.mxu1 %v2834_v9  ;;  %1588 = vmatprep.mubr.f32.mxu0 %v2865_v3  ;;  %v433_v9 = vld [vmem:[%s4647_s1 + $0xcf8] sm:$0xff]  ;;  %v528_v51 = vld [vmem:[%s4647_s1 + $0xff0] sm:$0xff] }
  0xe9   :  { %1659 = vmatprep.mubr.f32.mxu1 %v2865_v3  ;;  %v2842_v3 = vpack.c.bf16 %v273_v26, %v241_v25  ;;  %v2198_v25 = vunpack.c.0.s8 %v2197_v1  ;;  %v2854_v26 = vpack.c.bf16 %v465_v10, %v433_v9  ;;  %v2860_v0 = vpack.c.bf16 %v528_v51, %v496_v49 }
  0xea   :  { %2805 = vmatpush1.bf16.msra.mxu0 %v2804_v15  ;;  %v430_v15 = vld [vmem:[%s4647_s1 + $0xce0] sm:$0xff] }
  0xeb   :  { %2837 = vmatpush1.bf16.msra.mxu1 %v2836_v16  ;;  %2807 = vmatprep.subr.bf16.mxu0 %v2806_v17  ;;  %v1689_v16 = vrot.slane %v4416_v54, %v4430_v59  ;;  %v2852_v17 = vpack.c.bf16 %v400_v4, %v368_v63  ;;  %v2824_v37 = vpack.c.bf16 %v462_v19, %v430_v15 }
  0xec   :  { %2839 = vmatprep.subr.bf16.mxu1 %v2838_v21  ;;  %v464_v21 = vld [vmem:[%s4647_s1 + $0xdf0] sm:$0xff]  ;;  %v4503_v46 = vsub.s32 %v2198_v25, %v4384_v39 }
  0xed   :  { %v2856_v38 = vpack.c.bf16 %v464_v21, %v432_v20 }
  0xee   :  { %2809 = vmatpush1.bf16.msra.mxu0 %v2808_v28  ;;  %v527_v28 = vld [vmem:[%s4647_s1 + $0xfe8] sm:$0xff] }
  0xef   :  { %2841 = vmatpush1.bf16.msra.mxu1 %v2840_v29  ;;  %2811 = vmatprep.subr.bf16.mxu0 %v2810_v30  ;;  %v2826_v48 = vpack.c.bf16 %v527_v28, %v495_v27 }
  0xf0   :  { %2843 = vmatprep.subr.bf16.mxu1 %v2842_v3  ;;  %v529_v3 = vld [vmem:[%s4647_s1 + $0xff8] sm:$0xff] }
  0xf1   :  { %v2858_v47 = vpack.c.bf16 %v529_v3, %v497_v33 }
  0xf2   :  { %2813 = vmatpush1.bf16.msra.mxu0 %v2812_v40  ;;  %v494_v40 = vld [vmem:[%s4647_s1 + $0xee0] sm:$0xff] }
  0xf3   :  { %2845 = vmatpush1.bf16.msra.mxu1 %v2844_v41  ;;  %2815 = vmatprep.subr.bf16.mxu0 %v2814_v42  ;;  %v526_v41 = vld [vmem:[%s4647_s1 + $0xfe0] sm:$0xff] }
  0xf4   :  { %2847 = vmatprep.subr.bf16.mxu1 %v2846_v45 }
  0xf6   :  { %2817 = vmatpush1.bf16.msra.mxu0 %v2816_v53 }
  0xf7   :  { %2849 = vmatpush1.bf16.msra.mxu1 %v2848_v58  ;;  %2819 = vmatprep.subr.bf16.mxu0 %v2818_v60  ;;  %v2828_v58 = vpack.c.bf16 %v526_v41, %v494_v40 }
  0xf8   :  { %v596_v22 = vpop.f32.mrb[0].mxu0  ;;  %2851 = vmatprep.subr.bf16.mxu1 %v2850_v2 }
  0xf9   :  { %v1834_v29 = vmul.f32 %v1677_v8, %v596_v22  ;;  %v667_v30 = vpop.f32.mrb[0].mxu1  ;;  %v598_v31 = vpop.f32.mrb[1].mxu0 }
  0xfa   :  { %v1836_v34 = vmul.f32 %v1685_v12, %v667_v30  ;;  %v1835_v35 = vmul.f32 %v1681_v13, %v598_v31  ;;  %v669_v36 = vpop.f32.mrb[1].mxu1  ;;  %2821 = vmatpush1.bf16.msra.mxu0 %v2820_v14  ;;  %v4522_v12 = vsub.s32 6, %v4384_v39  ;;  %v4525_v13 = vsub.s32 5, %v4384_v39 }
  0xfb   :  { %v2034_v42 = vadd.f32 %v1877_v11, %v1834_v29  ;;  %v1837_v43 = vmul.f32 %v1689_v16, %v669_v36  ;;  %2853 = vmatpush1.bf16.msra.mxu1 %v2852_v17  ;;  %2823 = vmatprep.subr.bf16.mxu0 %v2822_v18  ;;  %v4519_v11 = vsub.s32 4, %v4384_v39  ;;  %v4528_v14 = vsub.s32 7, %v4384_v39 }
  0xfc   :  { %v2036_v44 = vadd.f32 %v1885_v23, %v1836_v34  ;;  %v2035_v45 = vadd.f32 %v1881_v24, %v1835_v35  ;;  %2855 = vmatprep.subr.bf16.mxu1 %v2854_v26  ;;  %v1697_v16 = vrot.slane %v4416_v54, %v4525_v13  ;;  %v1901_v39 = vrot.slane %v4421_v55, %v4522_v12 }
  0xfd   :  { %vm2066_vm0 = vcmp.gt.f32.partialorder %v2034_v42, 0.0  ;;  %v2098_v52 = vmul.f32 0.2, %v2034_v42  ;;  %v2037_v53 = vadd.f32 %v1889_v32, %v1837_v43  ;;  %v1693_v15 = vrot.slane %v4416_v54, %v4519_v11 }
  0xfe   :  { %vm2068_vm1 = vcmp.gt.f32.partialorder %v2036_v44, 0.0  ;;  %v2100_v60 = vmul.f32 0.2, %v2036_v44  ;;  %vm2067_vm2 = vcmp.gt.f32.partialorder %v2035_v45, 0.0  ;;  %v2099_v61 = vmul.f32 0.2, %v2035_v45  ;;  %2825 = vmatpush1.bf16.msra.mxu0 %v2824_v37 }
  0xff   :  { %v2130_v62 = vsel %vm2066_vm0, %v2034_v42, %v2098_v52  ;;  %vm2069_vm3 = vcmp.gt.f32.partialorder %v2037_v53, 0.0  ;;  %v2101_v63 = vmul.f32 0.2, %v2037_v53  ;;  %2857 = vmatpush1.bf16.msra.mxu1 %v2856_v38  ;;  %2827 = vmatprep.subr.bf16.mxu0 %v2826_v48  ;;  %v1893_v17 = vrot.slane %v4421_v55, %v4519_v11  ;;  %v1667_v48 = vld [vmem:[%s4649_s2 + $0x8] sm:$0xff] }
 0x100   :  { %v2132_v1 = vsel %vm2068_vm1, %v2036_v44, %v2100_v60  ;;  %v2131_v2 = vsel %vm2067_vm2, %v2035_v45, %v2099_v61  ;;  %2859 = vmatprep.subr.bf16.mxu1 %v2858_v47  ;;  %v1705_v18 = vrot.slane %v4416_v54, %v4528_v14  ;;  %v1897_v20 = vrot.slane %v4421_v55, %v4525_v13  ;;  %v1867_v44 = vld [vmem:[%s4650_s3 + $0x8] sm:$0xff] }
 0x101   :  { %v2194_v4 = vcombine.low %v2130_v62, %v2131_v2  ;;  %v2133_v5 = vsel %vm2069_vm3, %v2037_v53, %v2101_v63  ;;  %v1905_v24 = vrot.slane %v4421_v55, %v4528_v14  ;;  %v1709_v45 = vrot.slane %v1667_v48, %v4405_v50 }
 0x102   :  { %v2195_v7 = vcombine.low %v2132_v1, %v2133_v5  ;;  %2829 = vmatpush1.bf16.msra.mxu0 %v2828_v58  ;;  %v1717_v47 = vrot.slane %v1667_v48, %v4424_v56  ;;  %v1713_v49 = vrot.slane %v1667_v48, %v4427_v57  ;;  %v1909_v51 = vrot.slane %v1867_v44, %v4405_v50 }
 0x103   :  { %v2202_v8 = vrot.slane %v2194_v4, %v4503_v46  ;;  %2861 = vmatpush1.bf16.msra.mxu1 %v2860_v0  ;;  %v1721_v52 = vrot.slane %v1667_v48, %v4430_v59  ;;  %v1917_v58 = vrot.slane %v1867_v44, %v4424_v56  ;;  %v1913_v60 = vrot.slane %v1867_v44, %v4427_v57 }
 0x104   :  { %v2209_v9 = vrot.slane %v2195_v7, %v4503_v46  ;;  %v1921_v0 = vrot.slane %v1867_v44, %v4430_v59 }
 0x105   :  { %1589 = vmatmul.mubr.f32.vlgmr.msra.gmra.mrb[14].mxu0 %v3932_v6 }
 0x106   :  { %v2210_v10 = vcombine.low %v2202_v8, %v2209_v9  ;;  %1660 = vmatmul.mubr.f32.vlgmr.msra.gmra.mrb[14].mxu1 %v3932_v6  ;;  %v1701_v6 = vrot.slane %v4416_v54, %v4522_v12 }
 0x108   :  { %2338 = vst [vmem:[%s4651_s4] sm:$0xff] %v2210_v10 }
 0x118   :  { %v738_v19 = vpop.f32.mrb[2].mxu0 }
 0x119   :  { %v1838_v21 = vmul.f32 %v1693_v15, %v738_v19  ;;  %v809_v22 = vpop.f32.mrb[2].mxu1  ;;  %v740_v23 = vpop.f32.mrb[3].mxu0 }
 0x11a   :  { %v1840_v25 = vmul.f32 %v1701_v6, %v809_v22  ;;  %v1839_v26 = vmul.f32 %v1697_v16, %v740_v23  ;;  %v811_v27 = vpop.f32.mrb[3].mxu1 }
 0x11b   :  { %v2038_v28 = vadd.f32 %v1893_v17, %v1838_v21  ;;  %v1841_v29 = vmul.f32 %v1705_v18, %v811_v27  ;;  %v1733_v27 = vrot.slane %v1667_v48, %v4522_v12 }
 0x11c   :  { %v2040_v30 = vadd.f32 %v1901_v39, %v1840_v25  ;;  %v2039_v54 = vadd.f32 %v1897_v20, %v1839_v26  ;;  %v1725_v26 = vrot.slane %v1667_v48, %v4519_v11 }
 0x11d   :  { %vm2070_vm4 = vcmp.gt.f32.partialorder %v2038_v28, 0.0  ;;  %v2102_v31 = vmul.f32 0.2, %v2038_v28  ;;  %v2041_v32 = vadd.f32 %v1905_v24, %v1841_v29  ;;  %v1925_v29 = vrot.slane %v1867_v44, %v4519_v11 }
 0x11e   :  { %vm2072_vm5 = vcmp.gt.f32.partialorder %v2040_v30, 0.0  ;;  %v2104_v33 = vmul.f32 0.2, %v2040_v30  ;;  %vm2071_vm6 = vcmp.gt.f32.partialorder %v2039_v54, 0.0  ;;  %v2103_v3 = vmul.f32 0.2, %v2039_v54 }
 0x11f   :  { %v2134_v34 = vsel %vm2070_vm4, %v2038_v28, %v2102_v31  ;;  %vm2073_vm7 = vcmp.gt.f32.partialorder %v2041_v32, 0.0  ;;  %v2105_v35 = vmul.f32 0.2, %v2041_v32  ;;  %v1729_v28 = vrot.slane %v1667_v48, %v4525_v13 }
 0x120   :  { %v2136_v36 = vsel %vm2072_vm5, %v2040_v30, %v2104_v33  ;;  %v2135_v37 = vsel %vm2071_vm6, %v2039_v54, %v2103_v3  ;;  %v1737_v30 = vrot.slane %v1667_v48, %v4528_v14  ;;  %v1933_v31 = vrot.slane %v1867_v44, %v4522_v12 }
 0x121   :  { %v2211_v55 = vcombine.low %v2134_v34, %v2135_v37  ;;  %v2137_v38 = vsel %vm2073_vm7, %v2041_v32, %v2105_v35  ;;  %v1929_v32 = vrot.slane %v1867_v44, %v4525_v13  ;;  %v1937_v35 = vrot.slane %v1867_v44, %v4528_v14 }
 0x122   :  { %v2212_v40 = vcombine.low %v2136_v36, %v2137_v38 }
 0x123   :  { %v2219_v41 = vrot.slane %v2211_v55, %v4503_v46 }
 0x124   :  { %v2226_v42 = vrot.slane %v2212_v40, %v4503_v46 }
 0x126   :  { %v2227_v43 = vcombine.low %v2219_v41, %v2226_v42 }
 0x128   :  { %2339 = vst [vmem:[%s4651_s4 + $0x8] sm:$0xff] %v2227_v43 }
 0x138   :  { %v880_v53 = vpop.f32.mrb[4].mxu0 }
 0x139   :  { %v1842_v61 = vmul.f32 %v1709_v45, %v880_v53  ;;  %v951_v62 = vpop.f32.mrb[4].mxu1  ;;  %v882_v63 = vpop.f32.mrb[5].mxu0 }
 0x13a   :  { %v1844_v1 = vmul.f32 %v1717_v47, %v951_v62  ;;  %v1843_v2 = vmul.f32 %v1713_v49, %v882_v63  ;;  %v953_v4 = vpop.f32.mrb[5].mxu1 }
 0x13b   :  { %v2042_v5 = vadd.f32 %v1909_v51, %v1842_v61  ;;  %v1845_v7 = vmul.f32 %v1721_v52, %v953_v4 }
 0x13c   :  { %v2044_v8 = vadd.f32 %v1917_v58, %v1844_v1  ;;  %v2043_v9 = vadd.f32 %v1913_v60, %v1843_v2  ;;  %v1868_v1 = vld [vmem:[%s4650_s3 + $0x10] sm:$0xff] }
 0x13d   :  { %vm2074_vm8 = vcmp.gt.f32.partialorder %v2042_v5, 0.0  ;;  %v2106_v10 = vmul.f32 0.2, %v2042_v5  ;;  %v2045_v15 = vadd.f32 %v1921_v0, %v1845_v7  ;;  %v1668_v0 = vld [vmem:[%s4649_s2 + $0x10] sm:$0xff]  ;;  %v1941_v7 = vrot.slane %v1868_v1, %v4405_v50 }
 0x13e   :  { %vm2076_vm9 = vcmp.gt.f32.partialorder %v2044_v8, 0.0  ;;  %v2108_v6 = vmul.f32 0.2, %v2044_v8  ;;  %vm2075_vm10 = vcmp.gt.f32.partialorder %v2043_v9, 0.0  ;;  %v2107_v16 = vmul.f32 0.2, %v2043_v9 }
 0x13f   :  { %v2138_v17 = vsel %vm2074_vm8, %v2042_v5, %v2106_v10  ;;  %vm2077_vm11 = vcmp.gt.f32.partialorder %v2045_v15, 0.0  ;;  %v2109_v18 = vmul.f32 0.2, %v2045_v15  ;;  %v1741_v2 = vrot.slane %v1668_v0, %v4405_v50 }
 0x140   :  { %v2140_v19 = vsel %vm2076_vm9, %v2044_v8, %v2108_v6  ;;  %v2139_v39 = vsel %vm2075_vm10, %v2043_v9, %v2107_v16  ;;  %v1749_v4 = vrot.slane %v1668_v0, %v4424_v56  ;;  %v1745_v5 = vrot.slane %v1668_v0, %v4427_v57 }
 0x141   :  { %v2228_v20 = vcombine.low %v2138_v17, %v2139_v39  ;;  %v2141_v21 = vsel %vm2077_vm11, %v2045_v15, %v2109_v18  ;;  %v1753_v8 = vrot.slane %v1668_v0, %v4430_v59  ;;  %v1949_v10 = vrot.slane %v1868_v1, %v4424_v56 }
 0x142   :  { %v2229_v22 = vcombine.low %v2140_v19, %v2141_v21  ;;  %v1945_v15 = vrot.slane %v1868_v1, %v4427_v57  ;;  %v1953_v18 = vrot.slane %v1868_v1, %v4430_v59 }
 0x143   :  { %v2236_v23 = vrot.slane %v2228_v20, %v4503_v46 }
 0x144   :  { %v2243_v24 = vrot.slane %v2229_v22, %v4503_v46 }
 0x146   :  { %v2244_v25 = vcombine.low %v2236_v23, %v2243_v24 }
 0x148   :  { %2340 = vst [vmem:[%s4651_s4 + $0x10] sm:$0xff] %v2244_v25 }
 0x158   :  { %v1022_v54 = vpop.f32.mrb[6].mxu0 }
 0x159   :  { %v1846_v33 = vmul.f32 %v1725_v26, %v1022_v54  ;;  %v1093_v3 = vpop.f32.mrb[6].mxu1  ;;  %v1024_v34 = vpop.f32.mrb[7].mxu0 }
 0x15a   :  { %v1848_v36 = vmul.f32 %v1733_v27, %v1093_v3  ;;  %v1847_v37 = vmul.f32 %v1729_v28, %v1024_v34  ;;  %v1095_v55 = vpop.f32.mrb[7].mxu1 }
 0x15b   :  { %v2046_v38 = vadd.f32 %v1925_v29, %v1846_v33  ;;  %v1849_v40 = vmul.f32 %v1737_v30, %v1095_v55  ;;  %v1765_v55 = vrot.slane %v1668_v0, %v4522_v12 }
 0x15c   :  { %v2048_v41 = vadd.f32 %v1933_v31, %v1848_v36  ;;  %v2047_v42 = vadd.f32 %v1929_v32, %v1847_v37  ;;  %v1757_v37 = vrot.slane %v1668_v0, %v4519_v11 }
 0x15d   :  { %vm2078_vm12 = vcmp.gt.f32.partialorder %v2046_v38, 0.0  ;;  %v2110_v43 = vmul.f32 0.2, %v2046_v38  ;;  %v2049_v48 = vadd.f32 %v1937_v35, %v1849_v40  ;;  %v1957_v40 = vrot.slane %v1868_v1, %v4519_v11 }
 0x15e   :  { %vm2080_vm13 = vcmp.gt.f32.partialorder %v2048_v41, 0.0  ;;  %v2112_v45 = vmul.f32 0.2, %v2048_v41  ;;  %vm2079_vm14 = vcmp.gt.f32.partialorder %v2047_v42, 0.0  ;;  %v2111_v47 = vmul.f32 0.2, %v2047_v42 }
 0x15f   :  { %v2142_v49 = vsel %vm2078_vm12, %v2046_v38, %v2110_v43  ;;  %vm2081_vm15 = vcmp.gt.f32.partialorder %v2049_v48, 0.0  ;;  %v2113_v51 = vmul.f32 0.2, %v2049_v48  ;;  %v1761_v38 = vrot.slane %v1668_v0, %v4525_v13 }
 0x160   :  { %v2144_v52 = vsel %vm2080_vm13, %v2048_v41, %v2112_v45  ;;  %v2143_v53 = vsel %vm2079_vm14, %v2047_v42, %v2111_v47  ;;  %v1769_v41 = vrot.slane %v1668_v0, %v4528_v14  ;;  %v1965_v43 = vrot.slane %v1868_v1, %v4522_v12 }
 0x161   :  { %v2245_v44 = vcombine.low %v2142_v49, %v2143_v53  ;;  %v2145_v58 = vsel %vm2081_vm15, %v2049_v48, %v2113_v51  ;;  %v1961_v48 = vrot.slane %v1868_v1, %v4525_v13  ;;  %v1969_v51 = vrot.slane %v1868_v1, %v4528_v14 }
 0x162   :  { %v2246_v60 = vcombine.low %v2144_v52, %v2145_v58 }
 0x163   :  { %v2253_v61 = vrot.slane %v2245_v44, %v4503_v46 }
 0x164   :  { %v2260_v62 = vrot.slane %v2246_v60, %v4503_v46 }
 0x166   :  { %v2261_v63 = vcombine.low %v2253_v61, %v2260_v62 }
 0x168   :  { %2341 = vst [vmem:[%s4651_s4 + $0x18] sm:$0xff] %v2261_v63 }
 0x178   :  { %v1164_v9 = vpop.f32.mrb[8].mxu0 }
 0x179   :  { %v1850_v6 = vmul.f32 %v1741_v2, %v1164_v9  ;;  %v1235_v16 = vpop.f32.mrb[8].mxu1  ;;  %v1166_v17 = vpop.f32.mrb[9].mxu0 }
 0x17a   :  { %v1852_v19 = vmul.f32 %v1749_v4, %v1235_v16  ;;  %v1851_v39 = vmul.f32 %v1745_v5, %v1166_v17  ;;  %v1237_v20 = vpop.f32.mrb[9].mxu1 }
 0x17b   :  { %v2050_v21 = vadd.f32 %v1941_v7, %v1850_v6  ;;  %v1853_v22 = vmul.f32 %v1753_v8, %v1237_v20 }
 0x17c   :  { %v2052_v23 = vadd.f32 %v1949_v10, %v1852_v19  ;;  %v2051_v24 = vadd.f32 %v1945_v15, %v1851_v39  ;;  %v1869_v19 = vld [vmem:[%s4650_s3 + $0x18] sm:$0xff] }
 0x17d   :  { %vm2082_vm0 = vcmp.gt.f32.partialorder %v2050_v21, 0.0  ;;  %v2114_v25 = vmul.f32 0.2, %v2050_v21  ;;  %v2053_v26 = vadd.f32 %v1953_v18, %v1853_v22  ;;  %v1669_v18 = vld [vmem:[%s4649_s2 + $0x18] sm:$0xff]  ;;  %v1973_v22 = vrot.slane %v1869_v19, %v4405_v50 }
 0x17e   :  { %vm2084_vm1 = vcmp.gt.f32.partialorder %v2052_v23, 0.0  ;;  %v2116_v27 = vmul.f32 0.2, %v2052_v23  ;;  %vm2083_vm2 = vcmp.gt.f32.partialorder %v2051_v24, 0.0  ;;  %v2115_v28 = vmul.f32 0.2, %v2051_v24 }
 0x17f   :  { %v2146_v29 = vsel %vm2082_vm0, %v2050_v21, %v2114_v25  ;;  %vm2085_vm3 = vcmp.gt.f32.partialorder %v2053_v26, 0.0  ;;  %v2117_v30 = vmul.f32 0.2, %v2053_v26  ;;  %v1773_v39 = vrot.slane %v1669_v18, %v4405_v50 }
 0x180   :  { %v2148_v54 = vsel %vm2084_vm1, %v2052_v23, %v2116_v27  ;;  %v2147_v31 = vsel %vm2083_vm2, %v2051_v24, %v2115_v28  ;;  %v1781_v20 = vrot.slane %v1669_v18, %v4424_v56  ;;  %v1777_v21 = vrot.slane %v1669_v18, %v4427_v57 }
 0x181   :  { %v2262_v32 = vcombine.low %v2146_v29, %v2147_v31  ;;  %v2149_v33 = vsel %vm2085_vm3, %v2053_v26, %v2117_v30  ;;  %v1785_v23 = vrot.slane %v1669_v18, %v4430_v59  ;;  %v1981_v25 = vrot.slane %v1869_v19, %v4424_v56 }
 0x182   :  { %v2263_v3 = vcombine.low %v2148_v54, %v2149_v33  ;;  %v1977_v26 = vrot.slane %v1869_v19, %v4427_v57  ;;  %v1985_v30 = vrot.slane %v1869_v19, %v4430_v59 }
 0x183   :  { %v2270_v34 = vrot.slane %v2262_v32, %v4503_v46 }
 0x184   :  { %v2277_v35 = vrot.slane %v2263_v3, %v4503_v46 }
 0x186   :  { %v2278_v36 = vcombine.low %v2270_v34, %v2277_v35 }
 0x188   :  { %2342 = vst [vmem:[%s4651_s4 + $0x20] sm:$0xff] %v2278_v36 }
 0x198   :  { %v1306_v42 = vpop.f32.mrb[10].mxu0 }
 0x199   :  { %v1854_v45 = vmul.f32 %v1757_v37, %v1306_v42  ;;  %v1377_v47 = vpop.f32.mrb[10].mxu1  ;;  %v1308_v49 = vpop.f32.mrb[11].mxu0 }
 0x19a   :  { %v1856_v52 = vmul.f32 %v1765_v55, %v1377_v47  ;;  %v1855_v53 = vmul.f32 %v1761_v38, %v1308_v49  ;;  %v1379_v44 = vpop.f32.mrb[11].mxu1  ;;  %v1789_v47 = vrot.slane %v1669_v18, %v4519_v11  ;;  %v1797_v49 = vrot.slane %v1669_v18, %v4522_v12 }
 0x19b   :  { %v2054_v58 = vadd.f32 %v1957_v40, %v1854_v45  ;;  %v1857_v60 = vmul.f32 %v1769_v41, %v1379_v44 }
 0x19c   :  { %v2056_v61 = vadd.f32 %v1965_v43, %v1856_v52  ;;  %v2055_v62 = vadd.f32 %v1961_v48, %v1855_v53  ;;  %v1989_v52 = vrot.slane %v1869_v19, %v4519_v11  ;;  %v1801_v53 = vrot.slane %v1669_v18, %v4528_v14 }
 0x19d   :  { %vm2086_vm4 = vcmp.gt.f32.partialorder %v2054_v58, 0.0  ;;  %v2118_v63 = vmul.f32 0.2, %v2054_v58  ;;  %v2057_v0 = vadd.f32 %v1969_v51, %v1857_v60  ;;  %v1793_v51 = vrot.slane %v1669_v18, %v4525_v13 }
 0x19e   :  { %vm2088_vm5 = vcmp.gt.f32.partialorder %v2056_v61, 0.0  ;;  %v2120_v2 = vmul.f32 0.2, %v2056_v61  ;;  %vm2087_vm6 = vcmp.gt.f32.partialorder %v2055_v62, 0.0  ;;  %v2119_v4 = vmul.f32 0.2, %v2055_v62 }
 0x19f   :  { %v2150_v5 = vsel %vm2086_vm4, %v2054_v58, %v2118_v63  ;;  %vm2089_vm7 = vcmp.gt.f32.partialorder %v2057_v0, 0.0  ;;  %v2121_v7 = vmul.f32 0.2, %v2057_v0  ;;  %v1997_v58 = vrot.slane %v1869_v19, %v4522_v12 }
 0x1a0   :  { %v2152_v8 = vsel %vm2088_vm5, %v2056_v61, %v2120_v2  ;;  %v2151_v9 = vsel %vm2087_vm6, %v2055_v62, %v2119_v4  ;;  %v1993_v60 = vrot.slane %v1869_v19, %v4525_v13 }
 0x1a1   :  { %v2279_v1 = vcombine.low %v2150_v5, %v2151_v9  ;;  %v2153_v10 = vsel %vm2089_vm7, %v2057_v0, %v2121_v7  ;;  %v2001_v0 = vrot.slane %v1869_v19, %v4528_v14 }
 0x1a2   :  { %v2280_v15 = vcombine.low %v2152_v8, %v2153_v10 }
 0x1a3   :  { %v2287_v6 = vrot.slane %v2279_v1, %v4503_v46 }
 0x1a4   :  { %v2294_v16 = vrot.slane %v2280_v15, %v4503_v46 }
 0x1a6   :  { %v2295_v17 = vcombine.low %v2287_v6, %v2294_v16 }
 0x1a8   :  { %2343 = vst [vmem:[%s4651_s4 + $0x28] sm:$0xff] %v2295_v17 }
 0x1b8   :  { %v1448_v24 = vpop.f32.mrb[12].mxu0 }
 0x1b9   :  { %v1858_v27 = vmul.f32 %v1773_v39, %v1448_v24  ;;  %v1519_v28 = vpop.f32.mrb[12].mxu1  ;;  %v1450_v29 = vpop.f32.mrb[13].mxu0 }
 0x1ba   :  { %v1860_v54 = vmul.f32 %v1781_v20, %v1519_v28  ;;  %v1859_v31 = vmul.f32 %v1777_v21, %v1450_v29  ;;  %v1521_v32 = vpop.f32.mrb[13].mxu1 }
 0x1bb   :  { %v2058_v33 = vadd.f32 %v1973_v22, %v1858_v27  ;;  %v1861_v3 = vmul.f32 %v1785_v23, %v1521_v32 }
 0x1bc   :  { %v2060_v34 = vadd.f32 %v1981_v25, %v1860_v54  ;;  %v2059_v35 = vadd.f32 %v1977_v26, %v1859_v31 }
 0x1bd   :  { %vm2090_vm8 = vcmp.gt.f32.partialorder %v2058_v33, 0.0  ;;  %v2122_v50 = vmul.f32 0.2, %v2058_v33  ;;  %v2061_v36 = vadd.f32 %v1985_v30, %v1861_v3 }
 0x1be   :  { %vm2092_vm9 = vcmp.gt.f32.partialorder %v2060_v34, 0.0  ;;  %v2124_v37 = vmul.f32 0.2, %v2060_v34  ;;  %vm2091_vm10 = vcmp.gt.f32.partialorder %v2059_v35, 0.0  ;;  %v2123_v56 = vmul.f32 0.2, %v2059_v35 }
 0x1bf   :  { %v2154_v57 = vsel %vm2090_vm8, %v2058_v33, %v2122_v50  ;;  %vm2093_vm11 = vcmp.gt.f32.partialorder %v2061_v36, 0.0  ;;  %v2125_v55 = vmul.f32 0.2, %v2061_v36 }
 0x1c0   :  { %v2156_v38 = vsel %vm2092_vm9, %v2060_v34, %v2124_v37  ;;  %v2155_v40 = vsel %vm2091_vm10, %v2059_v35, %v2123_v56 }
 0x1c1   :  { %v2296_v59 = vcombine.low %v2154_v57, %v2155_v40  ;;  %v2157_v41 = vsel %vm2093_vm11, %v2061_v36, %v2125_v55 }
 0x1c2   :  { %v2297_v42 = vcombine.low %v2156_v38, %v2157_v41 }
 0x1c3   :  { %v2304_v43 = vrot.slane %v2296_v59, %v4503_v46 }
 0x1c4   :  { %v2311_v48 = vrot.slane %v2297_v42, %v4503_v46 }
 0x1c6   :  { %v2312_v45 = vcombine.low %v2304_v43, %v2311_v48 }
 0x1c8   :  { %2344 = vst [vmem:[%s4651_s4 + $0x30] sm:$0xff] %v2312_v45 }
 0x1d8   :  { %v1590_v44 = vpop.f32.mrb[14].mxu0 }
 0x1d9   :  { %v1862_v61 = vmul.f32 %v1789_v47, %v1590_v44  ;;  %v1661_v62 = vpop.f32.mrb[14].mxu1  ;;  %v1592_v63 = vpop.f32.mrb[15].mxu0 }
 0x1da   :  { %v1864_v2 = vmul.f32 %v1797_v49, %v1661_v62  ;;  %v1863_v4 = vmul.f32 %v1793_v51, %v1592_v63  ;;  %v1663_v5 = vpop.f32.mrb[15].mxu1 }
 0x1db   :  { %v2062_v7 = vadd.f32 %v1989_v52, %v1862_v61  ;;  %v1865_v8 = vmul.f32 %v1801_v53, %v1663_v5 }
 0x1dc   :  { %v2064_v9 = vadd.f32 %v1997_v58, %v1864_v2  ;;  %v2063_v1 = vadd.f32 %v1993_v60, %v1863_v4 }
 0x1dd   :  { %vm2094_vm12 = vcmp.gt.f32.partialorder %v2062_v7, 0.0  ;;  %v2126_v11 = vmul.f32 0.2, %v2062_v7  ;;  %v2065_v10 = vadd.f32 %v2001_v0, %v1865_v8 }
 0x1de   :  { %vm2096_vm13 = vcmp.gt.f32.partialorder %v2064_v9, 0.0  ;;  %v2128_v15 = vmul.f32 0.2, %v2064_v9  ;;  %vm2095_vm14 = vcmp.gt.f32.partialorder %v2063_v1, 0.0  ;;  %v2127_v12 = vmul.f32 0.2, %v2063_v1 }
 0x1df   :  { %v2158_v13 = vsel %vm2094_vm12, %v2062_v7, %v2126_v11  ;;  %vm2097_vm15 = vcmp.gt.f32.partialorder %v2065_v10, 0.0  ;;  %v2129_v6 = vmul.f32 0.2, %v2065_v10 }
 0x1e0   :  { %v2160_v16 = vsel %vm2096_vm13, %v2064_v9, %v2128_v15  ;;  %v2159_v17 = vsel %vm2095_vm14, %v2063_v1, %v2127_v12 }
 0x1e1   :  { %v2313_v14 = vcombine.low %v2158_v13, %v2159_v17  ;;  %v2161_v18 = vsel %vm2097_vm15, %v2065_v10, %v2129_v6 }
 0x1e2   :  { %v2314_v19 = vcombine.low %v2160_v16, %v2161_v18 }
 0x1e3   :  { %v2321_v39 = vrot.slane %v2313_v14, %v4503_v46 }
 0x1e4   :  { %v2328_v20 = vrot.slane %v2314_v19, %v4503_v46 }
 0x1e6   :  { %v2329_v21 = vcombine.low %v2321_v39, %v2328_v20 }
 0x1e8   :  { %2345 = vst [vmem:[%s4651_s4 + $0x38] sm:$0xff] %v2329_v21 }

// kernel: _lambda_.11
= control target key start
LH: loop header
LB: loop body
LE: loop exit
PB: predicated region body
PF: predicated region fallthrough
CT: control target
= control target key end

     0   :  { %s1295_s15 = smov 0   ;;  %s1297_s16 = smov 0   ;;  %s1512_s0 = inlined_call_operand.vmem [shape: f32[4,32,1024], index: 0, kind: input, shape index: {}]   ;;  %s1513_s1 = inlined_call_operand.vmem [shape: f32[4,1024,128], index: 1, kind: input, shape index: {}]   ;;  %s1514_s2 = inlined_call_operand.vmem [shape: f32[1,128], index: 2, kind: input, shape index: {}]   ;;  %s1515_s3 = inlined_call_operand.vmem [shape: f32[1,128], index: 3, kind: input, shape index: {}]   ;;  %s1516_s4 = inlined_call_operand.vmem [shape: f32[4,32,128], index: 4, kind: output, shape index: {}]  }
   0x1   :  { %s1299_s17 = smov 0  }
   0x2 LB: > { %s26_s18 = sadd.s32 1, %s1264_s16  ;;  %p904_p0 = scmp.ge.s32.totalorder %s1268_s17, 1  ;;  %s1268_s17 = sphi %s1299_s17, %s14_s17   ;;  %s1264_s16 = sphi %s1297_s16, %s1518_s16   ;;  %s1260_s15 = sphi %s1295_s15, %s1517_s15  }
   0x3   : > { %p28_p1 = scmp.ge.s32.totalorder %s26_s18, 4  ;;  %p194_p2 = scmp.lt.s32.totalorder %s1268_s17, 5 }
   0x5   : > { %s1520_s18 = smov (%p28_p1, %s26_s18), 0  ;;  %p195_p3 = pnand %p904_p0, %p194_p2 }
   0x6   : > { %p235_p4 = scmp.lt.s32.totalorder (!%p195_p3), %s1260_s15, 3 }
   0x7   : > { %198 = sbr.rel (%p195_p3) target bundleno = 324 (0x144), region = 36 }
   0xe   : > { %s1522_s15 = smov (!%p235_p4, %s1260_s15), 3 }
   0xf   : > { %s916_s19 = sshll.u32 %s1522_s15, 10  ;;  %s915_s23 = sshll.u32 %s1522_s15, 8 }
  0x10   : > { %s1319_s22 = scalar_lea.vmem %s1513_s1, %s916_s19  ;;  %s1375_s26 = scalar_lea.vmem %s1512_s0, %s915_s23 }
  0x11   : > { %v308_v0 = vld [vmem:[%s1319_s22 + $0x80] sm:$0xff]  ;;  %v309_v1 = vld [vmem:[%s1319_s22 + $0x88] sm:$0xff]  ;;  %v310_v11 = vld [vmem:[%s1319_s22 + $0x90] sm:$0xff]  ;;  %s917_s5 = sshll.u32 %s1522_s15, 5 }
  0x12   : > { %v340_v2 = vld [vmem:[%s1319_s22 + $0x180] sm:$0xff]  ;;  %v1094_v3 = vpack.c.bf16 %v309_v1, %v308_v0  ;;  %v341_v4 = vld [vmem:[%s1319_s22 + $0x188] sm:$0xff]  ;;  %v311_v13 = vld [vmem:[%s1319_s22 + $0x98] sm:$0xff]  ;;  %s1497_s8 = scalar_lea.vmem %s1516_s4, %s917_s5 }
  0x13   : > { %v292_v5 = vld [vmem:[%s1319_s22] sm:$0xff]  ;;  %v293_v6 = vld [vmem:[%s1319_s22 + $0x8] sm:$0xff]  ;;  %v1126_v7 = vpack.c.bf16 %v341_v4, %v340_v2  ;;  %v342_v14 = vld [vmem:[%s1319_s22 + $0x190] sm:$0xff]  ;;  %v1098_v16 = vpack.c.bf16 %v311_v13, %v310_v11 }
  0x14   : > { %v1096_v8 = vpack.c.bf16 %v293_v6, %v292_v5  ;;  %v324_v9 = vld [vmem:[%s1319_s22 + $0x100] sm:$0xff]  ;;  %v325_v10 = vld [vmem:[%s1319_s22 + $0x108] sm:$0xff]  ;;  %1095 = vmatprep.subr.bf16.mxu0 %v1094_v3  ;;  %v343_v15 = vld [vmem:[%s1319_s22 + $0x198] sm:$0xff] }
  0x15   : > { %v1128_v12 = vpack.c.bf16 %v325_v10, %v324_v9  ;;  %1127 = vmatprep.subr.bf16.mxu1 %v1126_v7  ;;  %v1130_v17 = vpack.c.bf16 %v343_v15, %v342_v14  ;;  %v294_v18 = vld [vmem:[%s1319_s22 + $0x10] sm:$0xff]  ;;  %v295_v19 = vld [vmem:[%s1319_s22 + $0x18] sm:$0xff]  ;;  %v312_v23 = vld [vmem:[%s1319_s22 + $0xa0] sm:$0xff] }
  0x16   : > { %1097 = vmatpush3.bf16.msra.mxu0 %v1096_v8  ;;  %v326_v20 = vld [vmem:[%s1319_s22 + $0x110] sm:$0xff]  ;;  %v1100_v21 = vpack.c.bf16 %v295_v19, %v294_v18  ;;  %v327_v22 = vld [vmem:[%s1319_s22 + $0x118] sm:$0xff]  ;;  %v313_v24 = vld [vmem:[%s1319_s22 + $0xa8] sm:$0xff] }
  0x17   : > { %1129 = vmatpush3.bf16.msra.mxu1 %v1128_v12  ;;  %1099 = vmatprep.subr.bf16.mxu0 %v1098_v16  ;;  %v1132_v25 = vpack.c.bf16 %v327_v22, %v326_v20  ;;  %v1102_v26 = vpack.c.bf16 %v313_v24, %v312_v23  ;;  %v344_v27 = vld [vmem:[%s1319_s22 + $0x1a0] sm:$0xff]  ;;  %v345_v28 = vld [vmem:[%s1319_s22 + $0x1a8] sm:$0xff]  ;;  %v314_v35 = vld [vmem:[%s1319_s22 + $0xb0] sm:$0xff] }
  0x18   : > { %1131 = vmatprep.subr.bf16.mxu1 %v1130_v17  ;;  %v296_v29 = vld [vmem:[%s1319_s22 + $0x20] sm:$0xff]  ;;  %v1134_v30 = vpack.c.bf16 %v345_v28, %v344_v27  ;;  %v297_v31 = vld [vmem:[%s1319_s22 + $0x28] sm:$0xff]  ;;  %v315_v36 = vld [vmem:[%s1319_s22 + $0xb8] sm:$0xff] }
  0x19   : > { %v328_v32 = vld [vmem:[%s1319_s22 + $0x120] sm:$0xff]  ;;  %v329_v33 = vld [vmem:[%s1319_s22 + $0x128] sm:$0xff]  ;;  %v1104_v34 = vpack.c.bf16 %v297_v31, %v296_v29  ;;  %v346_v37 = vld [vmem:[%s1319_s22 + $0x1b0] sm:$0xff]  ;;  %v1106_v39 = vpack.c.bf16 %v315_v36, %v314_v35 }
  0x1a   : > { %1101 = vmatpush3.bf16.msra.mxu0 %v1100_v21  ;;  %v1136_v38 = vpack.c.bf16 %v329_v33, %v328_v32  ;;  %v347_v40 = vld [vmem:[%s1319_s22 + $0x1b8] sm:$0xff]  ;;  %v298_v41 = vld [vmem:[%s1319_s22 + $0x30] sm:$0xff]  ;;  %v316_v46 = vld [vmem:[%s1319_s22 + $0xc0] sm:$0xff] }
  0x1b   : > { %1133 = vmatpush3.bf16.msra.mxu1 %v1132_v25  ;;  %1103 = vmatprep.subr.bf16.mxu0 %v1102_v26  ;;  %v299_v42 = vld [vmem:[%s1319_s22 + $0x38] sm:$0xff]  ;;  %v1138_v43 = vpack.c.bf16 %v347_v40, %v346_v37  ;;  %v330_v44 = vld [vmem:[%s1319_s22 + $0x130] sm:$0xff]  ;;  %v317_v47 = vld [vmem:[%s1319_s22 + $0xc8] sm:$0xff] }
  0x1c   : > { %1135 = vmatprep.subr.bf16.mxu1 %v1134_v30  ;;  %v331_v45 = vld [vmem:[%s1319_s22 + $0x138] sm:$0xff]  ;;  %v348_v48 = vld [vmem:[%s1319_s22 + $0x1c0] sm:$0xff]  ;;  %v349_v49 = vld [vmem:[%s1319_s22 + $0x1c8] sm:$0xff]  ;;  %v1108_v50 = vpack.c.bf16 %v299_v42, %v298_v41  ;;  %v1110_v52 = vpack.c.bf16 %v317_v47, %v316_v46 }
  0x1d   : > { %v1140_v51 = vpack.c.bf16 %v331_v45, %v330_v44  ;;  %v300_v53 = vld [vmem:[%s1319_s22 + $0x40] sm:$0xff]  ;;  %v301_v54 = vld [vmem:[%s1319_s22 + $0x48] sm:$0xff]  ;;  %v1142_v56 = vpack.c.bf16 %v349_v49, %v348_v48  ;;  %v318_v58 = vld [vmem:[%s1319_s22 + $0xd0] sm:$0xff] }
  0x1e   : > { %1105 = vmatpush3.bf16.msra.mxu0 %v1104_v34  ;;  %v332_v55 = vld [vmem:[%s1319_s22 + $0x140] sm:$0xff]  ;;  %v333_v57 = vld [vmem:[%s1319_s22 + $0x148] sm:$0xff]  ;;  %v319_v59 = vld [vmem:[%s1319_s22 + $0xd8] sm:$0xff]  ;;  %v1112_v62 = vpack.c.bf16 %v301_v54, %v300_v53 }
  0x1f   : > { %1137 = vmatpush3.bf16.msra.mxu1 %v1136_v38  ;;  %1107 = vmatprep.subr.bf16.mxu0 %v1106_v39  ;;  %v350_v60 = vld [vmem:[%s1319_s22 + $0x1d0] sm:$0xff]  ;;  %v351_v61 = vld [vmem:[%s1319_s22 + $0x1d8] sm:$0xff]  ;;  %v1144_v63 = vpack.c.bf16 %v333_v57, %v332_v55  ;;  %v1114_v0 = vpack.c.bf16 %v319_v59, %v318_v58  ;;  %v320_v6 = vld [vmem:[%s1319_s22 + $0xe0] sm:$0xff] }
  0x20   : > { %1139 = vmatprep.subr.bf16.mxu1 %v1138_v43  ;;  %v302_v1 = vld [vmem:[%s1319_s22 + $0x50] sm:$0xff]  ;;  %v303_v2 = vld [vmem:[%s1319_s22 + $0x58] sm:$0xff]  ;;  %v1146_v4 = vpack.c.bf16 %v351_v61, %v350_v60  ;;  %v321_v7 = vld [vmem:[%s1319_s22 + $0xe8] sm:$0xff] }
  0x21   : > { %v334_v3 = vld [vmem:[%s1319_s22 + $0x150] sm:$0xff]  ;;  %v335_v5 = vld [vmem:[%s1319_s22 + $0x158] sm:$0xff]  ;;  %v352_v8 = vld [vmem:[%s1319_s22 + $0x1e0] sm:$0xff]  ;;  %v1116_v10 = vpack.c.bf16 %v303_v2, %v302_v1  ;;  %v1118_v14 = vpack.c.bf16 %v321_v7, %v320_v6 }
  0x22   : > { %1109 = vmatpush3.bf16.msra.mxu0 %v1108_v50  ;;  %v353_v9 = vld [vmem:[%s1319_s22 + $0x1e8] sm:$0xff]  ;;  %v304_v11 = vld [vmem:[%s1319_s22 + $0x60] sm:$0xff]  ;;  %v1148_v13 = vpack.c.bf16 %v335_v5, %v334_v3  ;;  %v263_v17 = vld [vmem:[%s1375_s26 + $0x18] sm:$0xff] }
  0x23   : > { %1141 = vmatpush3.bf16.msra.mxu1 %v1140_v51  ;;  %1111 = vmatprep.subr.bf16.mxu0 %v1110_v52  ;;  %v305_v12 = vld [vmem:[%s1319_s22 + $0x68] sm:$0xff]  ;;  %v336_v15 = vld [vmem:[%s1319_s22 + $0x160] sm:$0xff]  ;;  %v1150_v18 = vpack.c.bf16 %v353_v9, %v352_v8  ;;  %v322_v20 = vld [vmem:[%s1319_s22 + $0xf0] sm:$0xff] }
  0x24   : > { %1143 = vmatprep.subr.bf16.mxu1 %v1142_v56  ;;  %v261_v16 = vld [vmem:[%s1375_s26 + $0x8] sm:$0xff]  ;;  %v323_v21 = vld [vmem:[%s1319_s22 + $0xf8] sm:$0xff]  ;;  %v354_v22 = vld [vmem:[%s1319_s22 + $0x1f0] sm:$0xff]  ;;  %569 = vmatprep.mubr.f32.mxu1 %v263_v17  ;;  %v1120_v24 = vpack.c.bf16 %v305_v12, %v304_v11 }
  0x25   : > { %v337_v19 = vld [vmem:[%s1319_s22 + $0x168] sm:$0xff]  ;;  %484 = vmatprep.mubr.f32.mxu0 %v261_v16  ;;  %v355_v23 = vld [vmem:[%s1319_s22 + $0x1f8] sm:$0xff]  ;;  %v1122_v26 = vpack.c.bf16 %v323_v21, %v322_v20  ;;  %v306_v27 = vld [vmem:[%s1319_s22 + $0x70] sm:$0xff] }
  0x26   : > { %1113 = vmatpush3.bf16.msra.mxu0 %v1112_v62  ;;  %v1152_v25 = vpack.c.bf16 %v337_v19, %v336_v15  ;;  %v307_v28 = vld [vmem:[%s1319_s22 + $0x78] sm:$0xff]  ;;  %v338_v29 = vld [vmem:[%s1319_s22 + $0x170] sm:$0xff]  ;;  %v1154_v30 = vpack.c.bf16 %v355_v23, %v354_v22  ;;  %v372_v32 = vld [vmem:[%s1319_s22 + $0x280] sm:$0xff] }
  0x27   : > { %1145 = vmatpush3.bf16.msra.mxu1 %v1144_v63  ;;  %1115 = vmatprep.subr.bf16.mxu0 %v1114_v0  ;;  %v339_v31 = vld [vmem:[%s1319_s22 + $0x178] sm:$0xff]  ;;  %v373_v33 = vld [vmem:[%s1319_s22 + $0x288] sm:$0xff]  ;;  %v404_v34 = vld [vmem:[%s1319_s22 + $0x380] sm:$0xff]  ;;  %v1124_v36 = vpack.c.bf16 %v307_v28, %v306_v27 }
  0x28   : > { %1147 = vmatprep.subr.bf16.mxu1 %v1146_v4  ;;  %v405_v35 = vld [vmem:[%s1319_s22 + $0x388] sm:$0xff]  ;;  %v1156_v37 = vpack.c.bf16 %v339_v31, %v338_v29  ;;  %v1158_v38 = vpack.c.bf16 %v373_v33, %v372_v32  ;;  %v356_v39 = vld [vmem:[%s1319_s22 + $0x200] sm:$0xff]  ;;  %v374_v44 = vld [vmem:[%s1319_s22 + $0x290] sm:$0xff] }
  0x29   : > { %v357_v40 = vld [vmem:[%s1319_s22 + $0x208] sm:$0xff]  ;;  %v388_v41 = vld [vmem:[%s1319_s22 + $0x300] sm:$0xff]  ;;  %v1190_v42 = vpack.c.bf16 %v405_v35, %v404_v34  ;;  %v375_v45 = vld [vmem:[%s1319_s22 + $0x298] sm:$0xff] }
  0x2a   : > { %1117 = vmatpush3.bf16.msra.mxu0 %v1116_v10  ;;  %v389_v43 = vld [vmem:[%s1319_s22 + $0x308] sm:$0xff]  ;;  %v406_v46 = vld [vmem:[%s1319_s22 + $0x390] sm:$0xff]  ;;  %v407_v47 = vld [vmem:[%s1319_s22 + $0x398] sm:$0xff]  ;;  %v1160_v50 = vpack.c.bf16 %v357_v40, %v356_v39  ;;  %v1162_v52 = vpack.c.bf16 %v375_v45, %v374_v44 }
  0x2b   : > { %1149 = vmatpush3.bf16.msra.mxu1 %v1148_v13  ;;  %1119 = vmatprep.subr.bf16.mxu0 %v1118_v14  ;;  %v260_v48 = vld [vmem:[%s1375_s26] sm:$0xff]  ;;  %v262_v49 = vld [vmem:[%s1375_s26 + $0x10] sm:$0xff]  ;;  %v1192_v51 = vpack.c.bf16 %v389_v43, %v388_v41  ;;  %v359_v54 = vld [vmem:[%s1319_s22 + $0x218] sm:$0xff]  ;;  %v1194_v56 = vpack.c.bf16 %v407_v47, %v406_v46 }
  0x2c   : > { %1151 = vmatprep.subr.bf16.mxu1 %v1150_v18  ;;  %v358_v53 = vld [vmem:[%s1319_s22 + $0x210] sm:$0xff]  ;;  %v391_v57 = vld [vmem:[%s1319_s22 + $0x318] sm:$0xff]  ;;  %v376_v58 = vld [vmem:[%s1319_s22 + $0x2a0] sm:$0xff] }
  0x2d   : > { %v390_v55 = vld [vmem:[%s1319_s22 + $0x310] sm:$0xff]  ;;  %v377_v59 = vld [vmem:[%s1319_s22 + $0x2a8] sm:$0xff]  ;;  %v408_v60 = vld [vmem:[%s1319_s22 + $0x3a0] sm:$0xff]  ;;  %v1164_v63 = vpack.c.bf16 %v359_v54, %v358_v53 }
  0x2e   : > { %1121 = vmatpush3.bf16.msra.mxu0 %v1120_v24  ;;  %v409_v61 = vld [vmem:[%s1319_s22 + $0x3a8] sm:$0xff]  ;;  %v360_v0 = vld [vmem:[%s1319_s22 + $0x220] sm:$0xff]  ;;  %v271_v1 = vld [vmem:[%s1375_s26 + $0x58] sm:$0xff]  ;;  %v1196_v3 = vpack.c.bf16 %v391_v57, %v390_v55  ;;  %v1166_v4 = vpack.c.bf16 %v377_v59, %v376_v58 }
  0x2f   : > { %1153 = vmatpush3.bf16.msra.mxu1 %v1152_v25  ;;  %1123 = vmatprep.subr.bf16.mxu0 %v1122_v26  ;;  %v269_v62 = vld [vmem:[%s1375_s26 + $0x48] sm:$0xff]  ;;  %v268_v2 = vld [vmem:[%s1375_s26 + $0x40] sm:$0xff]  ;;  %v270_v7 = vld [vmem:[%s1375_s26 + $0x50] sm:$0xff]  ;;  %v1198_v8 = vpack.c.bf16 %v409_v61, %v408_v60 }
  0x30   : > { %1155 = vmatprep.subr.bf16.mxu1 %v1154_v30  ;;  %v361_v5 = vld [vmem:[%s1319_s22 + $0x228] sm:$0xff]  ;;  %v392_v6 = vld [vmem:[%s1319_s22 + $0x320] sm:$0xff]  ;;  %v378_v10 = vld [vmem:[%s1319_s22 + $0x2b0] sm:$0xff] }
  0x31   : > { %v393_v9 = vld [vmem:[%s1319_s22 + $0x328] sm:$0xff]  ;;  %v379_v11 = vld [vmem:[%s1319_s22 + $0x2b8] sm:$0xff]  ;;  %v410_v12 = vld [vmem:[%s1319_s22 + $0x3b0] sm:$0xff]  ;;  %v1168_v15 = vpack.c.bf16 %v361_v5, %v360_v0 }
  0x32   : > { %1125 = vmatpush3.bf16.msra.mxu0 %v1124_v36  ;;  %v411_v13 = vld [vmem:[%s1319_s22 + $0x3b8] sm:$0xff]  ;;  %v277_v14 = vld [vmem:[%s1375_s26 + $0x88] sm:$0xff]  ;;  %v362_v16 = vld [vmem:[%s1319_s22 + $0x230] sm:$0xff]  ;;  %v1200_v19 = vpack.c.bf16 %v393_v9, %v392_v6  ;;  %v1170_v20 = vpack.c.bf16 %v379_v11, %v378_v10 }
  0x33   : > { %1157 = vmatpush3.bf16.msra.mxu1 %v1156_v37  ;;  %1159 = vmatprep.subr.bf16.mxu0 %v1158_v38  ;;  %v279_v17 = vld [vmem:[%s1375_s26 + $0x98] sm:$0xff]  ;;  %v276_v18 = vld [vmem:[%s1375_s26 + $0x80] sm:$0xff]  ;;  %v394_v22 = vld [vmem:[%s1319_s22 + $0x330] sm:$0xff]  ;;  %v1202_v24 = vpack.c.bf16 %v411_v13, %v410_v12 }
  0x34   : > { %1191 = vmatprep.subr.bf16.mxu1 %v1190_v42  ;;  %v363_v21 = vld [vmem:[%s1319_s22 + $0x238] sm:$0xff]  ;;  %v278_v23 = vld [vmem:[%s1375_s26 + $0x90] sm:$0xff]  ;;  %v380_v26 = vld [vmem:[%s1319_s22 + $0x2c0] sm:$0xff] }
  0x35   : > { %485 = vmatmul.mubr.f32.vlgmr.msra.gmra.mrb[0].mxu0 %v260_v48  ;;  %v395_v25 = vld [vmem:[%s1319_s22 + $0x338] sm:$0xff]  ;;  %v381_v27 = vld [vmem:[%s1319_s22 + $0x2c8] sm:$0xff]  ;;  %v412_v28 = vld [vmem:[%s1319_s22 + $0x3c0] sm:$0xff]  ;;  %v1172_v31 = vpack.c.bf16 %v363_v21, %v362_v16 }
  0x36   : > { %570 = vmatmul.mubr.f32.vlgmr.msra.gmra.mrb[0].mxu1 %v262_v49  ;;  %1161 = vmatpush3.bf16.msra.mxu0 %v1160_v50  ;;  %v413_v29 = vld [vmem:[%s1319_s22 + $0x3c8] sm:$0xff]  ;;  %v364_v32 = vld [vmem:[%s1319_s22 + $0x240] sm:$0xff]  ;;  %v287_v33 = vld [vmem:[%s1375_s26 + $0xd8] sm:$0xff]  ;;  %v1204_v35 = vpack.c.bf16 %v395_v25, %v394_v22  ;;  %v1174_v36 = vpack.c.bf16 %v381_v27, %v380_v26 }
  0x37   : > { %1193 = vmatpush3.bf16.msra.mxu1 %v1192_v51  ;;  %1163 = vmatprep.subr.bf16.mxu0 %v1162_v52  ;;  %v285_v30 = vld [vmem:[%s1375_s26 + $0xc8] sm:$0xff]  ;;  %v284_v34 = vld [vmem:[%s1375_s26 + $0xc0] sm:$0xff]  ;;  %v286_v39 = vld [vmem:[%s1375_s26 + $0xd0] sm:$0xff]  ;;  %v1206_v40 = vpack.c.bf16 %v413_v29, %v412_v28 }
  0x38   : > { %1195 = vmatprep.subr.bf16.mxu1 %v1194_v56  ;;  %489 = vmatprep.mubr.f32.mxu0 %v269_v62  ;;  %v365_v37 = vld [vmem:[%s1319_s22 + $0x248] sm:$0xff]  ;;  %v396_v38 = vld [vmem:[%s1319_s22 + $0x340] sm:$0xff]  ;;  %v382_v42 = vld [vmem:[%s1319_s22 + $0x2d0] sm:$0xff] }
  0x39   : > { %574 = vmatprep.mubr.f32.mxu1 %v271_v1  ;;  %490 = vmatmul.mubr.f32.gmra.mrb[2].mxu0 %v268_v2  ;;  %v397_v41 = vld [vmem:[%s1319_s22 + $0x348] sm:$0xff]  ;;  %v383_v43 = vld [vmem:[%s1319_s22 + $0x2d8] sm:$0xff]  ;;  %v414_v44 = vld [vmem:[%s1319_s22 + $0x3d0] sm:$0xff]  ;;  %v1176_v46 = vpack.c.bf16 %v365_v37, %v364_v32 }
  0x3a   : > { %1165 = vmatpush3.bf16.msra.mxu0 %v1164_v63  ;;  %575 = vmatmul.mubr.f32.gmra.mrb[2].mxu1 %v270_v7  ;;  %v415_v45 = vld [vmem:[%s1319_s22 + $0x3d8] sm:$0xff]  ;;  %v265_v47 = vld [vmem:[%s1375_s26 + $0x28] sm:$0xff]  ;;  %v1208_v49 = vpack.c.bf16 %v397_v41, %v396_v38  ;;  %v1178_v50 = vpack.c.bf16 %v383_v43, %v382_v42  ;;  %v366_v51 = vld [vmem:[%s1319_s22 + $0x250] sm:$0xff] }
  0x3b   : > { %1197 = vmatpush3.bf16.msra.mxu1 %v1196_v3  ;;  %1167 = vmatprep.subr.bf16.mxu0 %v1166_v4  ;;  %v267_v48 = vld [vmem:[%s1375_s26 + $0x38] sm:$0xff]  ;;  %v398_v53 = vld [vmem:[%s1319_s22 + $0x350] sm:$0xff]  ;;  %v1210_v54 = vpack.c.bf16 %v415_v45, %v414_v44  ;;  %v384_v56 = vld [vmem:[%s1319_s22 + $0x2e0] sm:$0xff] }
  0x3c   : > { %1199 = vmatprep.subr.bf16.mxu1 %v1198_v8  ;;  %494 = vmatprep.mubr.f32.mxu0 %v277_v14  ;;  %v367_v52 = vld [vmem:[%s1319_s22 + $0x258] sm:$0xff]  ;;  %v385_v57 = vld [vmem:[%s1319_s22 + $0x2e8] sm:$0xff]  ;;  %v416_v58 = vld [vmem:[%s1319_s22 + $0x3e0] sm:$0xff] }
  0x3d   : > { %579 = vmatprep.mubr.f32.mxu1 %v279_v17  ;;  %495 = vmatmul.mubr.f32.gmra.mrb[4].mxu0 %v276_v18  ;;  %v399_v55 = vld [vmem:[%s1319_s22 + $0x358] sm:$0xff]  ;;  %v417_v59 = vld [vmem:[%s1319_s22 + $0x3e8] sm:$0xff]  ;;  %v1180_v60 = vpack.c.bf16 %v367_v52, %v366_v51  ;;  %v1182_v62 = vpack.c.bf16 %v385_v57, %v384_v56  ;;  %v368_v63 = vld [vmem:[%s1319_s22 + $0x260] sm:$0xff] }
  0x3e   : > { %1169 = vmatpush3.bf16.msra.mxu0 %v1168_v15  ;;  %580 = vmatmul.mubr.f32.gmra.mrb[4].mxu1 %v278_v23  ;;  %v1212_v61 = vpack.c.bf16 %v399_v55, %v398_v53  ;;  %v369_v0 = vld [vmem:[%s1319_s22 + $0x268] sm:$0xff]  ;;  %v400_v1 = vld [vmem:[%s1319_s22 + $0x360] sm:$0xff]  ;;  %v1214_v2 = vpack.c.bf16 %v417_v59, %v416_v58  ;;  %v386_v4 = vld [vmem:[%s1319_s22 + $0x2f0] sm:$0xff] }
  0x3f   : > { %1201 = vmatpush3.bf16.msra.mxu1 %v1200_v19  ;;  %1171 = vmatprep.subr.bf16.mxu0 %v1170_v20  ;;  %v401_v3 = vld [vmem:[%s1319_s22 + $0x368] sm:$0xff]  ;;  %v387_v5 = vld [vmem:[%s1319_s22 + $0x2f8] sm:$0xff]  ;;  %v418_v6 = vld [vmem:[%s1319_s22 + $0x3f0] sm:$0xff]  ;;  %v1184_v8 = vpack.c.bf16 %v369_v0, %v368_v63 }
  0x40   : > { %1203 = vmatprep.subr.bf16.mxu1 %v1202_v24  ;;  %499 = vmatprep.mubr.f32.mxu0 %v285_v30  ;;  %v419_v7 = vld [vmem:[%s1319_s22 + $0x3f8] sm:$0xff]  ;;  %v1216_v9 = vpack.c.bf16 %v401_v3, %v400_v1  ;;  %v1186_v10 = vpack.c.bf16 %v387_v5, %v386_v4  ;;  %v370_v11 = vld [vmem:[%s1319_s22 + $0x270] sm:$0xff]  ;;  %v264_v18 = vld [vmem:[%s1375_s26 + $0x20] sm:$0xff] }
  0x41   : > { %584 = vmatprep.mubr.f32.mxu1 %v287_v33  ;;  %500 = vmatmul.mubr.f32.gmra.mrb[6].mxu0 %v284_v34  ;;  %v371_v12 = vld [vmem:[%s1319_s22 + $0x278] sm:$0xff]  ;;  %v1218_v13 = vpack.c.bf16 %v419_v7, %v418_v6  ;;  %v402_v14 = vld [vmem:[%s1319_s22 + $0x370] sm:$0xff]  ;;  %v273_v20 = vld [vmem:[%s1375_s26 + $0x68] sm:$0xff] }
  0x42   : > { %1173 = vmatpush3.bf16.msra.mxu0 %v1172_v31  ;;  %585 = vmatmul.mubr.f32.gmra.mrb[6].mxu1 %v286_v39  ;;  %v403_v15 = vld [vmem:[%s1319_s22 + $0x378] sm:$0xff]  ;;  %v1188_v16 = vpack.c.bf16 %v371_v12, %v370_v11  ;;  %v266_v19 = vld [vmem:[%s1375_s26 + $0x30] sm:$0xff]  ;;  %v272_v22 = vld [vmem:[%s1375_s26 + $0x60] sm:$0xff] }
  0x43   : > { %1205 = vmatpush3.bf16.msra.mxu1 %v1204_v35  ;;  %1175 = vmatprep.subr.bf16.mxu0 %v1174_v36  ;;  %v1220_v17 = vpack.c.bf16 %v403_v15, %v402_v14  ;;  %v275_v21 = vld [vmem:[%s1375_s26 + $0x78] sm:$0xff]  ;;  %v274_v23 = vld [vmem:[%s1375_s26 + $0x70] sm:$0xff]  ;;  %v281_v24 = vld [vmem:[%s1375_s26 + $0xa8] sm:$0xff] }
  0x44   : > { %1207 = vmatprep.subr.bf16.mxu1 %v1206_v40  ;;  %654 = vmatprep.mubr.f32.mxu0 %v265_v47  ;;  %v283_v25 = vld [vmem:[%s1375_s26 + $0xb8] sm:$0xff]  ;;  %v280_v26 = vld [vmem:[%s1375_s26 + $0xa0] sm:$0xff]  ;;  %v282_v27 = vld [vmem:[%s1375_s26 + $0xb0] sm:$0xff] }
  0x45   : > { %739 = vmatprep.mubr.f32.mxu1 %v267_v48  ;;  %v289_v28 = vld [vmem:[%s1375_s26 + $0xe8] sm:$0xff]  ;;  %v291_v29 = vld [vmem:[%s1375_s26 + $0xf8] sm:$0xff]  ;;  %v288_v30 = vld [vmem:[%s1375_s26 + $0xe0] sm:$0xff] }
  0x46   : > { %1177 = vmatpush3.bf16.msra.mxu0 %v1176_v46  ;;  %v290_v31 = vld [vmem:[%s1375_s26 + $0xf0] sm:$0xff]  ;;  %v911_v4 = vld [vmem:[%s1514_s2] ss:$0 sm:$0xff] }
  0x47   : > { %1209 = vmatpush3.bf16.msra.mxu1 %v1208_v49  ;;  %1179 = vmatprep.subr.bf16.mxu0 %v1178_v50 }
  0x48   : > { %1211 = vmatprep.subr.bf16.mxu1 %v1210_v54 }
  0x4a   : > { %1181 = vmatpush3.bf16.msra.mxu0 %v1180_v60 }
  0x4b   : > { %1213 = vmatpush3.bf16.msra.mxu1 %v1212_v61  ;;  %1183 = vmatprep.subr.bf16.mxu0 %v1182_v62 }
  0x4c   : > { %1215 = vmatprep.subr.bf16.mxu1 %v1214_v2 }
  0x4e   : > { %1185 = vmatpush3.bf16.msra.mxu0 %v1184_v8 }
  0x4f   : > { %1217 = vmatpush3.bf16.msra.mxu1 %v1216_v9  ;;  %1187 = vmatprep.subr.bf16.mxu0 %v1186_v10  ;;  %v912_v10 = vld [vmem:[%s1515_s3] ss:$0 sm:$0xff] }
  0x50   : > { %1219 = vmatprep.subr.bf16.mxu1 %v1218_v13 }
  0x52   : > { %1189 = vmatpush3.bf16.msra.mxu0 %v1188_v16 }
  0x53   : > { %1221 = vmatpush3.bf16.msra.mxu1 %v1220_v17 }
  0x55   : > { %655 = vmatmul.mubr.f32.vlgmr.msra.gmra.mrb[8].mxu0 %v264_v18 }
  0x56   : > { %740 = vmatmul.mubr.f32.vlgmr.msra.gmra.mrb[8].mxu1 %v266_v19  ;;  %659 = vmatprep.mubr.f32.mxu0 %v273_v20 }
  0x57   : > { %744 = vmatprep.mubr.f32.mxu1 %v275_v21 }
  0x59   : > { %660 = vmatmul.mubr.f32.gmra.mrb[10].mxu0 %v272_v22 }
  0x5a   : > { %745 = vmatmul.mubr.f32.gmra.mrb[10].mxu1 %v274_v23  ;;  %664 = vmatprep.mubr.f32.mxu0 %v281_v24 }
  0x5b   : > { %749 = vmatprep.mubr.f32.mxu1 %v283_v25 }
  0x5d   : > { %665 = vmatmul.mubr.f32.gmra.mrb[12].mxu0 %v280_v26 }
  0x5e   : > { %750 = vmatmul.mubr.f32.gmra.mrb[12].mxu1 %v282_v27  ;;  %669 = vmatprep.mubr.f32.mxu0 %v289_v28 }
  0x5f   : > { %754 = vmatprep.mubr.f32.mxu1 %v291_v29 }
  0x61   : > { %670 = vmatmul.mubr.f32.gmra.mrb[14].mxu0 %v288_v30 }
  0x62   : > { %755 = vmatmul.mubr.f32.gmra.mrb[14].mxu1 %v290_v31 }
 0x108   : > { %v950_v32 = vpop.f32.mrb[0].mxu0 }
 0x109   : > { %v994_v33 = vpop.f32.mrb[0].mxu1  ;;  %v951_v34 = vpop.f32.mrb[1].mxu0 }
 0x10a   : > { %v952_v35 = vadd.f32 %v951_v34, %v950_v32  ;;  %v995_v36 = vpop.f32.mrb[1].mxu1 }
 0x10b   : > { %v996_v37 = vadd.f32 %v995_v36, %v994_v33 }
 0x10c   : > { %v953_v38 = vpop.f32.mrb[2].mxu0 }
 0x10d   : > { %v572_v39 = vadd.f32 %v996_v37, %v952_v35  ;;  %v997_v40 = vpop.f32.mrb[2].mxu1  ;;  %v954_v41 = vpop.f32.mrb[3].mxu0 }
 0x10e   : > { %v955_v42 = vadd.f32 %v954_v41, %v953_v38  ;;  %v998_v43 = vpop.f32.mrb[3].mxu1 }
 0x10f   : > { %v999_v44 = vadd.f32 %v998_v43, %v997_v40 }
 0x110   : > { %v956_v45 = vpop.f32.mrb[4].mxu0 }
 0x111   : > { %v577_v46 = vadd.f32 %v999_v44, %v955_v42  ;;  %v1000_v47 = vpop.f32.mrb[4].mxu1  ;;  %v957_v48 = vpop.f32.mrb[5].mxu0 }
 0x112   : > { %v958_v49 = vadd.f32 %v957_v48, %v956_v45  ;;  %v1001_v50 = vpop.f32.mrb[5].mxu1 }
 0x113   : > { %v1002_v51 = vadd.f32 %v1001_v50, %v1000_v47 }
 0x114   : > { %v959_v52 = vpop.f32.mrb[6].mxu0 }
 0x115   : > { %v582_v53 = vadd.f32 %v1002_v51, %v958_v49  ;;  %v1003_v54 = vpop.f32.mrb[6].mxu1  ;;  %v960_v55 = vpop.f32.mrb[7].mxu0 }
 0x116   : > { %v961_v56 = vadd.f32 %v960_v55, %v959_v52  ;;  %v1004_v57 = vpop.f32.mrb[7].mxu1 }
 0x117   : > { %v1005_v58 = vadd.f32 %v1004_v57, %v1003_v54 }
 0x119   : > { %v587_v59 = vadd.f32 %v1005_v58, %v961_v56 }
 0x128   : > { %v1038_v60 = vpop.f32.mrb[8].mxu0 }
 0x129   : > { %v1039_v61 = vpop.f32.mrb[9].mxu0  ;;  %v1082_v62 = vpop.f32.mrb[8].mxu1 }
 0x12a   : > { %v1040_v63 = vadd.f32 %v1039_v61, %v1038_v60  ;;  %v1083_v0 = vpop.f32.mrb[9].mxu1 }
 0x12b   : > { %v1084_v1 = vadd.f32 %v1083_v0, %v1082_v62 }
 0x12c   : > { %v657_v2 = vadd.f32 %v1040_v63, %v572_v39  ;;  %v1041_v3 = vpop.f32.mrb[10].mxu0 }
 0x12d   : > { %v1042_v5 = vpop.f32.mrb[11].mxu0  ;;  %v1085_v6 = vpop.f32.mrb[10].mxu1 }
 0x12e   : > { %v742_v7 = vadd.f32 %v1084_v1, %v657_v2  ;;  %v1043_v8 = vadd.f32 %v1042_v5, %v1041_v3  ;;  %v1086_v9 = vpop.f32.mrb[11].mxu1 }
 0x12f   : > { %v1087_v11 = vadd.f32 %v1086_v9, %v1085_v6 }
 0x130   : > { %v767_v12 = vmul.f32 %v911_v4, %v742_v7  ;;  %v662_v13 = vadd.f32 %v1043_v8, %v577_v46  ;;  %v1044_v14 = vpop.f32.mrb[12].mxu0 }
 0x131   : > { %v1045_v15 = vpop.f32.mrb[13].mxu0  ;;  %v1088_v16 = vpop.f32.mrb[12].mxu1 }
 0x132   : > { %v778_v17 = vadd.f32 %v912_v10, %v767_v12  ;;  %v747_v18 = vadd.f32 %v1087_v11, %v662_v13  ;;  %v1046_v19 = vadd.f32 %v1045_v15, %v1044_v14  ;;  %v1089_v20 = vpop.f32.mrb[13].mxu1 }
 0x133   : > { %v1090_v21 = vadd.f32 %v1089_v20, %v1088_v16 }
 0x134   : > { %vm782_vm0 = vcmp.gt.f32.partialorder %v778_v17, 0.0  ;;  %v786_v22 = vmul.f32 0.2, %v778_v17  ;;  %v768_v23 = vmul.f32 %v911_v4, %v747_v18  ;;  %v667_v24 = vadd.f32 %v1046_v19, %v582_v53  ;;  %v1047_v25 = vpop.f32.mrb[14].mxu0 }
 0x135   : > { %v1048_v26 = vpop.f32.mrb[15].mxu0  ;;  %v1091_v27 = vpop.f32.mrb[14].mxu1 }
 0x136   : > { %v790_v28 = vsel %vm782_vm0, %v778_v17, %v786_v22  ;;  %v779_v29 = vadd.f32 %v912_v10, %v768_v23  ;;  %v752_v30 = vadd.f32 %v1090_v21, %v667_v24  ;;  %v1049_v31 = vadd.f32 %v1048_v26, %v1047_v25  ;;  %v1092_v32 = vpop.f32.mrb[15].mxu1 }
 0x137   : > { %794 = vst [vmem:[%s1497_s8] sm:$0xff] %v790_v28  ;;  %v1093_v33 = vadd.f32 %v1092_v32, %v1091_v27 }
 0x138   : > { %vm783_vm1 = vcmp.gt.f32.partialorder %v779_v29, 0.0  ;;  %v787_v34 = vmul.f32 0.2, %v779_v29  ;;  %v769_v35 = vmul.f32 %v911_v4, %v752_v30  ;;  %v672_v36 = vadd.f32 %v1049_v31, %v587_v59 }
 0x13a   : > { %v791_v37 = vsel %vm783_vm1, %v779_v29, %v787_v34  ;;  %v780_v38 = vadd.f32 %v912_v10, %v769_v35  ;;  %v757_v39 = vadd.f32 %v1093_v33, %v672_v36 }
 0x13b   : > { %795 = vst [vmem:[%s1497_s8 + $0x8] sm:$0xff] %v791_v37 }
 0x13c   : > { %vm784_vm2 = vcmp.gt.f32.partialorder %v780_v38, 0.0  ;;  %v788_v40 = vmul.f32 0.2, %v780_v38  ;;  %v770_v41 = vmul.f32 %v911_v4, %v757_v39 }
 0x13e   : > { %v792_v42 = vsel %vm784_vm2, %v780_v38, %v788_v40  ;;  %v781_v43 = vadd.f32 %v912_v10, %v770_v41 }
 0x13f   : > { %796 = vst [vmem:[%s1497_s8 + $0x10] sm:$0xff] %v792_v42 }
 0x140   : > { %vm785_vm3 = vcmp.gt.f32.partialorder %v781_v43, 0.0  ;;  %v789_v44 = vmul.f32 0.2, %v781_v43 }
 0x142   : > { %v793_v45 = vsel %vm785_vm3, %v781_v43, %v789_v44 }
 0x143   : > { %797 = vst [vmem:[%s1497_s8 + $0x18] sm:$0xff] %v793_v45 }
 0x144 PF: > { %s14_s17 = sadd.s32 1, %s1268_s17   ;;  %s1517_s15 = smov %s1264_s16 }
 0x145   : > { %p11_p5 = scmp.ge.s32.totalorder %s14_s17, 6   ;;  %s1518_s16 = smov %s1520_s18 }
 0x147   :  { %13 = sbr.rel (!%p11_p5) target bundleno = 2 (0x2), region = 69 }

// kernel: _lambda_.12
= control target key start
LH: loop header
LB: loop body
LE: loop exit
PB: predicated region body
PF: predicated region fallthrough
CT: control target
= control target key end

     0   :  { %s1205_s15 = smov 0   ;;  %s1207_s16 = smov 0   ;;  %s1441_s0 = inlined_call_operand.vmem [shape: f32[4,128,512], index: 0, kind: input, shape index: {}]   ;;  %s1442_s1 = inlined_call_operand.vmem [shape: f32[4,512,128], index: 1, kind: input, shape index: {}]   ;;  %s1443_s2 = inlined_call_operand.vmem [shape: f32[1,128], index: 2, kind: input, shape index: {}]   ;;  %s1444_s3 = inlined_call_operand.vmem [shape: f32[1,128], index: 3, kind: input, shape index: {}]   ;;  %s1445_s4 = inlined_call_operand.vmem [shape: f32[4,128,128], index: 4, kind: output, shape index: {}]  }
   0x1   :  { %s1209_s17 = smov 0  }
   0x2 LB: > { %s26_s18 = sadd.s32 1, %s1174_s16  ;;  %p894_p0 = scmp.ge.s32.totalorder %s1178_s17, 1  ;;  %s1178_s17 = sphi %s1209_s17, %s14_s17   ;;  %s1174_s16 = sphi %s1207_s16, %s1447_s16   ;;  %s1170_s15 = sphi %s1205_s15, %s1446_s15  }
   0x3   : > { %p28_p1 = scmp.ge.s32.totalorder %s26_s18, 4  ;;  %p194_p2 = scmp.lt.s32.totalorder %s1178_s17, 5 }
   0x5   : > { %s1449_s18 = smov (%p28_p1, %s26_s18), 0  ;;  %p195_p3 = pnand %p894_p0, %p194_p2 }
   0x6   : > { %p235_p4 = scmp.lt.s32.totalorder (!%p195_p3), %s1170_s15, 3 }
   0x7   : > { %198 = sbr.rel (%p195_p3) target bundleno = 339 (0x153), region = 36 }
   0xe   : > { %s1451_s15 = smov (!%p235_p4, %s1170_s15), 3 }
   0xf   : > { %s905_s19 = sshll.u32 %s1451_s15, 9  ;;  %s907_s30 = sshll.u32 %s1451_s15, 7 }
  0x10   : > { %s1231_s22 = scalar_lea.vmem %s1442_s1, %s905_s19  ;;  %s1288_s25 = scalar_lea.vmem %s1441_s0, %s905_s19 }
  0x11   : > { %v340_v0 = vld [vmem:[%s1231_s22 + $0x80] sm:$0xff]  ;;  %v341_v1 = vld [vmem:[%s1231_s22 + $0x88] sm:$0xff]  ;;  %v342_v11 = vld [vmem:[%s1231_s22 + $0x90] sm:$0xff]  ;;  %s1384_s7 = scalar_lea.vmem %s1445_s4, %s907_s30 }
  0x12   : > { %v372_v2 = vld [vmem:[%s1231_s22 + $0x180] sm:$0xff]  ;;  %v1068_v3 = vpack.c.bf16 %v341_v1, %v340_v0  ;;  %v373_v4 = vld [vmem:[%s1231_s22 + $0x188] sm:$0xff]  ;;  %v343_v13 = vld [vmem:[%s1231_s22 + $0x98] sm:$0xff] }
  0x13   : > { %v324_v5 = vld [vmem:[%s1231_s22] sm:$0xff]  ;;  %v325_v6 = vld [vmem:[%s1231_s22 + $0x8] sm:$0xff]  ;;  %v1100_v7 = vpack.c.bf16 %v373_v4, %v372_v2  ;;  %v374_v14 = vld [vmem:[%s1231_s22 + $0x190] sm:$0xff]  ;;  %v1072_v16 = vpack.c.bf16 %v343_v13, %v342_v11 }
  0x14   : > { %v1070_v8 = vpack.c.bf16 %v325_v6, %v324_v5  ;;  %v356_v9 = vld [vmem:[%s1231_s22 + $0x100] sm:$0xff]  ;;  %v357_v10 = vld [vmem:[%s1231_s22 + $0x108] sm:$0xff]  ;;  %1069 = vmatprep.subr.bf16.mxu0 %v1068_v3  ;;  %v375_v15 = vld [vmem:[%s1231_s22 + $0x198] sm:$0xff] }
  0x15   : > { %v1102_v12 = vpack.c.bf16 %v357_v10, %v356_v9  ;;  %1101 = vmatprep.subr.bf16.mxu1 %v1100_v7  ;;  %v1104_v17 = vpack.c.bf16 %v375_v15, %v374_v14  ;;  %v326_v18 = vld [vmem:[%s1231_s22 + $0x10] sm:$0xff]  ;;  %v327_v19 = vld [vmem:[%s1231_s22 + $0x18] sm:$0xff]  ;;  %v344_v23 = vld [vmem:[%s1231_s22 + $0xa0] sm:$0xff] }
  0x16   : > { %1071 = vmatpush3.bf16.msra.mxu0 %v1070_v8  ;;  %v358_v20 = vld [vmem:[%s1231_s22 + $0x110] sm:$0xff]  ;;  %v1074_v21 = vpack.c.bf16 %v327_v19, %v326_v18  ;;  %v359_v22 = vld [vmem:[%s1231_s22 + $0x118] sm:$0xff]  ;;  %v345_v24 = vld [vmem:[%s1231_s22 + $0xa8] sm:$0xff] }
  0x17   : > { %1103 = vmatpush3.bf16.msra.mxu1 %v1102_v12  ;;  %1073 = vmatprep.subr.bf16.mxu0 %v1072_v16  ;;  %v1106_v25 = vpack.c.bf16 %v359_v22, %v358_v20  ;;  %v1076_v26 = vpack.c.bf16 %v345_v24, %v344_v23  ;;  %v376_v27 = vld [vmem:[%s1231_s22 + $0x1a0] sm:$0xff]  ;;  %v377_v28 = vld [vmem:[%s1231_s22 + $0x1a8] sm:$0xff]  ;;  %v346_v35 = vld [vmem:[%s1231_s22 + $0xb0] sm:$0xff] }
  0x18   : > { %1105 = vmatprep.subr.bf16.mxu1 %v1104_v17  ;;  %v328_v29 = vld [vmem:[%s1231_s22 + $0x20] sm:$0xff]  ;;  %v1108_v30 = vpack.c.bf16 %v377_v28, %v376_v27  ;;  %v329_v31 = vld [vmem:[%s1231_s22 + $0x28] sm:$0xff]  ;;  %v347_v36 = vld [vmem:[%s1231_s22 + $0xb8] sm:$0xff] }
  0x19   : > { %v360_v32 = vld [vmem:[%s1231_s22 + $0x120] sm:$0xff]  ;;  %v361_v33 = vld [vmem:[%s1231_s22 + $0x128] sm:$0xff]  ;;  %v1078_v34 = vpack.c.bf16 %v329_v31, %v328_v29  ;;  %v378_v37 = vld [vmem:[%s1231_s22 + $0x1b0] sm:$0xff]  ;;  %v1080_v39 = vpack.c.bf16 %v347_v36, %v346_v35 }
  0x1a   : > { %1075 = vmatpush3.bf16.msra.mxu0 %v1074_v21  ;;  %v1110_v38 = vpack.c.bf16 %v361_v33, %v360_v32  ;;  %v379_v40 = vld [vmem:[%s1231_s22 + $0x1b8] sm:$0xff]  ;;  %v330_v41 = vld [vmem:[%s1231_s22 + $0x30] sm:$0xff]  ;;  %v348_v46 = vld [vmem:[%s1231_s22 + $0xc0] sm:$0xff] }
  0x1b   : > { %1107 = vmatpush3.bf16.msra.mxu1 %v1106_v25  ;;  %1077 = vmatprep.subr.bf16.mxu0 %v1076_v26  ;;  %v331_v42 = vld [vmem:[%s1231_s22 + $0x38] sm:$0xff]  ;;  %v1112_v43 = vpack.c.bf16 %v379_v40, %v378_v37  ;;  %v362_v44 = vld [vmem:[%s1231_s22 + $0x130] sm:$0xff]  ;;  %v349_v47 = vld [vmem:[%s1231_s22 + $0xc8] sm:$0xff] }
  0x1c   : > { %1109 = vmatprep.subr.bf16.mxu1 %v1108_v30  ;;  %v363_v45 = vld [vmem:[%s1231_s22 + $0x138] sm:$0xff]  ;;  %v380_v48 = vld [vmem:[%s1231_s22 + $0x1c0] sm:$0xff]  ;;  %v381_v49 = vld [vmem:[%s1231_s22 + $0x1c8] sm:$0xff]  ;;  %v1082_v50 = vpack.c.bf16 %v331_v42, %v330_v41  ;;  %v1084_v52 = vpack.c.bf16 %v349_v47, %v348_v46 }
  0x1d   : > { %v1114_v51 = vpack.c.bf16 %v363_v45, %v362_v44  ;;  %v332_v53 = vld [vmem:[%s1231_s22 + $0x40] sm:$0xff]  ;;  %v333_v54 = vld [vmem:[%s1231_s22 + $0x48] sm:$0xff]  ;;  %v1116_v56 = vpack.c.bf16 %v381_v49, %v380_v48  ;;  %v350_v58 = vld [vmem:[%s1231_s22 + $0xd0] sm:$0xff] }
  0x1e   : > { %1079 = vmatpush3.bf16.msra.mxu0 %v1078_v34  ;;  %v364_v55 = vld [vmem:[%s1231_s22 + $0x140] sm:$0xff]  ;;  %v365_v57 = vld [vmem:[%s1231_s22 + $0x148] sm:$0xff]  ;;  %v351_v59 = vld [vmem:[%s1231_s22 + $0xd8] sm:$0xff]  ;;  %v1086_v62 = vpack.c.bf16 %v333_v54, %v332_v53 }
  0x1f   : > { %1111 = vmatpush3.bf16.msra.mxu1 %v1110_v38  ;;  %1081 = vmatprep.subr.bf16.mxu0 %v1080_v39  ;;  %v382_v60 = vld [vmem:[%s1231_s22 + $0x1d0] sm:$0xff]  ;;  %v383_v61 = vld [vmem:[%s1231_s22 + $0x1d8] sm:$0xff]  ;;  %v1118_v63 = vpack.c.bf16 %v365_v57, %v364_v55  ;;  %v1088_v0 = vpack.c.bf16 %v351_v59, %v350_v58  ;;  %v352_v6 = vld [vmem:[%s1231_s22 + $0xe0] sm:$0xff] }
  0x20   : > { %1113 = vmatprep.subr.bf16.mxu1 %v1112_v43  ;;  %v334_v1 = vld [vmem:[%s1231_s22 + $0x50] sm:$0xff]  ;;  %v335_v2 = vld [vmem:[%s1231_s22 + $0x58] sm:$0xff]  ;;  %v1120_v4 = vpack.c.bf16 %v383_v61, %v382_v60  ;;  %v353_v7 = vld [vmem:[%s1231_s22 + $0xe8] sm:$0xff] }
  0x21   : > { %v366_v3 = vld [vmem:[%s1231_s22 + $0x150] sm:$0xff]  ;;  %v367_v5 = vld [vmem:[%s1231_s22 + $0x158] sm:$0xff]  ;;  %v384_v8 = vld [vmem:[%s1231_s22 + $0x1e0] sm:$0xff]  ;;  %v1090_v10 = vpack.c.bf16 %v335_v2, %v334_v1  ;;  %v1092_v14 = vpack.c.bf16 %v353_v7, %v352_v6 }
  0x22   : > { %1083 = vmatpush3.bf16.msra.mxu0 %v1082_v50  ;;  %v385_v9 = vld [vmem:[%s1231_s22 + $0x1e8] sm:$0xff]  ;;  %v336_v11 = vld [vmem:[%s1231_s22 + $0x60] sm:$0xff]  ;;  %v1122_v13 = vpack.c.bf16 %v367_v5, %v366_v3  ;;  %v263_v17 = vld [vmem:[%s1288_s25 + $0x18] sm:$0xff] }
  0x23   : > { %1115 = vmatpush3.bf16.msra.mxu1 %v1114_v51  ;;  %1085 = vmatprep.subr.bf16.mxu0 %v1084_v52  ;;  %v337_v12 = vld [vmem:[%s1231_s22 + $0x68] sm:$0xff]  ;;  %v368_v15 = vld [vmem:[%s1231_s22 + $0x160] sm:$0xff]  ;;  %v1124_v18 = vpack.c.bf16 %v385_v9, %v384_v8  ;;  %v354_v20 = vld [vmem:[%s1231_s22 + $0xf0] sm:$0xff] }
  0x24   : > { %1117 = vmatprep.subr.bf16.mxu1 %v1116_v56  ;;  %v261_v16 = vld [vmem:[%s1288_s25 + $0x8] sm:$0xff]  ;;  %v355_v21 = vld [vmem:[%s1231_s22 + $0xf8] sm:$0xff]  ;;  %v386_v22 = vld [vmem:[%s1231_s22 + $0x1f0] sm:$0xff]  ;;  %597 = vmatprep.mubr.f32.mxu1 %v263_v17  ;;  %v1094_v24 = vpack.c.bf16 %v337_v12, %v336_v11 }
  0x25   : > { %v369_v19 = vld [vmem:[%s1231_s22 + $0x168] sm:$0xff]  ;;  %452 = vmatprep.mubr.f32.mxu0 %v261_v16  ;;  %v387_v23 = vld [vmem:[%s1231_s22 + $0x1f8] sm:$0xff]  ;;  %v1096_v26 = vpack.c.bf16 %v355_v21, %v354_v20  ;;  %v338_v27 = vld [vmem:[%s1231_s22 + $0x70] sm:$0xff] }
  0x26   : > { %1087 = vmatpush3.bf16.msra.mxu0 %v1086_v62  ;;  %v1126_v25 = vpack.c.bf16 %v369_v19, %v368_v15  ;;  %v339_v28 = vld [vmem:[%s1231_s22 + $0x78] sm:$0xff]  ;;  %v1128_v29 = vpack.c.bf16 %v387_v23, %v386_v22  ;;  %v370_v30 = vld [vmem:[%s1231_s22 + $0x170] sm:$0xff]  ;;  %v260_v34 = vld [vmem:[%s1288_s25] sm:$0xff] }
  0x27   : > { %1119 = vmatpush3.bf16.msra.mxu1 %v1118_v63  ;;  %1089 = vmatprep.subr.bf16.mxu0 %v1088_v0  ;;  %v371_v31 = vld [vmem:[%s1231_s22 + $0x178] sm:$0xff]  ;;  %v1098_v32 = vpack.c.bf16 %v339_v28, %v338_v27  ;;  %v262_v35 = vld [vmem:[%s1288_s25 + $0x10] sm:$0xff]  ;;  %v265_v36 = vld [vmem:[%s1288_s25 + $0x28] sm:$0xff] }
  0x28   : > { %1121 = vmatprep.subr.bf16.mxu1 %v1120_v4  ;;  %v1130_v33 = vpack.c.bf16 %v371_v31, %v370_v30  ;;  %v267_v37 = vld [vmem:[%s1288_s25 + $0x38] sm:$0xff]  ;;  %v264_v38 = vld [vmem:[%s1288_s25 + $0x20] sm:$0xff]  ;;  %v266_v39 = vld [vmem:[%s1288_s25 + $0x30] sm:$0xff] }
  0x29   : > { %v269_v40 = vld [vmem:[%s1288_s25 + $0x48] sm:$0xff]  ;;  %v271_v41 = vld [vmem:[%s1288_s25 + $0x58] sm:$0xff]  ;;  %v268_v42 = vld [vmem:[%s1288_s25 + $0x40] sm:$0xff] }
  0x2a   : > { %1091 = vmatpush3.bf16.msra.mxu0 %v1090_v10  ;;  %v270_v43 = vld [vmem:[%s1288_s25 + $0x50] sm:$0xff]  ;;  %v273_v44 = vld [vmem:[%s1288_s25 + $0x68] sm:$0xff]  ;;  %v275_v45 = vld [vmem:[%s1288_s25 + $0x78] sm:$0xff] }
  0x2b   : > { %1123 = vmatpush3.bf16.msra.mxu1 %v1122_v13  ;;  %1093 = vmatprep.subr.bf16.mxu0 %v1092_v14  ;;  %v272_v46 = vld [vmem:[%s1288_s25 + $0x60] sm:$0xff]  ;;  %v274_v47 = vld [vmem:[%s1288_s25 + $0x70] sm:$0xff]  ;;  %v277_v48 = vld [vmem:[%s1288_s25 + $0x88] sm:$0xff] }
  0x2c   : > { %1125 = vmatprep.subr.bf16.mxu1 %v1124_v18  ;;  %v279_v49 = vld [vmem:[%s1288_s25 + $0x98] sm:$0xff]  ;;  %v276_v50 = vld [vmem:[%s1288_s25 + $0x80] sm:$0xff]  ;;  %v278_v51 = vld [vmem:[%s1288_s25 + $0x90] sm:$0xff] }
  0x2d   : > { %v281_v52 = vld [vmem:[%s1288_s25 + $0xa8] sm:$0xff]  ;;  %v283_v53 = vld [vmem:[%s1288_s25 + $0xb8] sm:$0xff]  ;;  %v280_v54 = vld [vmem:[%s1288_s25 + $0xa0] sm:$0xff] }
  0x2e   : > { %1095 = vmatpush3.bf16.msra.mxu0 %v1094_v24  ;;  %v282_v55 = vld [vmem:[%s1288_s25 + $0xb0] sm:$0xff]  ;;  %v285_v56 = vld [vmem:[%s1288_s25 + $0xc8] sm:$0xff]  ;;  %v287_v57 = vld [vmem:[%s1288_s25 + $0xd8] sm:$0xff] }
  0x2f   : > { %1127 = vmatpush3.bf16.msra.mxu1 %v1126_v25  ;;  %1097 = vmatprep.subr.bf16.mxu0 %v1096_v26  ;;  %v284_v58 = vld [vmem:[%s1288_s25 + $0xc0] sm:$0xff]  ;;  %v286_v59 = vld [vmem:[%s1288_s25 + $0xd0] sm:$0xff]  ;;  %v289_v60 = vld [vmem:[%s1288_s25 + $0xe8] sm:$0xff] }
  0x30   : > { %1129 = vmatprep.subr.bf16.mxu1 %v1128_v29  ;;  %v291_v61 = vld [vmem:[%s1288_s25 + $0xf8] sm:$0xff]  ;;  %v288_v62 = vld [vmem:[%s1288_s25 + $0xe0] sm:$0xff]  ;;  %v290_v63 = vld [vmem:[%s1288_s25 + $0xf0] sm:$0xff] }
  0x31   : > { %v293_v0 = vld [vmem:[%s1288_s25 + $0x108] sm:$0xff]  ;;  %v295_v1 = vld [vmem:[%s1288_s25 + $0x118] sm:$0xff]  ;;  %v292_v2 = vld [vmem:[%s1288_s25 + $0x100] sm:$0xff] }
  0x32   : > { %1099 = vmatpush3.bf16.msra.mxu0 %v1098_v32  ;;  %v294_v3 = vld [vmem:[%s1288_s25 + $0x110] sm:$0xff]  ;;  %v297_v4 = vld [vmem:[%s1288_s25 + $0x128] sm:$0xff]  ;;  %v299_v5 = vld [vmem:[%s1288_s25 + $0x138] sm:$0xff] }
  0x33   : > { %1131 = vmatpush3.bf16.msra.mxu1 %v1130_v33  ;;  %v296_v6 = vld [vmem:[%s1288_s25 + $0x120] sm:$0xff]  ;;  %v298_v7 = vld [vmem:[%s1288_s25 + $0x130] sm:$0xff]  ;;  %v301_v8 = vld [vmem:[%s1288_s25 + $0x148] sm:$0xff] }
  0x34   : > { %v303_v9 = vld [vmem:[%s1288_s25 + $0x158] sm:$0xff]  ;;  %v300_v10 = vld [vmem:[%s1288_s25 + $0x140] sm:$0xff]  ;;  %v302_v11 = vld [vmem:[%s1288_s25 + $0x150] sm:$0xff] }
  0x35   : > { %453 = vmatmul.mubr.f32.vlgmr.msra.gmra.mrb[0].mxu0 %v260_v34  ;;  %v305_v12 = vld [vmem:[%s1288_s25 + $0x168] sm:$0xff]  ;;  %v307_v13 = vld [vmem:[%s1288_s25 + $0x178] sm:$0xff]  ;;  %v304_v14 = vld [vmem:[%s1288_s25 + $0x160] sm:$0xff] }
  0x36   : > { %598 = vmatmul.mubr.f32.vlgmr.msra.gmra.mrb[0].mxu1 %v262_v35  ;;  %457 = vmatprep.mubr.f32.mxu0 %v265_v36  ;;  %v306_v15 = vld [vmem:[%s1288_s25 + $0x170] sm:$0xff]  ;;  %v309_v16 = vld [vmem:[%s1288_s25 + $0x188] sm:$0xff]  ;;  %v311_v17 = vld [vmem:[%s1288_s25 + $0x198] sm:$0xff] }
  0x37   : > { %602 = vmatprep.mubr.f32.mxu1 %v267_v37  ;;  %v308_v18 = vld [vmem:[%s1288_s25 + $0x180] sm:$0xff]  ;;  %v310_v19 = vld [vmem:[%s1288_s25 + $0x190] sm:$0xff]  ;;  %v313_v20 = vld [vmem:[%s1288_s25 + $0x1a8] sm:$0xff] }
  0x38   : > { %v315_v21 = vld [vmem:[%s1288_s25 + $0x1b8] sm:$0xff]  ;;  %v312_v22 = vld [vmem:[%s1288_s25 + $0x1a0] sm:$0xff]  ;;  %v314_v23 = vld [vmem:[%s1288_s25 + $0x1b0] sm:$0xff] }
  0x39   : > { %458 = vmatmul.mubr.f32.gmra.mrb[2].mxu0 %v264_v38  ;;  %v317_v24 = vld [vmem:[%s1288_s25 + $0x1c8] sm:$0xff]  ;;  %v319_v25 = vld [vmem:[%s1288_s25 + $0x1d8] sm:$0xff]  ;;  %v316_v26 = vld [vmem:[%s1288_s25 + $0x1c0] sm:$0xff] }
  0x3a   : > { %603 = vmatmul.mubr.f32.gmra.mrb[2].mxu1 %v266_v39  ;;  %462 = vmatprep.mubr.f32.mxu0 %v269_v40  ;;  %v318_v27 = vld [vmem:[%s1288_s25 + $0x1d0] sm:$0xff]  ;;  %v321_v28 = vld [vmem:[%s1288_s25 + $0x1e8] sm:$0xff]  ;;  %v323_v29 = vld [vmem:[%s1288_s25 + $0x1f8] sm:$0xff] }
  0x3b   : > { %607 = vmatprep.mubr.f32.mxu1 %v271_v41  ;;  %v320_v30 = vld [vmem:[%s1288_s25 + $0x1e0] sm:$0xff]  ;;  %v322_v31 = vld [vmem:[%s1288_s25 + $0x1f0] sm:$0xff] }
  0x3c   : > { %v1371_v38 = vld [vmem:[%s1443_s2] ss:$0 sm:$0xff] }
  0x3d   : > { %463 = vmatmul.mubr.f32.gmra.mrb[4].mxu0 %v268_v42 }
  0x3e   : > { %608 = vmatmul.mubr.f32.gmra.mrb[4].mxu1 %v270_v43  ;;  %467 = vmatprep.mubr.f32.mxu0 %v273_v44  ;;  %v1376_v43 = vld [vmem:[%s1444_s3] ss:$0 sm:$0xff] }
  0x3f   : > { %612 = vmatprep.mubr.f32.mxu1 %v275_v45 }
  0x41   : > { %468 = vmatmul.mubr.f32.gmra.mrb[6].mxu0 %v272_v46 }
  0x42   : > { %613 = vmatmul.mubr.f32.gmra.mrb[6].mxu1 %v274_v47  ;;  %472 = vmatprep.mubr.f32.mxu0 %v277_v48 }
  0x43   : > { %617 = vmatprep.mubr.f32.mxu1 %v279_v49 }
  0x45   : > { %473 = vmatmul.mubr.f32.gmra.mrb[8].mxu0 %v276_v50 }
  0x46   : > { %618 = vmatmul.mubr.f32.gmra.mrb[8].mxu1 %v278_v51  ;;  %477 = vmatprep.mubr.f32.mxu0 %v281_v52 }
  0x47   : > { %622 = vmatprep.mubr.f32.mxu1 %v283_v53 }
  0x49   : > { %478 = vmatmul.mubr.f32.gmra.mrb[10].mxu0 %v280_v54 }
  0x4a   : > { %623 = vmatmul.mubr.f32.gmra.mrb[10].mxu1 %v282_v55  ;;  %482 = vmatprep.mubr.f32.mxu0 %v285_v56 }
  0x4b   : > { %627 = vmatprep.mubr.f32.mxu1 %v287_v57 }
  0x4d   : > { %483 = vmatmul.mubr.f32.gmra.mrb[12].mxu0 %v284_v58 }
  0x4e   : > { %628 = vmatmul.mubr.f32.gmra.mrb[12].mxu1 %v286_v59  ;;  %487 = vmatprep.mubr.f32.mxu0 %v289_v60 }
  0x4f   : > { %632 = vmatprep.mubr.f32.mxu1 %v291_v61 }
  0x51   : > { %488 = vmatmul.mubr.f32.gmra.mrb[14].mxu0 %v288_v62 }
  0x52   : > { %633 = vmatmul.mubr.f32.gmra.mrb[14].mxu1 %v290_v63  ;;  %492 = vmatprep.mubr.f32.mxu0 %v293_v0 }
  0x53   : > { %637 = vmatprep.mubr.f32.mxu1 %v295_v1 }
  0x55   : > { %493 = vmatmul.mubr.f32.gmra.mrb[16].mxu0 %v292_v2 }
  0x56   : > { %638 = vmatmul.mubr.f32.gmra.mrb[16].mxu1 %v294_v3  ;;  %497 = vmatprep.mubr.f32.mxu0 %v297_v4 }
  0x57   : > { %642 = vmatprep.mubr.f32.mxu1 %v299_v5 }
  0x59   : > { %498 = vmatmul.mubr.f32.gmra.mrb[18].mxu0 %v296_v6 }
  0x5a   : > { %643 = vmatmul.mubr.f32.gmra.mrb[18].mxu1 %v298_v7  ;;  %502 = vmatprep.mubr.f32.mxu0 %v301_v8 }
  0x5b   : > { %647 = vmatprep.mubr.f32.mxu1 %v303_v9 }
  0x5d   : > { %503 = vmatmul.mubr.f32.gmra.mrb[20].mxu0 %v300_v10 }
  0x5e   : > { %648 = vmatmul.mubr.f32.gmra.mrb[20].mxu1 %v302_v11  ;;  %507 = vmatprep.mubr.f32.mxu0 %v305_v12 }
  0x5f   : > { %652 = vmatprep.mubr.f32.mxu1 %v307_v13 }
  0x61   : > { %508 = vmatmul.mubr.f32.gmra.mrb[22].mxu0 %v304_v14 }
  0x62   : > { %653 = vmatmul.mubr.f32.gmra.mrb[22].mxu1 %v306_v15  ;;  %512 = vmatprep.mubr.f32.mxu0 %v309_v16 }
  0x63   : > { %657 = vmatprep.mubr.f32.mxu1 %v311_v17 }
  0x65   : > { %513 = vmatmul.mubr.f32.gmra.mrb[24].mxu0 %v308_v18 }
  0x66   : > { %658 = vmatmul.mubr.f32.gmra.mrb[24].mxu1 %v310_v19  ;;  %517 = vmatprep.mubr.f32.mxu0 %v313_v20 }
  0x67   : > { %662 = vmatprep.mubr.f32.mxu1 %v315_v21 }
  0x69   : > { %518 = vmatmul.mubr.f32.gmra.mrb[26].mxu0 %v312_v22 }
  0x6a   : > { %663 = vmatmul.mubr.f32.gmra.mrb[26].mxu1 %v314_v23  ;;  %522 = vmatprep.mubr.f32.mxu0 %v317_v24 }
  0x6b   : > { %667 = vmatprep.mubr.f32.mxu1 %v319_v25 }
  0x6d   : > { %523 = vmatmul.mubr.f32.gmra.mrb[28].mxu0 %v316_v26 }
  0x6e   : > { %668 = vmatmul.mubr.f32.gmra.mrb[28].mxu1 %v318_v27  ;;  %527 = vmatprep.mubr.f32.mxu0 %v321_v28 }
  0x6f   : > { %672 = vmatprep.mubr.f32.mxu1 %v323_v29 }
  0x71   : > { %528 = vmatmul.mubr.f32.gmra.mrb[30].mxu0 %v320_v30 }
  0x72   : > { %673 = vmatmul.mubr.f32.gmra.mrb[30].mxu1 %v322_v31 }
 0x108   : > { %v940_v32 = vpop.f32.mrb[0].mxu0 }
 0x109   : > { %v1020_v33 = vpop.f32.mrb[0].mxu1  ;;  %v941_v34 = vpop.f32.mrb[1].mxu0 }
 0x10a   : > { %v942_v35 = vadd.f32 %v941_v34, %v940_v32  ;;  %v1021_v36 = vpop.f32.mrb[1].mxu1 }
 0x10b   : > { %v1022_v37 = vadd.f32 %v1021_v36, %v1020_v33 }
 0x10c   : > { %v943_v39 = vpop.f32.mrb[2].mxu0 }
 0x10d   : > { %v600_v40 = vadd.f32 %v1022_v37, %v942_v35  ;;  %v1023_v41 = vpop.f32.mrb[2].mxu1  ;;  %v944_v42 = vpop.f32.mrb[3].mxu0 }
 0x10e   : > { %v945_v44 = vadd.f32 %v944_v42, %v943_v39  ;;  %v1024_v45 = vpop.f32.mrb[3].mxu1 }
 0x10f   : > { %v685_v46 = vmul.f32 %v1371_v38, %v600_v40  ;;  %v1025_v47 = vadd.f32 %v1024_v45, %v1023_v41 }
 0x110   : > { %v946_v48 = vpop.f32.mrb[4].mxu0 }
 0x111   : > { %v708_v49 = vadd.f32 %v1376_v43, %v685_v46  ;;  %v605_v50 = vadd.f32 %v1025_v47, %v945_v44  ;;  %v1026_v51 = vpop.f32.mrb[4].mxu1  ;;  %v947_v52 = vpop.f32.mrb[5].mxu0 }
 0x112   : > { %v948_v53 = vadd.f32 %v947_v52, %v946_v48  ;;  %v1027_v54 = vpop.f32.mrb[5].mxu1 }
 0x113   : > { %vm724_vm0 = vcmp.gt.f32.partialorder %v708_v49, 0.0  ;;  %v740_v55 = vmul.f32 0.2, %v708_v49  ;;  %v686_v56 = vmul.f32 %v1371_v38, %v605_v50  ;;  %v1028_v57 = vadd.f32 %v1027_v54, %v1026_v51 }
 0x114   : > { %v949_v58 = vpop.f32.mrb[6].mxu0 }
 0x115   : > { %v756_v59 = vsel %vm724_vm0, %v708_v49, %v740_v55  ;;  %v709_v60 = vadd.f32 %v1376_v43, %v686_v56  ;;  %v610_v61 = vadd.f32 %v1028_v57, %v948_v53  ;;  %v1029_v62 = vpop.f32.mrb[6].mxu1  ;;  %v950_v63 = vpop.f32.mrb[7].mxu0 }
 0x116   : > { %772 = vst [vmem:[%s1384_s7] sm:$0xff] %v756_v59  ;;  %v951_v0 = vadd.f32 %v950_v63, %v949_v58  ;;  %v1030_v1 = vpop.f32.mrb[7].mxu1 }
 0x117   : > { %vm725_vm1 = vcmp.gt.f32.partialorder %v709_v60, 0.0  ;;  %v741_v2 = vmul.f32 0.2, %v709_v60  ;;  %v687_v3 = vmul.f32 %v1371_v38, %v610_v61  ;;  %v1031_v4 = vadd.f32 %v1030_v1, %v1029_v62 }
 0x118   : > { %v952_v5 = vpop.f32.mrb[8].mxu0 }
 0x119   : > { %v757_v6 = vsel %vm725_vm1, %v709_v60, %v741_v2  ;;  %v710_v7 = vadd.f32 %v1376_v43, %v687_v3  ;;  %v615_v8 = vadd.f32 %v1031_v4, %v951_v0  ;;  %v1032_v9 = vpop.f32.mrb[8].mxu1  ;;  %v953_v10 = vpop.f32.mrb[9].mxu0 }
 0x11a   : > { %773 = vst [vmem:[%s1384_s7 + $0x8] sm:$0xff] %v757_v6  ;;  %v954_v11 = vadd.f32 %v953_v10, %v952_v5  ;;  %v1033_v12 = vpop.f32.mrb[9].mxu1 }
 0x11b   : > { %vm726_vm2 = vcmp.gt.f32.partialorder %v710_v7, 0.0  ;;  %v742_v13 = vmul.f32 0.2, %v710_v7  ;;  %v688_v14 = vmul.f32 %v1371_v38, %v615_v8  ;;  %v1034_v15 = vadd.f32 %v1033_v12, %v1032_v9 }
 0x11c   : > { %v955_v16 = vpop.f32.mrb[10].mxu0 }
 0x11d   : > { %v758_v17 = vsel %vm726_vm2, %v710_v7, %v742_v13  ;;  %v711_v18 = vadd.f32 %v1376_v43, %v688_v14  ;;  %v620_v19 = vadd.f32 %v1034_v15, %v954_v11  ;;  %v1035_v20 = vpop.f32.mrb[10].mxu1  ;;  %v956_v21 = vpop.f32.mrb[11].mxu0 }
 0x11e   : > { %774 = vst [vmem:[%s1384_s7 + $0x10] sm:$0xff] %v758_v17  ;;  %v957_v22 = vadd.f32 %v956_v21, %v955_v16  ;;  %v1036_v23 = vpop.f32.mrb[11].mxu1 }
 0x11f   : > { %vm727_vm3 = vcmp.gt.f32.partialorder %v711_v18, 0.0  ;;  %v743_v24 = vmul.f32 0.2, %v711_v18  ;;  %v689_v25 = vmul.f32 %v1371_v38, %v620_v19  ;;  %v1037_v26 = vadd.f32 %v1036_v23, %v1035_v20 }
 0x120   : > { %v958_v27 = vpop.f32.mrb[12].mxu0 }
 0x121   : > { %v759_v28 = vsel %vm727_vm3, %v711_v18, %v743_v24  ;;  %v712_v29 = vadd.f32 %v1376_v43, %v689_v25  ;;  %v625_v30 = vadd.f32 %v1037_v26, %v957_v22  ;;  %v1038_v31 = vpop.f32.mrb[12].mxu1  ;;  %v959_v32 = vpop.f32.mrb[13].mxu0 }
 0x122   : > { %775 = vst [vmem:[%s1384_s7 + $0x18] sm:$0xff] %v759_v28  ;;  %v960_v33 = vadd.f32 %v959_v32, %v958_v27  ;;  %v1039_v34 = vpop.f32.mrb[13].mxu1 }
 0x123   : > { %vm728_vm4 = vcmp.gt.f32.partialorder %v712_v29, 0.0  ;;  %v744_v35 = vmul.f32 0.2, %v712_v29  ;;  %v690_v36 = vmul.f32 %v1371_v38, %v625_v30  ;;  %v1040_v37 = vadd.f32 %v1039_v34, %v1038_v31 }
 0x124   : > { %v961_v39 = vpop.f32.mrb[14].mxu0 }
 0x125   : > { %v760_v40 = vsel %vm728_vm4, %v712_v29, %v744_v35  ;;  %v713_v41 = vadd.f32 %v1376_v43, %v690_v36  ;;  %v630_v42 = vadd.f32 %v1040_v37, %v960_v33  ;;  %v1041_v44 = vpop.f32.mrb[14].mxu1  ;;  %v962_v45 = vpop.f32.mrb[15].mxu0 }
 0x126   : > { %776 = vst [vmem:[%s1384_s7 + $0x20] sm:$0xff] %v760_v40  ;;  %v963_v46 = vadd.f32 %v962_v45, %v961_v39  ;;  %v1042_v47 = vpop.f32.mrb[15].mxu1 }
 0x127   : > { %vm729_vm5 = vcmp.gt.f32.partialorder %v713_v41, 0.0  ;;  %v745_v48 = vmul.f32 0.2, %v713_v41  ;;  %v691_v49 = vmul.f32 %v1371_v38, %v630_v42  ;;  %v1043_v50 = vadd.f32 %v1042_v47, %v1041_v44 }
 0x128   : > { %v964_v51 = vpop.f32.mrb[16].mxu0 }
 0x129   : > { %v761_v52 = vsel %vm729_vm5, %v713_v41, %v745_v48  ;;  %v714_v53 = vadd.f32 %v1376_v43, %v691_v49  ;;  %v635_v54 = vadd.f32 %v1043_v50, %v963_v46  ;;  %v1044_v55 = vpop.f32.mrb[16].mxu1  ;;  %v965_v56 = vpop.f32.mrb[17].mxu0 }
 0x12a   : > { %777 = vst [vmem:[%s1384_s7 + $0x28] sm:$0xff] %v761_v52  ;;  %v966_v57 = vadd.f32 %v965_v56, %v964_v51  ;;  %v1045_v58 = vpop.f32.mrb[17].mxu1 }
 0x12b   : > { %vm730_vm6 = vcmp.gt.f32.partialorder %v714_v53, 0.0  ;;  %v746_v59 = vmul.f32 0.2, %v714_v53  ;;  %v692_v60 = vmul.f32 %v1371_v38, %v635_v54  ;;  %v1046_v61 = vadd.f32 %v1045_v58, %v1044_v55 }
 0x12c   : > { %v967_v62 = vpop.f32.mrb[18].mxu0 }
 0x12d   : > { %v762_v63 = vsel %vm730_vm6, %v714_v53, %v746_v59  ;;  %v715_v0 = vadd.f32 %v1376_v43, %v692_v60  ;;  %v640_v1 = vadd.f32 %v1046_v61, %v966_v57  ;;  %v1047_v2 = vpop.f32.mrb[18].mxu1  ;;  %v968_v3 = vpop.f32.mrb[19].mxu0 }
 0x12e   : > { %778 = vst [vmem:[%s1384_s7 + $0x30] sm:$0xff] %v762_v63  ;;  %v969_v4 = vadd.f32 %v968_v3, %v967_v62  ;;  %v1048_v5 = vpop.f32.mrb[19].mxu1 }
 0x12f   : > { %vm731_vm7 = vcmp.gt.f32.partialorder %v715_v0, 0.0  ;;  %v747_v6 = vmul.f32 0.2, %v715_v0  ;;  %v693_v7 = vmul.f32 %v1371_v38, %v640_v1  ;;  %v1049_v8 = vadd.f32 %v1048_v5, %v1047_v2 }
 0x130   : > { %v970_v9 = vpop.f32.mrb[20].mxu0 }
 0x131   : > { %v763_v10 = vsel %vm731_vm7, %v715_v0, %v747_v6  ;;  %v716_v11 = vadd.f32 %v1376_v43, %v693_v7  ;;  %v645_v12 = vadd.f32 %v1049_v8, %v969_v4  ;;  %v1050_v13 = vpop.f32.mrb[20].mxu1  ;;  %v971_v14 = vpop.f32.mrb[21].mxu0 }
 0x132   : > { %779 = vst [vmem:[%s1384_s7 + $0x38] sm:$0xff] %v763_v10  ;;  %v972_v15 = vadd.f32 %v971_v14, %v970_v9  ;;  %v1051_v16 = vpop.f32.mrb[21].mxu1 }
 0x133   : > { %vm732_vm8 = vcmp.gt.f32.partialorder %v716_v11, 0.0  ;;  %v748_v17 = vmul.f32 0.2, %v716_v11  ;;  %v694_v18 = vmul.f32 %v1371_v38, %v645_v12  ;;  %v1052_v19 = vadd.f32 %v1051_v16, %v1050_v13 }
 0x134   : > { %v973_v20 = vpop.f32.mrb[22].mxu0 }
 0x135   : > { %v764_v21 = vsel %vm732_vm8, %v716_v11, %v748_v17  ;;  %v717_v22 = vadd.f32 %v1376_v43, %v694_v18  ;;  %v650_v23 = vadd.f32 %v1052_v19, %v972_v15  ;;  %v1053_v24 = vpop.f32.mrb[22].mxu1  ;;  %v974_v25 = vpop.f32.mrb[23].mxu0 }
 0x136   : > { %780 = vst [vmem:[%s1384_s7 + $0x40] sm:$0xff] %v764_v21  ;;  %v975_v26 = vadd.f32 %v974_v25, %v973_v20  ;;  %v1054_v27 = vpop.f32.mrb[23].mxu1 }
 0x137   : > { %vm733_vm9 = vcmp.gt.f32.partialorder %v717_v22, 0.0  ;;  %v749_v28 = vmul.f32 0.2, %v717_v22  ;;  %v695_v29 = vmul.f32 %v1371_v38, %v650_v23  ;;  %v1055_v30 = vadd.f32 %v1054_v27, %v1053_v24 }
 0x138   : > { %v976_v31 = vpop.f32.mrb[24].mxu0 }
 0x139   : > { %v765_v32 = vsel %vm733_vm9, %v717_v22, %v749_v28  ;;  %v718_v33 = vadd.f32 %v1376_v43, %v695_v29  ;;  %v655_v34 = vadd.f32 %v1055_v30, %v975_v26  ;;  %v1056_v35 = vpop.f32.mrb[24].mxu1  ;;  %v977_v36 = vpop.f32.mrb[25].mxu0 }
 0x13a   : > { %781 = vst [vmem:[%s1384_s7 + $0x48] sm:$0xff] %v765_v32  ;;  %v978_v37 = vadd.f32 %v977_v36, %v976_v31  ;;  %v1057_v39 = vpop.f32.mrb[25].mxu1 }
 0x13b   : > { %vm734_vm10 = vcmp.gt.f32.partialorder %v718_v33, 0.0  ;;  %v750_v40 = vmul.f32 0.2, %v718_v33  ;;  %v696_v41 = vmul.f32 %v1371_v38, %v655_v34  ;;  %v1058_v42 = vadd.f32 %v1057_v39, %v1056_v35 }
 0x13c   : > { %v979_v44 = vpop.f32.mrb[26].mxu0 }
 0x13d   : > { %v766_v45 = vsel %vm734_vm10, %v718_v33, %v750_v40  ;;  %v719_v46 = vadd.f32 %v1376_v43, %v696_v41  ;;  %v660_v47 = vadd.f32 %v1058_v42, %v978_v37  ;;  %v1059_v48 = vpop.f32.mrb[26].mxu1  ;;  %v980_v49 = vpop.f32.mrb[27].mxu0 }
 0x13e   : > { %782 = vst [vmem:[%s1384_s7 + $0x50] sm:$0xff] %v766_v45  ;;  %v981_v50 = vadd.f32 %v980_v49, %v979_v44  ;;  %v1060_v51 = vpop.f32.mrb[27].mxu1 }
 0x13f   : > { %vm735_vm11 = vcmp.gt.f32.partialorder %v719_v46, 0.0  ;;  %v751_v52 = vmul.f32 0.2, %v719_v46  ;;  %v697_v53 = vmul.f32 %v1371_v38, %v660_v47  ;;  %v1061_v54 = vadd.f32 %v1060_v51, %v1059_v48 }
 0x140   : > { %v982_v55 = vpop.f32.mrb[28].mxu0 }
 0x141   : > { %v767_v56 = vsel %vm735_vm11, %v719_v46, %v751_v52  ;;  %v720_v57 = vadd.f32 %v1376_v43, %v697_v53  ;;  %v665_v58 = vadd.f32 %v1061_v54, %v981_v50  ;;  %v1062_v59 = vpop.f32.mrb[28].mxu1  ;;  %v983_v60 = vpop.f32.mrb[29].mxu0 }
 0x142   : > { %783 = vst [vmem:[%s1384_s7 + $0x58] sm:$0xff] %v767_v56  ;;  %v984_v61 = vadd.f32 %v983_v60, %v982_v55  ;;  %v1063_v62 = vpop.f32.mrb[29].mxu1 }
 0x143   : > { %vm736_vm12 = vcmp.gt.f32.partialorder %v720_v57, 0.0  ;;  %v752_v63 = vmul.f32 0.2, %v720_v57  ;;  %v698_v0 = vmul.f32 %v1371_v38, %v665_v58  ;;  %v1064_v1 = vadd.f32 %v1063_v62, %v1062_v59 }
 0x144   : > { %v985_v2 = vpop.f32.mrb[30].mxu0 }
 0x145   : > { %v768_v3 = vsel %vm736_vm12, %v720_v57, %v752_v63  ;;  %v721_v4 = vadd.f32 %v1376_v43, %v698_v0  ;;  %v670_v5 = vadd.f32 %v1064_v1, %v984_v61  ;;  %v1065_v6 = vpop.f32.mrb[30].mxu1  ;;  %v986_v7 = vpop.f32.mrb[31].mxu0 }
 0x146   : > { %784 = vst [vmem:[%s1384_s7 + $0x60] sm:$0xff] %v768_v3  ;;  %v987_v8 = vadd.f32 %v986_v7, %v985_v2  ;;  %v1066_v9 = vpop.f32.mrb[31].mxu1 }
 0x147   : > { %vm737_vm13 = vcmp.gt.f32.partialorder %v721_v4, 0.0  ;;  %v753_v10 = vmul.f32 0.2, %v721_v4  ;;  %v699_v11 = vmul.f32 %v1371_v38, %v670_v5  ;;  %v1067_v12 = vadd.f32 %v1066_v9, %v1065_v6 }
 0x149   : > { %v769_v13 = vsel %vm737_vm13, %v721_v4, %v753_v10  ;;  %v722_v14 = vadd.f32 %v1376_v43, %v699_v11  ;;  %v675_v15 = vadd.f32 %v1067_v12, %v987_v8 }
 0x14a   : > { %785 = vst [vmem:[%s1384_s7 + $0x68] sm:$0xff] %v769_v13 }
 0x14b   : > { %vm738_vm14 = vcmp.gt.f32.partialorder %v722_v14, 0.0  ;;  %v754_v16 = vmul.f32 0.2, %v722_v14  ;;  %v700_v17 = vmul.f32 %v1371_v38, %v675_v15 }
 0x14d   : > { %v770_v18 = vsel %vm738_vm14, %v722_v14, %v754_v16  ;;  %v723_v19 = vadd.f32 %v1376_v43, %v700_v17 }
 0x14e   : > { %786 = vst [vmem:[%s1384_s7 + $0x70] sm:$0xff] %v770_v18 }
 0x14f   : > { %vm739_vm15 = vcmp.gt.f32.partialorder %v723_v19, 0.0  ;;  %v755_v20 = vmul.f32 0.2, %v723_v19 }
 0x151   : > { %v771_v21 = vsel %vm739_vm15, %v723_v19, %v755_v20 }
 0x152   : > { %787 = vst [vmem:[%s1384_s7 + $0x78] sm:$0xff] %v771_v21 }
 0x153 PF: > { %s14_s17 = sadd.s32 1, %s1178_s17   ;;  %s1446_s15 = smov %s1174_s16 }
 0x154   : > { %p11_p5 = scmp.ge.s32.totalorder %s14_s17, 6   ;;  %s1447_s16 = smov %s1449_s18 }
 0x156   :  { %13 = sbr.rel (!%p11_p5) target bundleno = 2 (0x2), region = 69 }

// kernel: _lambda_.13
= control target key start
LH: loop header
LB: loop body
LE: loop exit
PB: predicated region body
PF: predicated region fallthrough
CT: control target
= control target key end

     0   :  { %s1098_s15 = smov 0   ;;  %s1100_s16 = smov 0   ;;  %s1395_s0 = inlined_call_operand.vmem [shape: f32[4,512,256], index: 0, kind: input, shape index: {}]   ;;  %s1396_s1 = inlined_call_operand.vmem [shape: f32[4,256,128], index: 1, kind: input, shape index: {}]   ;;  %s1397_s2 = inlined_call_operand.vmem [shape: f32[1,128], index: 2, kind: input, shape index: {}]   ;;  %s1398_s3 = inlined_call_operand.vmem [shape: f32[1,128], index: 3, kind: input, shape index: {}]   ;;  %s1399_s4 = inlined_call_operand.vmem [shape: f32[4,512,128], index: 4, kind: output, shape index: {}]  }
   0x1   :  { %s1102_s17 = smov 0   ;;  %s1104_s18 = smov 0  }
   0x2   :  { %s1106_s19 = smov 0  }
   0x3 LB: > { %s23_s20 = sadd.s32 1, %s1062_s17  ;;  %s26_s21 = sadd.s32 1, %s1066_s18  ;;  %s1070_s19 = sphi %s1106_s19, %s14_s19   ;;  %s1066_s18 = sphi %s1104_s18, %s1403_s18   ;;  %s1062_s17 = sphi %s1102_s17, %s1402_s17   ;;  %s1058_s16 = sphi %s1100_s16, %s1401_s16   ;;  %s1054_s15 = sphi %s1098_s15, %s1400_s15  }
   0x4   : > { %p24_p0 = scmp.ge.s32.totalorder %s23_s20, 2  ;;  %p832_p1 = scmp.ge.s32.totalorder %s1070_s19, 1 }
   0x5   : > { %p194_p2 = scmp.lt.s32.totalorder %s1070_s19, 9 }
   0x6   : > { %s1405_s20 = smov (%p24_p0, %s23_s20), 0  ;;  %s1407_s21 = smov (!%p24_p0, %s26_s21), %s1066_s18 }
   0x7   : > { %p195_p3 = pnand %p832_p1, %p194_p2  ;;  %p28_p4 = scmp.ge.s32.totalorder %s1407_s21, 4 }
   0x8   : > { %s833_s22 = sshll.u32 (!%p195_p3), %s1054_s15, 5  ;;  %p235_p5 = scmp.lt.s32.totalorder (!%p195_p3), %s1058_s16, 3  ;;  %v1072_v0 = vmov (!%p195_p3), 0.0|0.0  }
   0x9   : > { %s1409_s21 = smov (%p28_p4, %s1407_s21), 0  ;;  %198 = sbr.rel (%p195_p3) target bundleno = 374 (0x176), region = 36 }
   0xa   : > { %847 = vmatprep.subr.bf16.mxu0 (!%p195_p3), %v1072_v0  ;;  %895 = vmatprep.subr.bf16.mxu1 (!%p195_p3), %v1072_v0  ;;  %p237_p6 = scmp.lt.s32.totalorder (!%p195_p3), %s833_s22, 63 }
  0x10   : > { %s1411_s16 = smov (!%p235_p5, %s1058_s16), 3  ;;  %s1413_s22 = smov (!%p237_p6, %s833_s22), 63 }
  0x11   : > { %s835_s23 = sshll.u32 %s1411_s16, 7  ;;  %s846_s24 = sshll.u32 %s1411_s16, 8 }
  0x12   : > { %s834_s25 = sshll.u32 %s1413_s22, 1  ;;  %s1133_s28 = scalar_lea.vmem %s1396_s1, %s846_s24 }
  0x13   : > { %s840_s29 = sshll.u32 %s1411_s16, 6  ;;  %v324_v1 = vld [vmem:[%s1133_s28] sm:$0xff]  ;;  %v325_v2 = vld [vmem:[%s1133_s28 + $0x8] sm:$0xff]  ;;  %v326_v3 = vld [vmem:[%s1133_s28 + $0x10] sm:$0xff]  ;;  %s241_s30 = sadd.s32 %s835_s23, %s834_s25 }
  0x14   : > { %s1138_s5 = sadd.s32 %s840_s29, %s1413_s22  ;;  %v848_v4 = vpack.c.bf16 %v325_v2, %v324_v1  ;;  %v327_v5 = vld [vmem:[%s1133_s28 + $0x18] sm:$0xff]  ;;  %s836_s6 = sshll.u32 %s241_s30, 3  ;;  %v328_v7 = vld [vmem:[%s1133_s28 + $0x20] sm:$0xff]  ;;  %v329_v8 = vld [vmem:[%s1133_s28 + $0x28] sm:$0xff] }
  0x15   : > { %v851_v6 = vpack.c.bf16 %v327_v5, %v326_v3  ;;  %s1148_s9 = scalar_lea.vmem %s1395_s0, %s836_s6  ;;  %v854_v9 = vpack.c.bf16 %v329_v8, %v328_v7  ;;  %v330_v10 = vld [vmem:[%s1133_s28 + $0x30] sm:$0xff]  ;;  %v331_v11 = vld [vmem:[%s1133_s28 + $0x38] sm:$0xff]  ;;  %v332_v15 = vld [vmem:[%s1133_s28 + $0x40] sm:$0xff]  ;;  %s841_s14 = sshll.u32 %s1138_s5, 3 }
  0x16   : > { %849 = vmatpush1.bf16.msra.mxu0 %v848_v4  ;;  %911 = vmatpush1.bf16.msra.mxu1 %v848_v4  ;;  %v261_v12 = vld [vmem:[%s1148_s9 + $0x8] sm:$0xff]  ;;  %v857_v13 = vpack.c.bf16 %v331_v11, %v330_v10  ;;  %v334_v18 = vld [vmem:[%s1133_s28 + $0x50] sm:$0xff]  ;;  %v335_v19 = vld [vmem:[%s1133_s28 + $0x58] sm:$0xff]  ;;  %s1294_s22 = scalar_lea.vmem %s1399_s4, %s841_s14 }
  0x17   : > { %850 = vmatprep.subr.bf16.mxu0 %v1072_v0  ;;  %896 = vmatprep.subr.bf16.mxu1 %v1072_v0  ;;  %v293_v14 = vld [vmem:[%s1148_s9 + $0x108] sm:$0xff]  ;;  %v863_v20 = vpack.c.bf16 %v335_v19, %v334_v18  ;;  %v336_v21 = vld [vmem:[%s1133_s28 + $0x60] sm:$0xff]  ;;  %v338_v24 = vld [vmem:[%s1133_s28 + $0x70] sm:$0xff] }
  0x18   : > { %v333_v16 = vld [vmem:[%s1133_s28 + $0x48] sm:$0xff]  ;;  %420 = vmatprep.mubr.f32.mxu0 %v261_v12  ;;  %500 = vmatprep.mubr.f32.mxu1 %v293_v14  ;;  %v339_v25 = vld [vmem:[%s1133_s28 + $0x78] sm:$0xff]  ;;  %v340_v27 = vld [vmem:[%s1133_s28 + $0x80] sm:$0xff] }
  0x19   : > { %v860_v17 = vpack.c.bf16 %v333_v16, %v332_v15  ;;  %v337_v22 = vld [vmem:[%s1133_s28 + $0x68] sm:$0xff]  ;;  %v869_v26 = vpack.c.bf16 %v339_v25, %v338_v24  ;;  %v342_v30 = vld [vmem:[%s1133_s28 + $0x90] sm:$0xff]  ;;  %v343_v31 = vld [vmem:[%s1133_s28 + $0x98] sm:$0xff] }
  0x1a   : > { %852 = vmatpush1.bf16.msra.mxu0 %v851_v6  ;;  %912 = vmatpush1.bf16.msra.mxu1 %v851_v6  ;;  %v866_v23 = vpack.c.bf16 %v337_v22, %v336_v21  ;;  %v341_v28 = vld [vmem:[%s1133_s28 + $0x88] sm:$0xff]  ;;  %v875_v32 = vpack.c.bf16 %v343_v31, %v342_v30  ;;  %v344_v33 = vld [vmem:[%s1133_s28 + $0xa0] sm:$0xff]  ;;  %v346_v36 = vld [vmem:[%s1133_s28 + $0xb0] sm:$0xff] }
  0x1b   : > { %853 = vmatprep.subr.bf16.mxu0 %v1072_v0  ;;  %897 = vmatprep.subr.bf16.mxu1 %v1072_v0  ;;  %v872_v29 = vpack.c.bf16 %v341_v28, %v340_v27  ;;  %v345_v34 = vld [vmem:[%s1133_s28 + $0xa8] sm:$0xff]  ;;  %v347_v37 = vld [vmem:[%s1133_s28 + $0xb8] sm:$0xff]  ;;  %v348_v39 = vld [vmem:[%s1133_s28 + $0xc0] sm:$0xff] }
  0x1c   : > { %v878_v35 = vpack.c.bf16 %v345_v34, %v344_v33  ;;  %v881_v38 = vpack.c.bf16 %v347_v37, %v346_v36  ;;  %v349_v40 = vld [vmem:[%s1133_s28 + $0xc8] sm:$0xff]  ;;  %v350_v42 = vld [vmem:[%s1133_s28 + $0xd0] sm:$0xff]  ;;  %v351_v43 = vld [vmem:[%s1133_s28 + $0xd8] sm:$0xff] }
  0x1d   : > { %v884_v41 = vpack.c.bf16 %v349_v40, %v348_v39  ;;  %v887_v44 = vpack.c.bf16 %v351_v43, %v350_v42  ;;  %v352_v45 = vld [vmem:[%s1133_s28 + $0xe0] sm:$0xff]  ;;  %v353_v46 = vld [vmem:[%s1133_s28 + $0xe8] sm:$0xff]  ;;  %v354_v48 = vld [vmem:[%s1133_s28 + $0xf0] sm:$0xff] }
  0x1e   : > { %855 = vmatpush1.bf16.msra.mxu0 %v854_v9  ;;  %913 = vmatpush1.bf16.msra.mxu1 %v854_v9  ;;  %v890_v47 = vpack.c.bf16 %v353_v46, %v352_v45  ;;  %v355_v49 = vld [vmem:[%s1133_s28 + $0xf8] sm:$0xff]  ;;  %v260_v51 = vld [vmem:[%s1148_s9] sm:$0xff]  ;;  %v262_v55 = vld [vmem:[%s1148_s9 + $0x10] sm:$0xff] }
  0x1f   : > { %856 = vmatprep.subr.bf16.mxu0 %v1072_v0  ;;  %898 = vmatprep.subr.bf16.mxu1 %v1072_v0  ;;  %v893_v50 = vpack.c.bf16 %v355_v49, %v354_v48  ;;  %v292_v52 = vld [vmem:[%s1148_s9 + $0x100] sm:$0xff]  ;;  %v263_v53 = vld [vmem:[%s1148_s9 + $0x18] sm:$0xff]  ;;  %v294_v56 = vld [vmem:[%s1148_s9 + $0x110] sm:$0xff] }
  0x20   : > { %v295_v54 = vld [vmem:[%s1148_s9 + $0x118] sm:$0xff]  ;;  %v265_v57 = vld [vmem:[%s1148_s9 + $0x28] sm:$0xff]  ;;  %v264_v59 = vld [vmem:[%s1148_s9 + $0x20] sm:$0xff] }
  0x21   : > { %v297_v58 = vld [vmem:[%s1148_s9 + $0x128] sm:$0xff]  ;;  %v296_v60 = vld [vmem:[%s1148_s9 + $0x120] sm:$0xff]  ;;  %v267_v61 = vld [vmem:[%s1148_s9 + $0x38] sm:$0xff] }
  0x22   : > { %858 = vmatpush1.bf16.msra.mxu0 %v857_v13  ;;  %914 = vmatpush1.bf16.msra.mxu1 %v857_v13  ;;  %v299_v62 = vld [vmem:[%s1148_s9 + $0x138] sm:$0xff]  ;;  %v266_v63 = vld [vmem:[%s1148_s9 + $0x30] sm:$0xff]  ;;  %v269_v1 = vld [vmem:[%s1148_s9 + $0x48] sm:$0xff] }
  0x23   : > { %859 = vmatprep.subr.bf16.mxu0 %v1072_v0  ;;  %899 = vmatprep.subr.bf16.mxu1 %v1072_v0  ;;  %v301_v2 = vld [vmem:[%s1148_s9 + $0x148] sm:$0xff]  ;;  %v268_v3 = vld [vmem:[%s1148_s9 + $0x40] sm:$0xff]  ;;  %v271_v5 = vld [vmem:[%s1148_s9 + $0x58] sm:$0xff] }
  0x24   : > { %v300_v4 = vld [vmem:[%s1148_s9 + $0x140] sm:$0xff]  ;;  %v303_v6 = vld [vmem:[%s1148_s9 + $0x158] sm:$0xff]  ;;  %v270_v7 = vld [vmem:[%s1148_s9 + $0x50] sm:$0xff] }
  0x25   : > { %v302_v8 = vld [vmem:[%s1148_s9 + $0x150] sm:$0xff]  ;;  %v273_v9 = vld [vmem:[%s1148_s9 + $0x68] sm:$0xff]  ;;  %v272_v11 = vld [vmem:[%s1148_s9 + $0x60] sm:$0xff] }
  0x26   : > { %861 = vmatpush1.bf16.msra.mxu0 %v860_v17  ;;  %915 = vmatpush1.bf16.msra.mxu1 %v860_v17  ;;  %v305_v10 = vld [vmem:[%s1148_s9 + $0x168] sm:$0xff]  ;;  %v304_v12 = vld [vmem:[%s1148_s9 + $0x160] sm:$0xff]  ;;  %v275_v13 = vld [vmem:[%s1148_s9 + $0x78] sm:$0xff] }
  0x27   : > { %862 = vmatprep.subr.bf16.mxu0 %v1072_v0  ;;  %900 = vmatprep.subr.bf16.mxu1 %v1072_v0  ;;  %v307_v14 = vld [vmem:[%s1148_s9 + $0x178] sm:$0xff]  ;;  %v274_v15 = vld [vmem:[%s1148_s9 + $0x70] sm:$0xff]  ;;  %v277_v17 = vld [vmem:[%s1148_s9 + $0x88] sm:$0xff] }
  0x28   : > { %v306_v16 = vld [vmem:[%s1148_s9 + $0x170] sm:$0xff]  ;;  %v309_v18 = vld [vmem:[%s1148_s9 + $0x188] sm:$0xff]  ;;  %v276_v19 = vld [vmem:[%s1148_s9 + $0x80] sm:$0xff] }
  0x29   : > { %v279_v21 = vld [vmem:[%s1148_s9 + $0x98] sm:$0xff]  ;;  %v310_v24 = vld [vmem:[%s1148_s9 + $0x190] sm:$0xff]  ;;  %v281_v25 = vld [vmem:[%s1148_s9 + $0xa8] sm:$0xff] }
  0x2a   : > { %864 = vmatpush1.bf16.msra.mxu0 %v863_v20  ;;  %916 = vmatpush1.bf16.msra.mxu1 %v863_v20  ;;  %v308_v20 = vld [vmem:[%s1148_s9 + $0x180] sm:$0xff]  ;;  %v311_v22 = vld [vmem:[%s1148_s9 + $0x198] sm:$0xff]  ;;  %v282_v31 = vld [vmem:[%s1148_s9 + $0xb0] sm:$0xff] }
  0x2b   : > { %865 = vmatprep.subr.bf16.mxu0 %v1072_v0  ;;  %901 = vmatprep.subr.bf16.mxu1 %v1072_v0  ;;  %v280_v27 = vld [vmem:[%s1148_s9 + $0xa0] sm:$0xff]  ;;  %v315_v30 = vld [vmem:[%s1148_s9 + $0x1b8] sm:$0xff]  ;;  %v285_v33 = vld [vmem:[%s1148_s9 + $0xc8] sm:$0xff] }
  0x2c   : > { %v312_v28 = vld [vmem:[%s1148_s9 + $0x1a0] sm:$0xff]  ;;  %v317_v34 = vld [vmem:[%s1148_s9 + $0x1c8] sm:$0xff]  ;;  %v287_v37 = vld [vmem:[%s1148_s9 + $0xd8] sm:$0xff] }
  0x2d   : > { %v316_v36 = vld [vmem:[%s1148_s9 + $0x1c0] sm:$0xff]  ;;  %v286_v39 = vld [vmem:[%s1148_s9 + $0xd0] sm:$0xff]  ;;  %v321_v42 = vld [vmem:[%s1148_s9 + $0x1e8] sm:$0xff] }
  0x2e   : > { %867 = vmatpush1.bf16.msra.mxu0 %v866_v23  ;;  %917 = vmatpush1.bf16.msra.mxu1 %v866_v23  ;;  %v278_v23 = vld [vmem:[%s1148_s9 + $0x90] sm:$0xff]  ;;  %v288_v43 = vld [vmem:[%s1148_s9 + $0xe0] sm:$0xff]  ;;  %v291_v45 = vld [vmem:[%s1148_s9 + $0xf8] sm:$0xff] }
  0x2f   : > { %868 = vmatprep.subr.bf16.mxu0 %v1072_v0  ;;  %902 = vmatprep.subr.bf16.mxu1 %v1072_v0  ;;  %v318_v40 = vld [vmem:[%s1148_s9 + $0x1d0] sm:$0xff]  ;;  %v323_v46 = vld [vmem:[%s1148_s9 + $0x1f8] sm:$0xff]  ;;  %v1271_v49 = vld [vmem:[%s1397_s2] ss:$0 sm:$0xff] }
  0x30   : > { %v322_v48 = vld [vmem:[%s1148_s9 + $0x1f0] sm:$0xff] }
  0x32   : > { %870 = vmatpush1.bf16.msra.mxu0 %v869_v26  ;;  %918 = vmatpush1.bf16.msra.mxu1 %v869_v26  ;;  %v313_v26 = vld [vmem:[%s1148_s9 + $0x1a8] sm:$0xff] }
  0x33   : > { %871 = vmatprep.subr.bf16.mxu0 %v1072_v0  ;;  %903 = vmatprep.subr.bf16.mxu1 %v1072_v0 }
  0x36   : > { %873 = vmatpush1.bf16.msra.mxu0 %v872_v29  ;;  %919 = vmatpush1.bf16.msra.mxu1 %v872_v29  ;;  %v283_v29 = vld [vmem:[%s1148_s9 + $0xb8] sm:$0xff] }
  0x37   : > { %874 = vmatprep.subr.bf16.mxu0 %v1072_v0  ;;  %904 = vmatprep.subr.bf16.mxu1 %v1072_v0 }
  0x3a   : > { %876 = vmatpush1.bf16.msra.mxu0 %v875_v32  ;;  %920 = vmatpush1.bf16.msra.mxu1 %v875_v32  ;;  %v314_v32 = vld [vmem:[%s1148_s9 + $0x1b0] sm:$0xff] }
  0x3b   : > { %877 = vmatprep.subr.bf16.mxu0 %v1072_v0  ;;  %905 = vmatprep.subr.bf16.mxu1 %v1072_v0 }
  0x3e   : > { %879 = vmatpush1.bf16.msra.mxu0 %v878_v35  ;;  %921 = vmatpush1.bf16.msra.mxu1 %v878_v35  ;;  %v284_v35 = vld [vmem:[%s1148_s9 + $0xc0] sm:$0xff] }
  0x3f   : > { %880 = vmatprep.subr.bf16.mxu0 %v1072_v0  ;;  %906 = vmatprep.subr.bf16.mxu1 %v1072_v0 }
  0x42   : > { %882 = vmatpush1.bf16.msra.mxu0 %v881_v38  ;;  %922 = vmatpush1.bf16.msra.mxu1 %v881_v38  ;;  %v319_v38 = vld [vmem:[%s1148_s9 + $0x1d8] sm:$0xff] }
  0x43   : > { %883 = vmatprep.subr.bf16.mxu0 %v1072_v0  ;;  %907 = vmatprep.subr.bf16.mxu1 %v1072_v0 }
  0x46   : > { %885 = vmatpush1.bf16.msra.mxu0 %v884_v41  ;;  %923 = vmatpush1.bf16.msra.mxu1 %v884_v41  ;;  %v289_v41 = vld [vmem:[%s1148_s9 + $0xe8] sm:$0xff] }
  0x47   : > { %886 = vmatprep.subr.bf16.mxu0 %v1072_v0  ;;  %908 = vmatprep.subr.bf16.mxu1 %v1072_v0 }
  0x4a   : > { %888 = vmatpush1.bf16.msra.mxu0 %v887_v44  ;;  %924 = vmatpush1.bf16.msra.mxu1 %v887_v44  ;;  %v320_v44 = vld [vmem:[%s1148_s9 + $0x1e0] sm:$0xff] }
  0x4b   : > { %889 = vmatprep.subr.bf16.mxu0 %v1072_v0  ;;  %909 = vmatprep.subr.bf16.mxu1 %v1072_v0 }
  0x4e   : > { %891 = vmatpush1.bf16.msra.mxu0 %v890_v47  ;;  %925 = vmatpush1.bf16.msra.mxu1 %v890_v47  ;;  %v290_v47 = vld [vmem:[%s1148_s9 + $0xf0] sm:$0xff] }
  0x4f   : > { %892 = vmatprep.subr.bf16.mxu0 %v1072_v0  ;;  %910 = vmatprep.subr.bf16.mxu1 %v1072_v0  ;;  %v298_v0 = vld [vmem:[%s1148_s9 + $0x130] sm:$0xff] }
  0x52   : > { %894 = vmatpush1.bf16.msra.mxu0 %v893_v50  ;;  %926 = vmatpush1.bf16.msra.mxu1 %v893_v50 }
  0x55   : > { %421 = vmatmul.mubr.f32.vlgmr.msra.gmra.mrb[0].mxu0 %v260_v51  ;;  %501 = vmatmul.mubr.f32.vlgmr.msra.gmra.mrb[0].mxu1 %v292_v52  ;;  %v1276_v51 = vld [vmem:[%s1398_s3] ss:$0 sm:$0xff] }
  0x56   : > { %425 = vmatprep.mubr.f32.mxu0 %v263_v53  ;;  %505 = vmatprep.mubr.f32.mxu1 %v295_v54 }
  0x59   : > { %426 = vmatmul.mubr.f32.gmra.mrb[2].mxu0 %v262_v55  ;;  %506 = vmatmul.mubr.f32.gmra.mrb[2].mxu1 %v294_v56 }
  0x5a   : > { %430 = vmatprep.mubr.f32.mxu0 %v265_v57  ;;  %510 = vmatprep.mubr.f32.mxu1 %v297_v58 }
  0x5d   : > { %431 = vmatmul.mubr.f32.gmra.mrb[4].mxu0 %v264_v59  ;;  %511 = vmatmul.mubr.f32.gmra.mrb[4].mxu1 %v296_v60 }
  0x5e   : > { %435 = vmatprep.mubr.f32.mxu0 %v267_v61  ;;  %515 = vmatprep.mubr.f32.mxu1 %v299_v62 }
  0x61   : > { %436 = vmatmul.mubr.f32.gmra.mrb[6].mxu0 %v266_v63  ;;  %516 = vmatmul.mubr.f32.gmra.mrb[6].mxu1 %v298_v0 }
  0x62   : > { %440 = vmatprep.mubr.f32.mxu0 %v269_v1  ;;  %520 = vmatprep.mubr.f32.mxu1 %v301_v2 }
  0x65   : > { %441 = vmatmul.mubr.f32.gmra.mrb[8].mxu0 %v268_v3  ;;  %521 = vmatmul.mubr.f32.gmra.mrb[8].mxu1 %v300_v4 }
  0x66   : > { %445 = vmatprep.mubr.f32.mxu0 %v271_v5  ;;  %525 = vmatprep.mubr.f32.mxu1 %v303_v6 }
  0x69   : > { %446 = vmatmul.mubr.f32.gmra.mrb[10].mxu0 %v270_v7  ;;  %526 = vmatmul.mubr.f32.gmra.mrb[10].mxu1 %v302_v8 }
  0x6a   : > { %450 = vmatprep.mubr.f32.mxu0 %v273_v9  ;;  %530 = vmatprep.mubr.f32.mxu1 %v305_v10 }
  0x6d   : > { %451 = vmatmul.mubr.f32.gmra.mrb[12].mxu0 %v272_v11  ;;  %531 = vmatmul.mubr.f32.gmra.mrb[12].mxu1 %v304_v12 }
  0x6e   : > { %455 = vmatprep.mubr.f32.mxu0 %v275_v13  ;;  %535 = vmatprep.mubr.f32.mxu1 %v307_v14 }
  0x71   : > { %456 = vmatmul.mubr.f32.gmra.mrb[14].mxu0 %v274_v15  ;;  %536 = vmatmul.mubr.f32.gmra.mrb[14].mxu1 %v306_v16 }
  0x72   : > { %460 = vmatprep.mubr.f32.mxu0 %v277_v17  ;;  %540 = vmatprep.mubr.f32.mxu1 %v309_v18 }
  0x75   : > { %461 = vmatmul.mubr.f32.gmra.mrb[16].mxu0 %v276_v19  ;;  %541 = vmatmul.mubr.f32.gmra.mrb[16].mxu1 %v308_v20 }
  0x76   : > { %465 = vmatprep.mubr.f32.mxu0 %v279_v21  ;;  %545 = vmatprep.mubr.f32.mxu1 %v311_v22 }
  0x79   : > { %466 = vmatmul.mubr.f32.gmra.mrb[18].mxu0 %v278_v23  ;;  %546 = vmatmul.mubr.f32.gmra.mrb[18].mxu1 %v310_v24 }
  0x7a   : > { %470 = vmatprep.mubr.f32.mxu0 %v281_v25  ;;  %550 = vmatprep.mubr.f32.mxu1 %v313_v26 }
  0x7d   : > { %471 = vmatmul.mubr.f32.gmra.mrb[20].mxu0 %v280_v27  ;;  %551 = vmatmul.mubr.f32.gmra.mrb[20].mxu1 %v312_v28 }
  0x7e   : > { %475 = vmatprep.mubr.f32.mxu0 %v283_v29  ;;  %555 = vmatprep.mubr.f32.mxu1 %v315_v30 }
  0x81   : > { %476 = vmatmul.mubr.f32.gmra.mrb[22].mxu0 %v282_v31  ;;  %556 = vmatmul.mubr.f32.gmra.mrb[22].mxu1 %v314_v32 }
  0x82   : > { %480 = vmatprep.mubr.f32.mxu0 %v285_v33  ;;  %560 = vmatprep.mubr.f32.mxu1 %v317_v34 }
  0x85   : > { %481 = vmatmul.mubr.f32.gmra.mrb[24].mxu0 %v284_v35  ;;  %561 = vmatmul.mubr.f32.gmra.mrb[24].mxu1 %v316_v36 }
  0x86   : > { %485 = vmatprep.mubr.f32.mxu0 %v287_v37  ;;  %565 = vmatprep.mubr.f32.mxu1 %v319_v38 }
  0x89   : > { %486 = vmatmul.mubr.f32.gmra.mrb[26].mxu0 %v286_v39  ;;  %566 = vmatmul.mubr.f32.gmra.mrb[26].mxu1 %v318_v40 }
  0x8a   : > { %490 = vmatprep.mubr.f32.mxu0 %v289_v41  ;;  %570 = vmatprep.mubr.f32.mxu1 %v321_v42 }
  0x8d   : > { %491 = vmatmul.mubr.f32.gmra.mrb[28].mxu0 %v288_v43  ;;  %571 = vmatmul.mubr.f32.gmra.mrb[28].mxu1 %v320_v44 }
  0x8e   : > { %495 = vmatprep.mubr.f32.mxu0 %v291_v45  ;;  %575 = vmatprep.mubr.f32.mxu1 %v323_v46 }
  0x91   : > { %496 = vmatmul.mubr.f32.gmra.mrb[30].mxu0 %v290_v47  ;;  %576 = vmatmul.mubr.f32.gmra.mrb[30].mxu1 %v322_v48 }
 0x128   : > { %v422_v50 = vpop.f32.mrb[0].mxu0  ;;  %v502_v52 = vpop.f32.mrb[0].mxu1 }
 0x129   : > { %v588_v53 = vmul.f32 %v1271_v49, %v422_v50  ;;  %v604_v54 = vmul.f32 %v1271_v49, %v502_v52  ;;  %v424_v55 = vpop.f32.mrb[1].mxu0  ;;  %v504_v56 = vpop.f32.mrb[1].mxu1 }
 0x12b   : > { %v627_v57 = vadd.f32 %v1276_v51, %v588_v53  ;;  %v643_v58 = vadd.f32 %v1276_v51, %v604_v54 }
 0x12c   : > { %v427_v59 = vpop.f32.mrb[2].mxu0  ;;  %v507_v60 = vpop.f32.mrb[2].mxu1 }
 0x12d   : > { %968 = vtanh.f32 %v627_v57  ;;  %v589_v61 = vmul.f32 %v1271_v49, %v427_v59  ;;  %v605_v62 = vmul.f32 %v1271_v49, %v507_v60  ;;  %v429_v63 = vpop.f32.mrb[3].mxu0  ;;  %v509_v0 = vpop.f32.mrb[3].mxu1 }
 0x12e   : > { %970 = vtanh.f32 %v643_v58 }
 0x12f   : > { %v628_v1 = vadd.f32 %v1276_v51, %v589_v61  ;;  %v644_v2 = vadd.f32 %v1276_v51, %v605_v62 }
 0x130   : > { %v432_v3 = vpop.f32.mrb[4].mxu0  ;;  %v512_v4 = vpop.f32.mrb[4].mxu1 }
 0x131   : > { %972 = vtanh.f32 %v628_v1  ;;  %v590_v5 = vmul.f32 %v1271_v49, %v432_v3  ;;  %v606_v6 = vmul.f32 %v1271_v49, %v512_v4  ;;  %v434_v7 = vpop.f32.mrb[5].mxu0  ;;  %v514_v8 = vpop.f32.mrb[5].mxu1 }
 0x132   : > { %974 = vtanh.f32 %v644_v2 }
 0x133   : > { %v629_v9 = vadd.f32 %v1276_v51, %v590_v5  ;;  %v645_v10 = vadd.f32 %v1276_v51, %v606_v6 }
 0x134   : > { %v437_v11 = vpop.f32.mrb[6].mxu0  ;;  %v517_v12 = vpop.f32.mrb[6].mxu1 }
 0x135   : > { %976 = vtanh.f32 %v629_v9  ;;  %v591_v13 = vmul.f32 %v1271_v49, %v437_v11  ;;  %v607_v14 = vmul.f32 %v1271_v49, %v517_v12  ;;  %v439_v15 = vpop.f32.mrb[7].mxu0  ;;  %v519_v16 = vpop.f32.mrb[7].mxu1 }
 0x136   : > { %978 = vtanh.f32 %v645_v10 }
 0x137   : > { %v969_v17 = vpop.eup %968  ;;  %v630_v18 = vadd.f32 %v1276_v51, %v591_v13  ;;  %v646_v19 = vadd.f32 %v1276_v51, %v607_v14 }
 0x138   : > { %v971_v20 = vpop.eup %970  ;;  %691 = vst [vmem:[%s1294_s22] sm:$0xff] %v969_v17  ;;  %v442_v21 = vpop.f32.mrb[8].mxu0 }
 0x139   : > { %v522_v22 = vpop.f32.mrb[8].mxu1  ;;  %707 = vst [vmem:[%s1294_s22 + $0x80] sm:$0xff] %v971_v20  ;;  %980 = vtanh.f32 %v630_v18  ;;  %v592_v23 = vmul.f32 %v1271_v49, %v442_v21  ;;  %v444_v25 = vpop.f32.mrb[9].mxu0 }
 0x13a   : > { %v608_v24 = vmul.f32 %v1271_v49, %v522_v22  ;;  %v524_v26 = vpop.f32.mrb[9].mxu1  ;;  %982 = vtanh.f32 %v646_v19 }
 0x13b   : > { %v973_v27 = vpop.eup %972  ;;  %v631_v28 = vadd.f32 %v1276_v51, %v592_v23 }
 0x13c   : > { %v647_v29 = vadd.f32 %v1276_v51, %v608_v24  ;;  %v975_v30 = vpop.eup %974  ;;  %692 = vst [vmem:[%s1294_s22 + $0x8] sm:$0xff] %v973_v27  ;;  %v447_v31 = vpop.f32.mrb[10].mxu0 }
 0x13d   : > { %v527_v32 = vpop.f32.mrb[10].mxu1  ;;  %708 = vst [vmem:[%s1294_s22 + $0x88] sm:$0xff] %v975_v30  ;;  %984 = vtanh.f32 %v631_v28  ;;  %v593_v33 = vmul.f32 %v1271_v49, %v447_v31  ;;  %v449_v35 = vpop.f32.mrb[11].mxu0 }
 0x13e   : > { %v609_v34 = vmul.f32 %v1271_v49, %v527_v32  ;;  %v529_v36 = vpop.f32.mrb[11].mxu1  ;;  %986 = vtanh.f32 %v647_v29 }
 0x13f   : > { %v977_v37 = vpop.eup %976  ;;  %v632_v38 = vadd.f32 %v1276_v51, %v593_v33 }
 0x140   : > { %v648_v39 = vadd.f32 %v1276_v51, %v609_v34  ;;  %v979_v40 = vpop.eup %978  ;;  %693 = vst [vmem:[%s1294_s22 + $0x10] sm:$0xff] %v977_v37  ;;  %v452_v41 = vpop.f32.mrb[12].mxu0 }
 0x141   : > { %v532_v42 = vpop.f32.mrb[12].mxu1  ;;  %709 = vst [vmem:[%s1294_s22 + $0x90] sm:$0xff] %v979_v40  ;;  %988 = vtanh.f32 %v632_v38  ;;  %v594_v43 = vmul.f32 %v1271_v49, %v452_v41  ;;  %v454_v45 = vpop.f32.mrb[13].mxu0 }
 0x142   : > { %v610_v44 = vmul.f32 %v1271_v49, %v532_v42  ;;  %v534_v46 = vpop.f32.mrb[13].mxu1  ;;  %990 = vtanh.f32 %v648_v39 }
 0x143   : > { %v981_v47 = vpop.eup %980  ;;  %v633_v48 = vadd.f32 %v1276_v51, %v594_v43 }
 0x144   : > { %v649_v50 = vadd.f32 %v1276_v51, %v610_v44  ;;  %v983_v52 = vpop.eup %982  ;;  %694 = vst [vmem:[%s1294_s22 + $0x18] sm:$0xff] %v981_v47  ;;  %v457_v53 = vpop.f32.mrb[14].mxu0 }
 0x145   : > { %v537_v54 = vpop.f32.mrb[14].mxu1  ;;  %710 = vst [vmem:[%s1294_s22 + $0x98] sm:$0xff] %v983_v52  ;;  %992 = vtanh.f32 %v633_v48  ;;  %v595_v55 = vmul.f32 %v1271_v49, %v457_v53  ;;  %v459_v57 = vpop.f32.mrb[15].mxu0 }
 0x146   : > { %v611_v56 = vmul.f32 %v1271_v49, %v537_v54  ;;  %v539_v58 = vpop.f32.mrb[15].mxu1  ;;  %994 = vtanh.f32 %v649_v50 }
 0x147   : > { %v985_v59 = vpop.eup %984  ;;  %v634_v60 = vadd.f32 %v1276_v51, %v595_v55 }
 0x148   : > { %v650_v61 = vadd.f32 %v1276_v51, %v611_v56  ;;  %v987_v62 = vpop.eup %986  ;;  %695 = vst [vmem:[%s1294_s22 + $0x20] sm:$0xff] %v985_v59  ;;  %v462_v63 = vpop.f32.mrb[16].mxu0 }
 0x149   : > { %v542_v0 = vpop.f32.mrb[16].mxu1  ;;  %711 = vst [vmem:[%s1294_s22 + $0xa0] sm:$0xff] %v987_v62  ;;  %996 = vtanh.f32 %v634_v60  ;;  %v596_v1 = vmul.f32 %v1271_v49, %v462_v63  ;;  %v464_v3 = vpop.f32.mrb[17].mxu0 }
 0x14a   : > { %v612_v2 = vmul.f32 %v1271_v49, %v542_v0  ;;  %v544_v4 = vpop.f32.mrb[17].mxu1  ;;  %998 = vtanh.f32 %v650_v61 }
 0x14b   : > { %v989_v5 = vpop.eup %988  ;;  %v635_v6 = vadd.f32 %v1276_v51, %v596_v1 }
 0x14c   : > { %v651_v7 = vadd.f32 %v1276_v51, %v612_v2  ;;  %v991_v8 = vpop.eup %990  ;;  %696 = vst [vmem:[%s1294_s22 + $0x28] sm:$0xff] %v989_v5  ;;  %v467_v9 = vpop.f32.mrb[18].mxu0 }
 0x14d   : > { %v547_v10 = vpop.f32.mrb[18].mxu1  ;;  %712 = vst [vmem:[%s1294_s22 + $0xa8] sm:$0xff] %v991_v8  ;;  %1000 = vtanh.f32 %v635_v6  ;;  %v597_v11 = vmul.f32 %v1271_v49, %v467_v9  ;;  %v469_v13 = vpop.f32.mrb[19].mxu0 }
 0x14e   : > { %v613_v12 = vmul.f32 %v1271_v49, %v547_v10  ;;  %v549_v14 = vpop.f32.mrb[19].mxu1  ;;  %1002 = vtanh.f32 %v651_v7 }
 0x14f   : > { %v993_v15 = vpop.eup %992  ;;  %v636_v16 = vadd.f32 %v1276_v51, %v597_v11 }
 0x150   : > { %v652_v17 = vadd.f32 %v1276_v51, %v613_v12  ;;  %v995_v18 = vpop.eup %994  ;;  %697 = vst [vmem:[%s1294_s22 + $0x30] sm:$0xff] %v993_v15  ;;  %v472_v19 = vpop.f32.mrb[20].mxu0 }
 0x151   : > { %v552_v20 = vpop.f32.mrb[20].mxu1  ;;  %713 = vst [vmem:[%s1294_s22 + $0xb0] sm:$0xff] %v995_v18  ;;  %1004 = vtanh.f32 %v636_v16  ;;  %v598_v21 = vmul.f32 %v1271_v49, %v472_v19  ;;  %v474_v23 = vpop.f32.mrb[21].mxu0 }
 0x152   : > { %v614_v22 = vmul.f32 %v1271_v49, %v552_v20  ;;  %v554_v24 = vpop.f32.mrb[21].mxu1  ;;  %1006 = vtanh.f32 %v652_v17 }
 0x153   : > { %v997_v25 = vpop.eup %996  ;;  %v637_v26 = vadd.f32 %v1276_v51, %v598_v21 }
 0x154   : > { %v653_v27 = vadd.f32 %v1276_v51, %v614_v22  ;;  %v999_v28 = vpop.eup %998  ;;  %698 = vst [vmem:[%s1294_s22 + $0x38] sm:$0xff] %v997_v25  ;;  %v477_v29 = vpop.f32.mrb[22].mxu0 }
 0x155   : > { %v557_v30 = vpop.f32.mrb[22].mxu1  ;;  %714 = vst [vmem:[%s1294_s22 + $0xb8] sm:$0xff] %v999_v28  ;;  %1008 = vtanh.f32 %v637_v26  ;;  %v599_v31 = vmul.f32 %v1271_v49, %v477_v29  ;;  %v479_v33 = vpop.f32.mrb[23].mxu0 }
 0x156   : > { %v615_v32 = vmul.f32 %v1271_v49, %v557_v30  ;;  %v559_v34 = vpop.f32.mrb[23].mxu1  ;;  %1010 = vtanh.f32 %v653_v27 }
 0x157   : > { %v1001_v35 = vpop.eup %1000  ;;  %v638_v36 = vadd.f32 %v1276_v51, %v599_v31 }
 0x158   : > { %v654_v37 = vadd.f32 %v1276_v51, %v615_v32  ;;  %v1003_v38 = vpop.eup %1002  ;;  %699 = vst [vmem:[%s1294_s22 + $0x40] sm:$0xff] %v1001_v35  ;;  %v482_v39 = vpop.f32.mrb[24].mxu0 }
 0x159   : > { %v562_v40 = vpop.f32.mrb[24].mxu1  ;;  %715 = vst [vmem:[%s1294_s22 + $0xc0] sm:$0xff] %v1003_v38  ;;  %1012 = vtanh.f32 %v638_v36  ;;  %v600_v41 = vmul.f32 %v1271_v49, %v482_v39  ;;  %v484_v43 = vpop.f32.mrb[25].mxu0 }
 0x15a   : > { %v616_v42 = vmul.f32 %v1271_v49, %v562_v40  ;;  %v564_v44 = vpop.f32.mrb[25].mxu1  ;;  %1014 = vtanh.f32 %v654_v37 }
 0x15b   : > { %v1005_v45 = vpop.eup %1004  ;;  %v639_v46 = vadd.f32 %v1276_v51, %v600_v41 }
 0x15c   : > { %v655_v47 = vadd.f32 %v1276_v51, %v616_v42  ;;  %v1007_v48 = vpop.eup %1006  ;;  %700 = vst [vmem:[%s1294_s22 + $0x48] sm:$0xff] %v1005_v45  ;;  %v487_v50 = vpop.f32.mrb[26].mxu0 }
 0x15d   : > { %v567_v52 = vpop.f32.mrb[26].mxu1  ;;  %716 = vst [vmem:[%s1294_s22 + $0xc8] sm:$0xff] %v1007_v48  ;;  %1016 = vtanh.f32 %v639_v46  ;;  %v601_v53 = vmul.f32 %v1271_v49, %v487_v50  ;;  %v489_v55 = vpop.f32.mrb[27].mxu0 }
 0x15e   : > { %v617_v54 = vmul.f32 %v1271_v49, %v567_v52  ;;  %v569_v56 = vpop.f32.mrb[27].mxu1  ;;  %1018 = vtanh.f32 %v655_v47 }
 0x15f   : > { %v1009_v57 = vpop.eup %1008  ;;  %v640_v58 = vadd.f32 %v1276_v51, %v601_v53 }
 0x160   : > { %v656_v59 = vadd.f32 %v1276_v51, %v617_v54  ;;  %v1011_v60 = vpop.eup %1010  ;;  %701 = vst [vmem:[%s1294_s22 + $0x50] sm:$0xff] %v1009_v57  ;;  %v492_v61 = vpop.f32.mrb[28].mxu0 }
 0x161   : > { %v572_v62 = vpop.f32.mrb[28].mxu1  ;;  %717 = vst [vmem:[%s1294_s22 + $0xd0] sm:$0xff] %v1011_v60  ;;  %1020 = vtanh.f32 %v640_v58  ;;  %v602_v63 = vmul.f32 %v1271_v49, %v492_v61  ;;  %v494_v1 = vpop.f32.mrb[29].mxu0 }
 0x162   : > { %v618_v0 = vmul.f32 %v1271_v49, %v572_v62  ;;  %v574_v2 = vpop.f32.mrb[29].mxu1  ;;  %1022 = vtanh.f32 %v656_v59 }
 0x163   : > { %v1013_v3 = vpop.eup %1012  ;;  %v641_v4 = vadd.f32 %v1276_v51, %v602_v63 }
 0x164   : > { %v657_v5 = vadd.f32 %v1276_v51, %v618_v0  ;;  %v1015_v6 = vpop.eup %1014  ;;  %702 = vst [vmem:[%s1294_s22 + $0x58] sm:$0xff] %v1013_v3  ;;  %v497_v7 = vpop.f32.mrb[30].mxu0 }
 0x165   : > { %v577_v8 = vpop.f32.mrb[30].mxu1  ;;  %718 = vst [vmem:[%s1294_s22 + $0xd8] sm:$0xff] %v1015_v6  ;;  %1024 = vtanh.f32 %v641_v4  ;;  %v603_v9 = vmul.f32 %v1271_v49, %v497_v7  ;;  %v499_v11 = vpop.f32.mrb[31].mxu0 }
 0x166   : > { %v619_v10 = vmul.f32 %v1271_v49, %v577_v8  ;;  %v579_v12 = vpop.f32.mrb[31].mxu1  ;;  %1026 = vtanh.f32 %v657_v5 }
 0x167   : > { %v1017_v13 = vpop.eup %1016  ;;  %v642_v14 = vadd.f32 %v1276_v51, %v603_v9 }
 0x168   : > { %v658_v15 = vadd.f32 %v1276_v51, %v619_v10  ;;  %v1019_v16 = vpop.eup %1018  ;;  %703 = vst [vmem:[%s1294_s22 + $0x60] sm:$0xff] %v1017_v13 }
 0x169   : > { %719 = vst [vmem:[%s1294_s22 + $0xe0] sm:$0xff] %v1019_v16  ;;  %1028 = vtanh.f32 %v642_v14 }
 0x16a   : > { %1030 = vtanh.f32 %v658_v15 }
 0x16b   : > { %v1021_v17 = vpop.eup %1020 }
 0x16c   : > { %v1023_v18 = vpop.eup %1022  ;;  %704 = vst [vmem:[%s1294_s22 + $0x68] sm:$0xff] %v1021_v17 }
 0x16d   : > { %720 = vst [vmem:[%s1294_s22 + $0xe8] sm:$0xff] %v1023_v18 }
 0x16f   : > { %v1025_v49 = vpop.eup %1024 }
 0x170   : > { %v1027_v19 = vpop.eup %1026  ;;  %705 = vst [vmem:[%s1294_s22 + $0x70] sm:$0xff] %v1025_v49 }
 0x171   : > { %721 = vst [vmem:[%s1294_s22 + $0xf0] sm:$0xff] %v1027_v19 }
 0x173   : > { %v1029_v20 = vpop.eup %1028 }
 0x174   : > { %v1031_v21 = vpop.eup %1030  ;;  %706 = vst [vmem:[%s1294_s22 + $0x78] sm:$0xff] %v1029_v20 }
 0x175   : > { %722 = vst [vmem:[%s1294_s22 + $0xf8] sm:$0xff] %v1031_v21 }
 0x176 PF: > { %s14_s19 = sadd.s32 1, %s1070_s19   ;;  %s1400_s15 = smov %s1062_s17 }
 0x177   : > { %p11_p7 = scmp.ge.s32.totalorder %s14_s19, 10   ;;  %s1401_s16 = smov %s1066_s18 }
 0x178   : > { %s1402_s17 = smov %s1405_s20  ;;  %s1403_s18 = smov %s1409_s21 }
 0x179   :  { %13 = sbr.rel (!%p11_p7) target bundleno = 3 (0x3), region = 69 }

</bundles_post_ra>
